<compile_context>
chip_gen: v7x
topology: tpu7x:2x2x1
jax: 0.10.0
libtpu: 0.0.40
codegen_flags: <defaults>
</compile_context>

<pallas_src>
import numpy as np
import jax
import jax.numpy as jnp
from jax.experimental import pallas as pl
from jax.experimental.pallas import tpu as pltpu

# ----------------------------- hyper-parameters -----------------------------
D_MODEL = 32      # model width
D_FF = 64         # FFN hidden width
D_K = 8           # per-head key dim
D_V = 8           # per-head value dim
N_HEADS = 4
N_LAYERS = 2
SRC_LEN = 5
TGT_LEN = 5
SRC_VOCAB = 6
TGT_VOCAB = 7
BATCH = 2
LN_EPS = 1e-5     # torch.nn.LayerNorm default eps
NEG = -1e9        # mask fill value (matches the reference masked_fill_)

N_MHA = 3 * N_LAYERS          # enc-self x2, dec-self x2, dec-enc x2
N_FFN = 2 * N_LAYERS
LANE = 128                    # TPU lane width; all packed slabs / outputs use it
ATT_Q = N_HEADS * TGT_LEN     # head-stacked attention rows (20)
ATT_K = N_HEADS * SRC_LEN     # head-stacked attention cols (20)

assert SRC_LEN == TGT_LEN, "packed attention slab assumes equal src/tgt length"
assert N_MHA * ATT_K <= LANE, "all attention maps must fit in one 128-lane slab"


# ------------------------------- fused kernel --------------------------------
def transformer_kernel(enc_x_ref, dec_x_ref, enc_b_ref, dsb_ref, deb_ref,
                       mha_w_ref, mha_b_ref, ffn_w_ref, ffn_b_ref, proj_ref,
                       logits_ref, attn_ref):
    """Entire transformer forward for a block of batch elements (one grid step)."""
    BB = enc_x_ref.shape[0]

    def layer_norm(x, gamma, beta):
        mean = jnp.mean(x, axis=-1, keepdims=True)
        var = jnp.mean(jnp.square(x - mean), axis=-1, keepdims=True)
        return (x - mean) * jax.lax.rsqrt(var + LN_EPS) * gamma + beta

    def mha(idx, q_in, kv_in, bias, self_attn):
        """Multi-head attention + output proj + residual + LayerNorm.

        Packed weights:  mha_w[idx] = [wq/sqrt(dk) | wk | wv | wo]  (32,128) bf16
                         mha_b[idx] = [[bq/sqrt(dk)|bk|bv|bo],
                                       [gamma|beta|0...]]           (2,128)  f32
        `bias` is the host-built (H*Lq, H*Lk) additive bias carrying both the
        attention mask and -1e9 on every cross-head block.
        """
        w = mha_w_ref[idx]                      # (32, 128) bf16
        b = mha_b_ref[idx]                      # (2, 128)  f32
        lq = q_in.shape[0]

        if self_attn:
            # single fused QKV matmul (scale already folded into the Q columns)
            qkv = jnp.dot(q_in.astype(jnp.bfloat16), w[:, :3 * D_MODEL],
                          preferred_element_type=jnp.float32) + b[0:1, :3 * D_MODEL]
            q = qkv[:, :D_MODEL]
            k = qkv[:, D_MODEL:2 * D_MODEL]
            v = qkv[:, 2 * D_MODEL:3 * D_MODEL]
        else:
            # Q from decoder stream, fused KV from encoder output
            q = jnp.dot(q_in.astype(jnp.bfloat16), w[:, :D_MODEL],
                        preferred_element_type=jnp.float32) + b[0:1, :D_MODEL]
            kv = jnp.dot(kv_in.astype(jnp.bfloat16), w[:, D_MODEL:3 * D_MODEL],
                         preferred_element_type=jnp.float32) + b[0:1, D_MODEL:3 * D_MODEL]
            k = kv[:, :D_MODEL]
            v = kv[:, D_MODEL:2 * D_MODEL]

        # Head-stack along rows -> a single score matmul / softmax / context
        # matmul covers all heads at once.
        qh = jnp.concatenate([q[:, h * D_K:(h + 1) * D_K] for h in range(N_HEADS)],
                             axis=0).astype(jnp.bfloat16)        # (H*lq, d_k)
        kh = jnp.concatenate([k[:, h * D_K:(h + 1) * D_K] for h in range(N_HEADS)],
                             axis=0).astype(jnp.bfloat16)        # (H*lk, d_k)
        vh = jnp.concatenate([v[:, h * D_V:(h + 1) * D_V] for h in range(N_HEADS)],
                             axis=0).astype(jnp.bfloat16)        # (H*lk, d_v)

        sc = jax.lax.dot_general(qh, kh, (((1,), (1,)), ((), ())),
                                 preferred_element_type=jnp.float32) + bias
        sc = sc - jnp.max(sc, axis=-1, keepdims=True)
        e = jnp.exp(sc)                                          # cross-head -> 0
        attn = e / jnp.sum(e, axis=-1, keepdims=True)            # exact softmax

        ctx = jnp.dot(attn.astype(jnp.bfloat16), vh,
                      preferred_element_type=jnp.float32)        # (H*lq, d_v)
        # re-pack heads into lanes and apply W_O with one matmul
        ctx_cat = jnp.concatenate(
            [ctx[h * lq:(h + 1) * lq, :] for h in range(N_HEADS)], axis=1)
        out = jnp.dot(ctx_cat.astype(jnp.bfloat16), w[:, 3 * D_MODEL:4 * D_MODEL],
                      preferred_element_type=jnp.float32) + b[0:1, 3 * D_MODEL:4 * D_MODEL]
        out = layer_norm(out + q_in, b[1:2, :D_MODEL], b[1:2, D_MODEL:2 * D_MODEL])
        return out, attn

    def ffn(idx, x):
        """Position-wise FFN (Conv1d k=1 == matmul) + residual + LayerNorm.

        Packed (lane-dense) weights:
          ffn_w[idx] = [[w1 padded to 128 lanes (32,128)],
                        [w2 padded to (128,128)]]           (160, 128) bf16
          ffn_b[idx] = [[b1|0...], [b2|gamma|beta|0...]]    (2, 128)   f32
        """
        w = ffn_w_ref[idx]
        b = ffn_b_ref[idx]
        h = jnp.maximum(jnp.dot(x.astype(jnp.bfloat16), w[:D_MODEL, :],
                                preferred_element_type=jnp.float32) + b[0:1, :], 0.0)
        y = jnp.dot(h.astype(jnp.bfloat16), w[D_MODEL:, :],
                    preferred_element_type=jnp.float32)[:, :D_MODEL] + b[1:2, :D_MODEL]
        return layer_norm(y + x, b[1:2, D_MODEL:2 * D_MODEL],
                          b[1:2, 2 * D_MODEL:3 * D_MODEL])

    for bb in range(BB):        # static unroll; BB is 1 (v7x) or the full batch
        enc_b = enc_b_ref[bb]                   # (H*SRC, H*SRC) additive bias
        dsb = dsb_ref[bb]                       # (H*TGT, H*TGT)
        deb = deb_ref[bb]                       # (H*TGT, H*SRC)

        enc_attns, dec_self_attns, dec_enc_attns = [], [], []

        # ---------------- encoder ----------------
        x = enc_x_ref[bb]                       # (SRC_LEN, D_MODEL)
        for l in range(N_LAYERS):
            x, a = mha(l, x, x, enc_b, True)
            enc_attns.append(a)
            x = ffn(l, x)
        enc_out = x

        # ---------------- decoder ----------------
        y = dec_x_ref[bb]                       # (TGT_LEN, D_MODEL)
        for l in range(N_LAYERS):
            y, a = mha(N_LAYERS + 2 * l, y, y, dsb, True)
            dec_self_attns.append(a)
            y, a = mha(N_LAYERS + 2 * l + 1, y, enc_out, deb, False)
            dec_enc_attns.append(a)
            y = ffn(N_LAYERS + l, y)

        # ---------------- lane-dense stores ----------------
        # logits: proj weight is zero-padded to 128 lanes -> single full store
        logits_ref[bb] = jnp.dot(y.astype(jnp.bfloat16), proj_ref[...],
                                 preferred_element_type=jnp.float32)
        # all 6 attention slabs packed into one (20, 128) tile, one store
        pieces = enc_attns + dec_self_attns + dec_enc_attns
        used = sum(pc.shape[1] for pc in pieces)
        pieces.append(jnp.zeros((ATT_Q, LANE - used), jnp.float32))
        attn_ref[bb] = jnp.concatenate(pieces, axis=1)


# ------------------------------ pallas wrapper --------------------------------
def _num_batch_splits(batch):
    """v7x has 2 TensorCores -> keep a 2-way parallel batch axis; v5e/v6e have
    a single TC -> collapse the batch into one grid step (each grid step costs
    ~0.35 us of fixed overhead)."""
    kind = ""
    try:
        kind = jax.devices()[0].device_kind.lower()
    except Exception:
        pass
    if (("v7" in kind) or ("tpu7" in kind)) and batch >= 2 and batch % 2 == 0:
        return 2
    return 1


def transformer_pallas(enc_x, dec_x, enc_bias, dec_self_bias, dec_enc_bias, p):
    B = enc_x.shape[0]
    splits = _num_batch_splits(B)
    BB = B // splits

    def batched(*tail):
        n = len(tail)
        return pl.BlockSpec((BB,) + tuple(tail), lambda g, _n=n: (g,) + (0,) * _n)

    def full(shape):
        n = len(shape)
        return pl.BlockSpec(tuple(shape), lambda g, _n=n: (0,) * _n)

    out_shape = (
        jax.ShapeDtypeStruct((B, TGT_LEN, LANE), jnp.float32),   # padded logits
        jax.ShapeDtypeStruct((B, ATT_Q, LANE), jnp.float32),     # packed attn maps
    )

    # advisory cost estimate so XLA schedules the surrounding gathers sensibly
    mha_flops = (SRC_LEN * D_MODEL * 3 * D_MODEL + ATT_Q * ATT_K * D_K
                 + ATT_Q * ATT_K * D_V + SRC_LEN * N_HEADS * D_V * D_MODEL)
    ffn_flops = SRC_LEN * D_MODEL * LANE + SRC_LEN * LANE * LANE
    flops = 2 * B * (N_MHA * mha_flops + N_FFN * ffn_flops + TGT_LEN * D_MODEL * LANE)
    in_arrays = (enc_x, dec_x, enc_bias, dec_self_bias, dec_enc_bias,
                 p['mha_w'], p['mha_b'], p['ffn_w'], p['ffn_b'], p['proj'])
    bytes_accessed = sum(int(np.prod(a.shape)) * jnp.dtype(a.dtype).itemsize
                         for a in in_arrays)
    bytes_accessed += sum(int(np.prod(s.shape)) * 4 for s in out_shape)
    cost = pl.CostEstimate(flops=int(flops),
                           transcendentals=int(B * N_MHA * ATT_Q * ATT_K),
                           bytes_accessed=int(bytes_accessed))

    return pl.pallas_call(
        transformer_kernel,
        grid=(splits,),
        in_specs=[
            batched(SRC_LEN, D_MODEL),
            batched(TGT_LEN, D_MODEL),
            batched(ATT_K, ATT_K),
            batched(ATT_Q, ATT_Q),
            batched(ATT_Q, ATT_K),
            full(p['mha_w'].shape),
            full(p['mha_b'].shape),
            full(p['ffn_w'].shape),
            full(p['ffn_b'].shape),
            full(p['proj'].shape),
        ],
        out_specs=(
            batched(TGT_LEN, LANE),
            batched(ATT_Q, LANE),
        ),
        out_shape=out_shape,
        compiler_params=pltpu.CompilerParams(dimension_semantics=("parallel",)),
        cost_estimate=cost,
    )(enc_x, dec_x, enc_bias, dec_self_bias, dec_enc_bias,
      p['mha_w'], p['mha_b'], p['ffn_w'], p['ffn_b'], p['proj'])


# --------------------------------- glue (JAX) ---------------------------------
def get_sinusoid_encoding_table(n_position, d_model):
    pos = np.arange(n_position, dtype=np.float64)[:, None]
    hid = np.arange(d_model)[None, :]
    angle = pos / np.power(10000, 2 * (hid // 2) / d_model)
    table = np.zeros((n_position, d_model), dtype=np.float64)
    table[:, 0::2] = np.sin(angle[:, 0::2])
    table[:, 1::2] = np.cos(angle[:, 1::2])
    return jnp.asarray(table, dtype=jnp.float32)


def get_attn_pad_mask(seq_q, seq_k):
    B, Lq = seq_q.shape
    Lk = seq_k.shape[1]
    pad = (seq_k == 0)[:, None, :]
    return jnp.broadcast_to(pad, (B, Lq, Lk))


def get_attn_subsequent_mask(seq):
    B, L = seq.shape
    m = jnp.triu(jnp.ones((L, L), dtype=jnp.int32), k=1)
    return jnp.broadcast_to(m[None], (B, L, L))


def blockdiag_bias(mask):
    """(B, Lq, Lk) boolean mask -> (B, H*Lq, H*Lk) additive bias where every
    cross-head block is -1e9 and diagonal blocks carry the attention mask."""
    mask = mask.astype(bool)
    B, Lq, Lk = mask.shape
    diag = jnp.where(mask, jnp.float32(NEG), jnp.float32(0.0))
    eye = jnp.eye(N_HEADS, dtype=jnp.float32)
    full = (eye[None, :, None, :, None] * diag[:, None, :, None, :]
            + (1.0 - eye)[None, :, None, :, None] * jnp.float32(NEG))
    return full.reshape(B, N_HEADS * Lq, N_HEADS * Lk)


def init_params(key):
    keys = iter(jax.random.split(key, 128))

    def nrm(shape, scale=0.1):
        return jax.random.normal(next(keys), shape, dtype=jnp.float32) * scale

    inv_sqrt_dk = 1.0 / float(np.sqrt(D_K))

    def pack_mha():
        wq = nrm((D_MODEL, N_HEADS * D_K))
        wk = nrm((D_MODEL, N_HEADS * D_K))
        wv = nrm((D_MODEL, N_HEADS * D_V))
        wo = nrm((N_HEADS * D_V, D_MODEL))
        bq = nrm((N_HEADS * D_K,))
        bk = nrm((N_HEADS * D_K,))
        bv = nrm((N_HEADS * D_V,))
        bo = nrm((D_MODEL,))
        gamma = jnp.ones((D_MODEL,), jnp.float32)
        beta = jnp.zeros((D_MODEL,), jnp.float32)
        # fold 1/sqrt(d_k) into W_Q / b_Q (free host-side transform)
        w = jnp.concatenate([wq * inv_sqrt_dk, wk, wv, wo], axis=1)      # (32,128)
        row0 = jnp.concatenate([bq * inv_sqrt_dk, bk, bv, bo])           # (128,)
        row1 = jnp.concatenate([gamma, beta,
                                jnp.zeros((LANE - 2 * D_MODEL,), jnp.float32)])
        return w.astype(jnp.bfloat16), jnp.stack([row0, row1])

    def pack_ffn():
        w1 = nrm((D_MODEL, D_FF))
        w2 = nrm((D_FF, D_MODEL))
        b1 = nrm((D_FF,))
        b2 = nrm((D_MODEL,))
        gamma = jnp.ones((D_MODEL,), jnp.float32)
        beta = jnp.zeros((D_MODEL,), jnp.float32)
        # lane-dense (128-wide) weight slabs -> unmasked loads / full MXU tiles
        w1p = jnp.zeros((D_MODEL, LANE), jnp.float32).at[:, :D_FF].set(w1)
        w2p = jnp.zeros((LANE, LANE), jnp.float32).at[:D_FF, :D_MODEL].set(w2)
        w = jnp.concatenate([w1p, w2p], axis=0)                          # (160,128)
        row0 = jnp.concatenate([b1, jnp.zeros((LANE - D_FF,), jnp.float32)])
        row1 = jnp.concatenate([b2, gamma, beta,
                                jnp.zeros((LANE - 3 * D_MODEL,), jnp.float32)])
        return w.astype(jnp.bfloat16), jnp.stack([row0, row1])

    # module order must match the static indices used inside the kernel:
    #   MHA: [enc0_self, enc1_self, dec0_self, dec0_enc, dec1_self, dec1_enc]
    #   FFN: [enc0, enc1, dec0, dec1]
    mha_mods = [pack_mha() for _ in range(N_LAYERS)]
    for _ in range(N_LAYERS):
        mha_mods.append(pack_mha())   # decoder self-attn
        mha_mods.append(pack_mha())   # decoder enc-attn
    ffn_mods = [pack_ffn() for _ in range(N_FFN)]

    proj = nrm((D_MODEL, TGT_VOCAB))  # nn.Linear(d_model, tgt_vocab, bias=False)
    proj_p = jnp.zeros((D_MODEL, LANE), jnp.float32).at[:, :TGT_VOCAB].set(proj)

    return dict(
        src_emb=nrm((SRC_VOCAB, D_MODEL), 1.0),
        tgt_emb=nrm((TGT_VOCAB, D_MODEL), 1.0),
        enc_pos_table=get_sinusoid_encoding_table(SRC_LEN + 1, D_MODEL),
        dec_pos_table=get_sinusoid_encoding_table(TGT_LEN + 1, D_MODEL),
        mha_w=jnp.stack([m[0] for m in mha_mods]),                  # (6,32,128) bf16
        mha_b=jnp.stack([m[1] for m in mha_mods]),                  # (6,2,128)  f32
        ffn_w=jnp.stack([f[0] for f in ffn_mods]),                  # (4,160,128) bf16
        ffn_b=jnp.stack([f[1] for f in ffn_mods]),                  # (4,2,128)  f32
        proj=proj_p.astype(jnp.bfloat16),                           # (32,128)   bf16
    )


@jax.jit
def transformer_forward(params, enc_inputs, dec_inputs):
    # fixed positional indices exactly as in the reference forward
    enc_pos = jnp.array([[1, 2, 3, 4, 0]], dtype=jnp.int32)
    dec_pos = jnp.array([[5, 1, 2, 3, 4]], dtype=jnp.int32)

    enc_x = params['src_emb'][enc_inputs] + params['enc_pos_table'][enc_pos]
    dec_x = params['tgt_emb'][dec_inputs] + params['dec_pos_table'][dec_pos]

    enc_self_mask = get_attn_pad_mask(enc_inputs, enc_inputs)
    dec_self_mask = (get_attn_pad_mask(dec_inputs, dec_inputs).astype(jnp.int32)
                     + get_attn_subsequent_mask(dec_inputs)) > 0
    dec_enc_mask = get_attn_pad_mask(dec_inputs, enc_inputs)

    # masks become additive biases (mask + cross-head -1e9 blocks), built once
    enc_bias = blockdiag_bias(enc_self_mask)
    dec_self_bias = blockdiag_bias(dec_self_mask)
    dec_enc_bias = blockdiag_bias(dec_enc_mask)

    logits_pad, attn_slab = transformer_pallas(
        enc_x, dec_x, enc_bias, dec_self_bias, dec_enc_bias, params)

    B = enc_inputs.shape[0]
    logits = logits_pad[:, :, :TGT_VOCAB].reshape(-1, TGT_VOCAB)

    def split_heads(block, lq, lk):
        blk = block.reshape(B, N_HEADS, lq, N_HEADS, lk)
        return jnp.stack([blk[:, h, :, h, :] for h in range(N_HEADS)], axis=1)

    enc_self_attns, dec_self_attns, dec_enc_attns = [], [], []
    for l in range(N_LAYERS):
        enc_self_attns.append(split_heads(
            attn_slab[:, :, l * ATT_K:(l + 1) * ATT_K], SRC_LEN, SRC_LEN))
    off = N_LAYERS * ATT_K
    for l in range(N_LAYERS):
        dec_self_attns.append(split_heads(
            attn_slab[:, :, off + l * ATT_Q: off + (l + 1) * ATT_Q], TGT_LEN, TGT_LEN))
    off = N_LAYERS * (ATT_K + ATT_Q)
    for l in range(N_LAYERS):
        dec_enc_attns.append(split_heads(
            attn_slab[:, :, off + l * ATT_K: off + (l + 1) * ATT_K], TGT_LEN, SRC_LEN))

    return logits, enc_self_attns, dec_self_attns, dec_enc_attns


# ------------------------------------ main ------------------------------------
if __name__ == "__main__":
    key = jax.random.PRNGKey(0)
    pkey, ekey, dkey = jax.random.split(key, 3)
    params = init_params(pkey)

    # deterministic token ids; last encoder token is the pad token (0),
    # mirroring the "ich mochte ein bier P" example from the tutorial.
    enc_inputs = jax.random.randint(ekey, (BATCH, SRC_LEN), 1, SRC_VOCAB,
                                    dtype=jnp.int32)
    enc_inputs = enc_inputs.at[:, -1].set(0)
    dec_inputs = jax.random.randint(dkey, (BATCH, TGT_LEN), 1, TGT_VOCAB,
                                    dtype=jnp.int32)

    logits, enc_attns, dec_self_attns, dec_enc_attns = transformer_forward(
        params, enc_inputs, dec_inputs)
    jax.block_until_ready(logits)

    assert logits.shape == (BATCH * TGT_LEN, TGT_VOCAB)
    assert enc_attns[0].shape == (BATCH, N_HEADS, SRC_LEN, SRC_LEN)
    assert dec_self_attns[0].shape == (BATCH, N_HEADS, TGT_LEN, TGT_LEN)
    assert dec_enc_attns[0].shape == (BATCH, N_HEADS, TGT_LEN, SRC_LEN)
    assert bool(jnp.all(jnp.isfinite(logits)))
    # attention rows must sum to 1 (exact softmax, f32)
    for attn in (enc_attns[0], dec_self_attns[-1], dec_enc_attns[-1]):
        assert bool(jnp.all(jnp.abs(jnp.sum(attn, axis=-1) - 1.0) < 1e-3))
    print("KERNEL_OK")
</pallas_src>

<mosaic_0001>
module attributes {stable_mosaic.version = 11 : i64} {
  func.func @transformer_kernel(%arg0: i32, %arg1: memref<2x5x32xf32, #tpu.memory_space<vmem>>, %arg2: memref<2x5x32xf32, #tpu.memory_space<vmem>>, %arg3: memref<2x20x20xf32, #tpu.memory_space<vmem>>, %arg4: memref<2x20x20xf32, #tpu.memory_space<vmem>>, %arg5: memref<2x20x20xf32, #tpu.memory_space<vmem>>, %arg6: memref<6x32x128xbf16, #tpu.memory_space<vmem>>, %arg7: memref<6x2x128xf32, #tpu.memory_space<vmem>>, %arg8: memref<4x160x128xbf16, #tpu.memory_space<vmem>>, %arg9: memref<4x2x128xf32, #tpu.memory_space<vmem>>, %arg10: memref<32x128xbf16, #tpu.memory_space<vmem>>, %arg11: memref<2x5x128xf32, #tpu.memory_space<vmem>>, %arg12: memref<2x20x128xf32, #tpu.memory_space<vmem>>) attributes {dimension_semantics = [#tpu.dimension_semantics<parallel>], iteration_bounds = array<i64: 1>, scalar_prefetch = 0 : i64, scratch_operands = 0 : i64, tpu.core_type = #tpu.core_type<tc>, window_params = [{transform_indices = @transform_0, window_bounds = array<i64: 2, 5, 32>}, {transform_indices = @transform_1, window_bounds = array<i64: 2, 5, 32>}, {transform_indices = @transform_2, window_bounds = array<i64: 2, 20, 20>}, {transform_indices = @transform_3, window_bounds = array<i64: 2, 20, 20>}, {transform_indices = @transform_4, window_bounds = array<i64: 2, 20, 20>}, {pipeline_mode = #tpu.pipeline_mode<synchronous>, transform_indices = @transform_5, window_bounds = array<i64: 6, 32, 128>}, {pipeline_mode = #tpu.pipeline_mode<synchronous>, transform_indices = @transform_6, window_bounds = array<i64: 6, 2, 128>}, {pipeline_mode = #tpu.pipeline_mode<synchronous>, transform_indices = @transform_7, window_bounds = array<i64: 4, 160, 128>}, {pipeline_mode = #tpu.pipeline_mode<synchronous>, transform_indices = @transform_8, window_bounds = array<i64: 4, 2, 128>}, {pipeline_mode = #tpu.pipeline_mode<synchronous>, transform_indices = @transform_9, window_bounds = array<i64: 32, 128>}, {transform_indices = @transform_10, window_bounds = array<i64: 2, 5, 128>}, {transform_indices = @transform_11, window_bounds = array<i64: 2, 20, 128>}]} {
    %c0 = arith.constant 0 : index
    %c0_0 = arith.constant 0 : index
    %c0_1 = arith.constant 0 : index
    %0 = vector.load %arg3[%c0, %c0_0, %c0_1] : memref<2x20x20xf32, #tpu.memory_space<vmem>>, vector<1x20x20xf32>
    %1 = vector.shape_cast %0 : vector<1x20x20xf32> to vector<20x20xf32>
    %c0_2 = arith.constant 0 : index
    %c0_3 = arith.constant 0 : index
    %c0_4 = arith.constant 0 : index
    %2 = vector.load %arg4[%c0_2, %c0_3, %c0_4] : memref<2x20x20xf32, #tpu.memory_space<vmem>>, vector<1x20x20xf32>
    %3 = vector.shape_cast %2 : vector<1x20x20xf32> to vector<20x20xf32>
    %c0_5 = arith.constant 0 : index
    %c0_6 = arith.constant 0 : index
    %c0_7 = arith.constant 0 : index
    %4 = vector.load %arg5[%c0_5, %c0_6, %c0_7] : memref<2x20x20xf32, #tpu.memory_space<vmem>>, vector<1x20x20xf32>
    %5 = vector.shape_cast %4 : vector<1x20x20xf32> to vector<20x20xf32>
    %c0_8 = arith.constant 0 : index
    %c0_9 = arith.constant 0 : index
    %c0_10 = arith.constant 0 : index
    %6 = vector.load %arg1[%c0_8, %c0_9, %c0_10] : memref<2x5x32xf32, #tpu.memory_space<vmem>>, vector<1x5x32xf32>
    %7 = vector.shape_cast %6 : vector<1x5x32xf32> to vector<5x32xf32>
    %c0_11 = arith.constant 0 : index
    %c0_12 = arith.constant 0 : index
    %c0_13 = arith.constant 0 : index
    %8 = vector.load %arg6[%c0_11, %c0_12, %c0_13] : memref<6x32x128xbf16, #tpu.memory_space<vmem>>, vector<1x32x128xbf16>
    %9 = vector.shape_cast %8 : vector<1x32x128xbf16> to vector<32x128xbf16>
    %c0_14 = arith.constant 0 : index
    %c0_15 = arith.constant 0 : index
    %c0_16 = arith.constant 0 : index
    %10 = vector.load %arg7[%c0_14, %c0_15, %c0_16] : memref<6x2x128xf32, #tpu.memory_space<vmem>>, vector<1x2x128xf32>
    %11 = vector.shape_cast %10 : vector<1x2x128xf32> to vector<2x128xf32>
    %12 = arith.truncf %7 : vector<5x32xf32> to vector<5x32xbf16>
    %13 = vector.extract_strided_slice %9 {offsets = [0, 0], sizes = [32, 96], strides = [1, 1]} : vector<32x128xbf16> to vector<32x96xbf16>
    %cst = arith.constant dense<0.000000e+00> : vector<5x96xf32>
    %14 = tpu.matmul %12, %13, %cst {dimension_numbers = #tpu.dot_dimension_numbers<[1], [0], [0], [1], [0, 0, 1, 1], [], []>} : vector<5x32xbf16>, vector<32x96xbf16>, vector<5x96xf32> -> vector<5x96xf32>
    %15 = vector.extract_strided_slice %11 {offsets = [0, 0], sizes = [1, 96], strides = [1, 1]} : vector<2x128xf32> to vector<1x96xf32>
    %16 = vector.broadcast %15 : vector<1x96xf32> to vector<5x96xf32>
    %17 = arith.addf %14, %16 : vector<5x96xf32>
    %18 = vector.extract_strided_slice %17 {offsets = [0, 0], sizes = [5, 32], strides = [1, 1]} : vector<5x96xf32> to vector<5x32xf32>
    %19 = vector.extract_strided_slice %17 {offsets = [0, 32], sizes = [5, 32], strides = [1, 1]} : vector<5x96xf32> to vector<5x32xf32>
    %20 = vector.extract_strided_slice %17 {offsets = [0, 64], sizes = [5, 32], strides = [1, 1]} : vector<5x96xf32> to vector<5x32xf32>
    %21 = vector.extract_strided_slice %18 {offsets = [0, 0], sizes = [5, 8], strides = [1, 1]} : vector<5x32xf32> to vector<5x8xf32>
    %22 = vector.extract_strided_slice %18 {offsets = [0, 8], sizes = [5, 8], strides = [1, 1]} : vector<5x32xf32> to vector<5x8xf32>
    %23 = vector.extract_strided_slice %18 {offsets = [0, 16], sizes = [5, 8], strides = [1, 1]} : vector<5x32xf32> to vector<5x8xf32>
    %24 = vector.extract_strided_slice %18 {offsets = [0, 24], sizes = [5, 8], strides = [1, 1]} : vector<5x32xf32> to vector<5x8xf32>
    %25 = tpu.concatenate %21, %22, %23, %24 in 0 : vector<5x8xf32>, vector<5x8xf32>, vector<5x8xf32>, vector<5x8xf32> -> vector<20x8xf32>
    %26 = arith.truncf %25 : vector<20x8xf32> to vector<20x8xbf16>
    %27 = vector.extract_strided_slice %19 {offsets = [0, 0], sizes = [5, 8], strides = [1, 1]} : vector<5x32xf32> to vector<5x8xf32>
    %28 = vector.extract_strided_slice %19 {offsets = [0, 8], sizes = [5, 8], strides = [1, 1]} : vector<5x32xf32> to vector<5x8xf32>
    %29 = vector.extract_strided_slice %19 {offsets = [0, 16], sizes = [5, 8], strides = [1, 1]} : vector<5x32xf32> to vector<5x8xf32>
    %30 = vector.extract_strided_slice %19 {offsets = [0, 24], sizes = [5, 8], strides = [1, 1]} : vector<5x32xf32> to vector<5x8xf32>
    %31 = tpu.concatenate %27, %28, %29, %30 in 0 : vector<5x8xf32>, vector<5x8xf32>, vector<5x8xf32>, vector<5x8xf32> -> vector<20x8xf32>
    %32 = arith.truncf %31 : vector<20x8xf32> to vector<20x8xbf16>
    %33 = vector.extract_strided_slice %20 {offsets = [0, 0], sizes = [5, 8], strides = [1, 1]} : vector<5x32xf32> to vector<5x8xf32>
    %34 = vector.extract_strided_slice %20 {offsets = [0, 8], sizes = [5, 8], strides = [1, 1]} : vector<5x32xf32> to vector<5x8xf32>
    %35 = vector.extract_strided_slice %20 {offsets = [0, 16], sizes = [5, 8], strides = [1, 1]} : vector<5x32xf32> to vector<5x8xf32>
    %36 = vector.extract_strided_slice %20 {offsets = [0, 24], sizes = [5, 8], strides = [1, 1]} : vector<5x32xf32> to vector<5x8xf32>
    %37 = tpu.concatenate %33, %34, %35, %36 in 0 : vector<5x8xf32>, vector<5x8xf32>, vector<5x8xf32>, vector<5x8xf32> -> vector<20x8xf32>
    %38 = arith.truncf %37 : vector<20x8xf32> to vector<20x8xbf16>
    %cst_17 = arith.constant dense<0.000000e+00> : vector<20x20xf32>
    %39 = tpu.matmul %26, %32, %cst_17 {dimension_numbers = #tpu.dot_dimension_numbers<[1], [1], [0], [0], [0, 0, 1, 0], [], []>} : vector<20x8xbf16>, vector<20x8xbf16>, vector<20x20xf32> -> vector<20x20xf32>
    %40 = arith.addf %39, %1 : vector<20x20xf32>
    %cst_18 = arith.constant dense<0xFF800000> : vector<20xf32>
    %41 = vector.multi_reduction <maximumf>, %40, %cst_18 [1] : vector<20x20xf32> to vector<20xf32>
    %42 = vector.shape_cast %41 : vector<20xf32> to vector<20x1xf32>
    %43 = vector.broadcast %42 : vector<20x1xf32> to vector<20x20xf32>
    %44 = arith.subf %40, %43 : vector<20x20xf32>
    %45 = math.exp %44 : vector<20x20xf32>
    %cst_19 = arith.constant dense<0.000000e+00> : vector<20xf32>
    %46 = vector.multi_reduction <add>, %45, %cst_19 [1] : vector<20x20xf32> to vector<20xf32>
    %47 = vector.shape_cast %46 : vector<20xf32> to vector<20x1xf32>
    %48 = vector.broadcast %47 : vector<20x1xf32> to vector<20x20xf32>
    %49 = arith.divf %45, %48 : vector<20x20xf32>
    %50 = arith.truncf %49 : vector<20x20xf32> to vector<20x20xbf16>
    %cst_20 = arith.constant dense<0.000000e+00> : vector<20x8xf32>
    %51 = tpu.matmul %50, %38, %cst_20 {dimension_numbers = #tpu.dot_dimension_numbers<[1], [0], [0], [1], [0, 0, 1, 1], [], []>} : vector<20x20xbf16>, vector<20x8xbf16>, vector<20x8xf32> -> vector<20x8xf32>
    %52 = vector.extract_strided_slice %51 {offsets = [0, 0], sizes = [5, 8], strides = [1, 1]} : vector<20x8xf32> to vector<5x8xf32>
    %53 = vector.extract_strided_slice %51 {offsets = [5, 0], sizes = [5, 8], strides = [1, 1]} : vector<20x8xf32> to vector<5x8xf32>
    %54 = vector.extract_strided_slice %51 {offsets = [10, 0], sizes = [5, 8], strides = [1, 1]} : vector<20x8xf32> to vector<5x8xf32>
    %55 = vector.extract_strided_slice %51 {offsets = [15, 0], sizes = [5, 8], strides = [1, 1]} : vector<20x8xf32> to vector<5x8xf32>
    %56 = tpu.concatenate %52, %53, %54, %55 in 1 : vector<5x8xf32>, vector<5x8xf32>, vector<5x8xf32>, vector<5x8xf32> -> vector<5x32xf32>
    %57 = arith.truncf %56 : vector<5x32xf32> to vector<5x32xbf16>
    %58 = vector.extract_strided_slice %9 {offsets = [0, 96], sizes = [32, 32], strides = [1, 1]} : vector<32x128xbf16> to vector<32x32xbf16>
    %cst_21 = arith.constant dense<0.000000e+00> : vector<5x32xf32>
    %59 = tpu.matmul %57, %58, %cst_21 {dimension_numbers = #tpu.dot_dimension_numbers<[1], [0], [0], [1], [0, 0, 1, 1], [], []>} : vector<5x32xbf16>, vector<32x32xbf16>, vector<5x32xf32> -> vector<5x32xf32>
    %60 = vector.extract_strided_slice %11 {offsets = [0, 96], sizes = [1, 32], strides = [1, 1]} : vector<2x128xf32> to vector<1x32xf32>
    %61 = vector.broadcast %60 : vector<1x32xf32> to vector<5x32xf32>
    %62 = arith.addf %59, %61 : vector<5x32xf32>
    %63 = arith.addf %62, %7 : vector<5x32xf32>
    %64 = vector.extract_strided_slice %11 {offsets = [1, 0], sizes = [1, 32], strides = [1, 1]} : vector<2x128xf32> to vector<1x32xf32>
    %65 = vector.extract_strided_slice %11 {offsets = [1, 32], sizes = [1, 32], strides = [1, 1]} : vector<2x128xf32> to vector<1x32xf32>
    %cst_22 = arith.constant dense<0.000000e+00> : vector<5xf32>
    %66 = vector.multi_reduction <add>, %63, %cst_22 [1] : vector<5x32xf32> to vector<5xf32>
    %67 = vector.shape_cast %66 : vector<5xf32> to vector<5x1xf32>
    %cst_23 = arith.constant 3.200000e+01 : f32
    %68 = vector.broadcast %cst_23 : f32 to vector<5x1xf32>
    %69 = arith.divf %67, %68 : vector<5x1xf32>
    %70 = vector.broadcast %69 : vector<5x1xf32> to vector<5x32xf32>
    %71 = arith.subf %63, %70 : vector<5x32xf32>
    %72 = arith.mulf %71, %71 : vector<5x32xf32>
    %cst_24 = arith.constant dense<0.000000e+00> : vector<5xf32>
    %73 = vector.multi_reduction <add>, %72, %cst_24 [1] : vector<5x32xf32> to vector<5xf32>
    %74 = vector.shape_cast %73 : vector<5xf32> to vector<5x1xf32>
    %cst_25 = arith.constant 3.200000e+01 : f32
    %75 = vector.broadcast %cst_25 : f32 to vector<5x1xf32>
    %76 = arith.divf %74, %75 : vector<5x1xf32>
    %77 = vector.broadcast %69 : vector<5x1xf32> to vector<5x32xf32>
    %78 = arith.subf %63, %77 : vector<5x32xf32>
    %cst_26 = arith.constant 9.99999974E-6 : f32
    %79 = vector.broadcast %cst_26 : f32 to vector<5x1xf32>
    %80 = arith.addf %76, %79 : vector<5x1xf32>
    %81 = math.rsqrt %80 : vector<5x1xf32>
    %82 = vector.broadcast %81 : vector<5x1xf32> to vector<5x32xf32>
    %83 = arith.mulf %78, %82 : vector<5x32xf32>
    %84 = vector.broadcast %64 : vector<1x32xf32> to vector<5x32xf32>
    %85 = arith.mulf %83, %84 : vector<5x32xf32>
    %86 = vector.broadcast %65 : vector<1x32xf32> to vector<5x32xf32>
    %87 = arith.addf %85, %86 : vector<5x32xf32>
    %c0_27 = arith.constant 0 : index
    %c0_28 = arith.constant 0 : index
    %c0_29 = arith.constant 0 : index
    %88 = vector.load %arg8[%c0_27, %c0_28, %c0_29] : memref<4x160x128xbf16, #tpu.memory_space<vmem>>, vector<1x160x128xbf16>
    %89 = vector.shape_cast %88 : vector<1x160x128xbf16> to vector<160x128xbf16>
    %c0_30 = arith.constant 0 : index
    %c0_31 = arith.constant 0 : index
    %c0_32 = arith.constant 0 : index
    %90 = vector.load %arg9[%c0_30, %c0_31, %c0_32] : memref<4x2x128xf32, #tpu.memory_space<vmem>>, vector<1x2x128xf32>
    %91 = vector.shape_cast %90 : vector<1x2x128xf32> to vector<2x128xf32>
    %92 = arith.truncf %87 : vector<5x32xf32> to vector<5x32xbf16>
    %93 = vector.extract_strided_slice %89 {offsets = [0, 0], sizes = [32, 128], strides = [1, 1]} : vector<160x128xbf16> to vector<32x128xbf16>
    %cst_33 = arith.constant dense<0.000000e+00> : vector<5x128xf32>
    %94 = tpu.matmul %92, %93, %cst_33 {dimension_numbers = #tpu.dot_dimension_numbers<[1], [0], [0], [1], [0, 0, 1, 1], [], []>} : vector<5x32xbf16>, vector<32x128xbf16>, vector<5x128xf32> -> vector<5x128xf32>
    %95 = vector.extract_strided_slice %91 {offsets = [0, 0], sizes = [1, 128], strides = [1, 1]} : vector<2x128xf32> to vector<1x128xf32>
    %96 = vector.broadcast %95 : vector<1x128xf32> to vector<5x128xf32>
    %97 = arith.addf %94, %96 : vector<5x128xf32>
    %cst_34 = arith.constant 0.000000e+00 : f32
    %98 = vector.broadcast %cst_34 : f32 to vector<5x128xf32>
    %99 = arith.maximumf %97, %98 : vector<5x128xf32>
    %100 = arith.truncf %99 : vector<5x128xf32> to vector<5x128xbf16>
    %101 = vector.extract_strided_slice %89 {offsets = [32, 0], sizes = [128, 128], strides = [1, 1]} : vector<160x128xbf16> to vector<128x128xbf16>
    %cst_35 = arith.constant dense<0.000000e+00> : vector<5x128xf32>
    %102 = tpu.matmul %100, %101, %cst_35 {dimension_numbers = #tpu.dot_dimension_numbers<[1], [0], [0], [1], [0, 0, 1, 1], [], []>} : vector<5x128xbf16>, vector<128x128xbf16>, vector<5x128xf32> -> vector<5x128xf32>
    %103 = vector.extract_strided_slice %102 {offsets = [0, 0], sizes = [5, 32], strides = [1, 1]} : vector<5x128xf32> to vector<5x32xf32>
    %104 = vector.extract_strided_slice %91 {offsets = [1, 0], sizes = [1, 32], strides = [1, 1]} : vector<2x128xf32> to vector<1x32xf32>
    %105 = vector.broadcast %104 : vector<1x32xf32> to vector<5x32xf32>
    %106 = arith.addf %103, %105 : vector<5x32xf32>
    %107 = arith.addf %106, %87 : vector<5x32xf32>
    %108 = vector.extract_strided_slice %91 {offsets = [1, 32], sizes = [1, 32], strides = [1, 1]} : vector<2x128xf32> to vector<1x32xf32>
    %109 = vector.extract_strided_slice %91 {offsets = [1, 64], sizes = [1, 32], strides = [1, 1]} : vector<2x128xf32> to vector<1x32xf32>
    %cst_36 = arith.constant dense<0.000000e+00> : vector<5xf32>
    %110 = vector.multi_reduction <add>, %107, %cst_36 [1] : vector<5x32xf32> to vector<5xf32>
    %111 = vector.shape_cast %110 : vector<5xf32> to vector<5x1xf32>
    %cst_37 = arith.constant 3.200000e+01 : f32
    %112 = vector.broadcast %cst_37 : f32 to vector<5x1xf32>
    %113 = arith.divf %111, %112 : vector<5x1xf32>
    %114 = vector.broadcast %113 : vector<5x1xf32> to vector<5x32xf32>
    %115 = arith.subf %107, %114 : vector<5x32xf32>
    %116 = arith.mulf %115, %115 : vector<5x32xf32>
    %cst_38 = arith.constant dense<0.000000e+00> : vector<5xf32>
    %117 = vector.multi_reduction <add>, %116, %cst_38 [1] : vector<5x32xf32> to vector<5xf32>
    %118 = vector.shape_cast %117 : vector<5xf32> to vector<5x1xf32>
    %cst_39 = arith.constant 3.200000e+01 : f32
    %119 = vector.broadcast %cst_39 : f32 to vector<5x1xf32>
    %120 = arith.divf %118, %119 : vector<5x1xf32>
    %121 = vector.broadcast %113 : vector<5x1xf32> to vector<5x32xf32>
    %122 = arith.subf %107, %121 : vector<5x32xf32>
    %cst_40 = arith.constant 9.99999974E-6 : f32
    %123 = vector.broadcast %cst_40 : f32 to vector<5x1xf32>
    %124 = arith.addf %120, %123 : vector<5x1xf32>
    %125 = math.rsqrt %124 : vector<5x1xf32>
    %126 = vector.broadcast %125 : vector<5x1xf32> to vector<5x32xf32>
    %127 = arith.mulf %122, %126 : vector<5x32xf32>
    %128 = vector.broadcast %108 : vector<1x32xf32> to vector<5x32xf32>
    %129 = arith.mulf %127, %128 : vector<5x32xf32>
    %130 = vector.broadcast %109 : vector<1x32xf32> to vector<5x32xf32>
    %131 = arith.addf %129, %130 : vector<5x32xf32>
    %c1 = arith.constant 1 : index
    %c0_41 = arith.constant 0 : index
    %c0_42 = arith.constant 0 : index
    %132 = vector.load %arg6[%c1, %c0_41, %c0_42] : memref<6x32x128xbf16, #tpu.memory_space<vmem>>, vector<1x32x128xbf16>
    %133 = vector.shape_cast %132 : vector<1x32x128xbf16> to vector<32x128xbf16>
    %c1_43 = arith.constant 1 : index
    %c0_44 = arith.constant 0 : index
    %c0_45 = arith.constant 0 : index
    %134 = vector.load %arg7[%c1_43, %c0_44, %c0_45] : memref<6x2x128xf32, #tpu.memory_space<vmem>>, vector<1x2x128xf32>
    %135 = vector.shape_cast %134 : vector<1x2x128xf32> to vector<2x128xf32>
    %136 = arith.truncf %131 : vector<5x32xf32> to vector<5x32xbf16>
    %137 = vector.extract_strided_slice %133 {offsets = [0, 0], sizes = [32, 96], strides = [1, 1]} : vector<32x128xbf16> to vector<32x96xbf16>
    %cst_46 = arith.constant dense<0.000000e+00> : vector<5x96xf32>
    %138 = tpu.matmul %136, %137, %cst_46 {dimension_numbers = #tpu.dot_dimension_numbers<[1], [0], [0], [1], [0, 0, 1, 1], [], []>} : vector<5x32xbf16>, vector<32x96xbf16>, vector<5x96xf32> -> vector<5x96xf32>
    %139 = vector.extract_strided_slice %135 {offsets = [0, 0], sizes = [1, 96], strides = [1, 1]} : vector<2x128xf32> to vector<1x96xf32>
    %140 = vector.broadcast %139 : vector<1x96xf32> to vector<5x96xf32>
    %141 = arith.addf %138, %140 : vector<5x96xf32>
    %142 = vector.extract_strided_slice %141 {offsets = [0, 0], sizes = [5, 32], strides = [1, 1]} : vector<5x96xf32> to vector<5x32xf32>
    %143 = vector.extract_strided_slice %141 {offsets = [0, 32], sizes = [5, 32], strides = [1, 1]} : vector<5x96xf32> to vector<5x32xf32>
    %144 = vector.extract_strided_slice %141 {offsets = [0, 64], sizes = [5, 32], strides = [1, 1]} : vector<5x96xf32> to vector<5x32xf32>
    %145 = vector.extract_strided_slice %142 {offsets = [0, 0], sizes = [5, 8], strides = [1, 1]} : vector<5x32xf32> to vector<5x8xf32>
    %146 = vector.extract_strided_slice %142 {offsets = [0, 8], sizes = [5, 8], strides = [1, 1]} : vector<5x32xf32> to vector<5x8xf32>
    %147 = vector.extract_strided_slice %142 {offsets = [0, 16], sizes = [5, 8], strides = [1, 1]} : vector<5x32xf32> to vector<5x8xf32>
    %148 = vector.extract_strided_slice %142 {offsets = [0, 24], sizes = [5, 8], strides = [1, 1]} : vector<5x32xf32> to vector<5x8xf32>
    %149 = tpu.concatenate %145, %146, %147, %148 in 0 : vector<5x8xf32>, vector<5x8xf32>, vector<5x8xf32>, vector<5x8xf32> -> vector<20x8xf32>
    %150 = arith.truncf %149 : vector<20x8xf32> to vector<20x8xbf16>
    %151 = vector.extract_strided_slice %143 {offsets = [0, 0], sizes = [5, 8], strides = [1, 1]} : vector<5x32xf32> to vector<5x8xf32>
    %152 = vector.extract_strided_slice %143 {offsets = [0, 8], sizes = [5, 8], strides = [1, 1]} : vector<5x32xf32> to vector<5x8xf32>
    %153 = vector.extract_strided_slice %143 {offsets = [0, 16], sizes = [5, 8], strides = [1, 1]} : vector<5x32xf32> to vector<5x8xf32>
    %154 = vector.extract_strided_slice %143 {offsets = [0, 24], sizes = [5, 8], strides = [1, 1]} : vector<5x32xf32> to vector<5x8xf32>
    %155 = tpu.concatenate %151, %152, %153, %154 in 0 : vector<5x8xf32>, vector<5x8xf32>, vector<5x8xf32>, vector<5x8xf32> -> vector<20x8xf32>
    %156 = arith.truncf %155 : vector<20x8xf32> to vector<20x8xbf16>
    %157 = vector.extract_strided_slice %144 {offsets = [0, 0], sizes = [5, 8], strides = [1, 1]} : vector<5x32xf32> to vector<5x8xf32>
    %158 = vector.extract_strided_slice %144 {offsets = [0, 8], sizes = [5, 8], strides = [1, 1]} : vector<5x32xf32> to vector<5x8xf32>
    %159 = vector.extract_strided_slice %144 {offsets = [0, 16], sizes = [5, 8], strides = [1, 1]} : vector<5x32xf32> to vector<5x8xf32>
    %160 = vector.extract_strided_slice %144 {offsets = [0, 24], sizes = [5, 8], strides = [1, 1]} : vector<5x32xf32> to vector<5x8xf32>
    %161 = tpu.concatenate %157, %158, %159, %160 in 0 : vector<5x8xf32>, vector<5x8xf32>, vector<5x8xf32>, vector<5x8xf32> -> vector<20x8xf32>
    %162 = arith.truncf %161 : vector<20x8xf32> to vector<20x8xbf16>
    %cst_47 = arith.constant dense<0.000000e+00> : vector<20x20xf32>
    %163 = tpu.matmul %150, %156, %cst_47 {dimension_numbers = #tpu.dot_dimension_numbers<[1], [1], [0], [0], [0, 0, 1, 0], [], []>} : vector<20x8xbf16>, vector<20x8xbf16>, vector<20x20xf32> -> vector<20x20xf32>
    %164 = arith.addf %163, %1 : vector<20x20xf32>
    %cst_48 = arith.constant dense<0xFF800000> : vector<20xf32>
    %165 = vector.multi_reduction <maximumf>, %164, %cst_48 [1] : vector<20x20xf32> to vector<20xf32>
    %166 = vector.shape_cast %165 : vector<20xf32> to vector<20x1xf32>
    %167 = vector.broadcast %166 : vector<20x1xf32> to vector<20x20xf32>
    %168 = arith.subf %164, %167 : vector<20x20xf32>
    %169 = math.exp %168 : vector<20x20xf32>
    %cst_49 = arith.constant dense<0.000000e+00> : vector<20xf32>
    %170 = vector.multi_reduction <add>, %169, %cst_49 [1] : vector<20x20xf32> to vector<20xf32>
    %171 = vector.shape_cast %170 : vector<20xf32> to vector<20x1xf32>
    %172 = vector.broadcast %171 : vector<20x1xf32> to vector<20x20xf32>
    %173 = arith.divf %169, %172 : vector<20x20xf32>
    %174 = arith.truncf %173 : vector<20x20xf32> to vector<20x20xbf16>
    %cst_50 = arith.constant dense<0.000000e+00> : vector<20x8xf32>
    %175 = tpu.matmul %174, %162, %cst_50 {dimension_numbers = #tpu.dot_dimension_numbers<[1], [0], [0], [1], [0, 0, 1, 1], [], []>} : vector<20x20xbf16>, vector<20x8xbf16>, vector<20x8xf32> -> vector<20x8xf32>
    %176 = vector.extract_strided_slice %175 {offsets = [0, 0], sizes = [5, 8], strides = [1, 1]} : vector<20x8xf32> to vector<5x8xf32>
    %177 = vector.extract_strided_slice %175 {offsets = [5, 0], sizes = [5, 8], strides = [1, 1]} : vector<20x8xf32> to vector<5x8xf32>
    %178 = vector.extract_strided_slice %175 {offsets = [10, 0], sizes = [5, 8], strides = [1, 1]} : vector<20x8xf32> to vector<5x8xf32>
    %179 = vector.extract_strided_slice %175 {offsets = [15, 0], sizes = [5, 8], strides = [1, 1]} : vector<20x8xf32> to vector<5x8xf32>
    %180 = tpu.concatenate %176, %177, %178, %179 in 1 : vector<5x8xf32>, vector<5x8xf32>, vector<5x8xf32>, vector<5x8xf32> -> vector<5x32xf32>
    %181 = arith.truncf %180 : vector<5x32xf32> to vector<5x32xbf16>
    %182 = vector.extract_strided_slice %133 {offsets = [0, 96], sizes = [32, 32], strides = [1, 1]} : vector<32x128xbf16> to vector<32x32xbf16>
    %cst_51 = arith.constant dense<0.000000e+00> : vector<5x32xf32>
    %183 = tpu.matmul %181, %182, %cst_51 {dimension_numbers = #tpu.dot_dimension_numbers<[1], [0], [0], [1], [0, 0, 1, 1], [], []>} : vector<5x32xbf16>, vector<32x32xbf16>, vector<5x32xf32> -> vector<5x32xf32>
    %184 = vector.extract_strided_slice %135 {offsets = [0, 96], sizes = [1, 32], strides = [1, 1]} : vector<2x128xf32> to vector<1x32xf32>
    %185 = vector.broadcast %184 : vector<1x32xf32> to vector<5x32xf32>
    %186 = arith.addf %183, %185 : vector<5x32xf32>
    %187 = arith.addf %186, %131 : vector<5x32xf32>
    %188 = vector.extract_strided_slice %135 {offsets = [1, 0], sizes = [1, 32], strides = [1, 1]} : vector<2x128xf32> to vector<1x32xf32>
    %189 = vector.extract_strided_slice %135 {offsets = [1, 32], sizes = [1, 32], strides = [1, 1]} : vector<2x128xf32> to vector<1x32xf32>
    %cst_52 = arith.constant dense<0.000000e+00> : vector<5xf32>
    %190 = vector.multi_reduction <add>, %187, %cst_52 [1] : vector<5x32xf32> to vector<5xf32>
    %191 = vector.shape_cast %190 : vector<5xf32> to vector<5x1xf32>
    %cst_53 = arith.constant 3.200000e+01 : f32
    %192 = vector.broadcast %cst_53 : f32 to vector<5x1xf32>
    %193 = arith.divf %191, %192 : vector<5x1xf32>
    %194 = vector.broadcast %193 : vector<5x1xf32> to vector<5x32xf32>
    %195 = arith.subf %187, %194 : vector<5x32xf32>
    %196 = arith.mulf %195, %195 : vector<5x32xf32>
    %cst_54 = arith.constant dense<0.000000e+00> : vector<5xf32>
    %197 = vector.multi_reduction <add>, %196, %cst_54 [1] : vector<5x32xf32> to vector<5xf32>
    %198 = vector.shape_cast %197 : vector<5xf32> to vector<5x1xf32>
    %cst_55 = arith.constant 3.200000e+01 : f32
    %199 = vector.broadcast %cst_55 : f32 to vector<5x1xf32>
    %200 = arith.divf %198, %199 : vector<5x1xf32>
    %201 = vector.broadcast %193 : vector<5x1xf32> to vector<5x32xf32>
    %202 = arith.subf %187, %201 : vector<5x32xf32>
    %cst_56 = arith.constant 9.99999974E-6 : f32
    %203 = vector.broadcast %cst_56 : f32 to vector<5x1xf32>
    %204 = arith.addf %200, %203 : vector<5x1xf32>
    %205 = math.rsqrt %204 : vector<5x1xf32>
    %206 = vector.broadcast %205 : vector<5x1xf32> to vector<5x32xf32>
    %207 = arith.mulf %202, %206 : vector<5x32xf32>
    %208 = vector.broadcast %188 : vector<1x32xf32> to vector<5x32xf32>
    %209 = arith.mulf %207, %208 : vector<5x32xf32>
    %210 = vector.broadcast %189 : vector<1x32xf32> to vector<5x32xf32>
    %211 = arith.addf %209, %210 : vector<5x32xf32>
    %c1_57 = arith.constant 1 : index
    %c0_58 = arith.constant 0 : index
    %c0_59 = arith.constant 0 : index
    %212 = vector.load %arg8[%c1_57, %c0_58, %c0_59] : memref<4x160x128xbf16, #tpu.memory_space<vmem>>, vector<1x160x128xbf16>
    %213 = vector.shape_cast %212 : vector<1x160x128xbf16> to vector<160x128xbf16>
    %c1_60 = arith.constant 1 : index
    %c0_61 = arith.constant 0 : index
    %c0_62 = arith.constant 0 : index
    %214 = vector.load %arg9[%c1_60, %c0_61, %c0_62] : memref<4x2x128xf32, #tpu.memory_space<vmem>>, vector<1x2x128xf32>
    %215 = vector.shape_cast %214 : vector<1x2x128xf32> to vector<2x128xf32>
    %216 = arith.truncf %211 : vector<5x32xf32> to vector<5x32xbf16>
    %217 = vector.extract_strided_slice %213 {offsets = [0, 0], sizes = [32, 128], strides = [1, 1]} : vector<160x128xbf16> to vector<32x128xbf16>
    %cst_63 = arith.constant dense<0.000000e+00> : vector<5x128xf32>
    %218 = tpu.matmul %216, %217, %cst_63 {dimension_numbers = #tpu.dot_dimension_numbers<[1], [0], [0], [1], [0, 0, 1, 1], [], []>} : vector<5x32xbf16>, vector<32x128xbf16>, vector<5x128xf32> -> vector<5x128xf32>
    %219 = vector.extract_strided_slice %215 {offsets = [0, 0], sizes = [1, 128], strides = [1, 1]} : vector<2x128xf32> to vector<1x128xf32>
    %220 = vector.broadcast %219 : vector<1x128xf32> to vector<5x128xf32>
    %221 = arith.addf %218, %220 : vector<5x128xf32>
    %cst_64 = arith.constant 0.000000e+00 : f32
    %222 = vector.broadcast %cst_64 : f32 to vector<5x128xf32>
    %223 = arith.maximumf %221, %222 : vector<5x128xf32>
    %224 = arith.truncf %223 : vector<5x128xf32> to vector<5x128xbf16>
    %225 = vector.extract_strided_slice %213 {offsets = [32, 0], sizes = [128, 128], strides = [1, 1]} : vector<160x128xbf16> to vector<128x128xbf16>
    %cst_65 = arith.constant dense<0.000000e+00> : vector<5x128xf32>
    %226 = tpu.matmul %224, %225, %cst_65 {dimension_numbers = #tpu.dot_dimension_numbers<[1], [0], [0], [1], [0, 0, 1, 1], [], []>} : vector<5x128xbf16>, vector<128x128xbf16>, vector<5x128xf32> -> vector<5x128xf32>
    %227 = vector.extract_strided_slice %226 {offsets = [0, 0], sizes = [5, 32], strides = [1, 1]} : vector<5x128xf32> to vector<5x32xf32>
    %228 = vector.extract_strided_slice %215 {offsets = [1, 0], sizes = [1, 32], strides = [1, 1]} : vector<2x128xf32> to vector<1x32xf32>
    %229 = vector.broadcast %228 : vector<1x32xf32> to vector<5x32xf32>
    %230 = arith.addf %227, %229 : vector<5x32xf32>
    %231 = arith.addf %230, %211 : vector<5x32xf32>
    %232 = vector.extract_strided_slice %215 {offsets = [1, 32], sizes = [1, 32], strides = [1, 1]} : vector<2x128xf32> to vector<1x32xf32>
    %233 = vector.extract_strided_slice %215 {offsets = [1, 64], sizes = [1, 32], strides = [1, 1]} : vector<2x128xf32> to vector<1x32xf32>
    %cst_66 = arith.constant dense<0.000000e+00> : vector<5xf32>
    %234 = vector.multi_reduction <add>, %231, %cst_66 [1] : vector<5x32xf32> to vector<5xf32>
    %235 = vector.shape_cast %234 : vector<5xf32> to vector<5x1xf32>
    %cst_67 = arith.constant 3.200000e+01 : f32
    %236 = vector.broadcast %cst_67 : f32 to vector<5x1xf32>
    %237 = arith.divf %235, %236 : vector<5x1xf32>
    %238 = vector.broadcast %237 : vector<5x1xf32> to vector<5x32xf32>
    %239 = arith.subf %231, %238 : vector<5x32xf32>
    %240 = arith.mulf %239, %239 : vector<5x32xf32>
    %cst_68 = arith.constant dense<0.000000e+00> : vector<5xf32>
    %241 = vector.multi_reduction <add>, %240, %cst_68 [1] : vector<5x32xf32> to vector<5xf32>
    %242 = vector.shape_cast %241 : vector<5xf32> to vector<5x1xf32>
    %cst_69 = arith.constant 3.200000e+01 : f32
    %243 = vector.broadcast %cst_69 : f32 to vector<5x1xf32>
    %244 = arith.divf %242, %243 : vector<5x1xf32>
    %245 = vector.broadcast %237 : vector<5x1xf32> to vector<5x32xf32>
    %246 = arith.subf %231, %245 : vector<5x32xf32>
    %cst_70 = arith.constant 9.99999974E-6 : f32
    %247 = vector.broadcast %cst_70 : f32 to vector<5x1xf32>
    %248 = arith.addf %244, %247 : vector<5x1xf32>
    %249 = math.rsqrt %248 : vector<5x1xf32>
    %250 = vector.broadcast %249 : vector<5x1xf32> to vector<5x32xf32>
    %251 = arith.mulf %246, %250 : vector<5x32xf32>
    %252 = vector.broadcast %232 : vector<1x32xf32> to vector<5x32xf32>
    %253 = arith.mulf %251, %252 : vector<5x32xf32>
    %254 = vector.broadcast %233 : vector<1x32xf32> to vector<5x32xf32>
    %255 = arith.addf %253, %254 : vector<5x32xf32>
    %c0_71 = arith.constant 0 : index
    %c0_72 = arith.constant 0 : index
    %c0_73 = arith.constant 0 : index
    %256 = vector.load %arg2[%c0_71, %c0_72, %c0_73] : memref<2x5x32xf32, #tpu.memory_space<vmem>>, vector<1x5x32xf32>
    %257 = vector.shape_cast %256 : vector<1x5x32xf32> to vector<5x32xf32>
    %c2 = arith.constant 2 : index
    %c0_74 = arith.constant 0 : index
    %c0_75 = arith.constant 0 : index
    %258 = vector.load %arg6[%c2, %c0_74, %c0_75] : memref<6x32x128xbf16, #tpu.memory_space<vmem>>, vector<1x32x128xbf16>
    %259 = vector.shape_cast %258 : vector<1x32x128xbf16> to vector<32x128xbf16>
    %c2_76 = arith.constant 2 : index
    %c0_77 = arith.constant 0 : index
    %c0_78 = arith.constant 0 : index
    %260 = vector.load %arg7[%c2_76, %c0_77, %c0_78] : memref<6x2x128xf32, #tpu.memory_space<vmem>>, vector<1x2x128xf32>
    %261 = vector.shape_cast %260 : vector<1x2x128xf32> to vector<2x128xf32>
    %262 = arith.truncf %257 : vector<5x32xf32> to vector<5x32xbf16>
    %263 = vector.extract_strided_slice %259 {offsets = [0, 0], sizes = [32, 96], strides = [1, 1]} : vector<32x128xbf16> to vector<32x96xbf16>
    %cst_79 = arith.constant dense<0.000000e+00> : vector<5x96xf32>
    %264 = tpu.matmul %262, %263, %cst_79 {dimension_numbers = #tpu.dot_dimension_numbers<[1], [0], [0], [1], [0, 0, 1, 1], [], []>} : vector<5x32xbf16>, vector<32x96xbf16>, vector<5x96xf32> -> vector<5x96xf32>
    %265 = vector.extract_strided_slice %261 {offsets = [0, 0], sizes = [1, 96], strides = [1, 1]} : vector<2x128xf32> to vector<1x96xf32>
    %266 = vector.broadcast %265 : vector<1x96xf32> to vector<5x96xf32>
    %267 = arith.addf %264, %266 : vector<5x96xf32>
    %268 = vector.extract_strided_slice %267 {offsets = [0, 0], sizes = [5, 32], strides = [1, 1]} : vector<5x96xf32> to vector<5x32xf32>
    %269 = vector.extract_strided_slice %267 {offsets = [0, 32], sizes = [5, 32], strides = [1, 1]} : vector<5x96xf32> to vector<5x32xf32>
    %270 = vector.extract_strided_slice %267 {offsets = [0, 64], sizes = [5, 32], strides = [1, 1]} : vector<5x96xf32> to vector<5x32xf32>
    %271 = vector.extract_strided_slice %268 {offsets = [0, 0], sizes = [5, 8], strides = [1, 1]} : vector<5x32xf32> to vector<5x8xf32>
    %272 = vector.extract_strided_slice %268 {offsets = [0, 8], sizes = [5, 8], strides = [1, 1]} : vector<5x32xf32> to vector<5x8xf32>
    %273 = vector.extract_strided_slice %268 {offsets = [0, 16], sizes = [5, 8], strides = [1, 1]} : vector<5x32xf32> to vector<5x8xf32>
    %274 = vector.extract_strided_slice %268 {offsets = [0, 24], sizes = [5, 8], strides = [1, 1]} : vector<5x32xf32> to vector<5x8xf32>
    %275 = tpu.concatenate %271, %272, %273, %274 in 0 : vector<5x8xf32>, vector<5x8xf32>, vector<5x8xf32>, vector<5x8xf32> -> vector<20x8xf32>
    %276 = arith.truncf %275 : vector<20x8xf32> to vector<20x8xbf16>
    %277 = vector.extract_strided_slice %269 {offsets = [0, 0], sizes = [5, 8], strides = [1, 1]} : vector<5x32xf32> to vector<5x8xf32>
    %278 = vector.extract_strided_slice %269 {offsets = [0, 8], sizes = [5, 8], strides = [1, 1]} : vector<5x32xf32> to vector<5x8xf32>
    %279 = vector.extract_strided_slice %269 {offsets = [0, 16], sizes = [5, 8], strides = [1, 1]} : vector<5x32xf32> to vector<5x8xf32>
    %280 = vector.extract_strided_slice %269 {offsets = [0, 24], sizes = [5, 8], strides = [1, 1]} : vector<5x32xf32> to vector<5x8xf32>
    %281 = tpu.concatenate %277, %278, %279, %280 in 0 : vector<5x8xf32>, vector<5x8xf32>, vector<5x8xf32>, vector<5x8xf32> -> vector<20x8xf32>
    %282 = arith.truncf %281 : vector<20x8xf32> to vector<20x8xbf16>
    %283 = vector.extract_strided_slice %270 {offsets = [0, 0], sizes = [5, 8], strides = [1, 1]} : vector<5x32xf32> to vector<5x8xf32>
    %284 = vector.extract_strided_slice %270 {offsets = [0, 8], sizes = [5, 8], strides = [1, 1]} : vector<5x32xf32> to vector<5x8xf32>
    %285 = vector.extract_strided_slice %270 {offsets = [0, 16], sizes = [5, 8], strides = [1, 1]} : vector<5x32xf32> to vector<5x8xf32>
    %286 = vector.extract_strided_slice %270 {offsets = [0, 24], sizes = [5, 8], strides = [1, 1]} : vector<5x32xf32> to vector<5x8xf32>
    %287 = tpu.concatenate %283, %284, %285, %286 in 0 : vector<5x8xf32>, vector<5x8xf32>, vector<5x8xf32>, vector<5x8xf32> -> vector<20x8xf32>
    %288 = arith.truncf %287 : vector<20x8xf32> to vector<20x8xbf16>
    %cst_80 = arith.constant dense<0.000000e+00> : vector<20x20xf32>
    %289 = tpu.matmul %276, %282, %cst_80 {dimension_numbers = #tpu.dot_dimension_numbers<[1], [1], [0], [0], [0, 0, 1, 0], [], []>} : vector<20x8xbf16>, vector<20x8xbf16>, vector<20x20xf32> -> vector<20x20xf32>
    %290 = arith.addf %289, %3 : vector<20x20xf32>
    %cst_81 = arith.constant dense<0xFF800000> : vector<20xf32>
    %291 = vector.multi_reduction <maximumf>, %290, %cst_81 [1] : vector<20x20xf32> to vector<20xf32>
    %292 = vector.shape_cast %291 : vector<20xf32> to vector<20x1xf32>
    %293 = vector.broadcast %292 : vector<20x1xf32> to vector<20x20xf32>
    %294 = arith.subf %290, %293 : vector<20x20xf32>
    %295 = math.exp %294 : vector<20x20xf32>
    %cst_82 = arith.constant dense<0.000000e+00> : vector<20xf32>
    %296 = vector.multi_reduction <add>, %295, %cst_82 [1] : vector<20x20xf32> to vector<20xf32>
    %297 = vector.shape_cast %296 : vector<20xf32> to vector<20x1xf32>
    %298 = vector.broadcast %297 : vector<20x1xf32> to vector<20x20xf32>
    %299 = arith.divf %295, %298 : vector<20x20xf32>
    %300 = arith.truncf %299 : vector<20x20xf32> to vector<20x20xbf16>
    %cst_83 = arith.constant dense<0.000000e+00> : vector<20x8xf32>
    %301 = tpu.matmul %300, %288, %cst_83 {dimension_numbers = #tpu.dot_dimension_numbers<[1], [0], [0], [1], [0, 0, 1, 1], [], []>} : vector<20x20xbf16>, vector<20x8xbf16>, vector<20x8xf32> -> vector<20x8xf32>
    %302 = vector.extract_strided_slice %301 {offsets = [0, 0], sizes = [5, 8], strides = [1, 1]} : vector<20x8xf32> to vector<5x8xf32>
    %303 = vector.extract_strided_slice %301 {offsets = [5, 0], sizes = [5, 8], strides = [1, 1]} : vector<20x8xf32> to vector<5x8xf32>
    %304 = vector.extract_strided_slice %301 {offsets = [10, 0], sizes = [5, 8], strides = [1, 1]} : vector<20x8xf32> to vector<5x8xf32>
    %305 = vector.extract_strided_slice %301 {offsets = [15, 0], sizes = [5, 8], strides = [1, 1]} : vector<20x8xf32> to vector<5x8xf32>
    %306 = tpu.concatenate %302, %303, %304, %305 in 1 : vector<5x8xf32>, vector<5x8xf32>, vector<5x8xf32>, vector<5x8xf32> -> vector<5x32xf32>
    %307 = arith.truncf %306 : vector<5x32xf32> to vector<5x32xbf16>
    %308 = vector.extract_strided_slice %259 {offsets = [0, 96], sizes = [32, 32], strides = [1, 1]} : vector<32x128xbf16> to vector<32x32xbf16>
    %cst_84 = arith.constant dense<0.000000e+00> : vector<5x32xf32>
    %309 = tpu.matmul %307, %308, %cst_84 {dimension_numbers = #tpu.dot_dimension_numbers<[1], [0], [0], [1], [0, 0, 1, 1], [], []>} : vector<5x32xbf16>, vector<32x32xbf16>, vector<5x32xf32> -> vector<5x32xf32>
    %310 = vector.extract_strided_slice %261 {offsets = [0, 96], sizes = [1, 32], strides = [1, 1]} : vector<2x128xf32> to vector<1x32xf32>
    %311 = vector.broadcast %310 : vector<1x32xf32> to vector<5x32xf32>
    %312 = arith.addf %309, %311 : vector<5x32xf32>
    %313 = arith.addf %312, %257 : vector<5x32xf32>
    %314 = vector.extract_strided_slice %261 {offsets = [1, 0], sizes = [1, 32], strides = [1, 1]} : vector<2x128xf32> to vector<1x32xf32>
    %315 = vector.extract_strided_slice %261 {offsets = [1, 32], sizes = [1, 32], strides = [1, 1]} : vector<2x128xf32> to vector<1x32xf32>
    %cst_85 = arith.constant dense<0.000000e+00> : vector<5xf32>
    %316 = vector.multi_reduction <add>, %313, %cst_85 [1] : vector<5x32xf32> to vector<5xf32>
    %317 = vector.shape_cast %316 : vector<5xf32> to vector<5x1xf32>
    %cst_86 = arith.constant 3.200000e+01 : f32
    %318 = vector.broadcast %cst_86 : f32 to vector<5x1xf32>
    %319 = arith.divf %317, %318 : vector<5x1xf32>
    %320 = vector.broadcast %319 : vector<5x1xf32> to vector<5x32xf32>
    %321 = arith.subf %313, %320 : vector<5x32xf32>
    %322 = arith.mulf %321, %321 : vector<5x32xf32>
    %cst_87 = arith.constant dense<0.000000e+00> : vector<5xf32>
    %323 = vector.multi_reduction <add>, %322, %cst_87 [1] : vector<5x32xf32> to vector<5xf32>
    %324 = vector.shape_cast %323 : vector<5xf32> to vector<5x1xf32>
    %cst_88 = arith.constant 3.200000e+01 : f32
    %325 = vector.broadcast %cst_88 : f32 to vector<5x1xf32>
    %326 = arith.divf %324, %325 : vector<5x1xf32>
    %327 = vector.broadcast %319 : vector<5x1xf32> to vector<5x32xf32>
    %328 = arith.subf %313, %327 : vector<5x32xf32>
    %cst_89 = arith.constant 9.99999974E-6 : f32
    %329 = vector.broadcast %cst_89 : f32 to vector<5x1xf32>
    %330 = arith.addf %326, %329 : vector<5x1xf32>
    %331 = math.rsqrt %330 : vector<5x1xf32>
    %332 = vector.broadcast %331 : vector<5x1xf32> to vector<5x32xf32>
    %333 = arith.mulf %328, %332 : vector<5x32xf32>
    %334 = vector.broadcast %314 : vector<1x32xf32> to vector<5x32xf32>
    %335 = arith.mulf %333, %334 : vector<5x32xf32>
    %336 = vector.broadcast %315 : vector<1x32xf32> to vector<5x32xf32>
    %337 = arith.addf %335, %336 : vector<5x32xf32>
    %c3 = arith.constant 3 : index
    %c0_90 = arith.constant 0 : index
    %c0_91 = arith.constant 0 : index
    %338 = vector.load %arg6[%c3, %c0_90, %c0_91] : memref<6x32x128xbf16, #tpu.memory_space<vmem>>, vector<1x32x128xbf16>
    %339 = vector.shape_cast %338 : vector<1x32x128xbf16> to vector<32x128xbf16>
    %c3_92 = arith.constant 3 : index
    %c0_93 = arith.constant 0 : index
    %c0_94 = arith.constant 0 : index
    %340 = vector.load %arg7[%c3_92, %c0_93, %c0_94] : memref<6x2x128xf32, #tpu.memory_space<vmem>>, vector<1x2x128xf32>
    %341 = vector.shape_cast %340 : vector<1x2x128xf32> to vector<2x128xf32>
    %342 = arith.truncf %337 : vector<5x32xf32> to vector<5x32xbf16>
    %343 = vector.extract_strided_slice %339 {offsets = [0, 0], sizes = [32, 32], strides = [1, 1]} : vector<32x128xbf16> to vector<32x32xbf16>
    %cst_95 = arith.constant dense<0.000000e+00> : vector<5x32xf32>
    %344 = tpu.matmul %342, %343, %cst_95 {dimension_numbers = #tpu.dot_dimension_numbers<[1], [0], [0], [1], [0, 0, 1, 1], [], []>} : vector<5x32xbf16>, vector<32x32xbf16>, vector<5x32xf32> -> vector<5x32xf32>
    %345 = vector.extract_strided_slice %341 {offsets = [0, 0], sizes = [1, 32], strides = [1, 1]} : vector<2x128xf32> to vector<1x32xf32>
    %346 = vector.broadcast %345 : vector<1x32xf32> to vector<5x32xf32>
    %347 = arith.addf %344, %346 : vector<5x32xf32>
    %348 = arith.truncf %255 : vector<5x32xf32> to vector<5x32xbf16>
    %349 = vector.extract_strided_slice %339 {offsets = [0, 32], sizes = [32, 64], strides = [1, 1]} : vector<32x128xbf16> to vector<32x64xbf16>
    %cst_96 = arith.constant dense<0.000000e+00> : vector<5x64xf32>
    %350 = tpu.matmul %348, %349, %cst_96 {dimension_numbers = #tpu.dot_dimension_numbers<[1], [0], [0], [1], [0, 0, 1, 1], [], []>} : vector<5x32xbf16>, vector<32x64xbf16>, vector<5x64xf32> -> vector<5x64xf32>
    %351 = vector.extract_strided_slice %341 {offsets = [0, 32], sizes = [1, 64], strides = [1, 1]} : vector<2x128xf32> to vector<1x64xf32>
    %352 = vector.broadcast %351 : vector<1x64xf32> to vector<5x64xf32>
    %353 = arith.addf %350, %352 : vector<5x64xf32>
    %354 = vector.extract_strided_slice %353 {offsets = [0, 0], sizes = [5, 32], strides = [1, 1]} : vector<5x64xf32> to vector<5x32xf32>
    %355 = vector.extract_strided_slice %353 {offsets = [0, 32], sizes = [5, 32], strides = [1, 1]} : vector<5x64xf32> to vector<5x32xf32>
    %356 = vector.extract_strided_slice %347 {offsets = [0, 0], sizes = [5, 8], strides = [1, 1]} : vector<5x32xf32> to vector<5x8xf32>
    %357 = vector.extract_strided_slice %347 {offsets = [0, 8], sizes = [5, 8], strides = [1, 1]} : vector<5x32xf32> to vector<5x8xf32>
    %358 = vector.extract_strided_slice %347 {offsets = [0, 16], sizes = [5, 8], strides = [1, 1]} : vector<5x32xf32> to vector<5x8xf32>
    %359 = vector.extract_strided_slice %347 {offsets = [0, 24], sizes = [5, 8], strides = [1, 1]} : vector<5x32xf32> to vector<5x8xf32>
    %360 = tpu.concatenate %356, %357, %358, %359 in 0 : vector<5x8xf32>, vector<5x8xf32>, vector<5x8xf32>, vector<5x8xf32> -> vector<20x8xf32>
    %361 = arith.truncf %360 : vector<20x8xf32> to vector<20x8xbf16>
    %362 = vector.extract_strided_slice %354 {offsets = [0, 0], sizes = [5, 8], strides = [1, 1]} : vector<5x32xf32> to vector<5x8xf32>
    %363 = vector.extract_strided_slice %354 {offsets = [0, 8], sizes = [5, 8], strides = [1, 1]} : vector<5x32xf32> to vector<5x8xf32>
    %364 = vector.extract_strided_slice %354 {offsets = [0, 16], sizes = [5, 8], strides = [1, 1]} : vector<5x32xf32> to vector<5x8xf32>
    %365 = vector.extract_strided_slice %354 {offsets = [0, 24], sizes = [5, 8], strides = [1, 1]} : vector<5x32xf32> to vector<5x8xf32>
    %366 = tpu.concatenate %362, %363, %364, %365 in 0 : vector<5x8xf32>, vector<5x8xf32>, vector<5x8xf32>, vector<5x8xf32> -> vector<20x8xf32>
    %367 = arith.truncf %366 : vector<20x8xf32> to vector<20x8xbf16>
    %368 = vector.extract_strided_slice %355 {offsets = [0, 0], sizes = [5, 8], strides = [1, 1]} : vector<5x32xf32> to vector<5x8xf32>
    %369 = vector.extract_strided_slice %355 {offsets = [0, 8], sizes = [5, 8], strides = [1, 1]} : vector<5x32xf32> to vector<5x8xf32>
    %370 = vector.extract_strided_slice %355 {offsets = [0, 16], sizes = [5, 8], strides = [1, 1]} : vector<5x32xf32> to vector<5x8xf32>
    %371 = vector.extract_strided_slice %355 {offsets = [0, 24], sizes = [5, 8], strides = [1, 1]} : vector<5x32xf32> to vector<5x8xf32>
    %372 = tpu.concatenate %368, %369, %370, %371 in 0 : vector<5x8xf32>, vector<5x8xf32>, vector<5x8xf32>, vector<5x8xf32> -> vector<20x8xf32>
    %373 = arith.truncf %372 : vector<20x8xf32> to vector<20x8xbf16>
    %cst_97 = arith.constant dense<0.000000e+00> : vector<20x20xf32>
    %374 = tpu.matmul %361, %367, %cst_97 {dimension_numbers = #tpu.dot_dimension_numbers<[1], [1], [0], [0], [0, 0, 1, 0], [], []>} : vector<20x8xbf16>, vector<20x8xbf16>, vector<20x20xf32> -> vector<20x20xf32>
    %375 = arith.addf %374, %5 : vector<20x20xf32>
    %cst_98 = arith.constant dense<0xFF800000> : vector<20xf32>
    %376 = vector.multi_reduction <maximumf>, %375, %cst_98 [1] : vector<20x20xf32> to vector<20xf32>
    %377 = vector.shape_cast %376 : vector<20xf32> to vector<20x1xf32>
    %378 = vector.broadcast %377 : vector<20x1xf32> to vector<20x20xf32>
    %379 = arith.subf %375, %378 : vector<20x20xf32>
    %380 = math.exp %379 : vector<20x20xf32>
    %cst_99 = arith.constant dense<0.000000e+00> : vector<20xf32>
    %381 = vector.multi_reduction <add>, %380, %cst_99 [1] : vector<20x20xf32> to vector<20xf32>
    %382 = vector.shape_cast %381 : vector<20xf32> to vector<20x1xf32>
    %383 = vector.broadcast %382 : vector<20x1xf32> to vector<20x20xf32>
    %384 = arith.divf %380, %383 : vector<20x20xf32>
    %385 = arith.truncf %384 : vector<20x20xf32> to vector<20x20xbf16>
    %cst_100 = arith.constant dense<0.000000e+00> : vector<20x8xf32>
    %386 = tpu.matmul %385, %373, %cst_100 {dimension_numbers = #tpu.dot_dimension_numbers<[1], [0], [0], [1], [0, 0, 1, 1], [], []>} : vector<20x20xbf16>, vector<20x8xbf16>, vector<20x8xf32> -> vector<20x8xf32>
    %387 = vector.extract_strided_slice %386 {offsets = [0, 0], sizes = [5, 8], strides = [1, 1]} : vector<20x8xf32> to vector<5x8xf32>
    %388 = vector.extract_strided_slice %386 {offsets = [5, 0], sizes = [5, 8], strides = [1, 1]} : vector<20x8xf32> to vector<5x8xf32>
    %389 = vector.extract_strided_slice %386 {offsets = [10, 0], sizes = [5, 8], strides = [1, 1]} : vector<20x8xf32> to vector<5x8xf32>
    %390 = vector.extract_strided_slice %386 {offsets = [15, 0], sizes = [5, 8], strides = [1, 1]} : vector<20x8xf32> to vector<5x8xf32>
    %391 = tpu.concatenate %387, %388, %389, %390 in 1 : vector<5x8xf32>, vector<5x8xf32>, vector<5x8xf32>, vector<5x8xf32> -> vector<5x32xf32>
    %392 = arith.truncf %391 : vector<5x32xf32> to vector<5x32xbf16>
    %393 = vector.extract_strided_slice %339 {offsets = [0, 96], sizes = [32, 32], strides = [1, 1]} : vector<32x128xbf16> to vector<32x32xbf16>
    %cst_101 = arith.constant dense<0.000000e+00> : vector<5x32xf32>
    %394 = tpu.matmul %392, %393, %cst_101 {dimension_numbers = #tpu.dot_dimension_numbers<[1], [0], [0], [1], [0, 0, 1, 1], [], []>} : vector<5x32xbf16>, vector<32x32xbf16>, vector<5x32xf32> -> vector<5x32xf32>
    %395 = vector.extract_strided_slice %341 {offsets = [0, 96], sizes = [1, 32], strides = [1, 1]} : vector<2x128xf32> to vector<1x32xf32>
    %396 = vector.broadcast %395 : vector<1x32xf32> to vector<5x32xf32>
    %397 = arith.addf %394, %396 : vector<5x32xf32>
    %398 = arith.addf %397, %337 : vector<5x32xf32>
    %399 = vector.extract_strided_slice %341 {offsets = [1, 0], sizes = [1, 32], strides = [1, 1]} : vector<2x128xf32> to vector<1x32xf32>
    %400 = vector.extract_strided_slice %341 {offsets = [1, 32], sizes = [1, 32], strides = [1, 1]} : vector<2x128xf32> to vector<1x32xf32>
    %cst_102 = arith.constant dense<0.000000e+00> : vector<5xf32>
    %401 = vector.multi_reduction <add>, %398, %cst_102 [1] : vector<5x32xf32> to vector<5xf32>
    %402 = vector.shape_cast %401 : vector<5xf32> to vector<5x1xf32>
    %cst_103 = arith.constant 3.200000e+01 : f32
    %403 = vector.broadcast %cst_103 : f32 to vector<5x1xf32>
    %404 = arith.divf %402, %403 : vector<5x1xf32>
    %405 = vector.broadcast %404 : vector<5x1xf32> to vector<5x32xf32>
    %406 = arith.subf %398, %405 : vector<5x32xf32>
    %407 = arith.mulf %406, %406 : vector<5x32xf32>
    %cst_104 = arith.constant dense<0.000000e+00> : vector<5xf32>
    %408 = vector.multi_reduction <add>, %407, %cst_104 [1] : vector<5x32xf32> to vector<5xf32>
    %409 = vector.shape_cast %408 : vector<5xf32> to vector<5x1xf32>
    %cst_105 = arith.constant 3.200000e+01 : f32
    %410 = vector.broadcast %cst_105 : f32 to vector<5x1xf32>
    %411 = arith.divf %409, %410 : vector<5x1xf32>
    %412 = vector.broadcast %404 : vector<5x1xf32> to vector<5x32xf32>
    %413 = arith.subf %398, %412 : vector<5x32xf32>
    %cst_106 = arith.constant 9.99999974E-6 : f32
    %414 = vector.broadcast %cst_106 : f32 to vector<5x1xf32>
    %415 = arith.addf %411, %414 : vector<5x1xf32>
    %416 = math.rsqrt %415 : vector<5x1xf32>
    %417 = vector.broadcast %416 : vector<5x1xf32> to vector<5x32xf32>
    %418 = arith.mulf %413, %417 : vector<5x32xf32>
    %419 = vector.broadcast %399 : vector<1x32xf32> to vector<5x32xf32>
    %420 = arith.mulf %418, %419 : vector<5x32xf32>
    %421 = vector.broadcast %400 : vector<1x32xf32> to vector<5x32xf32>
    %422 = arith.addf %420, %421 : vector<5x32xf32>
    %c2_107 = arith.constant 2 : index
    %c0_108 = arith.constant 0 : index
    %c0_109 = arith.constant 0 : index
    %423 = vector.load %arg8[%c2_107, %c0_108, %c0_109] : memref<4x160x128xbf16, #tpu.memory_space<vmem>>, vector<1x160x128xbf16>
    %424 = vector.shape_cast %423 : vector<1x160x128xbf16> to vector<160x128xbf16>
    %c2_110 = arith.constant 2 : index
    %c0_111 = arith.constant 0 : index
    %c0_112 = arith.constant 0 : index
    %425 = vector.load %arg9[%c2_110, %c0_111, %c0_112] : memref<4x2x128xf32, #tpu.memory_space<vmem>>, vector<1x2x128xf32>
    %426 = vector.shape_cast %425 : vector<1x2x128xf32> to vector<2x128xf32>
    %427 = arith.truncf %422 : vector<5x32xf32> to vector<5x32xbf16>
    %428 = vector.extract_strided_slice %424 {offsets = [0, 0], sizes = [32, 128], strides = [1, 1]} : vector<160x128xbf16> to vector<32x128xbf16>
    %cst_113 = arith.constant dense<0.000000e+00> : vector<5x128xf32>
    %429 = tpu.matmul %427, %428, %cst_113 {dimension_numbers = #tpu.dot_dimension_numbers<[1], [0], [0], [1], [0, 0, 1, 1], [], []>} : vector<5x32xbf16>, vector<32x128xbf16>, vector<5x128xf32> -> vector<5x128xf32>
    %430 = vector.extract_strided_slice %426 {offsets = [0, 0], sizes = [1, 128], strides = [1, 1]} : vector<2x128xf32> to vector<1x128xf32>
    %431 = vector.broadcast %430 : vector<1x128xf32> to vector<5x128xf32>
    %432 = arith.addf %429, %431 : vector<5x128xf32>
    %cst_114 = arith.constant 0.000000e+00 : f32
    %433 = vector.broadcast %cst_114 : f32 to vector<5x128xf32>
    %434 = arith.maximumf %432, %433 : vector<5x128xf32>
    %435 = arith.truncf %434 : vector<5x128xf32> to vector<5x128xbf16>
    %436 = vector.extract_strided_slice %424 {offsets = [32, 0], sizes = [128, 128], strides = [1, 1]} : vector<160x128xbf16> to vector<128x128xbf16>
    %cst_115 = arith.constant dense<0.000000e+00> : vector<5x128xf32>
    %437 = tpu.matmul %435, %436, %cst_115 {dimension_numbers = #tpu.dot_dimension_numbers<[1], [0], [0], [1], [0, 0, 1, 1], [], []>} : vector<5x128xbf16>, vector<128x128xbf16>, vector<5x128xf32> -> vector<5x128xf32>
    %438 = vector.extract_strided_slice %437 {offsets = [0, 0], sizes = [5, 32], strides = [1, 1]} : vector<5x128xf32> to vector<5x32xf32>
    %439 = vector.extract_strided_slice %426 {offsets = [1, 0], sizes = [1, 32], strides = [1, 1]} : vector<2x128xf32> to vector<1x32xf32>
    %440 = vector.broadcast %439 : vector<1x32xf32> to vector<5x32xf32>
    %441 = arith.addf %438, %440 : vector<5x32xf32>
    %442 = arith.addf %441, %422 : vector<5x32xf32>
    %443 = vector.extract_strided_slice %426 {offsets = [1, 32], sizes = [1, 32], strides = [1, 1]} : vector<2x128xf32> to vector<1x32xf32>
    %444 = vector.extract_strided_slice %426 {offsets = [1, 64], sizes = [1, 32], strides = [1, 1]} : vector<2x128xf32> to vector<1x32xf32>
    %cst_116 = arith.constant dense<0.000000e+00> : vector<5xf32>
    %445 = vector.multi_reduction <add>, %442, %cst_116 [1] : vector<5x32xf32> to vector<5xf32>
    %446 = vector.shape_cast %445 : vector<5xf32> to vector<5x1xf32>
    %cst_117 = arith.constant 3.200000e+01 : f32
    %447 = vector.broadcast %cst_117 : f32 to vector<5x1xf32>
    %448 = arith.divf %446, %447 : vector<5x1xf32>
    %449 = vector.broadcast %448 : vector<5x1xf32> to vector<5x32xf32>
    %450 = arith.subf %442, %449 : vector<5x32xf32>
    %451 = arith.mulf %450, %450 : vector<5x32xf32>
    %cst_118 = arith.constant dense<0.000000e+00> : vector<5xf32>
    %452 = vector.multi_reduction <add>, %451, %cst_118 [1] : vector<5x32xf32> to vector<5xf32>
    %453 = vector.shape_cast %452 : vector<5xf32> to vector<5x1xf32>
    %cst_119 = arith.constant 3.200000e+01 : f32
    %454 = vector.broadcast %cst_119 : f32 to vector<5x1xf32>
    %455 = arith.divf %453, %454 : vector<5x1xf32>
    %456 = vector.broadcast %448 : vector<5x1xf32> to vector<5x32xf32>
    %457 = arith.subf %442, %456 : vector<5x32xf32>
    %cst_120 = arith.constant 9.99999974E-6 : f32
    %458 = vector.broadcast %cst_120 : f32 to vector<5x1xf32>
    %459 = arith.addf %455, %458 : vector<5x1xf32>
    %460 = math.rsqrt %459 : vector<5x1xf32>
    %461 = vector.broadcast %460 : vector<5x1xf32> to vector<5x32xf32>
    %462 = arith.mulf %457, %461 : vector<5x32xf32>
    %463 = vector.broadcast %443 : vector<1x32xf32> to vector<5x32xf32>
    %464 = arith.mulf %462, %463 : vector<5x32xf32>
    %465 = vector.broadcast %444 : vector<1x32xf32> to vector<5x32xf32>
    %466 = arith.addf %464, %465 : vector<5x32xf32>
    %c4 = arith.constant 4 : index
    %c0_121 = arith.constant 0 : index
    %c0_122 = arith.constant 0 : index
    %467 = vector.load %arg6[%c4, %c0_121, %c0_122] : memref<6x32x128xbf16, #tpu.memory_space<vmem>>, vector<1x32x128xbf16>
    %468 = vector.shape_cast %467 : vector<1x32x128xbf16> to vector<32x128xbf16>
    %c4_123 = arith.constant 4 : index
    %c0_124 = arith.constant 0 : index
    %c0_125 = arith.constant 0 : index
    %469 = vector.load %arg7[%c4_123, %c0_124, %c0_125] : memref<6x2x128xf32, #tpu.memory_space<vmem>>, vector<1x2x128xf32>
    %470 = vector.shape_cast %469 : vector<1x2x128xf32> to vector<2x128xf32>
    %471 = arith.truncf %466 : vector<5x32xf32> to vector<5x32xbf16>
    %472 = vector.extract_strided_slice %468 {offsets = [0, 0], sizes = [32, 96], strides = [1, 1]} : vector<32x128xbf16> to vector<32x96xbf16>
    %cst_126 = arith.constant dense<0.000000e+00> : vector<5x96xf32>
    %473 = tpu.matmul %471, %472, %cst_126 {dimension_numbers = #tpu.dot_dimension_numbers<[1], [0], [0], [1], [0, 0, 1, 1], [], []>} : vector<5x32xbf16>, vector<32x96xbf16>, vector<5x96xf32> -> vector<5x96xf32>
    %474 = vector.extract_strided_slice %470 {offsets = [0, 0], sizes = [1, 96], strides = [1, 1]} : vector<2x128xf32> to vector<1x96xf32>
    %475 = vector.broadcast %474 : vector<1x96xf32> to vector<5x96xf32>
    %476 = arith.addf %473, %475 : vector<5x96xf32>
    %477 = vector.extract_strided_slice %476 {offsets = [0, 0], sizes = [5, 32], strides = [1, 1]} : vector<5x96xf32> to vector<5x32xf32>
    %478 = vector.extract_strided_slice %476 {offsets = [0, 32], sizes = [5, 32], strides = [1, 1]} : vector<5x96xf32> to vector<5x32xf32>
    %479 = vector.extract_strided_slice %476 {offsets = [0, 64], sizes = [5, 32], strides = [1, 1]} : vector<5x96xf32> to vector<5x32xf32>
    %480 = vector.extract_strided_slice %477 {offsets = [0, 0], sizes = [5, 8], strides = [1, 1]} : vector<5x32xf32> to vector<5x8xf32>
    %481 = vector.extract_strided_slice %477 {offsets = [0, 8], sizes = [5, 8], strides = [1, 1]} : vector<5x32xf32> to vector<5x8xf32>
    %482 = vector.extract_strided_slice %477 {offsets = [0, 16], sizes = [5, 8], strides = [1, 1]} : vector<5x32xf32> to vector<5x8xf32>
    %483 = vector.extract_strided_slice %477 {offsets = [0, 24], sizes = [5, 8], strides = [1, 1]} : vector<5x32xf32> to vector<5x8xf32>
    %484 = tpu.concatenate %480, %481, %482, %483 in 0 : vector<5x8xf32>, vector<5x8xf32>, vector<5x8xf32>, vector<5x8xf32> -> vector<20x8xf32>
    %485 = arith.truncf %484 : vector<20x8xf32> to vector<20x8xbf16>
    %486 = vector.extract_strided_slice %478 {offsets = [0, 0], sizes = [5, 8], strides = [1, 1]} : vector<5x32xf32> to vector<5x8xf32>
    %487 = vector.extract_strided_slice %478 {offsets = [0, 8], sizes = [5, 8], strides = [1, 1]} : vector<5x32xf32> to vector<5x8xf32>
    %488 = vector.extract_strided_slice %478 {offsets = [0, 16], sizes = [5, 8], strides = [1, 1]} : vector<5x32xf32> to vector<5x8xf32>
    %489 = vector.extract_strided_slice %478 {offsets = [0, 24], sizes = [5, 8], strides = [1, 1]} : vector<5x32xf32> to vector<5x8xf32>
    %490 = tpu.concatenate %486, %487, %488, %489 in 0 : vector<5x8xf32>, vector<5x8xf32>, vector<5x8xf32>, vector<5x8xf32> -> vector<20x8xf32>
    %491 = arith.truncf %490 : vector<20x8xf32> to vector<20x8xbf16>
    %492 = vector.extract_strided_slice %479 {offsets = [0, 0], sizes = [5, 8], strides = [1, 1]} : vector<5x32xf32> to vector<5x8xf32>
    %493 = vector.extract_strided_slice %479 {offsets = [0, 8], sizes = [5, 8], strides = [1, 1]} : vector<5x32xf32> to vector<5x8xf32>
    %494 = vector.extract_strided_slice %479 {offsets = [0, 16], sizes = [5, 8], strides = [1, 1]} : vector<5x32xf32> to vector<5x8xf32>
    %495 = vector.extract_strided_slice %479 {offsets = [0, 24], sizes = [5, 8], strides = [1, 1]} : vector<5x32xf32> to vector<5x8xf32>
    %496 = tpu.concatenate %492, %493, %494, %495 in 0 : vector<5x8xf32>, vector<5x8xf32>, vector<5x8xf32>, vector<5x8xf32> -> vector<20x8xf32>
    %497 = arith.truncf %496 : vector<20x8xf32> to vector<20x8xbf16>
    %cst_127 = arith.constant dense<0.000000e+00> : vector<20x20xf32>
    %498 = tpu.matmul %485, %491, %cst_127 {dimension_numbers = #tpu.dot_dimension_numbers<[1], [1], [0], [0], [0, 0, 1, 0], [], []>} : vector<20x8xbf16>, vector<20x8xbf16>, vector<20x20xf32> -> vector<20x20xf32>
    %499 = arith.addf %498, %3 : vector<20x20xf32>
    %cst_128 = arith.constant dense<0xFF800000> : vector<20xf32>
    %500 = vector.multi_reduction <maximumf>, %499, %cst_128 [1] : vector<20x20xf32> to vector<20xf32>
    %501 = vector.shape_cast %500 : vector<20xf32> to vector<20x1xf32>
    %502 = vector.broadcast %501 : vector<20x1xf32> to vector<20x20xf32>
    %503 = arith.subf %499, %502 : vector<20x20xf32>
    %504 = math.exp %503 : vector<20x20xf32>
    %cst_129 = arith.constant dense<0.000000e+00> : vector<20xf32>
    %505 = vector.multi_reduction <add>, %504, %cst_129 [1] : vector<20x20xf32> to vector<20xf32>
    %506 = vector.shape_cast %505 : vector<20xf32> to vector<20x1xf32>
    %507 = vector.broadcast %506 : vector<20x1xf32> to vector<20x20xf32>
    %508 = arith.divf %504, %507 : vector<20x20xf32>
    %509 = arith.truncf %508 : vector<20x20xf32> to vector<20x20xbf16>
    %cst_130 = arith.constant dense<0.000000e+00> : vector<20x8xf32>
    %510 = tpu.matmul %509, %497, %cst_130 {dimension_numbers = #tpu.dot_dimension_numbers<[1], [0], [0], [1], [0, 0, 1, 1], [], []>} : vector<20x20xbf16>, vector<20x8xbf16>, vector<20x8xf32> -> vector<20x8xf32>
    %511 = vector.extract_strided_slice %510 {offsets = [0, 0], sizes = [5, 8], strides = [1, 1]} : vector<20x8xf32> to vector<5x8xf32>
    %512 = vector.extract_strided_slice %510 {offsets = [5, 0], sizes = [5, 8], strides = [1, 1]} : vector<20x8xf32> to vector<5x8xf32>
    %513 = vector.extract_strided_slice %510 {offsets = [10, 0], sizes = [5, 8], strides = [1, 1]} : vector<20x8xf32> to vector<5x8xf32>
    %514 = vector.extract_strided_slice %510 {offsets = [15, 0], sizes = [5, 8], strides = [1, 1]} : vector<20x8xf32> to vector<5x8xf32>
    %515 = tpu.concatenate %511, %512, %513, %514 in 1 : vector<5x8xf32>, vector<5x8xf32>, vector<5x8xf32>, vector<5x8xf32> -> vector<5x32xf32>
    %516 = arith.truncf %515 : vector<5x32xf32> to vector<5x32xbf16>
    %517 = vector.extract_strided_slice %468 {offsets = [0, 96], sizes = [32, 32], strides = [1, 1]} : vector<32x128xbf16> to vector<32x32xbf16>
    %cst_131 = arith.constant dense<0.000000e+00> : vector<5x32xf32>
    %518 = tpu.matmul %516, %517, %cst_131 {dimension_numbers = #tpu.dot_dimension_numbers<[1], [0], [0], [1], [0, 0, 1, 1], [], []>} : vector<5x32xbf16>, vector<32x32xbf16>, vector<5x32xf32> -> vector<5x32xf32>
    %519 = vector.extract_strided_slice %470 {offsets = [0, 96], sizes = [1, 32], strides = [1, 1]} : vector<2x128xf32> to vector<1x32xf32>
    %520 = vector.broadcast %519 : vector<1x32xf32> to vector<5x32xf32>
    %521 = arith.addf %518, %520 : vector<5x32xf32>
    %522 = arith.addf %521, %466 : vector<5x32xf32>
    %523 = vector.extract_strided_slice %470 {offsets = [1, 0], sizes = [1, 32], strides = [1, 1]} : vector<2x128xf32> to vector<1x32xf32>
    %524 = vector.extract_strided_slice %470 {offsets = [1, 32], sizes = [1, 32], strides = [1, 1]} : vector<2x128xf32> to vector<1x32xf32>
    %cst_132 = arith.constant dense<0.000000e+00> : vector<5xf32>
    %525 = vector.multi_reduction <add>, %522, %cst_132 [1] : vector<5x32xf32> to vector<5xf32>
    %526 = vector.shape_cast %525 : vector<5xf32> to vector<5x1xf32>
    %cst_133 = arith.constant 3.200000e+01 : f32
    %527 = vector.broadcast %cst_133 : f32 to vector<5x1xf32>
    %528 = arith.divf %526, %527 : vector<5x1xf32>
    %529 = vector.broadcast %528 : vector<5x1xf32> to vector<5x32xf32>
    %530 = arith.subf %522, %529 : vector<5x32xf32>
    %531 = arith.mulf %530, %530 : vector<5x32xf32>
    %cst_134 = arith.constant dense<0.000000e+00> : vector<5xf32>
    %532 = vector.multi_reduction <add>, %531, %cst_134 [1] : vector<5x32xf32> to vector<5xf32>
    %533 = vector.shape_cast %532 : vector<5xf32> to vector<5x1xf32>
    %cst_135 = arith.constant 3.200000e+01 : f32
    %534 = vector.broadcast %cst_135 : f32 to vector<5x1xf32>
    %535 = arith.divf %533, %534 : vector<5x1xf32>
    %536 = vector.broadcast %528 : vector<5x1xf32> to vector<5x32xf32>
    %537 = arith.subf %522, %536 : vector<5x32xf32>
    %cst_136 = arith.constant 9.99999974E-6 : f32
    %538 = vector.broadcast %cst_136 : f32 to vector<5x1xf32>
    %539 = arith.addf %535, %538 : vector<5x1xf32>
    %540 = math.rsqrt %539 : vector<5x1xf32>
    %541 = vector.broadcast %540 : vector<5x1xf32> to vector<5x32xf32>
    %542 = arith.mulf %537, %541 : vector<5x32xf32>
    %543 = vector.broadcast %523 : vector<1x32xf32> to vector<5x32xf32>
    %544 = arith.mulf %542, %543 : vector<5x32xf32>
    %545 = vector.broadcast %524 : vector<1x32xf32> to vector<5x32xf32>
    %546 = arith.addf %544, %545 : vector<5x32xf32>
    %c5 = arith.constant 5 : index
    %c0_137 = arith.constant 0 : index
    %c0_138 = arith.constant 0 : index
    %547 = vector.load %arg6[%c5, %c0_137, %c0_138] : memref<6x32x128xbf16, #tpu.memory_space<vmem>>, vector<1x32x128xbf16>
    %548 = vector.shape_cast %547 : vector<1x32x128xbf16> to vector<32x128xbf16>
    %c5_139 = arith.constant 5 : index
    %c0_140 = arith.constant 0 : index
    %c0_141 = arith.constant 0 : index
    %549 = vector.load %arg7[%c5_139, %c0_140, %c0_141] : memref<6x2x128xf32, #tpu.memory_space<vmem>>, vector<1x2x128xf32>
    %550 = vector.shape_cast %549 : vector<1x2x128xf32> to vector<2x128xf32>
    %551 = arith.truncf %546 : vector<5x32xf32> to vector<5x32xbf16>
    %552 = vector.extract_strided_slice %548 {offsets = [0, 0], sizes = [32, 32], strides = [1, 1]} : vector<32x128xbf16> to vector<32x32xbf16>
    %cst_142 = arith.constant dense<0.000000e+00> : vector<5x32xf32>
    %553 = tpu.matmul %551, %552, %cst_142 {dimension_numbers = #tpu.dot_dimension_numbers<[1], [0], [0], [1], [0, 0, 1, 1], [], []>} : vector<5x32xbf16>, vector<32x32xbf16>, vector<5x32xf32> -> vector<5x32xf32>
    %554 = vector.extract_strided_slice %550 {offsets = [0, 0], sizes = [1, 32], strides = [1, 1]} : vector<2x128xf32> to vector<1x32xf32>
    %555 = vector.broadcast %554 : vector<1x32xf32> to vector<5x32xf32>
    %556 = arith.addf %553, %555 : vector<5x32xf32>
    %557 = arith.truncf %255 : vector<5x32xf32> to vector<5x32xbf16>
    %558 = vector.extract_strided_slice %548 {offsets = [0, 32], sizes = [32, 64], strides = [1, 1]} : vector<32x128xbf16> to vector<32x64xbf16>
    %cst_143 = arith.constant dense<0.000000e+00> : vector<5x64xf32>
    %559 = tpu.matmul %557, %558, %cst_143 {dimension_numbers = #tpu.dot_dimension_numbers<[1], [0], [0], [1], [0, 0, 1, 1], [], []>} : vector<5x32xbf16>, vector<32x64xbf16>, vector<5x64xf32> -> vector<5x64xf32>
    %560 = vector.extract_strided_slice %550 {offsets = [0, 32], sizes = [1, 64], strides = [1, 1]} : vector<2x128xf32> to vector<1x64xf32>
    %561 = vector.broadcast %560 : vector<1x64xf32> to vector<5x64xf32>
    %562 = arith.addf %559, %561 : vector<5x64xf32>
    %563 = vector.extract_strided_slice %562 {offsets = [0, 0], sizes = [5, 32], strides = [1, 1]} : vector<5x64xf32> to vector<5x32xf32>
    %564 = vector.extract_strided_slice %562 {offsets = [0, 32], sizes = [5, 32], strides = [1, 1]} : vector<5x64xf32> to vector<5x32xf32>
    %565 = vector.extract_strided_slice %556 {offsets = [0, 0], sizes = [5, 8], strides = [1, 1]} : vector<5x32xf32> to vector<5x8xf32>
    %566 = vector.extract_strided_slice %556 {offsets = [0, 8], sizes = [5, 8], strides = [1, 1]} : vector<5x32xf32> to vector<5x8xf32>
    %567 = vector.extract_strided_slice %556 {offsets = [0, 16], sizes = [5, 8], strides = [1, 1]} : vector<5x32xf32> to vector<5x8xf32>
    %568 = vector.extract_strided_slice %556 {offsets = [0, 24], sizes = [5, 8], strides = [1, 1]} : vector<5x32xf32> to vector<5x8xf32>
    %569 = tpu.concatenate %565, %566, %567, %568 in 0 : vector<5x8xf32>, vector<5x8xf32>, vector<5x8xf32>, vector<5x8xf32> -> vector<20x8xf32>
    %570 = arith.truncf %569 : vector<20x8xf32> to vector<20x8xbf16>
    %571 = vector.extract_strided_slice %563 {offsets = [0, 0], sizes = [5, 8], strides = [1, 1]} : vector<5x32xf32> to vector<5x8xf32>
    %572 = vector.extract_strided_slice %563 {offsets = [0, 8], sizes = [5, 8], strides = [1, 1]} : vector<5x32xf32> to vector<5x8xf32>
    %573 = vector.extract_strided_slice %563 {offsets = [0, 16], sizes = [5, 8], strides = [1, 1]} : vector<5x32xf32> to vector<5x8xf32>
    %574 = vector.extract_strided_slice %563 {offsets = [0, 24], sizes = [5, 8], strides = [1, 1]} : vector<5x32xf32> to vector<5x8xf32>
    %575 = tpu.concatenate %571, %572, %573, %574 in 0 : vector<5x8xf32>, vector<5x8xf32>, vector<5x8xf32>, vector<5x8xf32> -> vector<20x8xf32>
    %576 = arith.truncf %575 : vector<20x8xf32> to vector<20x8xbf16>
    %577 = vector.extract_strided_slice %564 {offsets = [0, 0], sizes = [5, 8], strides = [1, 1]} : vector<5x32xf32> to vector<5x8xf32>
    %578 = vector.extract_strided_slice %564 {offsets = [0, 8], sizes = [5, 8], strides = [1, 1]} : vector<5x32xf32> to vector<5x8xf32>
    %579 = vector.extract_strided_slice %564 {offsets = [0, 16], sizes = [5, 8], strides = [1, 1]} : vector<5x32xf32> to vector<5x8xf32>
    %580 = vector.extract_strided_slice %564 {offsets = [0, 24], sizes = [5, 8], strides = [1, 1]} : vector<5x32xf32> to vector<5x8xf32>
    %581 = tpu.concatenate %577, %578, %579, %580 in 0 : vector<5x8xf32>, vector<5x8xf32>, vector<5x8xf32>, vector<5x8xf32> -> vector<20x8xf32>
    %582 = arith.truncf %581 : vector<20x8xf32> to vector<20x8xbf16>
    %cst_144 = arith.constant dense<0.000000e+00> : vector<20x20xf32>
    %583 = tpu.matmul %570, %576, %cst_144 {dimension_numbers = #tpu.dot_dimension_numbers<[1], [1], [0], [0], [0, 0, 1, 0], [], []>} : vector<20x8xbf16>, vector<20x8xbf16>, vector<20x20xf32> -> vector<20x20xf32>
    %584 = arith.addf %583, %5 : vector<20x20xf32>
    %cst_145 = arith.constant dense<0xFF800000> : vector<20xf32>
    %585 = vector.multi_reduction <maximumf>, %584, %cst_145 [1] : vector<20x20xf32> to vector<20xf32>
    %586 = vector.shape_cast %585 : vector<20xf32> to vector<20x1xf32>
    %587 = vector.broadcast %586 : vector<20x1xf32> to vector<20x20xf32>
    %588 = arith.subf %584, %587 : vector<20x20xf32>
    %589 = math.exp %588 : vector<20x20xf32>
    %cst_146 = arith.constant dense<0.000000e+00> : vector<20xf32>
    %590 = vector.multi_reduction <add>, %589, %cst_146 [1] : vector<20x20xf32> to vector<20xf32>
    %591 = vector.shape_cast %590 : vector<20xf32> to vector<20x1xf32>
    %592 = vector.broadcast %591 : vector<20x1xf32> to vector<20x20xf32>
    %593 = arith.divf %589, %592 : vector<20x20xf32>
    %594 = arith.truncf %593 : vector<20x20xf32> to vector<20x20xbf16>
    %cst_147 = arith.constant dense<0.000000e+00> : vector<20x8xf32>
    %595 = tpu.matmul %594, %582, %cst_147 {dimension_numbers = #tpu.dot_dimension_numbers<[1], [0], [0], [1], [0, 0, 1, 1], [], []>} : vector<20x20xbf16>, vector<20x8xbf16>, vector<20x8xf32> -> vector<20x8xf32>
    %596 = vector.extract_strided_slice %595 {offsets = [0, 0], sizes = [5, 8], strides = [1, 1]} : vector<20x8xf32> to vector<5x8xf32>
    %597 = vector.extract_strided_slice %595 {offsets = [5, 0], sizes = [5, 8], strides = [1, 1]} : vector<20x8xf32> to vector<5x8xf32>
    %598 = vector.extract_strided_slice %595 {offsets = [10, 0], sizes = [5, 8], strides = [1, 1]} : vector<20x8xf32> to vector<5x8xf32>
    %599 = vector.extract_strided_slice %595 {offsets = [15, 0], sizes = [5, 8], strides = [1, 1]} : vector<20x8xf32> to vector<5x8xf32>
    %600 = tpu.concatenate %596, %597, %598, %599 in 1 : vector<5x8xf32>, vector<5x8xf32>, vector<5x8xf32>, vector<5x8xf32> -> vector<5x32xf32>
    %601 = arith.truncf %600 : vector<5x32xf32> to vector<5x32xbf16>
    %602 = vector.extract_strided_slice %548 {offsets = [0, 96], sizes = [32, 32], strides = [1, 1]} : vector<32x128xbf16> to vector<32x32xbf16>
    %cst_148 = arith.constant dense<0.000000e+00> : vector<5x32xf32>
    %603 = tpu.matmul %601, %602, %cst_148 {dimension_numbers = #tpu.dot_dimension_numbers<[1], [0], [0], [1], [0, 0, 1, 1], [], []>} : vector<5x32xbf16>, vector<32x32xbf16>, vector<5x32xf32> -> vector<5x32xf32>
    %604 = vector.extract_strided_slice %550 {offsets = [0, 96], sizes = [1, 32], strides = [1, 1]} : vector<2x128xf32> to vector<1x32xf32>
    %605 = vector.broadcast %604 : vector<1x32xf32> to vector<5x32xf32>
    %606 = arith.addf %603, %605 : vector<5x32xf32>
    %607 = arith.addf %606, %546 : vector<5x32xf32>
    %608 = vector.extract_strided_slice %550 {offsets = [1, 0], sizes = [1, 32], strides = [1, 1]} : vector<2x128xf32> to vector<1x32xf32>
    %609 = vector.extract_strided_slice %550 {offsets = [1, 32], sizes = [1, 32], strides = [1, 1]} : vector<2x128xf32> to vector<1x32xf32>
    %cst_149 = arith.constant dense<0.000000e+00> : vector<5xf32>
    %610 = vector.multi_reduction <add>, %607, %cst_149 [1] : vector<5x32xf32> to vector<5xf32>
    %611 = vector.shape_cast %610 : vector<5xf32> to vector<5x1xf32>
    %cst_150 = arith.constant 3.200000e+01 : f32
    %612 = vector.broadcast %cst_150 : f32 to vector<5x1xf32>
    %613 = arith.divf %611, %612 : vector<5x1xf32>
    %614 = vector.broadcast %613 : vector<5x1xf32> to vector<5x32xf32>
    %615 = arith.subf %607, %614 : vector<5x32xf32>
    %616 = arith.mulf %615, %615 : vector<5x32xf32>
    %cst_151 = arith.constant dense<0.000000e+00> : vector<5xf32>
    %617 = vector.multi_reduction <add>, %616, %cst_151 [1] : vector<5x32xf32> to vector<5xf32>
    %618 = vector.shape_cast %617 : vector<5xf32> to vector<5x1xf32>
    %cst_152 = arith.constant 3.200000e+01 : f32
    %619 = vector.broadcast %cst_152 : f32 to vector<5x1xf32>
    %620 = arith.divf %618, %619 : vector<5x1xf32>
    %621 = vector.broadcast %613 : vector<5x1xf32> to vector<5x32xf32>
    %622 = arith.subf %607, %621 : vector<5x32xf32>
    %cst_153 = arith.constant 9.99999974E-6 : f32
    %623 = vector.broadcast %cst_153 : f32 to vector<5x1xf32>
    %624 = arith.addf %620, %623 : vector<5x1xf32>
    %625 = math.rsqrt %624 : vector<5x1xf32>
    %626 = vector.broadcast %625 : vector<5x1xf32> to vector<5x32xf32>
    %627 = arith.mulf %622, %626 : vector<5x32xf32>
    %628 = vector.broadcast %608 : vector<1x32xf32> to vector<5x32xf32>
    %629 = arith.mulf %627, %628 : vector<5x32xf32>
    %630 = vector.broadcast %609 : vector<1x32xf32> to vector<5x32xf32>
    %631 = arith.addf %629, %630 : vector<5x32xf32>
    %c3_154 = arith.constant 3 : index
    %c0_155 = arith.constant 0 : index
    %c0_156 = arith.constant 0 : index
    %632 = vector.load %arg8[%c3_154, %c0_155, %c0_156] : memref<4x160x128xbf16, #tpu.memory_space<vmem>>, vector<1x160x128xbf16>
    %633 = vector.shape_cast %632 : vector<1x160x128xbf16> to vector<160x128xbf16>
    %c3_157 = arith.constant 3 : index
    %c0_158 = arith.constant 0 : index
    %c0_159 = arith.constant 0 : index
    %634 = vector.load %arg9[%c3_157, %c0_158, %c0_159] : memref<4x2x128xf32, #tpu.memory_space<vmem>>, vector<1x2x128xf32>
    %635 = vector.shape_cast %634 : vector<1x2x128xf32> to vector<2x128xf32>
    %636 = arith.truncf %631 : vector<5x32xf32> to vector<5x32xbf16>
    %637 = vector.extract_strided_slice %633 {offsets = [0, 0], sizes = [32, 128], strides = [1, 1]} : vector<160x128xbf16> to vector<32x128xbf16>
    %cst_160 = arith.constant dense<0.000000e+00> : vector<5x128xf32>
    %638 = tpu.matmul %636, %637, %cst_160 {dimension_numbers = #tpu.dot_dimension_numbers<[1], [0], [0], [1], [0, 0, 1, 1], [], []>} : vector<5x32xbf16>, vector<32x128xbf16>, vector<5x128xf32> -> vector<5x128xf32>
    %639 = vector.extract_strided_slice %635 {offsets = [0, 0], sizes = [1, 128], strides = [1, 1]} : vector<2x128xf32> to vector<1x128xf32>
    %640 = vector.broadcast %639 : vector<1x128xf32> to vector<5x128xf32>
    %641 = arith.addf %638, %640 : vector<5x128xf32>
    %cst_161 = arith.constant 0.000000e+00 : f32
    %642 = vector.broadcast %cst_161 : f32 to vector<5x128xf32>
    %643 = arith.maximumf %641, %642 : vector<5x128xf32>
    %644 = arith.truncf %643 : vector<5x128xf32> to vector<5x128xbf16>
    %645 = vector.extract_strided_slice %633 {offsets = [32, 0], sizes = [128, 128], strides = [1, 1]} : vector<160x128xbf16> to vector<128x128xbf16>
    %cst_162 = arith.constant dense<0.000000e+00> : vector<5x128xf32>
    %646 = tpu.matmul %644, %645, %cst_162 {dimension_numbers = #tpu.dot_dimension_numbers<[1], [0], [0], [1], [0, 0, 1, 1], [], []>} : vector<5x128xbf16>, vector<128x128xbf16>, vector<5x128xf32> -> vector<5x128xf32>
    %647 = vector.extract_strided_slice %646 {offsets = [0, 0], sizes = [5, 32], strides = [1, 1]} : vector<5x128xf32> to vector<5x32xf32>
    %648 = vector.extract_strided_slice %635 {offsets = [1, 0], sizes = [1, 32], strides = [1, 1]} : vector<2x128xf32> to vector<1x32xf32>
    %649 = vector.broadcast %648 : vector<1x32xf32> to vector<5x32xf32>
    %650 = arith.addf %647, %649 : vector<5x32xf32>
    %651 = arith.addf %650, %631 : vector<5x32xf32>
    %652 = vector.extract_strided_slice %635 {offsets = [1, 32], sizes = [1, 32], strides = [1, 1]} : vector<2x128xf32> to vector<1x32xf32>
    %653 = vector.extract_strided_slice %635 {offsets = [1, 64], sizes = [1, 32], strides = [1, 1]} : vector<2x128xf32> to vector<1x32xf32>
    %cst_163 = arith.constant dense<0.000000e+00> : vector<5xf32>
    %654 = vector.multi_reduction <add>, %651, %cst_163 [1] : vector<5x32xf32> to vector<5xf32>
    %655 = vector.shape_cast %654 : vector<5xf32> to vector<5x1xf32>
    %cst_164 = arith.constant 3.200000e+01 : f32
    %656 = vector.broadcast %cst_164 : f32 to vector<5x1xf32>
    %657 = arith.divf %655, %656 : vector<5x1xf32>
    %658 = vector.broadcast %657 : vector<5x1xf32> to vector<5x32xf32>
    %659 = arith.subf %651, %658 : vector<5x32xf32>
    %660 = arith.mulf %659, %659 : vector<5x32xf32>
    %cst_165 = arith.constant dense<0.000000e+00> : vector<5xf32>
    %661 = vector.multi_reduction <add>, %660, %cst_165 [1] : vector<5x32xf32> to vector<5xf32>
    %662 = vector.shape_cast %661 : vector<5xf32> to vector<5x1xf32>
    %cst_166 = arith.constant 3.200000e+01 : f32
    %663 = vector.broadcast %cst_166 : f32 to vector<5x1xf32>
    %664 = arith.divf %662, %663 : vector<5x1xf32>
    %665 = vector.broadcast %657 : vector<5x1xf32> to vector<5x32xf32>
    %666 = arith.subf %651, %665 : vector<5x32xf32>
    %cst_167 = arith.constant 9.99999974E-6 : f32
    %667 = vector.broadcast %cst_167 : f32 to vector<5x1xf32>
    %668 = arith.addf %664, %667 : vector<5x1xf32>
    %669 = math.rsqrt %668 : vector<5x1xf32>
    %670 = vector.broadcast %669 : vector<5x1xf32> to vector<5x32xf32>
    %671 = arith.mulf %666, %670 : vector<5x32xf32>
    %672 = vector.broadcast %652 : vector<1x32xf32> to vector<5x32xf32>
    %673 = arith.mulf %671, %672 : vector<5x32xf32>
    %674 = vector.broadcast %653 : vector<1x32xf32> to vector<5x32xf32>
    %675 = arith.addf %673, %674 : vector<5x32xf32>
    %676 = arith.truncf %675 : vector<5x32xf32> to vector<5x32xbf16>
    %c0_168 = arith.constant 0 : index
    %c0_169 = arith.constant 0 : index
    %677 = vector.load %arg10[%c0_168, %c0_169] : memref<32x128xbf16, #tpu.memory_space<vmem>>, vector<32x128xbf16>
    %cst_170 = arith.constant dense<0.000000e+00> : vector<5x128xf32>
    %678 = tpu.matmul %676, %677, %cst_170 {dimension_numbers = #tpu.dot_dimension_numbers<[1], [0], [0], [1], [0, 0, 1, 1], [], []>} : vector<5x32xbf16>, vector<32x128xbf16>, vector<5x128xf32> -> vector<5x128xf32>
    %c0_171 = arith.constant 0 : index
    %c0_172 = arith.constant 0 : index
    %c0_173 = arith.constant 0 : index
    %679 = vector.load %arg11[%c0_171, %c0_172, %c0_173] : memref<2x5x128xf32, #tpu.memory_space<vmem>>, vector<1x5x128xf32>
    %680 = vector.shape_cast %679 : vector<1x5x128xf32> to vector<5x128xf32>
    %681 = vector.shape_cast %678 : vector<5x128xf32> to vector<1x5x128xf32>
    tpu.vector_store %arg11[%c0_171, %c0_172, %c0_173], %681 {strides = array<i32>} : memref<2x5x128xf32, #tpu.memory_space<vmem>>, vector<1x5x128xf32>,
    %cst_174 = arith.constant 0.000000e+00 : f32
    %682 = vector.broadcast %cst_174 : f32 to vector<20x8xf32>
    %683 = tpu.concatenate %49, %173, %299, %508, %384, %593, %682 in 1 : vector<20x20xf32>, vector<20x20xf32>, vector<20x20xf32>, vector<20x20xf32>, vector<20x20xf32>, vector<20x20xf32>, vector<20x8xf32> -> vector<20x128xf32>
    %c0_175 = arith.constant 0 : index
    %c0_176 = arith.constant 0 : index
    %c0_177 = arith.constant 0 : index
    %684 = vector.load %arg12[%c0_175, %c0_176, %c0_177] : memref<2x20x128xf32, #tpu.memory_space<vmem>>, vector<1x20x128xf32>
    %685 = vector.shape_cast %684 : vector<1x20x128xf32> to vector<20x128xf32>
    %686 = vector.shape_cast %683 : vector<20x128xf32> to vector<1x20x128xf32>
    tpu.vector_store %arg12[%c0_175, %c0_176, %c0_177], %686 {strides = array<i32>} : memref<2x20x128xf32, #tpu.memory_space<vmem>>, vector<1x20x128xf32>,
    %c1_178 = arith.constant 1 : index
    %c0_179 = arith.constant 0 : index
    %c0_180 = arith.constant 0 : index
    %687 = vector.load %arg3[%c1_178, %c0_179, %c0_180] : memref<2x20x20xf32, #tpu.memory_space<vmem>>, vector<1x20x20xf32>
    %688 = vector.shape_cast %687 : vector<1x20x20xf32> to vector<20x20xf32>
    %c1_181 = arith.constant 1 : index
    %c0_182 = arith.constant 0 : index
    %c0_183 = arith.constant 0 : index
    %689 = vector.load %arg4[%c1_181, %c0_182, %c0_183] : memref<2x20x20xf32, #tpu.memory_space<vmem>>, vector<1x20x20xf32>
    %690 = vector.shape_cast %689 : vector<1x20x20xf32> to vector<20x20xf32>
    %c1_184 = arith.constant 1 : index
    %c0_185 = arith.constant 0 : index
    %c0_186 = arith.constant 0 : index
    %691 = vector.load %arg5[%c1_184, %c0_185, %c0_186] : memref<2x20x20xf32, #tpu.memory_space<vmem>>, vector<1x20x20xf32>
    %692 = vector.shape_cast %691 : vector<1x20x20xf32> to vector<20x20xf32>
    %c1_187 = arith.constant 1 : index
    %c0_188 = arith.constant 0 : index
    %c0_189 = arith.constant 0 : index
    %693 = vector.load %arg1[%c1_187, %c0_188, %c0_189] : memref<2x5x32xf32, #tpu.memory_space<vmem>>, vector<1x5x32xf32>
    %694 = vector.shape_cast %693 : vector<1x5x32xf32> to vector<5x32xf32>
    %c0_190 = arith.constant 0 : index
    %c0_191 = arith.constant 0 : index
    %c0_192 = arith.constant 0 : index
    %695 = vector.load %arg6[%c0_190, %c0_191, %c0_192] : memref<6x32x128xbf16, #tpu.memory_space<vmem>>, vector<1x32x128xbf16>
    %696 = vector.shape_cast %695 : vector<1x32x128xbf16> to vector<32x128xbf16>
    %c0_193 = arith.constant 0 : index
    %c0_194 = arith.constant 0 : index
    %c0_195 = arith.constant 0 : index
    %697 = vector.load %arg7[%c0_193, %c0_194, %c0_195] : memref<6x2x128xf32, #tpu.memory_space<vmem>>, vector<1x2x128xf32>
    %698 = vector.shape_cast %697 : vector<1x2x128xf32> to vector<2x128xf32>
    %699 = arith.truncf %694 : vector<5x32xf32> to vector<5x32xbf16>
    %700 = vector.extract_strided_slice %696 {offsets = [0, 0], sizes = [32, 96], strides = [1, 1]} : vector<32x128xbf16> to vector<32x96xbf16>
    %cst_196 = arith.constant dense<0.000000e+00> : vector<5x96xf32>
    %701 = tpu.matmul %699, %700, %cst_196 {dimension_numbers = #tpu.dot_dimension_numbers<[1], [0], [0], [1], [0, 0, 1, 1], [], []>} : vector<5x32xbf16>, vector<32x96xbf16>, vector<5x96xf32> -> vector<5x96xf32>
    %702 = vector.extract_strided_slice %698 {offsets = [0, 0], sizes = [1, 96], strides = [1, 1]} : vector<2x128xf32> to vector<1x96xf32>
    %703 = vector.broadcast %702 : vector<1x96xf32> to vector<5x96xf32>
    %704 = arith.addf %701, %703 : vector<5x96xf32>
    %705 = vector.extract_strided_slice %704 {offsets = [0, 0], sizes = [5, 32], strides = [1, 1]} : vector<5x96xf32> to vector<5x32xf32>
    %706 = vector.extract_strided_slice %704 {offsets = [0, 32], sizes = [5, 32], strides = [1, 1]} : vector<5x96xf32> to vector<5x32xf32>
    %707 = vector.extract_strided_slice %704 {offsets = [0, 64], sizes = [5, 32], strides = [1, 1]} : vector<5x96xf32> to vector<5x32xf32>
    %708 = vector.extract_strided_slice %705 {offsets = [0, 0], sizes = [5, 8], strides = [1, 1]} : vector<5x32xf32> to vector<5x8xf32>
    %709 = vector.extract_strided_slice %705 {offsets = [0, 8], sizes = [5, 8], strides = [1, 1]} : vector<5x32xf32> to vector<5x8xf32>
    %710 = vector.extract_strided_slice %705 {offsets = [0, 16], sizes = [5, 8], strides = [1, 1]} : vector<5x32xf32> to vector<5x8xf32>
    %711 = vector.extract_strided_slice %705 {offsets = [0, 24], sizes = [5, 8], strides = [1, 1]} : vector<5x32xf32> to vector<5x8xf32>
    %712 = tpu.concatenate %708, %709, %710, %711 in 0 : vector<5x8xf32>, vector<5x8xf32>, vector<5x8xf32>, vector<5x8xf32> -> vector<20x8xf32>
    %713 = arith.truncf %712 : vector<20x8xf32> to vector<20x8xbf16>
    %714 = vector.extract_strided_slice %706 {offsets = [0, 0], sizes = [5, 8], strides = [1, 1]} : vector<5x32xf32> to vector<5x8xf32>
    %715 = vector.extract_strided_slice %706 {offsets = [0, 8], sizes = [5, 8], strides = [1, 1]} : vector<5x32xf32> to vector<5x8xf32>
    %716 = vector.extract_strided_slice %706 {offsets = [0, 16], sizes = [5, 8], strides = [1, 1]} : vector<5x32xf32> to vector<5x8xf32>
    %717 = vector.extract_strided_slice %706 {offsets = [0, 24], sizes = [5, 8], strides = [1, 1]} : vector<5x32xf32> to vector<5x8xf32>
    %718 = tpu.concatenate %714, %715, %716, %717 in 0 : vector<5x8xf32>, vector<5x8xf32>, vector<5x8xf32>, vector<5x8xf32> -> vector<20x8xf32>
    %719 = arith.truncf %718 : vector<20x8xf32> to vector<20x8xbf16>
    %720 = vector.extract_strided_slice %707 {offsets = [0, 0], sizes = [5, 8], strides = [1, 1]} : vector<5x32xf32> to vector<5x8xf32>
    %721 = vector.extract_strided_slice %707 {offsets = [0, 8], sizes = [5, 8], strides = [1, 1]} : vector<5x32xf32> to vector<5x8xf32>
    %722 = vector.extract_strided_slice %707 {offsets = [0, 16], sizes = [5, 8], strides = [1, 1]} : vector<5x32xf32> to vector<5x8xf32>
    %723 = vector.extract_strided_slice %707 {offsets = [0, 24], sizes = [5, 8], strides = [1, 1]} : vector<5x32xf32> to vector<5x8xf32>
    %724 = tpu.concatenate %720, %721, %722, %723 in 0 : vector<5x8xf32>, vector<5x8xf32>, vector<5x8xf32>, vector<5x8xf32> -> vector<20x8xf32>
    %725 = arith.truncf %724 : vector<20x8xf32> to vector<20x8xbf16>
    %cst_197 = arith.constant dense<0.000000e+00> : vector<20x20xf32>
    %726 = tpu.matmul %713, %719, %cst_197 {dimension_numbers = #tpu.dot_dimension_numbers<[1], [1], [0], [0], [0, 0, 1, 0], [], []>} : vector<20x8xbf16>, vector<20x8xbf16>, vector<20x20xf32> -> vector<20x20xf32>
    %727 = arith.addf %726, %688 : vector<20x20xf32>
    %cst_198 = arith.constant dense<0xFF800000> : vector<20xf32>
    %728 = vector.multi_reduction <maximumf>, %727, %cst_198 [1] : vector<20x20xf32> to vector<20xf32>
    %729 = vector.shape_cast %728 : vector<20xf32> to vector<20x1xf32>
    %730 = vector.broadcast %729 : vector<20x1xf32> to vector<20x20xf32>
    %731 = arith.subf %727, %730 : vector<20x20xf32>
    %732 = math.exp %731 : vector<20x20xf32>
    %cst_199 = arith.constant dense<0.000000e+00> : vector<20xf32>
    %733 = vector.multi_reduction <add>, %732, %cst_199 [1] : vector<20x20xf32> to vector<20xf32>
    %734 = vector.shape_cast %733 : vector<20xf32> to vector<20x1xf32>
    %735 = vector.broadcast %734 : vector<20x1xf32> to vector<20x20xf32>
    %736 = arith.divf %732, %735 : vector<20x20xf32>
    %737 = arith.truncf %736 : vector<20x20xf32> to vector<20x20xbf16>
    %cst_200 = arith.constant dense<0.000000e+00> : vector<20x8xf32>
    %738 = tpu.matmul %737, %725, %cst_200 {dimension_numbers = #tpu.dot_dimension_numbers<[1], [0], [0], [1], [0, 0, 1, 1], [], []>} : vector<20x20xbf16>, vector<20x8xbf16>, vector<20x8xf32> -> vector<20x8xf32>
    %739 = vector.extract_strided_slice %738 {offsets = [0, 0], sizes = [5, 8], strides = [1, 1]} : vector<20x8xf32> to vector<5x8xf32>
    %740 = vector.extract_strided_slice %738 {offsets = [5, 0], sizes = [5, 8], strides = [1, 1]} : vector<20x8xf32> to vector<5x8xf32>
    %741 = vector.extract_strided_slice %738 {offsets = [10, 0], sizes = [5, 8], strides = [1, 1]} : vector<20x8xf32> to vector<5x8xf32>
    %742 = vector.extract_strided_slice %738 {offsets = [15, 0], sizes = [5, 8], strides = [1, 1]} : vector<20x8xf32> to vector<5x8xf32>
    %743 = tpu.concatenate %739, %740, %741, %742 in 1 : vector<5x8xf32>, vector<5x8xf32>, vector<5x8xf32>, vector<5x8xf32> -> vector<5x32xf32>
    %744 = arith.truncf %743 : vector<5x32xf32> to vector<5x32xbf16>
    %745 = vector.extract_strided_slice %696 {offsets = [0, 96], sizes = [32, 32], strides = [1, 1]} : vector<32x128xbf16> to vector<32x32xbf16>
    %cst_201 = arith.constant dense<0.000000e+00> : vector<5x32xf32>
    %746 = tpu.matmul %744, %745, %cst_201 {dimension_numbers = #tpu.dot_dimension_numbers<[1], [0], [0], [1], [0, 0, 1, 1], [], []>} : vector<5x32xbf16>, vector<32x32xbf16>, vector<5x32xf32> -> vector<5x32xf32>
    %747 = vector.extract_strided_slice %698 {offsets = [0, 96], sizes = [1, 32], strides = [1, 1]} : vector<2x128xf32> to vector<1x32xf32>
    %748 = vector.broadcast %747 : vector<1x32xf32> to vector<5x32xf32>
    %749 = arith.addf %746, %748 : vector<5x32xf32>
    %750 = arith.addf %749, %694 : vector<5x32xf32>
    %751 = vector.extract_strided_slice %698 {offsets = [1, 0], sizes = [1, 32], strides = [1, 1]} : vector<2x128xf32> to vector<1x32xf32>
    %752 = vector.extract_strided_slice %698 {offsets = [1, 32], sizes = [1, 32], strides = [1, 1]} : vector<2x128xf32> to vector<1x32xf32>
    %cst_202 = arith.constant dense<0.000000e+00> : vector<5xf32>
    %753 = vector.multi_reduction <add>, %750, %cst_202 [1] : vector<5x32xf32> to vector<5xf32>
    %754 = vector.shape_cast %753 : vector<5xf32> to vector<5x1xf32>
    %cst_203 = arith.constant 3.200000e+01 : f32
    %755 = vector.broadcast %cst_203 : f32 to vector<5x1xf32>
    %756 = arith.divf %754, %755 : vector<5x1xf32>
    %757 = vector.broadcast %756 : vector<5x1xf32> to vector<5x32xf32>
    %758 = arith.subf %750, %757 : vector<5x32xf32>
    %759 = arith.mulf %758, %758 : vector<5x32xf32>
    %cst_204 = arith.constant dense<0.000000e+00> : vector<5xf32>
    %760 = vector.multi_reduction <add>, %759, %cst_204 [1] : vector<5x32xf32> to vector<5xf32>
    %761 = vector.shape_cast %760 : vector<5xf32> to vector<5x1xf32>
    %cst_205 = arith.constant 3.200000e+01 : f32
    %762 = vector.broadcast %cst_205 : f32 to vector<5x1xf32>
    %763 = arith.divf %761, %762 : vector<5x1xf32>
    %764 = vector.broadcast %756 : vector<5x1xf32> to vector<5x32xf32>
    %765 = arith.subf %750, %764 : vector<5x32xf32>
    %cst_206 = arith.constant 9.99999974E-6 : f32
    %766 = vector.broadcast %cst_206 : f32 to vector<5x1xf32>
    %767 = arith.addf %763, %766 : vector<5x1xf32>
    %768 = math.rsqrt %767 : vector<5x1xf32>
    %769 = vector.broadcast %768 : vector<5x1xf32> to vector<5x32xf32>
    %770 = arith.mulf %765, %769 : vector<5x32xf32>
    %771 = vector.broadcast %751 : vector<1x32xf32> to vector<5x32xf32>
    %772 = arith.mulf %770, %771 : vector<5x32xf32>
    %773 = vector.broadcast %752 : vector<1x32xf32> to vector<5x32xf32>
    %774 = arith.addf %772, %773 : vector<5x32xf32>
    %c0_207 = arith.constant 0 : index
    %c0_208 = arith.constant 0 : index
    %c0_209 = arith.constant 0 : index
    %775 = vector.load %arg8[%c0_207, %c0_208, %c0_209] : memref<4x160x128xbf16, #tpu.memory_space<vmem>>, vector<1x160x128xbf16>
    %776 = vector.shape_cast %775 : vector<1x160x128xbf16> to vector<160x128xbf16>
    %c0_210 = arith.constant 0 : index
    %c0_211 = arith.constant 0 : index
    %c0_212 = arith.constant 0 : index
    %777 = vector.load %arg9[%c0_210, %c0_211, %c0_212] : memref<4x2x128xf32, #tpu.memory_space<vmem>>, vector<1x2x128xf32>
    %778 = vector.shape_cast %777 : vector<1x2x128xf32> to vector<2x128xf32>
    %779 = arith.truncf %774 : vector<5x32xf32> to vector<5x32xbf16>
    %780 = vector.extract_strided_slice %776 {offsets = [0, 0], sizes = [32, 128], strides = [1, 1]} : vector<160x128xbf16> to vector<32x128xbf16>
    %cst_213 = arith.constant dense<0.000000e+00> : vector<5x128xf32>
    %781 = tpu.matmul %779, %780, %cst_213 {dimension_numbers = #tpu.dot_dimension_numbers<[1], [0], [0], [1], [0, 0, 1, 1], [], []>} : vector<5x32xbf16>, vector<32x128xbf16>, vector<5x128xf32> -> vector<5x128xf32>
    %782 = vector.extract_strided_slice %778 {offsets = [0, 0], sizes = [1, 128], strides = [1, 1]} : vector<2x128xf32> to vector<1x128xf32>
    %783 = vector.broadcast %782 : vector<1x128xf32> to vector<5x128xf32>
    %784 = arith.addf %781, %783 : vector<5x128xf32>
    %cst_214 = arith.constant 0.000000e+00 : f32
    %785 = vector.broadcast %cst_214 : f32 to vector<5x128xf32>
    %786 = arith.maximumf %784, %785 : vector<5x128xf32>
    %787 = arith.truncf %786 : vector<5x128xf32> to vector<5x128xbf16>
    %788 = vector.extract_strided_slice %776 {offsets = [32, 0], sizes = [128, 128], strides = [1, 1]} : vector<160x128xbf16> to vector<128x128xbf16>
    %cst_215 = arith.constant dense<0.000000e+00> : vector<5x128xf32>
    %789 = tpu.matmul %787, %788, %cst_215 {dimension_numbers = #tpu.dot_dimension_numbers<[1], [0], [0], [1], [0, 0, 1, 1], [], []>} : vector<5x128xbf16>, vector<128x128xbf16>, vector<5x128xf32> -> vector<5x128xf32>
    %790 = vector.extract_strided_slice %789 {offsets = [0, 0], sizes = [5, 32], strides = [1, 1]} : vector<5x128xf32> to vector<5x32xf32>
    %791 = vector.extract_strided_slice %778 {offsets = [1, 0], sizes = [1, 32], strides = [1, 1]} : vector<2x128xf32> to vector<1x32xf32>
    %792 = vector.broadcast %791 : vector<1x32xf32> to vector<5x32xf32>
    %793 = arith.addf %790, %792 : vector<5x32xf32>
    %794 = arith.addf %793, %774 : vector<5x32xf32>
    %795 = vector.extract_strided_slice %778 {offsets = [1, 32], sizes = [1, 32], strides = [1, 1]} : vector<2x128xf32> to vector<1x32xf32>
    %796 = vector.extract_strided_slice %778 {offsets = [1, 64], sizes = [1, 32], strides = [1, 1]} : vector<2x128xf32> to vector<1x32xf32>
    %cst_216 = arith.constant dense<0.000000e+00> : vector<5xf32>
    %797 = vector.multi_reduction <add>, %794, %cst_216 [1] : vector<5x32xf32> to vector<5xf32>
    %798 = vector.shape_cast %797 : vector<5xf32> to vector<5x1xf32>
    %cst_217 = arith.constant 3.200000e+01 : f32
    %799 = vector.broadcast %cst_217 : f32 to vector<5x1xf32>
    %800 = arith.divf %798, %799 : vector<5x1xf32>
    %801 = vector.broadcast %800 : vector<5x1xf32> to vector<5x32xf32>
    %802 = arith.subf %794, %801 : vector<5x32xf32>
    %803 = arith.mulf %802, %802 : vector<5x32xf32>
    %cst_218 = arith.constant dense<0.000000e+00> : vector<5xf32>
    %804 = vector.multi_reduction <add>, %803, %cst_218 [1] : vector<5x32xf32> to vector<5xf32>
    %805 = vector.shape_cast %804 : vector<5xf32> to vector<5x1xf32>
    %cst_219 = arith.constant 3.200000e+01 : f32
    %806 = vector.broadcast %cst_219 : f32 to vector<5x1xf32>
    %807 = arith.divf %805, %806 : vector<5x1xf32>
    %808 = vector.broadcast %800 : vector<5x1xf32> to vector<5x32xf32>
    %809 = arith.subf %794, %808 : vector<5x32xf32>
    %cst_220 = arith.constant 9.99999974E-6 : f32
    %810 = vector.broadcast %cst_220 : f32 to vector<5x1xf32>
    %811 = arith.addf %807, %810 : vector<5x1xf32>
    %812 = math.rsqrt %811 : vector<5x1xf32>
    %813 = vector.broadcast %812 : vector<5x1xf32> to vector<5x32xf32>
    %814 = arith.mulf %809, %813 : vector<5x32xf32>
    %815 = vector.broadcast %795 : vector<1x32xf32> to vector<5x32xf32>
    %816 = arith.mulf %814, %815 : vector<5x32xf32>
    %817 = vector.broadcast %796 : vector<1x32xf32> to vector<5x32xf32>
    %818 = arith.addf %816, %817 : vector<5x32xf32>
    %c1_221 = arith.constant 1 : index
    %c0_222 = arith.constant 0 : index
    %c0_223 = arith.constant 0 : index
    %819 = vector.load %arg6[%c1_221, %c0_222, %c0_223] : memref<6x32x128xbf16, #tpu.memory_space<vmem>>, vector<1x32x128xbf16>
    %820 = vector.shape_cast %819 : vector<1x32x128xbf16> to vector<32x128xbf16>
    %c1_224 = arith.constant 1 : index
    %c0_225 = arith.constant 0 : index
    %c0_226 = arith.constant 0 : index
    %821 = vector.load %arg7[%c1_224, %c0_225, %c0_226] : memref<6x2x128xf32, #tpu.memory_space<vmem>>, vector<1x2x128xf32>
    %822 = vector.shape_cast %821 : vector<1x2x128xf32> to vector<2x128xf32>
    %823 = arith.truncf %818 : vector<5x32xf32> to vector<5x32xbf16>
    %824 = vector.extract_strided_slice %820 {offsets = [0, 0], sizes = [32, 96], strides = [1, 1]} : vector<32x128xbf16> to vector<32x96xbf16>
    %cst_227 = arith.constant dense<0.000000e+00> : vector<5x96xf32>
    %825 = tpu.matmul %823, %824, %cst_227 {dimension_numbers = #tpu.dot_dimension_numbers<[1], [0], [0], [1], [0, 0, 1, 1], [], []>} : vector<5x32xbf16>, vector<32x96xbf16>, vector<5x96xf32> -> vector<5x96xf32>
    %826 = vector.extract_strided_slice %822 {offsets = [0, 0], sizes = [1, 96], strides = [1, 1]} : vector<2x128xf32> to vector<1x96xf32>
    %827 = vector.broadcast %826 : vector<1x96xf32> to vector<5x96xf32>
    %828 = arith.addf %825, %827 : vector<5x96xf32>
    %829 = vector.extract_strided_slice %828 {offsets = [0, 0], sizes = [5, 32], strides = [1, 1]} : vector<5x96xf32> to vector<5x32xf32>
    %830 = vector.extract_strided_slice %828 {offsets = [0, 32], sizes = [5, 32], strides = [1, 1]} : vector<5x96xf32> to vector<5x32xf32>
    %831 = vector.extract_strided_slice %828 {offsets = [0, 64], sizes = [5, 32], strides = [1, 1]} : vector<5x96xf32> to vector<5x32xf32>
    %832 = vector.extract_strided_slice %829 {offsets = [0, 0], sizes = [5, 8], strides = [1, 1]} : vector<5x32xf32> to vector<5x8xf32>
    %833 = vector.extract_strided_slice %829 {offsets = [0, 8], sizes = [5, 8], strides = [1, 1]} : vector<5x32xf32> to vector<5x8xf32>
    %834 = vector.extract_strided_slice %829 {offsets = [0, 16], sizes = [5, 8], strides = [1, 1]} : vector<5x32xf32> to vector<5x8xf32>
    %835 = vector.extract_strided_slice %829 {offsets = [0, 24], sizes = [5, 8], strides = [1, 1]} : vector<5x32xf32> to vector<5x8xf32>
    %836 = tpu.concatenate %832, %833, %834, %835 in 0 : vector<5x8xf32>, vector<5x8xf32>, vector<5x8xf32>, vector<5x8xf32> -> vector<20x8xf32>
    %837 = arith.truncf %836 : vector<20x8xf32> to vector<20x8xbf16>
    %838 = vector.extract_strided_slice %830 {offsets = [0, 0], sizes = [5, 8], strides = [1, 1]} : vector<5x32xf32> to vector<5x8xf32>
    %839 = vector.extract_strided_slice %830 {offsets = [0, 8], sizes = [5, 8], strides = [1, 1]} : vector<5x32xf32> to vector<5x8xf32>
    %840 = vector.extract_strided_slice %830 {offsets = [0, 16], sizes = [5, 8], strides = [1, 1]} : vector<5x32xf32> to vector<5x8xf32>
    %841 = vector.extract_strided_slice %830 {offsets = [0, 24], sizes = [5, 8], strides = [1, 1]} : vector<5x32xf32> to vector<5x8xf32>
    %842 = tpu.concatenate %838, %839, %840, %841 in 0 : vector<5x8xf32>, vector<5x8xf32>, vector<5x8xf32>, vector<5x8xf32> -> vector<20x8xf32>
    %843 = arith.truncf %842 : vector<20x8xf32> to vector<20x8xbf16>
    %844 = vector.extract_strided_slice %831 {offsets = [0, 0], sizes = [5, 8], strides = [1, 1]} : vector<5x32xf32> to vector<5x8xf32>
    %845 = vector.extract_strided_slice %831 {offsets = [0, 8], sizes = [5, 8], strides = [1, 1]} : vector<5x32xf32> to vector<5x8xf32>
    %846 = vector.extract_strided_slice %831 {offsets = [0, 16], sizes = [5, 8], strides = [1, 1]} : vector<5x32xf32> to vector<5x8xf32>
    %847 = vector.extract_strided_slice %831 {offsets = [0, 24], sizes = [5, 8], strides = [1, 1]} : vector<5x32xf32> to vector<5x8xf32>
    %848 = tpu.concatenate %844, %845, %846, %847 in 0 : vector<5x8xf32>, vector<5x8xf32>, vector<5x8xf32>, vector<5x8xf32> -> vector<20x8xf32>
    %849 = arith.truncf %848 : vector<20x8xf32> to vector<20x8xbf16>
    %cst_228 = arith.constant dense<0.000000e+00> : vector<20x20xf32>
    %850 = tpu.matmul %837, %843, %cst_228 {dimension_numbers = #tpu.dot_dimension_numbers<[1], [1], [0], [0], [0, 0, 1, 0], [], []>} : vector<20x8xbf16>, vector<20x8xbf16>, vector<20x20xf32> -> vector<20x20xf32>
    %851 = arith.addf %850, %688 : vector<20x20xf32>
    %cst_229 = arith.constant dense<0xFF800000> : vector<20xf32>
    %852 = vector.multi_reduction <maximumf>, %851, %cst_229 [1] : vector<20x20xf32> to vector<20xf32>
    %853 = vector.shape_cast %852 : vector<20xf32> to vector<20x1xf32>
    %854 = vector.broadcast %853 : vector<20x1xf32> to vector<20x20xf32>
    %855 = arith.subf %851, %854 : vector<20x20xf32>
    %856 = math.exp %855 : vector<20x20xf32>
    %cst_230 = arith.constant dense<0.000000e+00> : vector<20xf32>
    %857 = vector.multi_reduction <add>, %856, %cst_230 [1] : vector<20x20xf32> to vector<20xf32>
    %858 = vector.shape_cast %857 : vector<20xf32> to vector<20x1xf32>
    %859 = vector.broadcast %858 : vector<20x1xf32> to vector<20x20xf32>
    %860 = arith.divf %856, %859 : vector<20x20xf32>
    %861 = arith.truncf %860 : vector<20x20xf32> to vector<20x20xbf16>
    %cst_231 = arith.constant dense<0.000000e+00> : vector<20x8xf32>
    %862 = tpu.matmul %861, %849, %cst_231 {dimension_numbers = #tpu.dot_dimension_numbers<[1], [0], [0], [1], [0, 0, 1, 1], [], []>} : vector<20x20xbf16>, vector<20x8xbf16>, vector<20x8xf32> -> vector<20x8xf32>
    %863 = vector.extract_strided_slice %862 {offsets = [0, 0], sizes = [5, 8], strides = [1, 1]} : vector<20x8xf32> to vector<5x8xf32>
    %864 = vector.extract_strided_slice %862 {offsets = [5, 0], sizes = [5, 8], strides = [1, 1]} : vector<20x8xf32> to vector<5x8xf32>
    %865 = vector.extract_strided_slice %862 {offsets = [10, 0], sizes = [5, 8], strides = [1, 1]} : vector<20x8xf32> to vector<5x8xf32>
    %866 = vector.extract_strided_slice %862 {offsets = [15, 0], sizes = [5, 8], strides = [1, 1]} : vector<20x8xf32> to vector<5x8xf32>
    %867 = tpu.concatenate %863, %864, %865, %866 in 1 : vector<5x8xf32>, vector<5x8xf32>, vector<5x8xf32>, vector<5x8xf32> -> vector<5x32xf32>
    %868 = arith.truncf %867 : vector<5x32xf32> to vector<5x32xbf16>
    %869 = vector.extract_strided_slice %820 {offsets = [0, 96], sizes = [32, 32], strides = [1, 1]} : vector<32x128xbf16> to vector<32x32xbf16>
    %cst_232 = arith.constant dense<0.000000e+00> : vector<5x32xf32>
    %870 = tpu.matmul %868, %869, %cst_232 {dimension_numbers = #tpu.dot_dimension_numbers<[1], [0], [0], [1], [0, 0, 1, 1], [], []>} : vector<5x32xbf16>, vector<32x32xbf16>, vector<5x32xf32> -> vector<5x32xf32>
    %871 = vector.extract_strided_slice %822 {offsets = [0, 96], sizes = [1, 32], strides = [1, 1]} : vector<2x128xf32> to vector<1x32xf32>
    %872 = vector.broadcast %871 : vector<1x32xf32> to vector<5x32xf32>
    %873 = arith.addf %870, %872 : vector<5x32xf32>
    %874 = arith.addf %873, %818 : vector<5x32xf32>
    %875 = vector.extract_strided_slice %822 {offsets = [1, 0], sizes = [1, 32], strides = [1, 1]} : vector<2x128xf32> to vector<1x32xf32>
    %876 = vector.extract_strided_slice %822 {offsets = [1, 32], sizes = [1, 32], strides = [1, 1]} : vector<2x128xf32> to vector<1x32xf32>
    %cst_233 = arith.constant dense<0.000000e+00> : vector<5xf32>
    %877 = vector.multi_reduction <add>, %874, %cst_233 [1] : vector<5x32xf32> to vector<5xf32>
    %878 = vector.shape_cast %877 : vector<5xf32> to vector<5x1xf32>
    %cst_234 = arith.constant 3.200000e+01 : f32
    %879 = vector.broadcast %cst_234 : f32 to vector<5x1xf32>
    %880 = arith.divf %878, %879 : vector<5x1xf32>
    %881 = vector.broadcast %880 : vector<5x1xf32> to vector<5x32xf32>
    %882 = arith.subf %874, %881 : vector<5x32xf32>
    %883 = arith.mulf %882, %882 : vector<5x32xf32>
    %cst_235 = arith.constant dense<0.000000e+00> : vector<5xf32>
    %884 = vector.multi_reduction <add>, %883, %cst_235 [1] : vector<5x32xf32> to vector<5xf32>
    %885 = vector.shape_cast %884 : vector<5xf32> to vector<5x1xf32>
    %cst_236 = arith.constant 3.200000e+01 : f32
    %886 = vector.broadcast %cst_236 : f32 to vector<5x1xf32>
    %887 = arith.divf %885, %886 : vector<5x1xf32>
    %888 = vector.broadcast %880 : vector<5x1xf32> to vector<5x32xf32>
    %889 = arith.subf %874, %888 : vector<5x32xf32>
    %cst_237 = arith.constant 9.99999974E-6 : f32
    %890 = vector.broadcast %cst_237 : f32 to vector<5x1xf32>
    %891 = arith.addf %887, %890 : vector<5x1xf32>
    %892 = math.rsqrt %891 : vector<5x1xf32>
    %893 = vector.broadcast %892 : vector<5x1xf32> to vector<5x32xf32>
    %894 = arith.mulf %889, %893 : vector<5x32xf32>
    %895 = vector.broadcast %875 : vector<1x32xf32> to vector<5x32xf32>
    %896 = arith.mulf %894, %895 : vector<5x32xf32>
    %897 = vector.broadcast %876 : vector<1x32xf32> to vector<5x32xf32>
    %898 = arith.addf %896, %897 : vector<5x32xf32>
    %c1_238 = arith.constant 1 : index
    %c0_239 = arith.constant 0 : index
    %c0_240 = arith.constant 0 : index
    %899 = vector.load %arg8[%c1_238, %c0_239, %c0_240] : memref<4x160x128xbf16, #tpu.memory_space<vmem>>, vector<1x160x128xbf16>
    %900 = vector.shape_cast %899 : vector<1x160x128xbf16> to vector<160x128xbf16>
    %c1_241 = arith.constant 1 : index
    %c0_242 = arith.constant 0 : index
    %c0_243 = arith.constant 0 : index
    %901 = vector.load %arg9[%c1_241, %c0_242, %c0_243] : memref<4x2x128xf32, #tpu.memory_space<vmem>>, vector<1x2x128xf32>
    %902 = vector.shape_cast %901 : vector<1x2x128xf32> to vector<2x128xf32>
    %903 = arith.truncf %898 : vector<5x32xf32> to vector<5x32xbf16>
    %904 = vector.extract_strided_slice %900 {offsets = [0, 0], sizes = [32, 128], strides = [1, 1]} : vector<160x128xbf16> to vector<32x128xbf16>
    %cst_244 = arith.constant dense<0.000000e+00> : vector<5x128xf32>
    %905 = tpu.matmul %903, %904, %cst_244 {dimension_numbers = #tpu.dot_dimension_numbers<[1], [0], [0], [1], [0, 0, 1, 1], [], []>} : vector<5x32xbf16>, vector<32x128xbf16>, vector<5x128xf32> -> vector<5x128xf32>
    %906 = vector.extract_strided_slice %902 {offsets = [0, 0], sizes = [1, 128], strides = [1, 1]} : vector<2x128xf32> to vector<1x128xf32>
    %907 = vector.broadcast %906 : vector<1x128xf32> to vector<5x128xf32>
    %908 = arith.addf %905, %907 : vector<5x128xf32>
    %cst_245 = arith.constant 0.000000e+00 : f32
    %909 = vector.broadcast %cst_245 : f32 to vector<5x128xf32>
    %910 = arith.maximumf %908, %909 : vector<5x128xf32>
    %911 = arith.truncf %910 : vector<5x128xf32> to vector<5x128xbf16>
    %912 = vector.extract_strided_slice %900 {offsets = [32, 0], sizes = [128, 128], strides = [1, 1]} : vector<160x128xbf16> to vector<128x128xbf16>
    %cst_246 = arith.constant dense<0.000000e+00> : vector<5x128xf32>
    %913 = tpu.matmul %911, %912, %cst_246 {dimension_numbers = #tpu.dot_dimension_numbers<[1], [0], [0], [1], [0, 0, 1, 1], [], []>} : vector<5x128xbf16>, vector<128x128xbf16>, vector<5x128xf32> -> vector<5x128xf32>
    %914 = vector.extract_strided_slice %913 {offsets = [0, 0], sizes = [5, 32], strides = [1, 1]} : vector<5x128xf32> to vector<5x32xf32>
    %915 = vector.extract_strided_slice %902 {offsets = [1, 0], sizes = [1, 32], strides = [1, 1]} : vector<2x128xf32> to vector<1x32xf32>
    %916 = vector.broadcast %915 : vector<1x32xf32> to vector<5x32xf32>
    %917 = arith.addf %914, %916 : vector<5x32xf32>
    %918 = arith.addf %917, %898 : vector<5x32xf32>
    %919 = vector.extract_strided_slice %902 {offsets = [1, 32], sizes = [1, 32], strides = [1, 1]} : vector<2x128xf32> to vector<1x32xf32>
    %920 = vector.extract_strided_slice %902 {offsets = [1, 64], sizes = [1, 32], strides = [1, 1]} : vector<2x128xf32> to vector<1x32xf32>
    %cst_247 = arith.constant dense<0.000000e+00> : vector<5xf32>
    %921 = vector.multi_reduction <add>, %918, %cst_247 [1] : vector<5x32xf32> to vector<5xf32>
    %922 = vector.shape_cast %921 : vector<5xf32> to vector<5x1xf32>
    %cst_248 = arith.constant 3.200000e+01 : f32
    %923 = vector.broadcast %cst_248 : f32 to vector<5x1xf32>
    %924 = arith.divf %922, %923 : vector<5x1xf32>
    %925 = vector.broadcast %924 : vector<5x1xf32> to vector<5x32xf32>
    %926 = arith.subf %918, %925 : vector<5x32xf32>
    %927 = arith.mulf %926, %926 : vector<5x32xf32>
    %cst_249 = arith.constant dense<0.000000e+00> : vector<5xf32>
    %928 = vector.multi_reduction <add>, %927, %cst_249 [1] : vector<5x32xf32> to vector<5xf32>
    %929 = vector.shape_cast %928 : vector<5xf32> to vector<5x1xf32>
    %cst_250 = arith.constant 3.200000e+01 : f32
    %930 = vector.broadcast %cst_250 : f32 to vector<5x1xf32>
    %931 = arith.divf %929, %930 : vector<5x1xf32>
    %932 = vector.broadcast %924 : vector<5x1xf32> to vector<5x32xf32>
    %933 = arith.subf %918, %932 : vector<5x32xf32>
    %cst_251 = arith.constant 9.99999974E-6 : f32
    %934 = vector.broadcast %cst_251 : f32 to vector<5x1xf32>
    %935 = arith.addf %931, %934 : vector<5x1xf32>
    %936 = math.rsqrt %935 : vector<5x1xf32>
    %937 = vector.broadcast %936 : vector<5x1xf32> to vector<5x32xf32>
    %938 = arith.mulf %933, %937 : vector<5x32xf32>
    %939 = vector.broadcast %919 : vector<1x32xf32> to vector<5x32xf32>
    %940 = arith.mulf %938, %939 : vector<5x32xf32>
    %941 = vector.broadcast %920 : vector<1x32xf32> to vector<5x32xf32>
    %942 = arith.addf %940, %941 : vector<5x32xf32>
    %c1_252 = arith.constant 1 : index
    %c0_253 = arith.constant 0 : index
    %c0_254 = arith.constant 0 : index
    %943 = vector.load %arg2[%c1_252, %c0_253, %c0_254] : memref<2x5x32xf32, #tpu.memory_space<vmem>>, vector<1x5x32xf32>
    %944 = vector.shape_cast %943 : vector<1x5x32xf32> to vector<5x32xf32>
    %c2_255 = arith.constant 2 : index
    %c0_256 = arith.constant 0 : index
    %c0_257 = arith.constant 0 : index
    %945 = vector.load %arg6[%c2_255, %c0_256, %c0_257] : memref<6x32x128xbf16, #tpu.memory_space<vmem>>, vector<1x32x128xbf16>
    %946 = vector.shape_cast %945 : vector<1x32x128xbf16> to vector<32x128xbf16>
    %c2_258 = arith.constant 2 : index
    %c0_259 = arith.constant 0 : index
    %c0_260 = arith.constant 0 : index
    %947 = vector.load %arg7[%c2_258, %c0_259, %c0_260] : memref<6x2x128xf32, #tpu.memory_space<vmem>>, vector<1x2x128xf32>
    %948 = vector.shape_cast %947 : vector<1x2x128xf32> to vector<2x128xf32>
    %949 = arith.truncf %944 : vector<5x32xf32> to vector<5x32xbf16>
    %950 = vector.extract_strided_slice %946 {offsets = [0, 0], sizes = [32, 96], strides = [1, 1]} : vector<32x128xbf16> to vector<32x96xbf16>
    %cst_261 = arith.constant dense<0.000000e+00> : vector<5x96xf32>
    %951 = tpu.matmul %949, %950, %cst_261 {dimension_numbers = #tpu.dot_dimension_numbers<[1], [0], [0], [1], [0, 0, 1, 1], [], []>} : vector<5x32xbf16>, vector<32x96xbf16>, vector<5x96xf32> -> vector<5x96xf32>
    %952 = vector.extract_strided_slice %948 {offsets = [0, 0], sizes = [1, 96], strides = [1, 1]} : vector<2x128xf32> to vector<1x96xf32>
    %953 = vector.broadcast %952 : vector<1x96xf32> to vector<5x96xf32>
    %954 = arith.addf %951, %953 : vector<5x96xf32>
    %955 = vector.extract_strided_slice %954 {offsets = [0, 0], sizes = [5, 32], strides = [1, 1]} : vector<5x96xf32> to vector<5x32xf32>
    %956 = vector.extract_strided_slice %954 {offsets = [0, 32], sizes = [5, 32], strides = [1, 1]} : vector<5x96xf32> to vector<5x32xf32>
    %957 = vector.extract_strided_slice %954 {offsets = [0, 64], sizes = [5, 32], strides = [1, 1]} : vector<5x96xf32> to vector<5x32xf32>
    %958 = vector.extract_strided_slice %955 {offsets = [0, 0], sizes = [5, 8], strides = [1, 1]} : vector<5x32xf32> to vector<5x8xf32>
    %959 = vector.extract_strided_slice %955 {offsets = [0, 8], sizes = [5, 8], strides = [1, 1]} : vector<5x32xf32> to vector<5x8xf32>
    %960 = vector.extract_strided_slice %955 {offsets = [0, 16], sizes = [5, 8], strides = [1, 1]} : vector<5x32xf32> to vector<5x8xf32>
    %961 = vector.extract_strided_slice %955 {offsets = [0, 24], sizes = [5, 8], strides = [1, 1]} : vector<5x32xf32> to vector<5x8xf32>
    %962 = tpu.concatenate %958, %959, %960, %961 in 0 : vector<5x8xf32>, vector<5x8xf32>, vector<5x8xf32>, vector<5x8xf32> -> vector<20x8xf32>
    %963 = arith.truncf %962 : vector<20x8xf32> to vector<20x8xbf16>
    %964 = vector.extract_strided_slice %956 {offsets = [0, 0], sizes = [5, 8], strides = [1, 1]} : vector<5x32xf32> to vector<5x8xf32>
    %965 = vector.extract_strided_slice %956 {offsets = [0, 8], sizes = [5, 8], strides = [1, 1]} : vector<5x32xf32> to vector<5x8xf32>
    %966 = vector.extract_strided_slice %956 {offsets = [0, 16], sizes = [5, 8], strides = [1, 1]} : vector<5x32xf32> to vector<5x8xf32>
    %967 = vector.extract_strided_slice %956 {offsets = [0, 24], sizes = [5, 8], strides = [1, 1]} : vector<5x32xf32> to vector<5x8xf32>
    %968 = tpu.concatenate %964, %965, %966, %967 in 0 : vector<5x8xf32>, vector<5x8xf32>, vector<5x8xf32>, vector<5x8xf32> -> vector<20x8xf32>
    %969 = arith.truncf %968 : vector<20x8xf32> to vector<20x8xbf16>
    %970 = vector.extract_strided_slice %957 {offsets = [0, 0], sizes = [5, 8], strides = [1, 1]} : vector<5x32xf32> to vector<5x8xf32>
    %971 = vector.extract_strided_slice %957 {offsets = [0, 8], sizes = [5, 8], strides = [1, 1]} : vector<5x32xf32> to vector<5x8xf32>
    %972 = vector.extract_strided_slice %957 {offsets = [0, 16], sizes = [5, 8], strides = [1, 1]} : vector<5x32xf32> to vector<5x8xf32>
    %973 = vector.extract_strided_slice %957 {offsets = [0, 24], sizes = [5, 8], strides = [1, 1]} : vector<5x32xf32> to vector<5x8xf32>
    %974 = tpu.concatenate %970, %971, %972, %973 in 0 : vector<5x8xf32>, vector<5x8xf32>, vector<5x8xf32>, vector<5x8xf32> -> vector<20x8xf32>
    %975 = arith.truncf %974 : vector<20x8xf32> to vector<20x8xbf16>
    %cst_262 = arith.constant dense<0.000000e+00> : vector<20x20xf32>
    %976 = tpu.matmul %963, %969, %cst_262 {dimension_numbers = #tpu.dot_dimension_numbers<[1], [1], [0], [0], [0, 0, 1, 0], [], []>} : vector<20x8xbf16>, vector<20x8xbf16>, vector<20x20xf32> -> vector<20x20xf32>
    %977 = arith.addf %976, %690 : vector<20x20xf32>
    %cst_263 = arith.constant dense<0xFF800000> : vector<20xf32>
    %978 = vector.multi_reduction <maximumf>, %977, %cst_263 [1] : vector<20x20xf32> to vector<20xf32>
    %979 = vector.shape_cast %978 : vector<20xf32> to vector<20x1xf32>
    %980 = vector.broadcast %979 : vector<20x1xf32> to vector<20x20xf32>
    %981 = arith.subf %977, %980 : vector<20x20xf32>
    %982 = math.exp %981 : vector<20x20xf32>
    %cst_264 = arith.constant dense<0.000000e+00> : vector<20xf32>
    %983 = vector.multi_reduction <add>, %982, %cst_264 [1] : vector<20x20xf32> to vector<20xf32>
    %984 = vector.shape_cast %983 : vector<20xf32> to vector<20x1xf32>
    %985 = vector.broadcast %984 : vector<20x1xf32> to vector<20x20xf32>
    %986 = arith.divf %982, %985 : vector<20x20xf32>
    %987 = arith.truncf %986 : vector<20x20xf32> to vector<20x20xbf16>
    %cst_265 = arith.constant dense<0.000000e+00> : vector<20x8xf32>
    %988 = tpu.matmul %987, %975, %cst_265 {dimension_numbers = #tpu.dot_dimension_numbers<[1], [0], [0], [1], [0, 0, 1, 1], [], []>} : vector<20x20xbf16>, vector<20x8xbf16>, vector<20x8xf32> -> vector<20x8xf32>
    %989 = vector.extract_strided_slice %988 {offsets = [0, 0], sizes = [5, 8], strides = [1, 1]} : vector<20x8xf32> to vector<5x8xf32>
    %990 = vector.extract_strided_slice %988 {offsets = [5, 0], sizes = [5, 8], strides = [1, 1]} : vector<20x8xf32> to vector<5x8xf32>
    %991 = vector.extract_strided_slice %988 {offsets = [10, 0], sizes = [5, 8], strides = [1, 1]} : vector<20x8xf32> to vector<5x8xf32>
    %992 = vector.extract_strided_slice %988 {offsets = [15, 0], sizes = [5, 8], strides = [1, 1]} : vector<20x8xf32> to vector<5x8xf32>
    %993 = tpu.concatenate %989, %990, %991, %992 in 1 : vector<5x8xf32>, vector<5x8xf32>, vector<5x8xf32>, vector<5x8xf32> -> vector<5x32xf32>
    %994 = arith.truncf %993 : vector<5x32xf32> to vector<5x32xbf16>
    %995 = vector.extract_strided_slice %946 {offsets = [0, 96], sizes = [32, 32], strides = [1, 1]} : vector<32x128xbf16> to vector<32x32xbf16>
    %cst_266 = arith.constant dense<0.000000e+00> : vector<5x32xf32>
    %996 = tpu.matmul %994, %995, %cst_266 {dimension_numbers = #tpu.dot_dimension_numbers<[1], [0], [0], [1], [0, 0, 1, 1], [], []>} : vector<5x32xbf16>, vector<32x32xbf16>, vector<5x32xf32> -> vector<5x32xf32>
    %997 = vector.extract_strided_slice %948 {offsets = [0, 96], sizes = [1, 32], strides = [1, 1]} : vector<2x128xf32> to vector<1x32xf32>
    %998 = vector.broadcast %997 : vector<1x32xf32> to vector<5x32xf32>
    %999 = arith.addf %996, %998 : vector<5x32xf32>
    %1000 = arith.addf %999, %944 : vector<5x32xf32>
    %1001 = vector.extract_strided_slice %948 {offsets = [1, 0], sizes = [1, 32], strides = [1, 1]} : vector<2x128xf32> to vector<1x32xf32>
    %1002 = vector.extract_strided_slice %948 {offsets = [1, 32], sizes = [1, 32], strides = [1, 1]} : vector<2x128xf32> to vector<1x32xf32>
    %cst_267 = arith.constant dense<0.000000e+00> : vector<5xf32>
    %1003 = vector.multi_reduction <add>, %1000, %cst_267 [1] : vector<5x32xf32> to vector<5xf32>
    %1004 = vector.shape_cast %1003 : vector<5xf32> to vector<5x1xf32>
    %cst_268 = arith.constant 3.200000e+01 : f32
    %1005 = vector.broadcast %cst_268 : f32 to vector<5x1xf32>
    %1006 = arith.divf %1004, %1005 : vector<5x1xf32>
    %1007 = vector.broadcast %1006 : vector<5x1xf32> to vector<5x32xf32>
    %1008 = arith.subf %1000, %1007 : vector<5x32xf32>
    %1009 = arith.mulf %1008, %1008 : vector<5x32xf32>
    %cst_269 = arith.constant dense<0.000000e+00> : vector<5xf32>
    %1010 = vector.multi_reduction <add>, %1009, %cst_269 [1] : vector<5x32xf32> to vector<5xf32>
    %1011 = vector.shape_cast %1010 : vector<5xf32> to vector<5x1xf32>
    %cst_270 = arith.constant 3.200000e+01 : f32
    %1012 = vector.broadcast %cst_270 : f32 to vector<5x1xf32>
    %1013 = arith.divf %1011, %1012 : vector<5x1xf32>
    %1014 = vector.broadcast %1006 : vector<5x1xf32> to vector<5x32xf32>
    %1015 = arith.subf %1000, %1014 : vector<5x32xf32>
    %cst_271 = arith.constant 9.99999974E-6 : f32
    %1016 = vector.broadcast %cst_271 : f32 to vector<5x1xf32>
    %1017 = arith.addf %1013, %1016 : vector<5x1xf32>
    %1018 = math.rsqrt %1017 : vector<5x1xf32>
    %1019 = vector.broadcast %1018 : vector<5x1xf32> to vector<5x32xf32>
    %1020 = arith.mulf %1015, %1019 : vector<5x32xf32>
    %1021 = vector.broadcast %1001 : vector<1x32xf32> to vector<5x32xf32>
    %1022 = arith.mulf %1020, %1021 : vector<5x32xf32>
    %1023 = vector.broadcast %1002 : vector<1x32xf32> to vector<5x32xf32>
    %1024 = arith.addf %1022, %1023 : vector<5x32xf32>
    %c3_272 = arith.constant 3 : index
    %c0_273 = arith.constant 0 : index
    %c0_274 = arith.constant 0 : index
    %1025 = vector.load %arg6[%c3_272, %c0_273, %c0_274] : memref<6x32x128xbf16, #tpu.memory_space<vmem>>, vector<1x32x128xbf16>
    %1026 = vector.shape_cast %1025 : vector<1x32x128xbf16> to vector<32x128xbf16>
    %c3_275 = arith.constant 3 : index
    %c0_276 = arith.constant 0 : index
    %c0_277 = arith.constant 0 : index
    %1027 = vector.load %arg7[%c3_275, %c0_276, %c0_277] : memref<6x2x128xf32, #tpu.memory_space<vmem>>, vector<1x2x128xf32>
    %1028 = vector.shape_cast %1027 : vector<1x2x128xf32> to vector<2x128xf32>
    %1029 = arith.truncf %1024 : vector<5x32xf32> to vector<5x32xbf16>
    %1030 = vector.extract_strided_slice %1026 {offsets = [0, 0], sizes = [32, 32], strides = [1, 1]} : vector<32x128xbf16> to vector<32x32xbf16>
    %cst_278 = arith.constant dense<0.000000e+00> : vector<5x32xf32>
    %1031 = tpu.matmul %1029, %1030, %cst_278 {dimension_numbers = #tpu.dot_dimension_numbers<[1], [0], [0], [1], [0, 0, 1, 1], [], []>} : vector<5x32xbf16>, vector<32x32xbf16>, vector<5x32xf32> -> vector<5x32xf32>
    %1032 = vector.extract_strided_slice %1028 {offsets = [0, 0], sizes = [1, 32], strides = [1, 1]} : vector<2x128xf32> to vector<1x32xf32>
    %1033 = vector.broadcast %1032 : vector<1x32xf32> to vector<5x32xf32>
    %1034 = arith.addf %1031, %1033 : vector<5x32xf32>
    %1035 = arith.truncf %942 : vector<5x32xf32> to vector<5x32xbf16>
    %1036 = vector.extract_strided_slice %1026 {offsets = [0, 32], sizes = [32, 64], strides = [1, 1]} : vector<32x128xbf16> to vector<32x64xbf16>
    %cst_279 = arith.constant dense<0.000000e+00> : vector<5x64xf32>
    %1037 = tpu.matmul %1035, %1036, %cst_279 {dimension_numbers = #tpu.dot_dimension_numbers<[1], [0], [0], [1], [0, 0, 1, 1], [], []>} : vector<5x32xbf16>, vector<32x64xbf16>, vector<5x64xf32> -> vector<5x64xf32>
    %1038 = vector.extract_strided_slice %1028 {offsets = [0, 32], sizes = [1, 64], strides = [1, 1]} : vector<2x128xf32> to vector<1x64xf32>
    %1039 = vector.broadcast %1038 : vector<1x64xf32> to vector<5x64xf32>
    %1040 = arith.addf %1037, %1039 : vector<5x64xf32>
    %1041 = vector.extract_strided_slice %1040 {offsets = [0, 0], sizes = [5, 32], strides = [1, 1]} : vector<5x64xf32> to vector<5x32xf32>
    %1042 = vector.extract_strided_slice %1040 {offsets = [0, 32], sizes = [5, 32], strides = [1, 1]} : vector<5x64xf32> to vector<5x32xf32>
    %1043 = vector.extract_strided_slice %1034 {offsets = [0, 0], sizes = [5, 8], strides = [1, 1]} : vector<5x32xf32> to vector<5x8xf32>
    %1044 = vector.extract_strided_slice %1034 {offsets = [0, 8], sizes = [5, 8], strides = [1, 1]} : vector<5x32xf32> to vector<5x8xf32>
    %1045 = vector.extract_strided_slice %1034 {offsets = [0, 16], sizes = [5, 8], strides = [1, 1]} : vector<5x32xf32> to vector<5x8xf32>
    %1046 = vector.extract_strided_slice %1034 {offsets = [0, 24], sizes = [5, 8], strides = [1, 1]} : vector<5x32xf32> to vector<5x8xf32>
    %1047 = tpu.concatenate %1043, %1044, %1045, %1046 in 0 : vector<5x8xf32>, vector<5x8xf32>, vector<5x8xf32>, vector<5x8xf32> -> vector<20x8xf32>
    %1048 = arith.truncf %1047 : vector<20x8xf32> to vector<20x8xbf16>
    %1049 = vector.extract_strided_slice %1041 {offsets = [0, 0], sizes = [5, 8], strides = [1, 1]} : vector<5x32xf32> to vector<5x8xf32>
    %1050 = vector.extract_strided_slice %1041 {offsets = [0, 8], sizes = [5, 8], strides = [1, 1]} : vector<5x32xf32> to vector<5x8xf32>
    %1051 = vector.extract_strided_slice %1041 {offsets = [0, 16], sizes = [5, 8], strides = [1, 1]} : vector<5x32xf32> to vector<5x8xf32>
    %1052 = vector.extract_strided_slice %1041 {offsets = [0, 24], sizes = [5, 8], strides = [1, 1]} : vector<5x32xf32> to vector<5x8xf32>
    %1053 = tpu.concatenate %1049, %1050, %1051, %1052 in 0 : vector<5x8xf32>, vector<5x8xf32>, vector<5x8xf32>, vector<5x8xf32> -> vector<20x8xf32>
    %1054 = arith.truncf %1053 : vector<20x8xf32> to vector<20x8xbf16>
    %1055 = vector.extract_strided_slice %1042 {offsets = [0, 0], sizes = [5, 8], strides = [1, 1]} : vector<5x32xf32> to vector<5x8xf32>
    %1056 = vector.extract_strided_slice %1042 {offsets = [0, 8], sizes = [5, 8], strides = [1, 1]} : vector<5x32xf32> to vector<5x8xf32>
    %1057 = vector.extract_strided_slice %1042 {offsets = [0, 16], sizes = [5, 8], strides = [1, 1]} : vector<5x32xf32> to vector<5x8xf32>
    %1058 = vector.extract_strided_slice %1042 {offsets = [0, 24], sizes = [5, 8], strides = [1, 1]} : vector<5x32xf32> to vector<5x8xf32>
    %1059 = tpu.concatenate %1055, %1056, %1057, %1058 in 0 : vector<5x8xf32>, vector<5x8xf32>, vector<5x8xf32>, vector<5x8xf32> -> vector<20x8xf32>
    %1060 = arith.truncf %1059 : vector<20x8xf32> to vector<20x8xbf16>
    %cst_280 = arith.constant dense<0.000000e+00> : vector<20x20xf32>
    %1061 = tpu.matmul %1048, %1054, %cst_280 {dimension_numbers = #tpu.dot_dimension_numbers<[1], [1], [0], [0], [0, 0, 1, 0], [], []>} : vector<20x8xbf16>, vector<20x8xbf16>, vector<20x20xf32> -> vector<20x20xf32>
    %1062 = arith.addf %1061, %692 : vector<20x20xf32>
    %cst_281 = arith.constant dense<0xFF800000> : vector<20xf32>
    %1063 = vector.multi_reduction <maximumf>, %1062, %cst_281 [1] : vector<20x20xf32> to vector<20xf32>
    %1064 = vector.shape_cast %1063 : vector<20xf32> to vector<20x1xf32>
    %1065 = vector.broadcast %1064 : vector<20x1xf32> to vector<20x20xf32>
    %1066 = arith.subf %1062, %1065 : vector<20x20xf32>
    %1067 = math.exp %1066 : vector<20x20xf32>
    %cst_282 = arith.constant dense<0.000000e+00> : vector<20xf32>
    %1068 = vector.multi_reduction <add>, %1067, %cst_282 [1] : vector<20x20xf32> to vector<20xf32>
    %1069 = vector.shape_cast %1068 : vector<20xf32> to vector<20x1xf32>
    %1070 = vector.broadcast %1069 : vector<20x1xf32> to vector<20x20xf32>
    %1071 = arith.divf %1067, %1070 : vector<20x20xf32>
    %1072 = arith.truncf %1071 : vector<20x20xf32> to vector<20x20xbf16>
    %cst_283 = arith.constant dense<0.000000e+00> : vector<20x8xf32>
    %1073 = tpu.matmul %1072, %1060, %cst_283 {dimension_numbers = #tpu.dot_dimension_numbers<[1], [0], [0], [1], [0, 0, 1, 1], [], []>} : vector<20x20xbf16>, vector<20x8xbf16>, vector<20x8xf32> -> vector<20x8xf32>
    %1074 = vector.extract_strided_slice %1073 {offsets = [0, 0], sizes = [5, 8], strides = [1, 1]} : vector<20x8xf32> to vector<5x8xf32>
    %1075 = vector.extract_strided_slice %1073 {offsets = [5, 0], sizes = [5, 8], strides = [1, 1]} : vector<20x8xf32> to vector<5x8xf32>
    %1076 = vector.extract_strided_slice %1073 {offsets = [10, 0], sizes = [5, 8], strides = [1, 1]} : vector<20x8xf32> to vector<5x8xf32>
    %1077 = vector.extract_strided_slice %1073 {offsets = [15, 0], sizes = [5, 8], strides = [1, 1]} : vector<20x8xf32> to vector<5x8xf32>
    %1078 = tpu.concatenate %1074, %1075, %1076, %1077 in 1 : vector<5x8xf32>, vector<5x8xf32>, vector<5x8xf32>, vector<5x8xf32> -> vector<5x32xf32>
    %1079 = arith.truncf %1078 : vector<5x32xf32> to vector<5x32xbf16>
    %1080 = vector.extract_strided_slice %1026 {offsets = [0, 96], sizes = [32, 32], strides = [1, 1]} : vector<32x128xbf16> to vector<32x32xbf16>
    %cst_284 = arith.constant dense<0.000000e+00> : vector<5x32xf32>
    %1081 = tpu.matmul %1079, %1080, %cst_284 {dimension_numbers = #tpu.dot_dimension_numbers<[1], [0], [0], [1], [0, 0, 1, 1], [], []>} : vector<5x32xbf16>, vector<32x32xbf16>, vector<5x32xf32> -> vector<5x32xf32>
    %1082 = vector.extract_strided_slice %1028 {offsets = [0, 96], sizes = [1, 32], strides = [1, 1]} : vector<2x128xf32> to vector<1x32xf32>
    %1083 = vector.broadcast %1082 : vector<1x32xf32> to vector<5x32xf32>
    %1084 = arith.addf %1081, %1083 : vector<5x32xf32>
    %1085 = arith.addf %1084, %1024 : vector<5x32xf32>
    %1086 = vector.extract_strided_slice %1028 {offsets = [1, 0], sizes = [1, 32], strides = [1, 1]} : vector<2x128xf32> to vector<1x32xf32>
    %1087 = vector.extract_strided_slice %1028 {offsets = [1, 32], sizes = [1, 32], strides = [1, 1]} : vector<2x128xf32> to vector<1x32xf32>
    %cst_285 = arith.constant dense<0.000000e+00> : vector<5xf32>
    %1088 = vector.multi_reduction <add>, %1085, %cst_285 [1] : vector<5x32xf32> to vector<5xf32>
    %1089 = vector.shape_cast %1088 : vector<5xf32> to vector<5x1xf32>
    %cst_286 = arith.constant 3.200000e+01 : f32
    %1090 = vector.broadcast %cst_286 : f32 to vector<5x1xf32>
    %1091 = arith.divf %1089, %1090 : vector<5x1xf32>
    %1092 = vector.broadcast %1091 : vector<5x1xf32> to vector<5x32xf32>
    %1093 = arith.subf %1085, %1092 : vector<5x32xf32>
    %1094 = arith.mulf %1093, %1093 : vector<5x32xf32>
    %cst_287 = arith.constant dense<0.000000e+00> : vector<5xf32>
    %1095 = vector.multi_reduction <add>, %1094, %cst_287 [1] : vector<5x32xf32> to vector<5xf32>
    %1096 = vector.shape_cast %1095 : vector<5xf32> to vector<5x1xf32>
    %cst_288 = arith.constant 3.200000e+01 : f32
    %1097 = vector.broadcast %cst_288 : f32 to vector<5x1xf32>
    %1098 = arith.divf %1096, %1097 : vector<5x1xf32>
    %1099 = vector.broadcast %1091 : vector<5x1xf32> to vector<5x32xf32>
    %1100 = arith.subf %1085, %1099 : vector<5x32xf32>
    %cst_289 = arith.constant 9.99999974E-6 : f32
    %1101 = vector.broadcast %cst_289 : f32 to vector<5x1xf32>
    %1102 = arith.addf %1098, %1101 : vector<5x1xf32>
    %1103 = math.rsqrt %1102 : vector<5x1xf32>
    %1104 = vector.broadcast %1103 : vector<5x1xf32> to vector<5x32xf32>
    %1105 = arith.mulf %1100, %1104 : vector<5x32xf32>
    %1106 = vector.broadcast %1086 : vector<1x32xf32> to vector<5x32xf32>
    %1107 = arith.mulf %1105, %1106 : vector<5x32xf32>
    %1108 = vector.broadcast %1087 : vector<1x32xf32> to vector<5x32xf32>
    %1109 = arith.addf %1107, %1108 : vector<5x32xf32>
    %c2_290 = arith.constant 2 : index
    %c0_291 = arith.constant 0 : index
    %c0_292 = arith.constant 0 : index
    %1110 = vector.load %arg8[%c2_290, %c0_291, %c0_292] : memref<4x160x128xbf16, #tpu.memory_space<vmem>>, vector<1x160x128xbf16>
    %1111 = vector.shape_cast %1110 : vector<1x160x128xbf16> to vector<160x128xbf16>
    %c2_293 = arith.constant 2 : index
    %c0_294 = arith.constant 0 : index
    %c0_295 = arith.constant 0 : index
    %1112 = vector.load %arg9[%c2_293, %c0_294, %c0_295] : memref<4x2x128xf32, #tpu.memory_space<vmem>>, vector<1x2x128xf32>
    %1113 = vector.shape_cast %1112 : vector<1x2x128xf32> to vector<2x128xf32>
    %1114 = arith.truncf %1109 : vector<5x32xf32> to vector<5x32xbf16>
    %1115 = vector.extract_strided_slice %1111 {offsets = [0, 0], sizes = [32, 128], strides = [1, 1]} : vector<160x128xbf16> to vector<32x128xbf16>
    %cst_296 = arith.constant dense<0.000000e+00> : vector<5x128xf32>
    %1116 = tpu.matmul %1114, %1115, %cst_296 {dimension_numbers = #tpu.dot_dimension_numbers<[1], [0], [0], [1], [0, 0, 1, 1], [], []>} : vector<5x32xbf16>, vector<32x128xbf16>, vector<5x128xf32> -> vector<5x128xf32>
    %1117 = vector.extract_strided_slice %1113 {offsets = [0, 0], sizes = [1, 128], strides = [1, 1]} : vector<2x128xf32> to vector<1x128xf32>
    %1118 = vector.broadcast %1117 : vector<1x128xf32> to vector<5x128xf32>
    %1119 = arith.addf %1116, %1118 : vector<5x128xf32>
    %cst_297 = arith.constant 0.000000e+00 : f32
    %1120 = vector.broadcast %cst_297 : f32 to vector<5x128xf32>
    %1121 = arith.maximumf %1119, %1120 : vector<5x128xf32>
    %1122 = arith.truncf %1121 : vector<5x128xf32> to vector<5x128xbf16>
    %1123 = vector.extract_strided_slice %1111 {offsets = [32, 0], sizes = [128, 128], strides = [1, 1]} : vector<160x128xbf16> to vector<128x128xbf16>
    %cst_298 = arith.constant dense<0.000000e+00> : vector<5x128xf32>
    %1124 = tpu.matmul %1122, %1123, %cst_298 {dimension_numbers = #tpu.dot_dimension_numbers<[1], [0], [0], [1], [0, 0, 1, 1], [], []>} : vector<5x128xbf16>, vector<128x128xbf16>, vector<5x128xf32> -> vector<5x128xf32>
    %1125 = vector.extract_strided_slice %1124 {offsets = [0, 0], sizes = [5, 32], strides = [1, 1]} : vector<5x128xf32> to vector<5x32xf32>
    %1126 = vector.extract_strided_slice %1113 {offsets = [1, 0], sizes = [1, 32], strides = [1, 1]} : vector<2x128xf32> to vector<1x32xf32>
    %1127 = vector.broadcast %1126 : vector<1x32xf32> to vector<5x32xf32>
    %1128 = arith.addf %1125, %1127 : vector<5x32xf32>
    %1129 = arith.addf %1128, %1109 : vector<5x32xf32>
    %1130 = vector.extract_strided_slice %1113 {offsets = [1, 32], sizes = [1, 32], strides = [1, 1]} : vector<2x128xf32> to vector<1x32xf32>
    %1131 = vector.extract_strided_slice %1113 {offsets = [1, 64], sizes = [1, 32], strides = [1, 1]} : vector<2x128xf32> to vector<1x32xf32>
    %cst_299 = arith.constant dense<0.000000e+00> : vector<5xf32>
    %1132 = vector.multi_reduction <add>, %1129, %cst_299 [1] : vector<5x32xf32> to vector<5xf32>
    %1133 = vector.shape_cast %1132 : vector<5xf32> to vector<5x1xf32>
    %cst_300 = arith.constant 3.200000e+01 : f32
    %1134 = vector.broadcast %cst_300 : f32 to vector<5x1xf32>
    %1135 = arith.divf %1133, %1134 : vector<5x1xf32>
    %1136 = vector.broadcast %1135 : vector<5x1xf32> to vector<5x32xf32>
    %1137 = arith.subf %1129, %1136 : vector<5x32xf32>
    %1138 = arith.mulf %1137, %1137 : vector<5x32xf32>
    %cst_301 = arith.constant dense<0.000000e+00> : vector<5xf32>
    %1139 = vector.multi_reduction <add>, %1138, %cst_301 [1] : vector<5x32xf32> to vector<5xf32>
    %1140 = vector.shape_cast %1139 : vector<5xf32> to vector<5x1xf32>
    %cst_302 = arith.constant 3.200000e+01 : f32
    %1141 = vector.broadcast %cst_302 : f32 to vector<5x1xf32>
    %1142 = arith.divf %1140, %1141 : vector<5x1xf32>
    %1143 = vector.broadcast %1135 : vector<5x1xf32> to vector<5x32xf32>
    %1144 = arith.subf %1129, %1143 : vector<5x32xf32>
    %cst_303 = arith.constant 9.99999974E-6 : f32
    %1145 = vector.broadcast %cst_303 : f32 to vector<5x1xf32>
    %1146 = arith.addf %1142, %1145 : vector<5x1xf32>
    %1147 = math.rsqrt %1146 : vector<5x1xf32>
    %1148 = vector.broadcast %1147 : vector<5x1xf32> to vector<5x32xf32>
    %1149 = arith.mulf %1144, %1148 : vector<5x32xf32>
    %1150 = vector.broadcast %1130 : vector<1x32xf32> to vector<5x32xf32>
    %1151 = arith.mulf %1149, %1150 : vector<5x32xf32>
    %1152 = vector.broadcast %1131 : vector<1x32xf32> to vector<5x32xf32>
    %1153 = arith.addf %1151, %1152 : vector<5x32xf32>
    %c4_304 = arith.constant 4 : index
    %c0_305 = arith.constant 0 : index
    %c0_306 = arith.constant 0 : index
    %1154 = vector.load %arg6[%c4_304, %c0_305, %c0_306] : memref<6x32x128xbf16, #tpu.memory_space<vmem>>, vector<1x32x128xbf16>
    %1155 = vector.shape_cast %1154 : vector<1x32x128xbf16> to vector<32x128xbf16>
    %c4_307 = arith.constant 4 : index
    %c0_308 = arith.constant 0 : index
    %c0_309 = arith.constant 0 : index
    %1156 = vector.load %arg7[%c4_307, %c0_308, %c0_309] : memref<6x2x128xf32, #tpu.memory_space<vmem>>, vector<1x2x128xf32>
    %1157 = vector.shape_cast %1156 : vector<1x2x128xf32> to vector<2x128xf32>
    %1158 = arith.truncf %1153 : vector<5x32xf32> to vector<5x32xbf16>
    %1159 = vector.extract_strided_slice %1155 {offsets = [0, 0], sizes = [32, 96], strides = [1, 1]} : vector<32x128xbf16> to vector<32x96xbf16>
    %cst_310 = arith.constant dense<0.000000e+00> : vector<5x96xf32>
    %1160 = tpu.matmul %1158, %1159, %cst_310 {dimension_numbers = #tpu.dot_dimension_numbers<[1], [0], [0], [1], [0, 0, 1, 1], [], []>} : vector<5x32xbf16>, vector<32x96xbf16>, vector<5x96xf32> -> vector<5x96xf32>
    %1161 = vector.extract_strided_slice %1157 {offsets = [0, 0], sizes = [1, 96], strides = [1, 1]} : vector<2x128xf32> to vector<1x96xf32>
    %1162 = vector.broadcast %1161 : vector<1x96xf32> to vector<5x96xf32>
    %1163 = arith.addf %1160, %1162 : vector<5x96xf32>
    %1164 = vector.extract_strided_slice %1163 {offsets = [0, 0], sizes = [5, 32], strides = [1, 1]} : vector<5x96xf32> to vector<5x32xf32>
    %1165 = vector.extract_strided_slice %1163 {offsets = [0, 32], sizes = [5, 32], strides = [1, 1]} : vector<5x96xf32> to vector<5x32xf32>
    %1166 = vector.extract_strided_slice %1163 {offsets = [0, 64], sizes = [5, 32], strides = [1, 1]} : vector<5x96xf32> to vector<5x32xf32>
    %1167 = vector.extract_strided_slice %1164 {offsets = [0, 0], sizes = [5, 8], strides = [1, 1]} : vector<5x32xf32> to vector<5x8xf32>
    %1168 = vector.extract_strided_slice %1164 {offsets = [0, 8], sizes = [5, 8], strides = [1, 1]} : vector<5x32xf32> to vector<5x8xf32>
    %1169 = vector.extract_strided_slice %1164 {offsets = [0, 16], sizes = [5, 8], strides = [1, 1]} : vector<5x32xf32> to vector<5x8xf32>
    %1170 = vector.extract_strided_slice %1164 {offsets = [0, 24], sizes = [5, 8], strides = [1, 1]} : vector<5x32xf32> to vector<5x8xf32>
    %1171 = tpu.concatenate %1167, %1168, %1169, %1170 in 0 : vector<5x8xf32>, vector<5x8xf32>, vector<5x8xf32>, vector<5x8xf32> -> vector<20x8xf32>
    %1172 = arith.truncf %1171 : vector<20x8xf32> to vector<20x8xbf16>
    %1173 = vector.extract_strided_slice %1165 {offsets = [0, 0], sizes = [5, 8], strides = [1, 1]} : vector<5x32xf32> to vector<5x8xf32>
    %1174 = vector.extract_strided_slice %1165 {offsets = [0, 8], sizes = [5, 8], strides = [1, 1]} : vector<5x32xf32> to vector<5x8xf32>
    %1175 = vector.extract_strided_slice %1165 {offsets = [0, 16], sizes = [5, 8], strides = [1, 1]} : vector<5x32xf32> to vector<5x8xf32>
    %1176 = vector.extract_strided_slice %1165 {offsets = [0, 24], sizes = [5, 8], strides = [1, 1]} : vector<5x32xf32> to vector<5x8xf32>
    %1177 = tpu.concatenate %1173, %1174, %1175, %1176 in 0 : vector<5x8xf32>, vector<5x8xf32>, vector<5x8xf32>, vector<5x8xf32> -> vector<20x8xf32>
    %1178 = arith.truncf %1177 : vector<20x8xf32> to vector<20x8xbf16>
    %1179 = vector.extract_strided_slice %1166 {offsets = [0, 0], sizes = [5, 8], strides = [1, 1]} : vector<5x32xf32> to vector<5x8xf32>
    %1180 = vector.extract_strided_slice %1166 {offsets = [0, 8], sizes = [5, 8], strides = [1, 1]} : vector<5x32xf32> to vector<5x8xf32>
    %1181 = vector.extract_strided_slice %1166 {offsets = [0, 16], sizes = [5, 8], strides = [1, 1]} : vector<5x32xf32> to vector<5x8xf32>
    %1182 = vector.extract_strided_slice %1166 {offsets = [0, 24], sizes = [5, 8], strides = [1, 1]} : vector<5x32xf32> to vector<5x8xf32>
    %1183 = tpu.concatenate %1179, %1180, %1181, %1182 in 0 : vector<5x8xf32>, vector<5x8xf32>, vector<5x8xf32>, vector<5x8xf32> -> vector<20x8xf32>
    %1184 = arith.truncf %1183 : vector<20x8xf32> to vector<20x8xbf16>
    %cst_311 = arith.constant dense<0.000000e+00> : vector<20x20xf32>
    %1185 = tpu.matmul %1172, %1178, %cst_311 {dimension_numbers = #tpu.dot_dimension_numbers<[1], [1], [0], [0], [0, 0, 1, 0], [], []>} : vector<20x8xbf16>, vector<20x8xbf16>, vector<20x20xf32> -> vector<20x20xf32>
    %1186 = arith.addf %1185, %690 : vector<20x20xf32>
    %cst_312 = arith.constant dense<0xFF800000> : vector<20xf32>
    %1187 = vector.multi_reduction <maximumf>, %1186, %cst_312 [1] : vector<20x20xf32> to vector<20xf32>
    %1188 = vector.shape_cast %1187 : vector<20xf32> to vector<20x1xf32>
    %1189 = vector.broadcast %1188 : vector<20x1xf32> to vector<20x20xf32>
    %1190 = arith.subf %1186, %1189 : vector<20x20xf32>
    %1191 = math.exp %1190 : vector<20x20xf32>
    %cst_313 = arith.constant dense<0.000000e+00> : vector<20xf32>
    %1192 = vector.multi_reduction <add>, %1191, %cst_313 [1] : vector<20x20xf32> to vector<20xf32>
    %1193 = vector.shape_cast %1192 : vector<20xf32> to vector<20x1xf32>
    %1194 = vector.broadcast %1193 : vector<20x1xf32> to vector<20x20xf32>
    %1195 = arith.divf %1191, %1194 : vector<20x20xf32>
    %1196 = arith.truncf %1195 : vector<20x20xf32> to vector<20x20xbf16>
    %cst_314 = arith.constant dense<0.000000e+00> : vector<20x8xf32>
    %1197 = tpu.matmul %1196, %1184, %cst_314 {dimension_numbers = #tpu.dot_dimension_numbers<[1], [0], [0], [1], [0, 0, 1, 1], [], []>} : vector<20x20xbf16>, vector<20x8xbf16>, vector<20x8xf32> -> vector<20x8xf32>
    %1198 = vector.extract_strided_slice %1197 {offsets = [0, 0], sizes = [5, 8], strides = [1, 1]} : vector<20x8xf32> to vector<5x8xf32>
    %1199 = vector.extract_strided_slice %1197 {offsets = [5, 0], sizes = [5, 8], strides = [1, 1]} : vector<20x8xf32> to vector<5x8xf32>
    %1200 = vector.extract_strided_slice %1197 {offsets = [10, 0], sizes = [5, 8], strides = [1, 1]} : vector<20x8xf32> to vector<5x8xf32>
    %1201 = vector.extract_strided_slice %1197 {offsets = [15, 0], sizes = [5, 8], strides = [1, 1]} : vector<20x8xf32> to vector<5x8xf32>
    %1202 = tpu.concatenate %1198, %1199, %1200, %1201 in 1 : vector<5x8xf32>, vector<5x8xf32>, vector<5x8xf32>, vector<5x8xf32> -> vector<5x32xf32>
    %1203 = arith.truncf %1202 : vector<5x32xf32> to vector<5x32xbf16>
    %1204 = vector.extract_strided_slice %1155 {offsets = [0, 96], sizes = [32, 32], strides = [1, 1]} : vector<32x128xbf16> to vector<32x32xbf16>
    %cst_315 = arith.constant dense<0.000000e+00> : vector<5x32xf32>
    %1205 = tpu.matmul %1203, %1204, %cst_315 {dimension_numbers = #tpu.dot_dimension_numbers<[1], [0], [0], [1], [0, 0, 1, 1], [], []>} : vector<5x32xbf16>, vector<32x32xbf16>, vector<5x32xf32> -> vector<5x32xf32>
    %1206 = vector.extract_strided_slice %1157 {offsets = [0, 96], sizes = [1, 32], strides = [1, 1]} : vector<2x128xf32> to vector<1x32xf32>
    %1207 = vector.broadcast %1206 : vector<1x32xf32> to vector<5x32xf32>
    %1208 = arith.addf %1205, %1207 : vector<5x32xf32>
    %1209 = arith.addf %1208, %1153 : vector<5x32xf32>
    %1210 = vector.extract_strided_slice %1157 {offsets = [1, 0], sizes = [1, 32], strides = [1, 1]} : vector<2x128xf32> to vector<1x32xf32>
    %1211 = vector.extract_strided_slice %1157 {offsets = [1, 32], sizes = [1, 32], strides = [1, 1]} : vector<2x128xf32> to vector<1x32xf32>
    %cst_316 = arith.constant dense<0.000000e+00> : vector<5xf32>
    %1212 = vector.multi_reduction <add>, %1209, %cst_316 [1] : vector<5x32xf32> to vector<5xf32>
    %1213 = vector.shape_cast %1212 : vector<5xf32> to vector<5x1xf32>
    %cst_317 = arith.constant 3.200000e+01 : f32
    %1214 = vector.broadcast %cst_317 : f32 to vector<5x1xf32>
    %1215 = arith.divf %1213, %1214 : vector<5x1xf32>
    %1216 = vector.broadcast %1215 : vector<5x1xf32> to vector<5x32xf32>
    %1217 = arith.subf %1209, %1216 : vector<5x32xf32>
    %1218 = arith.mulf %1217, %1217 : vector<5x32xf32>
    %cst_318 = arith.constant dense<0.000000e+00> : vector<5xf32>
    %1219 = vector.multi_reduction <add>, %1218, %cst_318 [1] : vector<5x32xf32> to vector<5xf32>
    %1220 = vector.shape_cast %1219 : vector<5xf32> to vector<5x1xf32>
    %cst_319 = arith.constant 3.200000e+01 : f32
    %1221 = vector.broadcast %cst_319 : f32 to vector<5x1xf32>
    %1222 = arith.divf %1220, %1221 : vector<5x1xf32>
    %1223 = vector.broadcast %1215 : vector<5x1xf32> to vector<5x32xf32>
    %1224 = arith.subf %1209, %1223 : vector<5x32xf32>
    %cst_320 = arith.constant 9.99999974E-6 : f32
    %1225 = vector.broadcast %cst_320 : f32 to vector<5x1xf32>
    %1226 = arith.addf %1222, %1225 : vector<5x1xf32>
    %1227 = math.rsqrt %1226 : vector<5x1xf32>
    %1228 = vector.broadcast %1227 : vector<5x1xf32> to vector<5x32xf32>
    %1229 = arith.mulf %1224, %1228 : vector<5x32xf32>
    %1230 = vector.broadcast %1210 : vector<1x32xf32> to vector<5x32xf32>
    %1231 = arith.mulf %1229, %1230 : vector<5x32xf32>
    %1232 = vector.broadcast %1211 : vector<1x32xf32> to vector<5x32xf32>
    %1233 = arith.addf %1231, %1232 : vector<5x32xf32>
    %c5_321 = arith.constant 5 : index
    %c0_322 = arith.constant 0 : index
    %c0_323 = arith.constant 0 : index
    %1234 = vector.load %arg6[%c5_321, %c0_322, %c0_323] : memref<6x32x128xbf16, #tpu.memory_space<vmem>>, vector<1x32x128xbf16>
    %1235 = vector.shape_cast %1234 : vector<1x32x128xbf16> to vector<32x128xbf16>
    %c5_324 = arith.constant 5 : index
    %c0_325 = arith.constant 0 : index
    %c0_326 = arith.constant 0 : index
    %1236 = vector.load %arg7[%c5_324, %c0_325, %c0_326] : memref<6x2x128xf32, #tpu.memory_space<vmem>>, vector<1x2x128xf32>
    %1237 = vector.shape_cast %1236 : vector<1x2x128xf32> to vector<2x128xf32>
    %1238 = arith.truncf %1233 : vector<5x32xf32> to vector<5x32xbf16>
    %1239 = vector.extract_strided_slice %1235 {offsets = [0, 0], sizes = [32, 32], strides = [1, 1]} : vector<32x128xbf16> to vector<32x32xbf16>
    %cst_327 = arith.constant dense<0.000000e+00> : vector<5x32xf32>
    %1240 = tpu.matmul %1238, %1239, %cst_327 {dimension_numbers = #tpu.dot_dimension_numbers<[1], [0], [0], [1], [0, 0, 1, 1], [], []>} : vector<5x32xbf16>, vector<32x32xbf16>, vector<5x32xf32> -> vector<5x32xf32>
    %1241 = vector.extract_strided_slice %1237 {offsets = [0, 0], sizes = [1, 32], strides = [1, 1]} : vector<2x128xf32> to vector<1x32xf32>
    %1242 = vector.broadcast %1241 : vector<1x32xf32> to vector<5x32xf32>
    %1243 = arith.addf %1240, %1242 : vector<5x32xf32>
    %1244 = arith.truncf %942 : vector<5x32xf32> to vector<5x32xbf16>
    %1245 = vector.extract_strided_slice %1235 {offsets = [0, 32], sizes = [32, 64], strides = [1, 1]} : vector<32x128xbf16> to vector<32x64xbf16>
    %cst_328 = arith.constant dense<0.000000e+00> : vector<5x64xf32>
    %1246 = tpu.matmul %1244, %1245, %cst_328 {dimension_numbers = #tpu.dot_dimension_numbers<[1], [0], [0], [1], [0, 0, 1, 1], [], []>} : vector<5x32xbf16>, vector<32x64xbf16>, vector<5x64xf32> -> vector<5x64xf32>
    %1247 = vector.extract_strided_slice %1237 {offsets = [0, 32], sizes = [1, 64], strides = [1, 1]} : vector<2x128xf32> to vector<1x64xf32>
    %1248 = vector.broadcast %1247 : vector<1x64xf32> to vector<5x64xf32>
    %1249 = arith.addf %1246, %1248 : vector<5x64xf32>
    %1250 = vector.extract_strided_slice %1249 {offsets = [0, 0], sizes = [5, 32], strides = [1, 1]} : vector<5x64xf32> to vector<5x32xf32>
    %1251 = vector.extract_strided_slice %1249 {offsets = [0, 32], sizes = [5, 32], strides = [1, 1]} : vector<5x64xf32> to vector<5x32xf32>
    %1252 = vector.extract_strided_slice %1243 {offsets = [0, 0], sizes = [5, 8], strides = [1, 1]} : vector<5x32xf32> to vector<5x8xf32>
    %1253 = vector.extract_strided_slice %1243 {offsets = [0, 8], sizes = [5, 8], strides = [1, 1]} : vector<5x32xf32> to vector<5x8xf32>
    %1254 = vector.extract_strided_slice %1243 {offsets = [0, 16], sizes = [5, 8], strides = [1, 1]} : vector<5x32xf32> to vector<5x8xf32>
    %1255 = vector.extract_strided_slice %1243 {offsets = [0, 24], sizes = [5, 8], strides = [1, 1]} : vector<5x32xf32> to vector<5x8xf32>
    %1256 = tpu.concatenate %1252, %1253, %1254, %1255 in 0 : vector<5x8xf32>, vector<5x8xf32>, vector<5x8xf32>, vector<5x8xf32> -> vector<20x8xf32>
    %1257 = arith.truncf %1256 : vector<20x8xf32> to vector<20x8xbf16>
    %1258 = vector.extract_strided_slice %1250 {offsets = [0, 0], sizes = [5, 8], strides = [1, 1]} : vector<5x32xf32> to vector<5x8xf32>
    %1259 = vector.extract_strided_slice %1250 {offsets = [0, 8], sizes = [5, 8], strides = [1, 1]} : vector<5x32xf32> to vector<5x8xf32>
    %1260 = vector.extract_strided_slice %1250 {offsets = [0, 16], sizes = [5, 8], strides = [1, 1]} : vector<5x32xf32> to vector<5x8xf32>
    %1261 = vector.extract_strided_slice %1250 {offsets = [0, 24], sizes = [5, 8], strides = [1, 1]} : vector<5x32xf32> to vector<5x8xf32>
    %1262 = tpu.concatenate %1258, %1259, %1260, %1261 in 0 : vector<5x8xf32>, vector<5x8xf32>, vector<5x8xf32>, vector<5x8xf32> -> vector<20x8xf32>
    %1263 = arith.truncf %1262 : vector<20x8xf32> to vector<20x8xbf16>
    %1264 = vector.extract_strided_slice %1251 {offsets = [0, 0], sizes = [5, 8], strides = [1, 1]} : vector<5x32xf32> to vector<5x8xf32>
    %1265 = vector.extract_strided_slice %1251 {offsets = [0, 8], sizes = [5, 8], strides = [1, 1]} : vector<5x32xf32> to vector<5x8xf32>
    %1266 = vector.extract_strided_slice %1251 {offsets = [0, 16], sizes = [5, 8], strides = [1, 1]} : vector<5x32xf32> to vector<5x8xf32>
    %1267 = vector.extract_strided_slice %1251 {offsets = [0, 24], sizes = [5, 8], strides = [1, 1]} : vector<5x32xf32> to vector<5x8xf32>
    %1268 = tpu.concatenate %1264, %1265, %1266, %1267 in 0 : vector<5x8xf32>, vector<5x8xf32>, vector<5x8xf32>, vector<5x8xf32> -> vector<20x8xf32>
    %1269 = arith.truncf %1268 : vector<20x8xf32> to vector<20x8xbf16>
    %cst_329 = arith.constant dense<0.000000e+00> : vector<20x20xf32>
    %1270 = tpu.matmul %1257, %1263, %cst_329 {dimension_numbers = #tpu.dot_dimension_numbers<[1], [1], [0], [0], [0, 0, 1, 0], [], []>} : vector<20x8xbf16>, vector<20x8xbf16>, vector<20x20xf32> -> vector<20x20xf32>
    %1271 = arith.addf %1270, %692 : vector<20x20xf32>
    %cst_330 = arith.constant dense<0xFF800000> : vector<20xf32>
    %1272 = vector.multi_reduction <maximumf>, %1271, %cst_330 [1] : vector<20x20xf32> to vector<20xf32>
    %1273 = vector.shape_cast %1272 : vector<20xf32> to vector<20x1xf32>
    %1274 = vector.broadcast %1273 : vector<20x1xf32> to vector<20x20xf32>
    %1275 = arith.subf %1271, %1274 : vector<20x20xf32>
    %1276 = math.exp %1275 : vector<20x20xf32>
    %cst_331 = arith.constant dense<0.000000e+00> : vector<20xf32>
    %1277 = vector.multi_reduction <add>, %1276, %cst_331 [1] : vector<20x20xf32> to vector<20xf32>
    %1278 = vector.shape_cast %1277 : vector<20xf32> to vector<20x1xf32>
    %1279 = vector.broadcast %1278 : vector<20x1xf32> to vector<20x20xf32>
    %1280 = arith.divf %1276, %1279 : vector<20x20xf32>
    %1281 = arith.truncf %1280 : vector<20x20xf32> to vector<20x20xbf16>
    %cst_332 = arith.constant dense<0.000000e+00> : vector<20x8xf32>
    %1282 = tpu.matmul %1281, %1269, %cst_332 {dimension_numbers = #tpu.dot_dimension_numbers<[1], [0], [0], [1], [0, 0, 1, 1], [], []>} : vector<20x20xbf16>, vector<20x8xbf16>, vector<20x8xf32> -> vector<20x8xf32>
    %1283 = vector.extract_strided_slice %1282 {offsets = [0, 0], sizes = [5, 8], strides = [1, 1]} : vector<20x8xf32> to vector<5x8xf32>
    %1284 = vector.extract_strided_slice %1282 {offsets = [5, 0], sizes = [5, 8], strides = [1, 1]} : vector<20x8xf32> to vector<5x8xf32>
    %1285 = vector.extract_strided_slice %1282 {offsets = [10, 0], sizes = [5, 8], strides = [1, 1]} : vector<20x8xf32> to vector<5x8xf32>
    %1286 = vector.extract_strided_slice %1282 {offsets = [15, 0], sizes = [5, 8], strides = [1, 1]} : vector<20x8xf32> to vector<5x8xf32>
    %1287 = tpu.concatenate %1283, %1284, %1285, %1286 in 1 : vector<5x8xf32>, vector<5x8xf32>, vector<5x8xf32>, vector<5x8xf32> -> vector<5x32xf32>
    %1288 = arith.truncf %1287 : vector<5x32xf32> to vector<5x32xbf16>
    %1289 = vector.extract_strided_slice %1235 {offsets = [0, 96], sizes = [32, 32], strides = [1, 1]} : vector<32x128xbf16> to vector<32x32xbf16>
    %cst_333 = arith.constant dense<0.000000e+00> : vector<5x32xf32>
    %1290 = tpu.matmul %1288, %1289, %cst_333 {dimension_numbers = #tpu.dot_dimension_numbers<[1], [0], [0], [1], [0, 0, 1, 1], [], []>} : vector<5x32xbf16>, vector<32x32xbf16>, vector<5x32xf32> -> vector<5x32xf32>
    %1291 = vector.extract_strided_slice %1237 {offsets = [0, 96], sizes = [1, 32], strides = [1, 1]} : vector<2x128xf32> to vector<1x32xf32>
    %1292 = vector.broadcast %1291 : vector<1x32xf32> to vector<5x32xf32>
    %1293 = arith.addf %1290, %1292 : vector<5x32xf32>
    %1294 = arith.addf %1293, %1233 : vector<5x32xf32>
    %1295 = vector.extract_strided_slice %1237 {offsets = [1, 0], sizes = [1, 32], strides = [1, 1]} : vector<2x128xf32> to vector<1x32xf32>
    %1296 = vector.extract_strided_slice %1237 {offsets = [1, 32], sizes = [1, 32], strides = [1, 1]} : vector<2x128xf32> to vector<1x32xf32>
    %cst_334 = arith.constant dense<0.000000e+00> : vector<5xf32>
    %1297 = vector.multi_reduction <add>, %1294, %cst_334 [1] : vector<5x32xf32> to vector<5xf32>
    %1298 = vector.shape_cast %1297 : vector<5xf32> to vector<5x1xf32>
    %cst_335 = arith.constant 3.200000e+01 : f32
    %1299 = vector.broadcast %cst_335 : f32 to vector<5x1xf32>
    %1300 = arith.divf %1298, %1299 : vector<5x1xf32>
    %1301 = vector.broadcast %1300 : vector<5x1xf32> to vector<5x32xf32>
    %1302 = arith.subf %1294, %1301 : vector<5x32xf32>
    %1303 = arith.mulf %1302, %1302 : vector<5x32xf32>
    %cst_336 = arith.constant dense<0.000000e+00> : vector<5xf32>
    %1304 = vector.multi_reduction <add>, %1303, %cst_336 [1] : vector<5x32xf32> to vector<5xf32>
    %1305 = vector.shape_cast %1304 : vector<5xf32> to vector<5x1xf32>
    %cst_337 = arith.constant 3.200000e+01 : f32
    %1306 = vector.broadcast %cst_337 : f32 to vector<5x1xf32>
    %1307 = arith.divf %1305, %1306 : vector<5x1xf32>
    %1308 = vector.broadcast %1300 : vector<5x1xf32> to vector<5x32xf32>
    %1309 = arith.subf %1294, %1308 : vector<5x32xf32>
    %cst_338 = arith.constant 9.99999974E-6 : f32
    %1310 = vector.broadcast %cst_338 : f32 to vector<5x1xf32>
    %1311 = arith.addf %1307, %1310 : vector<5x1xf32>
    %1312 = math.rsqrt %1311 : vector<5x1xf32>
    %1313 = vector.broadcast %1312 : vector<5x1xf32> to vector<5x32xf32>
    %1314 = arith.mulf %1309, %1313 : vector<5x32xf32>
    %1315 = vector.broadcast %1295 : vector<1x32xf32> to vector<5x32xf32>
    %1316 = arith.mulf %1314, %1315 : vector<5x32xf32>
    %1317 = vector.broadcast %1296 : vector<1x32xf32> to vector<5x32xf32>
    %1318 = arith.addf %1316, %1317 : vector<5x32xf32>
    %c3_339 = arith.constant 3 : index
    %c0_340 = arith.constant 0 : index
    %c0_341 = arith.constant 0 : index
    %1319 = vector.load %arg8[%c3_339, %c0_340, %c0_341] : memref<4x160x128xbf16, #tpu.memory_space<vmem>>, vector<1x160x128xbf16>
    %1320 = vector.shape_cast %1319 : vector<1x160x128xbf16> to vector<160x128xbf16>
    %c3_342 = arith.constant 3 : index
    %c0_343 = arith.constant 0 : index
    %c0_344 = arith.constant 0 : index
    %1321 = vector.load %arg9[%c3_342, %c0_343, %c0_344] : memref<4x2x128xf32, #tpu.memory_space<vmem>>, vector<1x2x128xf32>
    %1322 = vector.shape_cast %1321 : vector<1x2x128xf32> to vector<2x128xf32>
    %1323 = arith.truncf %1318 : vector<5x32xf32> to vector<5x32xbf16>
    %1324 = vector.extract_strided_slice %1320 {offsets = [0, 0], sizes = [32, 128], strides = [1, 1]} : vector<160x128xbf16> to vector<32x128xbf16>
    %cst_345 = arith.constant dense<0.000000e+00> : vector<5x128xf32>
    %1325 = tpu.matmul %1323, %1324, %cst_345 {dimension_numbers = #tpu.dot_dimension_numbers<[1], [0], [0], [1], [0, 0, 1, 1], [], []>} : vector<5x32xbf16>, vector<32x128xbf16>, vector<5x128xf32> -> vector<5x128xf32>
    %1326 = vector.extract_strided_slice %1322 {offsets = [0, 0], sizes = [1, 128], strides = [1, 1]} : vector<2x128xf32> to vector<1x128xf32>
    %1327 = vector.broadcast %1326 : vector<1x128xf32> to vector<5x128xf32>
    %1328 = arith.addf %1325, %1327 : vector<5x128xf32>
    %cst_346 = arith.constant 0.000000e+00 : f32
    %1329 = vector.broadcast %cst_346 : f32 to vector<5x128xf32>
    %1330 = arith.maximumf %1328, %1329 : vector<5x128xf32>
    %1331 = arith.truncf %1330 : vector<5x128xf32> to vector<5x128xbf16>
    %1332 = vector.extract_strided_slice %1320 {offsets = [32, 0], sizes = [128, 128], strides = [1, 1]} : vector<160x128xbf16> to vector<128x128xbf16>
    %cst_347 = arith.constant dense<0.000000e+00> : vector<5x128xf32>
    %1333 = tpu.matmul %1331, %1332, %cst_347 {dimension_numbers = #tpu.dot_dimension_numbers<[1], [0], [0], [1], [0, 0, 1, 1], [], []>} : vector<5x128xbf16>, vector<128x128xbf16>, vector<5x128xf32> -> vector<5x128xf32>
    %1334 = vector.extract_strided_slice %1333 {offsets = [0, 0], sizes = [5, 32], strides = [1, 1]} : vector<5x128xf32> to vector<5x32xf32>
    %1335 = vector.extract_strided_slice %1322 {offsets = [1, 0], sizes = [1, 32], strides = [1, 1]} : vector<2x128xf32> to vector<1x32xf32>
    %1336 = vector.broadcast %1335 : vector<1x32xf32> to vector<5x32xf32>
    %1337 = arith.addf %1334, %1336 : vector<5x32xf32>
    %1338 = arith.addf %1337, %1318 : vector<5x32xf32>
    %1339 = vector.extract_strided_slice %1322 {offsets = [1, 32], sizes = [1, 32], strides = [1, 1]} : vector<2x128xf32> to vector<1x32xf32>
    %1340 = vector.extract_strided_slice %1322 {offsets = [1, 64], sizes = [1, 32], strides = [1, 1]} : vector<2x128xf32> to vector<1x32xf32>
    %cst_348 = arith.constant dense<0.000000e+00> : vector<5xf32>
    %1341 = vector.multi_reduction <add>, %1338, %cst_348 [1] : vector<5x32xf32> to vector<5xf32>
    %1342 = vector.shape_cast %1341 : vector<5xf32> to vector<5x1xf32>
    %cst_349 = arith.constant 3.200000e+01 : f32
    %1343 = vector.broadcast %cst_349 : f32 to vector<5x1xf32>
    %1344 = arith.divf %1342, %1343 : vector<5x1xf32>
    %1345 = vector.broadcast %1344 : vector<5x1xf32> to vector<5x32xf32>
    %1346 = arith.subf %1338, %1345 : vector<5x32xf32>
    %1347 = arith.mulf %1346, %1346 : vector<5x32xf32>
    %cst_350 = arith.constant dense<0.000000e+00> : vector<5xf32>
    %1348 = vector.multi_reduction <add>, %1347, %cst_350 [1] : vector<5x32xf32> to vector<5xf32>
    %1349 = vector.shape_cast %1348 : vector<5xf32> to vector<5x1xf32>
    %cst_351 = arith.constant 3.200000e+01 : f32
    %1350 = vector.broadcast %cst_351 : f32 to vector<5x1xf32>
    %1351 = arith.divf %1349, %1350 : vector<5x1xf32>
    %1352 = vector.broadcast %1344 : vector<5x1xf32> to vector<5x32xf32>
    %1353 = arith.subf %1338, %1352 : vector<5x32xf32>
    %cst_352 = arith.constant 9.99999974E-6 : f32
    %1354 = vector.broadcast %cst_352 : f32 to vector<5x1xf32>
    %1355 = arith.addf %1351, %1354 : vector<5x1xf32>
    %1356 = math.rsqrt %1355 : vector<5x1xf32>
    %1357 = vector.broadcast %1356 : vector<5x1xf32> to vector<5x32xf32>
    %1358 = arith.mulf %1353, %1357 : vector<5x32xf32>
    %1359 = vector.broadcast %1339 : vector<1x32xf32> to vector<5x32xf32>
    %1360 = arith.mulf %1358, %1359 : vector<5x32xf32>
    %1361 = vector.broadcast %1340 : vector<1x32xf32> to vector<5x32xf32>
    %1362 = arith.addf %1360, %1361 : vector<5x32xf32>
    %1363 = arith.truncf %1362 : vector<5x32xf32> to vector<5x32xbf16>
    %c0_353 = arith.constant 0 : index
    %c0_354 = arith.constant 0 : index
    %1364 = vector.load %arg10[%c0_353, %c0_354] : memref<32x128xbf16, #tpu.memory_space<vmem>>, vector<32x128xbf16>
    %cst_355 = arith.constant dense<0.000000e+00> : vector<5x128xf32>
    %1365 = tpu.matmul %1363, %1364, %cst_355 {dimension_numbers = #tpu.dot_dimension_numbers<[1], [0], [0], [1], [0, 0, 1, 1], [], []>} : vector<5x32xbf16>, vector<32x128xbf16>, vector<5x128xf32> -> vector<5x128xf32>
    %c1_356 = arith.constant 1 : index
    %c0_357 = arith.constant 0 : index
    %c0_358 = arith.constant 0 : index
    %1366 = vector.load %arg11[%c1_356, %c0_357, %c0_358] : memref<2x5x128xf32, #tpu.memory_space<vmem>>, vector<1x5x128xf32>
    %1367 = vector.shape_cast %1366 : vector<1x5x128xf32> to vector<5x128xf32>
    %1368 = vector.shape_cast %1365 : vector<5x128xf32> to vector<1x5x128xf32>
    tpu.vector_store %arg11[%c1_356, %c0_357, %c0_358], %1368 {strides = array<i32>} : memref<2x5x128xf32, #tpu.memory_space<vmem>>, vector<1x5x128xf32>,
    %cst_359 = arith.constant 0.000000e+00 : f32
    %1369 = vector.broadcast %cst_359 : f32 to vector<20x8xf32>
    %1370 = tpu.concatenate %736, %860, %986, %1195, %1071, %1280, %1369 in 1 : vector<20x20xf32>, vector<20x20xf32>, vector<20x20xf32>, vector<20x20xf32>, vector<20x20xf32>, vector<20x20xf32>, vector<20x8xf32> -> vector<20x128xf32>
    %c1_360 = arith.constant 1 : index
    %c0_361 = arith.constant 0 : index
    %c0_362 = arith.constant 0 : index
    %1371 = vector.load %arg12[%c1_360, %c0_361, %c0_362] : memref<2x20x128xf32, #tpu.memory_space<vmem>>, vector<1x20x128xf32>
    %1372 = vector.shape_cast %1371 : vector<1x20x128xf32> to vector<20x128xf32>
    %1373 = vector.shape_cast %1370 : vector<20x128xf32> to vector<1x20x128xf32>
    tpu.vector_store %arg12[%c1_360, %c0_361, %c0_362], %1373 {strides = array<i32>} : memref<2x20x128xf32, #tpu.memory_space<vmem>>, vector<1x20x128xf32>,
    return
  }
  func.func @transform_0(%arg0: i32) -> (i32, i32, i32) {
    %c0_i32 = arith.constant 0 : i32
    %c0_i32_0 = arith.constant 0 : i32
    %c0_i32_1 = arith.constant 0 : i32
    return %arg0, %c0_i32, %c0_i32_0 : i32, i32, i32
  }
  func.func @transform_1(%arg0: i32) -> (i32, i32, i32) {
    %c0_i32 = arith.constant 0 : i32
    %c0_i32_0 = arith.constant 0 : i32
    %c0_i32_1 = arith.constant 0 : i32
    return %arg0, %c0_i32, %c0_i32_0 : i32, i32, i32
  }
  func.func @transform_2(%arg0: i32) -> (i32, i32, i32) {
    %c0_i32 = arith.constant 0 : i32
    %c0_i32_0 = arith.constant 0 : i32
    %c0_i32_1 = arith.constant 0 : i32
    return %arg0, %c0_i32, %c0_i32_0 : i32, i32, i32
  }
  func.func @transform_3(%arg0: i32) -> (i32, i32, i32) {
    %c0_i32 = arith.constant 0 : i32
    %c0_i32_0 = arith.constant 0 : i32
    %c0_i32_1 = arith.constant 0 : i32
    return %arg0, %c0_i32, %c0_i32_0 : i32, i32, i32
  }
  func.func @transform_4(%arg0: i32) -> (i32, i32, i32) {
    %c0_i32 = arith.constant 0 : i32
    %c0_i32_0 = arith.constant 0 : i32
    %c0_i32_1 = arith.constant 0 : i32
    return %arg0, %c0_i32, %c0_i32_0 : i32, i32, i32
  }
  func.func @transform_5(%arg0: i32) -> (i32, i32, i32) {
    %c0_i32 = arith.constant 0 : i32
    %c0_i32_0 = arith.constant 0 : i32
    %c0_i32_1 = arith.constant 0 : i32
    %c0_i32_2 = arith.constant 0 : i32
    return %c0_i32, %c0_i32_0, %c0_i32_1 : i32, i32, i32
  }
  func.func @transform_6(%arg0: i32) -> (i32, i32, i32) {
    %c0_i32 = arith.constant 0 : i32
    %c0_i32_0 = arith.constant 0 : i32
    %c0_i32_1 = arith.constant 0 : i32
    %c0_i32_2 = arith.constant 0 : i32
    return %c0_i32, %c0_i32_0, %c0_i32_1 : i32, i32, i32
  }
  func.func @transform_7(%arg0: i32) -> (i32, i32, i32) {
    %c0_i32 = arith.constant 0 : i32
    %c0_i32_0 = arith.constant 0 : i32
    %c0_i32_1 = arith.constant 0 : i32
    %c0_i32_2 = arith.constant 0 : i32
    return %c0_i32, %c0_i32_0, %c0_i32_1 : i32, i32, i32
  }
  func.func @transform_8(%arg0: i32) -> (i32, i32, i32) {
    %c0_i32 = arith.constant 0 : i32
    %c0_i32_0 = arith.constant 0 : i32
    %c0_i32_1 = arith.constant 0 : i32
    %c0_i32_2 = arith.constant 0 : i32
    return %c0_i32, %c0_i32_0, %c0_i32_1 : i32, i32, i32
  }
  func.func @transform_9(%arg0: i32) -> (i32, i32) {
    %c0_i32 = arith.constant 0 : i32
    %c0_i32_0 = arith.constant 0 : i32
    %c0_i32_1 = arith.constant 0 : i32
    return %c0_i32, %c0_i32_0 : i32, i32
  }
  func.func @transform_10(%arg0: i32) -> (i32, i32, i32) {
    %c0_i32 = arith.constant 0 : i32
    %c0_i32_0 = arith.constant 0 : i32
    %c0_i32_1 = arith.constant 0 : i32
    return %arg0, %c0_i32, %c0_i32_0 : i32, i32, i32
  }
  func.func @transform_11(%arg0: i32) -> (i32, i32, i32) {
    %c0_i32 = arith.constant 0 : i32
    %c0_i32_0 = arith.constant 0 : i32
    %c0_i32_1 = arith.constant 0 : i32
    return %arg0, %c0_i32, %c0_i32_0 : i32, i32, i32
  }
}

</mosaic_0001>

<bundles_post_ra>
// kernel: transformer_forward.1
= control target key start
LH: loop header
LB: loop body
LE: loop exit
PB: predicated region body
PF: predicated region fallthrough
CT: control target
= control target key end

     0   :  { %v8064_v0 = vmov 0.0   ;;  %vm8065_vm0 = vmmov 0   ;;  %vm70_vm1 = vcmask 261120   ;;  %v54_v5 = vlaneseq  ;;  %s8066_s25 = smov 104   ;;  %s8067_s26 = smov 120   ;;  %s10096_s5 = inlined_call_operand.vmem [shape: bf16[6,32,128], index: 5, kind: input, shape index: {}]   ;;  %s10097_s0 = inlined_call_operand.vmem [shape: f32[2,5,32], index: 0, kind: input, shape index: {}]   ;;  %s10098_s6 = inlined_call_operand.vmem [shape: f32[6,2,128], index: 6, kind: input, shape index: {}]   ;;  %s10099_s2 = inlined_call_operand.vmem [shape: f32[2,20,20], index: 2, kind: input, shape index: {}, may-alias: {2,4}]   ;;  %s10100_s7 = inlined_call_operand.vmem [shape: bf16[4,160,128], index: 7, kind: input, shape index: {}]   ;;  %s10101_s8 = inlined_call_operand.vmem [shape: f32[4,2,128], index: 8, kind: input, shape index: {}]   ;;  %s10102_s1 = inlined_call_operand.vmem [shape: f32[2,5,32], index: 1, kind: input, shape index: {}]   ;;  %s10103_s3 = inlined_call_operand.vmem [shape: f32[2,20,20], index: 3, kind: input, shape index: {}]   ;;  %s10104_s4 = inlined_call_operand.vmem [shape: f32[2,20,20], index: 4, kind: input, shape index: {}, may-alias: {2,4}]   ;;  %s10105_s9 = inlined_call_operand.vmem [shape: bf16[32,128], index: 9, kind: input, shape index: {}]   ;;  %s10106_s10 = inlined_call_operand.vmem [shape: f32[2,5,128], index: 10, kind: output, shape index: {0}]   ;;  %s10107_s11 = inlined_call_operand.vmem [shape: f32[2,20,128], index: 11, kind: output, shape index: {1}]  }
   0x1   :  { %7064 = vmatprep.subr.bf16.mxu0 %v8064_v0  ;;  %v8144_v1 = vld [vmem:[%s10096_s5] sm:$0xff]   ;;  %7068 = vmatprep.mubr.msk.bf16.mxu0 %vm8065_vm0, %v8064_v0  ;;  %v8152_v2 = vld [vmem:[%s10096_s5 + $0x8] sm:$0xff]   ;;  %s8068_s27 = smov 112   ;;  %vm129_vm2 = vcmask 1041408   ;;  %vm127_vm3 = vcmask 1044480   ;;  %s8069_s28 = smov 96  }
   0x2   :  { %7065 = vmatpush3.bf16.msra.mxu0 %v8144_v1  ;;  %v8157_v3 = vld [vmem:[%s10097_s0] sm:$0x1f]  ;;  %v8164_v6 = vshrl.u32 %v54_v5, 7  ;;  %vm131_vm4 = vcmask 1046528   ;;  %vm141_vm5 = vcmask 64512   ;;  %v8208_v33 = vld [vmem:[%s10099_s2 + $0x8] sm:$0xff] }
   0x3   :  { %7066 = vmatprep.subr.bf16.mxu0 %v8064_v0  ;;  %v53_v4 = vpack.c.bf16 %v8157_v3, %v8157_v3  ;;  %v8172_v8 = vld [vmem:[%s10098_s6] sm:$0x3]  ;;  %vm202_vm6 = vcmask 162816   ;;  %v8214_v36 = vld [vmem:[%s10099_s2 + $0x10] sm:$0xf]  ;;  %vm209_vm7 = vcmask 158720  }
   0x4   :  { %v8167_v7 = vsub.s32 0, %v8164_v6  ;;  %v8203_v30 = vld [vmem:[%s10099_s2] sm:$0xff]  ;;  %s8070_s16 = smov 64   ;;  %s8071_s17 = smov 32   ;;  %vm303_vm8 = vcmask 1042432   ;;  %vm315_vm9 = vcmask 1040384  }
   0x5   :  { %s8072_s18 = smov 16   ;;  %s8073_s19 = smov 8   ;;  %vm323_vm10 = vcmask 130048   ;;  %vm325_vm11 = vcmask 195584   ;;  %vm382_vm12 = vcmask 258048   ;;  %vm3204_vm13 = vcmask 326656  }
   0x6   :  { %7067 = vmatpush3.bf16.msra.mxu0 %v8152_v2  ;;  %v8176_v9 = vrot.slane %v8172_v8, %v8167_v7  ;;  %s8074_s20 = smov 24   ;;  %vm3208_vm14 = vcmask 490496   ;;  %vm3216_vm15 = vcmask 818176  }
   0x9   :  { %7069 = vmatmul.mubr.msk.bf16.vlgmr.msra.gmra.mrb[0].mxu0 %vm70_vm1, %v53_v4 }
  0xdc   :  { %v108_v10 = vpop.f32.mrb[0].mxu0 }
  0xdd   :  { %v109_v11 = vadd.f32 %v108_v10, %v8176_v9  ;;  %v7070_v12 = vpop.f32.mrb[1].mxu0 }
  0xde   :  { %v111_v13 = vpop.f32.mrb[2].mxu0 }
  0xdf   :  { %v7071_v14 = vpop.f32.mrb[3].mxu0  ;;  %v123_v15 = vrot.slane %v109_v11, 1  ;;  %v115_v16 = vrot.slane %v109_v11, 3  ;;  %v119_v17 = vrot.slane %v109_v11, 6 }
  0xe1   :  { %124 = vrot.lane.b32.xlu1 %v123_v15, %s8066_s25  ;;  %116 = vrot.lane.b32.xlu0 %v115_v16, %s8067_s26 }
  0xe5   :  { %120 = vrot.lane.b32.xlu0 %v119_v17, %s8068_s27 }
 0x153   :  { %v125_v18 = vpop.permute.xlu1 %124  ;;  %v117_v19 = vpop.permute.xlu0 %116 }
 0x154   :  { %v8182_v20 = vpack.c.bf16 %v125_v18, %v125_v18  ;;  %v128_v23 = vsel %vm127_vm3, %v109_v11, %v117_v19 }
 0x156   :  { %139 = vrot.lane.b32.xlu0 %v8182_v20, %s8069_s28 }
 0x157   :  { %v121_v21 = vpop.permute.xlu0 %120 }
 0x158   :  { %v130_v22 = vsel %vm129_vm2, %v117_v19, %v121_v21 }
 0x159   :  { %v132_v24 = vsel %vm131_vm4, %v130_v22, %v125_v18 }
 0x15a   :  { %v133_v25 = vpack.c.bf16 %v132_v24, %v128_v23 }
 0x15c   :  { %137 = vrot.lane.b32.xlu1 %v133_v25, %s8069_s28  ;;  %7076 = vmatprep.mubr.msk.bf16.mxu1 %vm141_vm5, %v133_v25 }
 0x1c8   :  { %v140_v28 = vpop.permute.xlu0 %139 }
 0x1c9   :  { %v152_v29 = vsel %vm141_vm5, %v140_v28, 0 }
 0x1ce   :  { %v138_v26 = vpop.permute.xlu1 %137 }
 0x1cf   :  { %7720 = vmatprep.subr.msk.bf16.mxu1 %vm141_vm5, %v138_v26  ;;  %v149_v27 = vsel %vm141_vm5, %v138_v26, 0 }
 0x1d0   :  { %7073 = vmatpush3.bf16.xpose.msra.mxu1 %v149_v27 }
 0x1d1   :  { %7721 = vmatprep.subr.msk.bf16.mxu1 %vm141_vm5, %v140_v28 }
 0x1d8   :  { %7075 = vmatpush3.bf16.xpose.msra.mxu1 %v152_v29 }
 0x1d9   :  { %7124 = vmatprep.subr.bf16.mxu1 %v8064_v0 }
 0x1df   :  { %7077 = vmatmul.mubr.msk.bf16.vlgmr.msra.gmra.mrb[0].mxu1 %vm141_vm5, %v8182_v20 }
 0x1e0   :  { %7128 = vmatprep.mubr.msk.bf16.mxu1 %vm8065_vm0, %v8064_v0 }
 0x2b2   :  { %v7078_v31 = vpop.f32.mrb[0].mxu1 }
 0x2b3   :  { %v188_v32 = vpop.f32.mrb[1].mxu1  ;;  %v197_v40 = vadd.f32 %v7078_v31, %v8214_v36 }
 0x2b4   :  { %v189_v34 = vadd.f32 %v188_v32, %v8203_v30  ;;  %v7079_v35 = vpop.f32.mrb[2].mxu1 }
 0x2b5   :  { %v191_v37 = vpop.f32.mrb[3].mxu1  ;;  %v210_v42 = vsel %vm209_vm7, %v197_v40, -inf }
 0x2b6   :  { %v192_v38 = vadd.f32 %v191_v37, %v8208_v33  ;;  %v203_v39 = vsel %vm202_vm6, %v189_v34, -inf }
 0x2b7   :  { %204 = vmax.xlane.f32.xlu1 %v203_v39 }
 0x2b8   :  { %v206_v41 = vsel %vm202_vm6, %v192_v38, -inf }
 0x2b9   :  { %207 = vmax.xlane.f32.xlu0 %v206_v41 }
 0x2bd   :  { %211 = vmax.xlane.f32.xlu0 %v210_v42 }
 0x344   :  { %v205_v43 = vpop.xlane.xlu1 %204 }
 0x345   :  { %v213_v46 = vsub.f32 %v189_v34, %v205_v43 }
 0x346   :  { %v208_v44 = vpop.xlane.xlu0 %207 }
 0x347   :  { %v214_v45 = vsub.f32 %v192_v38, %v208_v44  ;;  %v216_v50 = vmul.f32 1.442695, %v213_v46 }
 0x349   :  { %v218_v47 = vmul.f32 1.442695, %v214_v45 }
 0x34a   :  { %v212_v48 = vpop.xlane.xlu0 %211 }
 0x34b   :  { %7880 = vpow2.f32 %v218_v47  ;;  %v215_v49 = vsub.f32 %v197_v40, %v212_v48 }
 0x34d   :  { %v220_v51 = vmul.f32 1.442695, %v215_v49  ;;  %v8267_v49 = vsub.s32 1, %v8164_v6 }
 0x34f   :  { %7882 = vpow2.f32 %v220_v51  ;;  %v7775_v51 = vld [vmem:[%s10100_s7 + $0x8] sm:$0xff]  }
 0x350   :  { %7884 = vpow2.f32 %v216_v50  ;;  %v400_v50 = vrot.slane %v8172_v8, %v8267_v49 }
 0x355   :  { %v7881_v52 = vpop.eup %7880 }
 0x356   :  { %v225_v53 = vsel %vm202_vm6, %v7881_v52, 0.0 }
 0x357   :  { %226 = vadd.xlane.f32.xlu0 %v225_v53 }
 0x359   :  { %v7883_v54 = vpop.eup %7882 }
 0x35a   :  { %v228_v55 = vsel %vm209_vm7, %v7883_v54, 0.0  ;;  %v7885_v56 = vpop.eup %7884 }
 0x35b   :  { %229 = vadd.xlane.f32.xlu1 %v228_v55  ;;  %v222_v57 = vsel %vm202_vm6, %v7885_v56, 0.0 }
 0x35f   :  { %223 = vadd.xlane.f32.xlu1 %v222_v57 }
 0x36d   :  { %239 = vrot.lane.b32.xlu0 %v133_v25, %s8070_s16 }
 0x370   :  { %241 = vrot.lane.b32.xlu1 %v8182_v20, %s8070_s16 }
 0x374   :  { %328 = vrot.lane.b32.xlu1 %v8144_v1, %s8071_s17 }
 0x3e4   :  { %v227_v58 = vpop.xlane.xlu0 %226 }
 0x3e8   :  { %v240_v59 = vpop.permute.xlu0 %239  ;;  %v230_v60 = vpop.xlane.xlu1 %229 }
 0x3e9   :  { %7080 = vmatprep.subr.bf16.mxu0 %v240_v59  ;;  %7886 = vrcp.f32 %v230_v60  ;;  %v7777_v60 = vld [vmem:[%s10100_s7 + $0x18] sm:$0xff]  }
 0x3ea   :  { %7081 = vmatpush3.bf16.msra.mxu0 %v240_v59  ;;  %7888 = vrcp.f32 %v227_v58  ;;  %v7776_v58 = vld [vmem:[%s10100_s7 + $0x10] sm:$0xff]  }
 0x3ec   :  { %v224_v61 = vpop.xlane.xlu1 %223 }
 0x3ed   :  { %7890 = vrcp.f32 %v224_v61  ;;  %v7778_v61 = vld [vmem:[%s10100_s7 + $0x20] sm:$0xff]  }
 0x3f0   :  { %v242_v62 = vpop.permute.xlu1 %241 }
 0x3f1   :  { %7722 = vmatprep.subr.msk.bf16.mxu0 %vm129_vm2, %v242_v62  ;;  %v251_v63 = vsel %vm129_vm2, %v242_v62, 0  ;;  %v7779_v62 = vld [vmem:[%s10100_s7 + $0x28] sm:$0xff]  }
 0x3f2   :  { %7083 = vmatpush3.bf16.msra.mxu0 %v251_v63  ;;  %v7780_v63 = vld [vmem:[%s10100_s7 + $0x30] sm:$0xff]  }
 0x3f3   :  { %7088 = vmatprep.subr.bf16.mxu0 %v8064_v0  ;;  %v7887_v4 = vpop.eup %7886 }
 0x3f4   :  { %v7889_v5 = vpop.eup %7888  ;;  %v8230_v11 = vmul.f32 %v7887_v4, %v7883_v54  ;;  %v329_v16 = vpop.permute.xlu1 %328  ;;  %v7781_v4 = vld [vmem:[%s10100_s7 + $0x38] sm:$0xff]  }
 0x3f5   :  { %v8234_v13 = vmul.f32 %v7889_v5, %v7881_v52  ;;  %v7782_v5 = vld [vmem:[%s10100_s7 + $0x40] sm:$0xff]  }
 0x3f6   :  { %v238_v15 = vpack.c.bf16 %v8230_v11, %v8230_v11 }
 0x3f7   :  { %v7891_v10 = vpop.eup %7890 }
 0x3f8   :  { %v8232_v12 = vmul.f32 %v7891_v10, %v7885_v56  ;;  %v7783_v10 = vld [vmem:[%s10100_s7 + $0x48] sm:$0xff]  }
 0x3fa   :  { %v237_v14 = vpack.c.bf16 %v8234_v13, %v8232_v12 }
 0x3fc   :  { %7084 = vmatprep.mubr.msk.bf16.mxu0 %vm202_vm6, %v237_v14  ;;  %v427_v14 = vld [vmem:[%s10101_s8] sm:$0x3] }
 0x3fd   :  { %7085 = vmatmul.mubr.msk.bf16.vlgmr.msra.gmra.mrb[4].mxu0 %vm202_vm6, %v238_v15  ;;  %v581_v15 = vrot.slane %v427_v14, %v8267_v49 }
 0x3fe   :  { %7092 = vmatprep.mubr.msk.bf16.mxu0 %vm8065_vm0, %v8064_v0  ;;  %7089 = vmatpush3.bf16.msra.mxu0 %v329_v16  ;;  %v432_v16 = vrot.slane %v427_v14, %v8167_v7 }
 0x3ff   :  { %7090 = vmatprep.subr.bf16.mxu0 %v8064_v0 }
 0x4d0   :  { %v7086_v17 = vpop.f32.mrb[4].mxu0 }
 0x4d1   :  { %v287_v18 = vpop.f32.mrb[5].mxu0  ;;  %v317_v20 = vrot.slane %v7086_v17, 7 }
 0x4d2   :  { %v7087_v19 = vpop.f32.mrb[6].mxu0  ;;  %v304_v22 = vrot.slane %v287_v18, 5 }
 0x4d3   :  { %v290_v21 = vpop.f32.mrb[7].mxu0 }
 0x4d4   :  { %v305_v23 = vrot.slane %v290_v21, 5  ;;  %v310_v24 = vrot.slane %v290_v21, 2  ;;  %v316_v25 = vrot.slane %v290_v21, 7 }
 0x4d6   :  { %311 = vrot.lane.b32.xlu1 %v310_v24, %s8072_s18  ;;  %v306_v1 = vsel %vm303_vm8, %v304_v22, %v305_v23  ;;  %v318_v26 = vsel %vm315_vm9, %v316_v25, %v317_v20 }
 0x4d7   :  { %307 = vrot.lane.b32.xlu0 %v306_v1, %s8073_s19 }
 0x4da   :  { %330 = vrot.lane.b32.xlu1 %v8152_v2, %s8071_s17 }
 0x4db   :  { %319 = vrot.lane.b32.xlu0 %v318_v26, %s8074_s20 }
 0x4df   :  { %335 = vrot.lane.b32.xlu0 %v8176_v9, %s8071_s17 }
 0x548   :  { %v312_v27 = vpop.permute.xlu1 %311 }
 0x549   :  { %v308_v28 = vpop.permute.xlu0 %307 }
 0x54a   :  { %v322_v29 = vsel %vm141_vm5, %v287_v18, %v308_v28 }
 0x54b   :  { %v324_v32 = vsel %vm323_vm10, %v322_v29, %v312_v27 }
 0x54c   :  { %v331_v31 = vpop.permute.xlu1 %330 }
 0x54d   :  { %v320_v34 = vpop.permute.xlu0 %319  ;;  %7091 = vmatpush3.bf16.msra.mxu0 %v331_v31 }
 0x54e   :  { %v326_v35 = vsel %vm325_vm11, %v324_v32, %v320_v34  ;;  %7096 = vmatprep.subr.bf16.mxu0 %v8064_v0 }
 0x54f   :  { %v327_v2 = vpack.c.bf16 %v326_v35, %v326_v35 }
 0x551   :  { %7093 = vmatmul.mubr.msk.bf16.vlgmr.msra.gmra.mrb[8].mxu0 %vm70_vm1, %v327_v2  ;;  %v336_v9 = vpop.permute.xlu0 %335 }
 0x552   :  { %7100 = vmatprep.mubr.msk.bf16.mxu0 %vm8065_vm0, %v8064_v0 }
 0x624   :  { %v375_v37 = vpop.f32.mrb[8].mxu0 }
 0x625   :  { %v376_v38 = vadd.f32 %v375_v37, %v336_v9  ;;  %v7094_v39 = vpop.f32.mrb[9].mxu0  ;;  %v8329_v9 = vld [vmem:[%s10096_s5 + $0x10] sm:$0xff]   ;;  %v8336_v37 = vld [vmem:[%s10096_s5 + $0x18] sm:$0xff]  }
 0x626   :  { %v378_v40 = vpop.f32.mrb[10].mxu0  ;;  %7125 = vmatpush3.bf16.msra.mxu1 %v8329_v9 }
 0x627   :  { %v7095_v41 = vpop.f32.mrb[11].mxu0  ;;  %v381_v42 = vadd.f32 %v376_v38, %v8157_v3  ;;  %v7774_v3 = vld [vmem:[%s10100_s7] sm:$0xff]   ;;  %7126 = vmatprep.subr.bf16.mxu1 %v8064_v0 }
 0x628   :  { %7097 = vmatpush3.bf16.msra.mxu0 %v7774_v3 }
 0x629   :  { %v383_v43 = vsel %vm382_vm12, %v381_v42, 0.0  ;;  %7098 = vmatprep.subr.bf16.mxu0 %v8064_v0 }
 0x62a   :  { %384 = vadd.xlane.f32.xlu1 %v383_v43  ;;  %7127 = vmatpush3.bf16.msra.mxu1 %v8336_v37 }
 0x62c   :  { %7099 = vmatpush3.bf16.msra.mxu0 %v7775_v51 }
 0x62d   :  { %7104 = vmatprep.subr.bf16.mxu0 %v8064_v0 }
 0x6b7   :  { %v385_v44 = vpop.xlane.xlu1 %384 }
 0x6b8   :  { %v387_v45 = vmul.f32 0.03125, %v385_v44 }
 0x6ba   :  { %v388_v46 = vsub.f32 %v381_v42, %v387_v45 }
 0x6bc   :  { %v389_v47 = vmul.f32 %v388_v46, %v388_v46 }
 0x6be   :  { %v390_v48 = vsel %vm382_vm12, %v389_v47, 0.0 }
 0x6bf   :  { %391 = vadd.xlane.f32.xlu0 %v390_v48  ;;  %v8347_v48 = vld [vmem:[%s10098_s6 + $0x2] sm:$0x3] }
 0x6d5   :  { %403 = vrot.lane.b32.xlu0 %v400_v50, %s8069_s28 }
 0x6d9   :  { %602 = vrot.lane.b32.xlu0 %v581_v15, %s8070_s16 }
 0x74c   :  { %v392_v6 = vpop.xlane.xlu0 %391 }
 0x74d   :  { %v393_v52 = vmul.f32 0.03125, %v392_v6 }
 0x74f   :  { %v394_v53 = vadd.f32 1e-05, %v393_v52 }
 0x750   :  { %v404_v55 = vpop.permute.xlu0 %403 }
 0x751   :  { %7892 = vrsqrt.f32 %v394_v53 }
 0x754   :  { %v603_v44 = vpop.permute.xlu0 %602 }
 0x75b   :  { %v7893_v8 = vpop.eup %7892 }
 0x75c   :  { %v396_v54 = vmul.f32 %v7893_v8, %v388_v46 }
 0x75e   :  { %v401_v56 = vmul.f32 %v400_v50, %v396_v54  ;;  %v8351_v50 = vrot.slane %v8347_v48, %v8167_v7 }
 0x760   :  { %v406_v57 = vadd.f32 %v404_v55, %v401_v56 }
 0x762   :  { %v428_v59 = vpack.c.bf16 %v406_v57, %v406_v57 }
 0x764   :  { %7101 = vmatmul.mubr.msk.bf16.vlgmr.msra.gmra.mrb[12].mxu0 %vm70_vm1, %v428_v59 }
 0x765   :  { %7105 = vmatpush3.bf16.msra.mxu0 %v7776_v58  ;;  %7120 = vmatprep.mubr.msk.bf16.mxu0 %vm8065_vm0, %v8064_v0 }
 0x766   :  { %7106 = vmatprep.subr.bf16.mxu0 %v8064_v0 }
 0x769   :  { %7107 = vmatpush3.bf16.msra.mxu0 %v7777_v60 }
 0x76a   :  { %7108 = vmatprep.subr.bf16.mxu0 %v8064_v0 }
 0x76d   :  { %7109 = vmatpush3.bf16.msra.mxu0 %v7778_v61 }
 0x76e   :  { %7110 = vmatprep.subr.bf16.mxu0 %v8064_v0 }
 0x771   :  { %7111 = vmatpush3.bf16.msra.mxu0 %v7779_v62 }
 0x772   :  { %7112 = vmatprep.subr.bf16.mxu0 %v8064_v0 }
 0x775   :  { %7113 = vmatpush3.bf16.msra.mxu0 %v7780_v63 }
 0x776   :  { %7114 = vmatprep.subr.bf16.mxu0 %v8064_v0 }
 0x779   :  { %7115 = vmatpush3.bf16.msra.mxu0 %v7781_v4 }
 0x77a   :  { %7116 = vmatprep.subr.bf16.mxu0 %v8064_v0 }
 0x77d   :  { %7117 = vmatpush3.bf16.msra.mxu0 %v7782_v5 }
 0x77e   :  { %7118 = vmatprep.subr.bf16.mxu0 %v8064_v0 }
 0x781   :  { %7119 = vmatpush3.bf16.msra.mxu0 %v7783_v10 }
 0x782   :  { %7148 = vmatprep.subr.bf16.mxu0 %v8064_v0 }
 0x837   :  { %v482_v17 = vpop.f32.mrb[12].mxu0 }
 0x838   :  { %v483_v18 = vadd.f32 %v482_v17, %v432_v16  ;;  %v7102_v19 = vpop.f32.mrb[13].mxu0 }
 0x839   :  { %v485_v20 = vpop.f32.mrb[14].mxu0 }
 0x83a   :  { %v488_v21 = vmax.f32 %v483_v18, 0.0  ;;  %v7103_v22 = vpop.f32.mrb[15].mxu0 }
 0x83c   :  { %v489_v23 = vpack.c.bf16 %v488_v21, %v488_v21 }
 0x83e   :  { %7121 = vmatmul.mubr.bf16.vlgmr.msra.gmra.mrb[16].mxu0 %v489_v23 }
 0x83f   :  { %7152 = vmatprep.mubr.msk.bf16.mxu0 %vm8065_vm0, %v8064_v0 }
 0x911   :  { %v572_v24 = vpop.f32.mrb[16].mxu0 }
 0x912   :  { %v582_v25 = vadd.f32 %v581_v15, %v572_v24  ;;  %v7122_v1 = vpop.f32.mrb[17].mxu0 }
 0x913   :  { %v575_v26 = vpop.f32.mrb[18].mxu0 }
 0x914   :  { %v7123_v27 = vpop.f32.mrb[19].mxu0  ;;  %v583_v28 = vadd.f32 %v582_v25, %v406_v57 }
 0x916   :  { %v584_v29 = vsel %vm382_vm12, %v583_v28, 0.0 }
 0x917   :  { %585 = vadd.xlane.f32.xlu1 %v584_v29 }
 0x9a4   :  { %v586_v31 = vpop.xlane.xlu1 %585 }
 0x9a5   :  { %v587_v32 = vmul.f32 0.03125, %v586_v31 }
 0x9a7   :  { %v588_v34 = vsub.f32 %v583_v28, %v587_v32 }
 0x9a9   :  { %v589_v35 = vmul.f32 %v588_v34, %v588_v34 }
 0x9ab   :  { %v590_v2 = vsel %vm382_vm12, %v589_v35, 0.0 }
 0x9ac   :  { %591 = vadd.xlane.f32.xlu1 %v590_v2 }
 0x9bd   :  { %598 = vrot.lane.b32.xlu1 %v581_v15, %s8069_s28 }
 0xa39   :  { %v592_v38 = vpop.xlane.xlu1 %591 }
 0xa3a   :  { %v593_v39 = vmul.f32 0.03125, %v592_v38 }
 0xa3c   :  { %v594_v40 = vadd.f32 1e-05, %v593_v39 }
 0xa3d   :  { %v599_v42 = vpop.permute.xlu1 %598 }
 0xa3e   :  { %7894 = vrsqrt.f32 %v594_v40 }
 0xa48   :  { %v7895_v41 = vpop.eup %7894 }
 0xa49   :  { %v596_v43 = vmul.f32 %v7895_v41, %v588_v34 }
 0xa4b   :  { %v601_v45 = vmul.f32 %v599_v42, %v596_v43 }
 0xa4d   :  { %v8339_v46 = vadd.f32 %v603_v44, %v601_v45 }
 0xa4f   :  { %v613_v47 = vpack.c.bf16 %v8339_v46, %v8339_v46 }
 0xa51   :  { %7129 = vmatmul.mubr.msk.bf16.vlgmr.msra.gmra.mrb[4].mxu1 %vm70_vm1, %v613_v47 }
 0xb24   :  { %v667_v3 = vpop.f32.mrb[4].mxu1 }
 0xb25   :  { %v668_v51 = vadd.f32 %v667_v3, %v8351_v50  ;;  %v7130_v6 = vpop.f32.mrb[5].mxu1 }
 0xb26   :  { %v670_v52 = vpop.f32.mrb[6].mxu1 }
 0xb27   :  { %v7131_v53 = vpop.f32.mrb[7].mxu1  ;;  %v678_v8 = vrot.slane %v668_v51, 6  ;;  %v674_v54 = vrot.slane %v668_v51, 3  ;;  %v682_v55 = vrot.slane %v668_v51, 1 }
 0xb29   :  { %679 = vrot.lane.b32.xlu1 %v678_v8, %s8068_s27  ;;  %675 = vrot.lane.b32.xlu0 %v674_v54, %s8067_s26 }
 0xb2d   :  { %683 = vrot.lane.b32.xlu0 %v682_v55, %s8066_s25 }
 0xb9b   :  { %v676_v56 = vpop.permute.xlu0 %675  ;;  %v680_v57 = vpop.permute.xlu1 %679 }
 0xb9c   :  { %v687_v58 = vsel %vm129_vm2, %v676_v56, %v680_v57  ;;  %v686_v60 = vsel %vm127_vm3, %v668_v51, %v676_v56 }
 0xb9f   :  { %v684_v59 = vpop.permute.xlu0 %683 }
 0xba0   :  { %v688_v61 = vsel %vm131_vm4, %v687_v58, %v684_v59  ;;  %v690_v62 = vpack.c.bf16 %v684_v59, %v684_v59 }
 0xba1   :  { %v689_v63 = vpack.c.bf16 %v688_v61, %v686_v60 }
 0xba2   :  { %695 = vrot.lane.b32.xlu0 %v690_v62, %s8069_s28 }
 0xba3   :  { %693 = vrot.lane.b32.xlu1 %v689_v63, %s8069_s28  ;;  %7136 = vmatprep.mubr.msk.bf16.mxu1 %vm141_vm5, %v689_v63 }
 0xc14   :  { %v696_v10 = vpop.permute.xlu0 %695 }
 0xc15   :  { %v694_v4 = vpop.permute.xlu1 %693  ;;  %v707_v14 = vsel %vm141_vm5, %v696_v10, 0 }
 0xc16   :  { %7723 = vmatprep.subr.msk.bf16.mxu1 %vm141_vm5, %v694_v4  ;;  %v704_v5 = vsel %vm141_vm5, %v694_v4, 0 }
 0xc17   :  { %7133 = vmatpush3.bf16.xpose.msra.mxu1 %v704_v5 }
 0xc18   :  { %7724 = vmatprep.subr.msk.bf16.mxu1 %vm141_vm5, %v696_v10 }
 0xc1f   :  { %7135 = vmatpush3.bf16.xpose.msra.mxu1 %v707_v14 }
 0xc26   :  { %7137 = vmatmul.mubr.msk.bf16.vlgmr.msra.gmra.mrb[8].mxu1 %vm141_vm5, %v690_v62 }
 0xcf9   :  { %v7138_v15 = vpop.f32.mrb[8].mxu1 }
 0xcfa   :  { %v743_v16 = vpop.f32.mrb[9].mxu1  ;;  %v752_v22 = vadd.f32 %v7138_v15, %v8214_v36 }
 0xcfb   :  { %v744_v17 = vadd.f32 %v743_v16, %v8203_v30  ;;  %v7139_v18 = vpop.f32.mrb[10].mxu1 }
 0xcfc   :  { %v746_v19 = vpop.f32.mrb[11].mxu1  ;;  %v763_v24 = vsel %vm209_vm7, %v752_v22, -inf }
 0xcfd   :  { %v747_v20 = vadd.f32 %v746_v19, %v8208_v33  ;;  %v757_v21 = vsel %vm202_vm6, %v744_v17, -inf }
 0xcfe   :  { %758 = vmax.xlane.f32.xlu1 %v757_v21 }
 0xcff   :  { %v760_v23 = vsel %vm202_vm6, %v747_v20, -inf }
 0xd00   :  { %761 = vmax.xlane.f32.xlu0 %v760_v23 }
 0xd04   :  { %764 = vmax.xlane.f32.xlu0 %v763_v24 }
 0xd8b   :  { %v759_v25 = vpop.xlane.xlu1 %758 }
 0xd8c   :  { %v766_v27 = vsub.f32 %v744_v17, %v759_v25 }
 0xd8d   :  { %v762_v1 = vpop.xlane.xlu0 %761 }
 0xd8e   :  { %v767_v26 = vsub.f32 %v747_v20, %v762_v1  ;;  %v769_v33 = vmul.f32 1.442695, %v766_v27 }
 0xd90   :  { %v771_v30 = vmul.f32 1.442695, %v767_v26 }
 0xd91   :  { %v765_v28 = vpop.xlane.xlu0 %764 }
 0xd92   :  { %7896 = vpow2.f32 %v771_v30  ;;  %v768_v29 = vsub.f32 %v752_v22, %v765_v28 }
 0xd94   :  { %v773_v31 = vmul.f32 1.442695, %v768_v29  ;;  %v947_v29 = vrot.slane %v8347_v48, %v8267_v49  ;;  %v7790_v48 = vld [vmem:[%s10100_s7 + $0x60] sm:$0xff]  }
 0xd96   :  { %7898 = vpow2.f32 %v773_v31  ;;  %v7791_v31 = vld [vmem:[%s10100_s7 + $0x68] sm:$0xff]  }
 0xd97   :  { %7900 = vpow2.f32 %v769_v33  ;;  %v7786_v33 = vld [vmem:[%s10100_s7 + $0x50] sm:$0xff]  }
 0xd9c   :  { %v7897_v32 = vpop.eup %7896 }
 0xd9d   :  { %v778_v36 = vsel %vm202_vm6, %v7897_v32, 0.0 }
 0xd9e   :  { %779 = vadd.xlane.f32.xlu0 %v778_v36  ;;  %v7793_v36 = vld [vmem:[%s10100_s7 + $0x78] sm:$0xff]  }
 0xda0   :  { %v7899_v34 = vpop.eup %7898 }
 0xda1   :  { %v781_v35 = vsel %vm209_vm7, %v7899_v34, 0.0  ;;  %v7901_v2 = vpop.eup %7900 }
 0xda2   :  { %782 = vadd.xlane.f32.xlu1 %v781_v35  ;;  %v775_v38 = vsel %vm202_vm6, %v7901_v2, 0.0  ;;  %v7795_v35 = vld [vmem:[%s10100_s7 + $0x88] sm:$0xff]  }
 0xda6   :  { %776 = vadd.xlane.f32.xlu1 %v775_v38 }
 0xdb4   :  { %792 = vrot.lane.b32.xlu0 %v689_v63, %s8070_s16 }
 0xdb7   :  { %794 = vrot.lane.b32.xlu1 %v690_v62, %s8070_s16 }
 0xdbb   :  { %877 = vrot.lane.b32.xlu1 %v8329_v9, %s8071_s17 }
 0xe2b   :  { %v780_v39 = vpop.xlane.xlu0 %779 }
 0xe2f   :  { %v793_v40 = vpop.permute.xlu0 %792  ;;  %v783_v41 = vpop.xlane.xlu1 %782 }
 0xe30   :  { %7140 = vmatprep.subr.bf16.mxu1 %v793_v40  ;;  %7902 = vrcp.f32 %v783_v41 }
 0xe31   :  { %7141 = vmatpush3.bf16.msra.mxu1 %v793_v40  ;;  %7904 = vrcp.f32 %v780_v39 }
 0xe33   :  { %v777_v42 = vpop.xlane.xlu1 %776 }
 0xe34   :  { %7906 = vrcp.f32 %v777_v42 }
 0xe37   :  { %v795_v43 = vpop.permute.xlu1 %794 }
 0xe38   :  { %7725 = vmatprep.subr.msk.bf16.mxu1 %vm129_vm2, %v795_v43  ;;  %v804_v44 = vsel %vm129_vm2, %v795_v43, 0 }
 0xe39   :  { %7143 = vmatpush3.bf16.msra.mxu1 %v804_v44 }
 0xe3a   :  { %7156 = vmatprep.subr.bf16.mxu1 %v8064_v0  ;;  %v7903_v45 = vpop.eup %7902 }
 0xe3b   :  { %v7905_v47 = vpop.eup %7904  ;;  %v8384_v3 = vmul.f32 %v7903_v45, %v7899_v34  ;;  %v878_v8 = vpop.permute.xlu1 %877  ;;  %v7794_v34 = vld [vmem:[%s10100_s7 + $0x80] sm:$0xff]  }
 0xe3c   :  { %v8388_v6 = vmul.f32 %v7905_v47, %v7897_v32  ;;  %7149 = vmatpush3.bf16.msra.mxu0 %v878_v8  ;;  %v7792_v32 = vld [vmem:[%s10100_s7 + $0x70] sm:$0xff]   ;;  %v8458_v45 = vld [vmem:[%s10096_s5 + $0x20] sm:$0xff]  }
 0xe3d   :  { %v791_v53 = vpack.c.bf16 %v8384_v3, %v8384_v3  ;;  %7150 = vmatprep.subr.bf16.mxu0 %v8064_v0  ;;  %v7796_v8 = vld [vmem:[%s10100_s7 + $0x90] sm:$0xff]  }
 0xe3e   :  { %v7907_v9 = vpop.eup %7906 }
 0xe3f   :  { %v8386_v51 = vmul.f32 %v7907_v9, %v7901_v2  ;;  %v8467_v9 = vld [vmem:[%s10096_s5 + $0x28] sm:$0xff]  }
 0xe41   :  { %v790_v52 = vpack.c.bf16 %v8388_v6, %v8386_v51 }
 0xe43   :  { %7144 = vmatprep.mubr.msk.bf16.mxu1 %vm202_vm6, %v790_v52  ;;  %v8474_v52 = vld [vmem:[%s10102_s1] sm:$0x1f] }
 0xe44   :  { %7145 = vmatmul.mubr.msk.bf16.vlgmr.msra.gmra.mrb[12].mxu1 %vm202_vm6, %v791_v53  ;;  %v1163_v53 = vpack.c.bf16 %v8474_v52, %v8474_v52 }
 0xe45   :  { %7160 = vmatprep.mubr.msk.bf16.mxu1 %vm8065_vm0, %v8064_v0  ;;  %7157 = vmatpush3.bf16.msra.mxu1 %v7786_v33 }
 0xe46   :  { %7158 = vmatprep.subr.bf16.mxu1 %v8064_v0 }
 0xf17   :  { %v7146_v54 = vpop.f32.mrb[12].mxu1 }
 0xf18   :  { %v840_v55 = vpop.f32.mrb[13].mxu1  ;;  %v868_v57 = vrot.slane %v7146_v54, 7  ;;  %v7797_v54 = vld [vmem:[%s10100_s7 + $0x98] sm:$0xff]  }
 0xf19   :  { %v7147_v56 = vpop.f32.mrb[14].mxu1  ;;  %v856_v59 = vrot.slane %v840_v55, 5 }
 0xf1a   :  { %v843_v58 = vpop.f32.mrb[15].mxu1 }
 0xf1b   :  { %v857_v60 = vrot.slane %v843_v58, 5  ;;  %v862_v61 = vrot.slane %v843_v58, 2  ;;  %v867_v62 = vrot.slane %v843_v58, 7 }
 0xf1d   :  { %863 = vrot.lane.b32.xlu1 %v862_v61, %s8072_s18  ;;  %v858_v63 = vsel %vm303_vm8, %v856_v59, %v857_v60  ;;  %v869_v4 = vsel %vm315_vm9, %v867_v62, %v868_v57  ;;  %v8499_v61 = vld [vmem:[%s10098_s6 + $0x4] sm:$0x3] }
 0xf1e   :  { %859 = vrot.lane.b32.xlu0 %v858_v63, %s8073_s19 }
 0xf21   :  { %879 = vrot.lane.b32.xlu1 %v8336_v37, %s8071_s17 }
 0xf22   :  { %870 = vrot.lane.b32.xlu0 %v869_v4, %s8074_s20 }
 0xf26   :  { %884 = vrot.lane.b32.xlu0 %v8351_v50, %s8071_s17 }
 0xf8f   :  { %v864_v5 = vpop.permute.xlu1 %863 }
 0xf90   :  { %v860_v10 = vpop.permute.xlu0 %859 }
 0xf91   :  { %v873_v14 = vsel %vm141_vm5, %v840_v55, %v860_v10  ;;  %v8492_v55 = vld [vmem:[%s10101_s8 + $0x2] sm:$0x3] }
 0xf92   :  { %v874_v17 = vsel %vm323_vm10, %v873_v14, %v864_v5  ;;  %v981_v56 = vrot.slane %v8492_v55, %v8167_v7  ;;  %v8503_v5 = vrot.slane %v8499_v61, %v8167_v7 }
 0xf93   :  { %v880_v15 = vpop.permute.xlu1 %879 }
 0xf94   :  { %v871_v16 = vpop.permute.xlu0 %870  ;;  %7151 = vmatpush3.bf16.msra.mxu0 %v880_v15 }
 0xf95   :  { %v875_v18 = vsel %vm325_vm11, %v874_v17, %v871_v16  ;;  %7164 = vmatprep.subr.bf16.mxu0 %v8064_v0 }
 0xf96   :  { %v876_v19 = vpack.c.bf16 %v875_v18, %v875_v18 }
 0xf98   :  { %7153 = vmatmul.mubr.msk.bf16.vlgmr.msra.gmra.mrb[20].mxu0 %vm70_vm1, %v876_v19  ;;  %v885_v37 = vpop.permute.xlu0 %884 }
 0xf99   :  { %7180 = vmatprep.mubr.msk.bf16.mxu0 %vm8065_vm0, %v8064_v0  ;;  %7165 = vmatpush3.bf16.msra.mxu0 %v7790_v48 }
 0xf9a   :  { %7166 = vmatprep.subr.bf16.mxu0 %v8064_v0 }
 0xf9d   :  { %7167 = vmatpush3.bf16.msra.mxu0 %v7791_v31  ;;  %v8527_v31 = vld [vmem:[%s10103_s3] sm:$0xff] }
 0xf9e   :  { %7168 = vmatprep.subr.bf16.mxu0 %v8064_v0 }
 0xfa1   :  { %7169 = vmatpush3.bf16.msra.mxu0 %v7792_v32 }
 0xfa2   :  { %7170 = vmatprep.subr.bf16.mxu0 %v8064_v0 }
 0xfa5   :  { %7171 = vmatpush3.bf16.msra.mxu0 %v7793_v36 }
 0xfa6   :  { %7172 = vmatprep.subr.bf16.mxu0 %v8064_v0 }
 0xfa9   :  { %7173 = vmatpush3.bf16.msra.mxu0 %v7794_v34  ;;  %v8532_v34 = vld [vmem:[%s10103_s3 + $0x8] sm:$0xff] }
 0xfaa   :  { %7174 = vmatprep.subr.bf16.mxu0 %v8064_v0 }
 0xfad   :  { %7175 = vmatpush3.bf16.msra.mxu0 %v7795_v35 }
 0xfae   :  { %7176 = vmatprep.subr.bf16.mxu0 %v8064_v0 }
 0xfb1   :  { %7177 = vmatpush3.bf16.msra.mxu0 %v7796_v8 }
 0xfb2   :  { %7178 = vmatprep.subr.bf16.mxu0 %v8064_v0 }
 0xfb5   :  { %7179 = vmatpush3.bf16.msra.mxu0 %v7797_v54 }
 0xfb6   :  { %7208 = vmatprep.subr.bf16.mxu0 %v8064_v0 }
0x106b   :  { %v924_v50 = vpop.f32.mrb[20].mxu0 }
0x106c   :  { %v925_v20 = vadd.f32 %v924_v50, %v885_v37  ;;  %v7154_v21 = vpop.f32.mrb[21].mxu0 }
0x106d   :  { %v927_v22 = vpop.f32.mrb[22].mxu0 }
0x106e   :  { %v7155_v23 = vpop.f32.mrb[23].mxu0  ;;  %v930_v24 = vadd.f32 %v925_v20, %v8339_v46  ;;  %v7787_v46 = vld [vmem:[%s10100_s7 + $0x58] sm:$0xff]  }
0x106f   :  { %7159 = vmatpush3.bf16.msra.mxu1 %v7787_v46 }
0x1070   :  { %v931_v25 = vsel %vm382_vm12, %v930_v24, 0.0  ;;  %7184 = vmatprep.subr.bf16.mxu1 %v8064_v0 }
0x1071   :  { %932 = vadd.xlane.f32.xlu1 %v931_v25 }
0x10fe   :  { %v933_v1 = vpop.xlane.xlu1 %932 }
0x10ff   :  { %v934_v26 = vmul.f32 0.03125, %v933_v1 }
0x1101   :  { %v935_v27 = vsub.f32 %v930_v24, %v934_v26 }
0x1103   :  { %v936_v30 = vmul.f32 %v935_v27, %v935_v27 }
0x1105   :  { %v937_v28 = vsel %vm382_vm12, %v936_v30, 0.0 }
0x1106   :  { %938 = vadd.xlane.f32.xlu0 %v937_v28 }
0x111c   :  { %950 = vrot.lane.b32.xlu0 %v947_v29, %s8069_s28 }
0x1193   :  { %v939_v2 = vpop.xlane.xlu0 %938 }
0x1194   :  { %v940_v38 = vmul.f32 0.03125, %v939_v2 }
0x1196   :  { %v941_v39 = vadd.f32 1e-05, %v940_v38  ;;  %v8538_v38 = vld [vmem:[%s10103_s3 + $0x10] sm:$0xf] }
0x1197   :  { %v951_v42 = vpop.permute.xlu0 %950 }
0x1198   :  { %7908 = vrsqrt.f32 %v941_v39 }
0x11a2   :  { %v7909_v40 = vpop.eup %7908 }
0x11a3   :  { %v943_v41 = vmul.f32 %v7909_v40, %v935_v27 }
0x11a5   :  { %v948_v43 = vmul.f32 %v947_v29, %v943_v41 }
0x11a7   :  { %v8453_v44 = vadd.f32 %v951_v42, %v948_v43 }
0x11a9   :  { %v977_v47 = vpack.c.bf16 %v8453_v44, %v8453_v44 }
0x11ab   :  { %7161 = vmatmul.mubr.msk.bf16.vlgmr.msra.gmra.mrb[16].mxu1 %vm70_vm1, %v977_v47 }
0x11ac   :  { %7185 = vmatpush3.bf16.msra.mxu1 %v8458_v45  ;;  %7188 = vmatprep.mubr.msk.bf16.mxu1 %vm8065_vm0, %v8064_v0 }
0x11ad   :  { %7186 = vmatprep.subr.bf16.mxu1 %v8064_v0 }
0x11b0   :  { %7187 = vmatpush3.bf16.msra.mxu1 %v8467_v9 }
0x11b3   :  { %7189 = vmatmul.mubr.msk.bf16.vlgmr.msra.gmra.mrb[20].mxu1 %vm70_vm1, %v1163_v53 }
0x127e   :  { %v1031_v57 = vpop.f32.mrb[16].mxu1 }
0x127f   :  { %v1032_v58 = vadd.f32 %v1031_v57, %v981_v56  ;;  %v7162_v59 = vpop.f32.mrb[17].mxu1 }
0x1280   :  { %v1034_v60 = vpop.f32.mrb[18].mxu1 }
0x1281   :  { %v1037_v62 = vmax.f32 %v1032_v58, 0.0  ;;  %v7163_v63 = vpop.f32.mrb[19].mxu1 }
0x1283   :  { %v1038_v4 = vpack.c.bf16 %v1037_v62, %v1037_v62 }
0x1285   :  { %7181 = vmatmul.mubr.bf16.vlgmr.msra.gmra.mrb[24].mxu0 %v1038_v4 }
0x1286   :  { %v1217_v10 = vpop.f32.mrb[20].mxu1  ;;  %7212 = vmatprep.mubr.msk.bf16.mxu0 %vm8065_vm0, %v8064_v0 }
0x1287   :  { %v1218_v14 = vadd.f32 %v1217_v10, %v8503_v5  ;;  %v7190_v15 = vpop.f32.mrb[21].mxu1 }
0x1288   :  { %v1220_v16 = vpop.f32.mrb[22].mxu1 }
0x1289   :  { %v7191_v17 = vpop.f32.mrb[23].mxu1  ;;  %v1232_v18 = vrot.slane %v1218_v14, 1  ;;  %v1224_v19 = vrot.slane %v1218_v14, 3  ;;  %v1228_v37 = vrot.slane %v1218_v14, 6 }
0x128b   :  { %1233 = vrot.lane.b32.xlu0 %v1232_v18, %s8066_s25  ;;  %1225 = vrot.lane.b32.xlu1 %v1224_v19, %s8067_s26 }
0x128f   :  { %1229 = vrot.lane.b32.xlu1 %v1228_v37, %s8068_s27 }
0x12fd   :  { %v1234_v50 = vpop.permute.xlu0 %1233  ;;  %v1226_v20 = vpop.permute.xlu1 %1225 }
0x12fe   :  { %v1240_v21 = vpack.c.bf16 %v1234_v50, %v1234_v50  ;;  %v1236_v24 = vsel %vm127_vm3, %v1218_v14, %v1226_v20 }
0x1300   :  { %1245 = vrot.lane.b32.xlu0 %v1240_v21, %s8069_s28 }
0x1301   :  { %v1230_v22 = vpop.permute.xlu1 %1229 }
0x1302   :  { %v1237_v23 = vsel %vm129_vm2, %v1226_v20, %v1230_v22 }
0x1303   :  { %v1238_v25 = vsel %vm131_vm4, %v1237_v23, %v1234_v50 }
0x1304   :  { %v1239_v1 = vpack.c.bf16 %v1238_v25, %v1236_v24 }
0x1306   :  { %1243 = vrot.lane.b32.xlu1 %v1239_v1, %s8069_s28  ;;  %7196 = vmatprep.mubr.msk.bf16.mxu1 %vm141_vm5, %v1239_v1 }
0x1358   :  { %v8517_v26 = vpop.f32.mrb[24].mxu0 }
0x1359   :  { %v7182_v27 = vpop.f32.mrb[25].mxu0 }
0x135a   :  { %v1124_v30 = vpop.f32.mrb[26].mxu0 }
0x135b   :  { %v7183_v28 = vpop.f32.mrb[27].mxu0 }
0x1372   :  { %v1246_v46 = vpop.permute.xlu0 %1245 }
0x1373   :  { %v1257_v48 = vsel %vm141_vm5, %v1246_v46, 0 }
0x1378   :  { %v1244_v29 = vpop.permute.xlu1 %1243 }
0x1379   :  { %7726 = vmatprep.subr.msk.bf16.mxu1 %vm141_vm5, %v1244_v29  ;;  %v1254_v33 = vsel %vm141_vm5, %v1244_v29, 0 }
0x137a   :  { %7193 = vmatpush3.bf16.xpose.msra.mxu1 %v1254_v33 }
0x137b   :  { %7727 = vmatprep.subr.msk.bf16.mxu1 %vm141_vm5, %v1246_v46 }
0x1382   :  { %7195 = vmatpush3.bf16.xpose.msra.mxu1 %v1257_v48 }
0x1389   :  { %7197 = vmatmul.mubr.msk.bf16.vlgmr.msra.gmra.mrb[24].mxu1 %vm141_vm5, %v1240_v21 }
0x145c   :  { %v7198_v32 = vpop.f32.mrb[24].mxu1 }
0x145d   :  { %v1293_v36 = vpop.f32.mrb[25].mxu1  ;;  %v1302_v42 = vadd.f32 %v7198_v32, %v8538_v38 }
0x145e   :  { %v1294_v35 = vadd.f32 %v1293_v36, %v8527_v31  ;;  %v7199_v2 = vpop.f32.mrb[26].mxu1 }
0x145f   :  { %v1296_v39 = vpop.f32.mrb[27].mxu1  ;;  %v1313_v47 = vsel %vm209_vm7, %v1302_v42, -inf }
0x1460   :  { %v1297_v40 = vadd.f32 %v1296_v39, %v8532_v34  ;;  %v1307_v41 = vsel %vm202_vm6, %v1294_v35, -inf }
0x1461   :  { %1308 = vmax.xlane.f32.xlu1 %v1307_v41  ;;  %v1130_v41 = vrot.slane %v8492_v55, %v8267_v49 }
0x1462   :  { %v1310_v43 = vsel %vm202_vm6, %v1297_v40, -inf }
0x1463   :  { %1311 = vmax.xlane.f32.xlu0 %v1310_v43 }
0x1467   :  { %1314 = vmax.xlane.f32.xlu0 %v1313_v47 }
0x14ee   :  { %v1309_v53 = vpop.xlane.xlu1 %1308 }
0x14ef   :  { %v1316_v56 = vsub.f32 %v1294_v35, %v1309_v53 }
0x14f0   :  { %v1312_v8 = vpop.xlane.xlu0 %1311 }
0x14f1   :  { %v1317_v54 = vsub.f32 %v1297_v40, %v1312_v8  ;;  %v1319_v60 = vmul.f32 1.442695, %v1316_v56 }
0x14f3   :  { %v1321_v57 = vmul.f32 1.442695, %v1317_v54 }
0x14f4   :  { %v1315_v58 = vpop.xlane.xlu0 %1314 }
0x14f5   :  { %7910 = vpow2.f32 %v1321_v57  ;;  %v1318_v59 = vsub.f32 %v1302_v42, %v1315_v58  ;;  %v1131_v42 = vadd.f32 %v1130_v41, %v8517_v26  ;;  %v8596_v26 = vld [vmem:[%s10096_s5 + $0x30] sm:$0xff]   ;;  %v8603_v57 = vld [vmem:[%s10096_s5 + $0x38] sm:$0xff]  }
0x14f7   :  { %v1323_v62 = vmul.f32 1.442695, %v1318_v59  ;;  %v1132_v43 = vadd.f32 %v1131_v42, %v8453_v44 }
0x14f9   :  { %7912 = vpow2.f32 %v1323_v62  ;;  %v1133_v47 = vsel %vm382_vm12, %v1132_v43, 0.0 }
0x14fa   :  { %7914 = vpow2.f32 %v1319_v60 }
0x14ff   :  { %v7911_v63 = vpop.eup %7910 }
0x1500   :  { %v1328_v4 = vsel %vm202_vm6, %v7911_v63, 0.0 }
0x1501   :  { %1329 = vadd.xlane.f32.xlu0 %v1328_v4 }
0x1503   :  { %v7913_v10 = vpop.eup %7912 }
0x1504   :  { %v1331_v14 = vsel %vm209_vm7, %v7913_v10, 0.0  ;;  %v7915_v15 = vpop.eup %7914 }
0x1505   :  { %1332 = vadd.xlane.f32.xlu1 %v1331_v14  ;;  %v1325_v16 = vsel %vm202_vm6, %v7915_v15, 0.0 }
0x1509   :  { %1326 = vadd.xlane.f32.xlu1 %v1325_v16 }
0x1517   :  { %1342 = vrot.lane.b32.xlu0 %v1239_v1, %s8070_s16 }
0x151a   :  { %1344 = vrot.lane.b32.xlu1 %v1240_v21, %s8070_s16 }
0x151e   :  { %1427 = vrot.lane.b32.xlu1 %v8458_v45, %s8071_s17 }
0x158e   :  { %v1330_v17 = vpop.xlane.xlu0 %1329 }
0x1592   :  { %v1343_v18 = vpop.permute.xlu0 %1342  ;;  %v1333_v19 = vpop.xlane.xlu1 %1332 }
0x1593   :  { %7200 = vmatprep.subr.bf16.mxu1 %v1343_v18  ;;  %7916 = vrcp.f32 %v1333_v19 }
0x1594   :  { %7201 = vmatpush3.bf16.msra.mxu1 %v1343_v18  ;;  %7918 = vrcp.f32 %v1330_v17 }
0x1596   :  { %v1327_v37 = vpop.xlane.xlu1 %1326 }
0x1597   :  { %7920 = vrcp.f32 %v1327_v37  ;;  %v8616_v37 = vld [vmem:[%s10098_s6 + $0x6] sm:$0x3] }
0x159a   :  { %v1345_v50 = vpop.permute.xlu1 %1344 }
0x159b   :  { %7728 = vmatprep.subr.msk.bf16.mxu1 %vm129_vm2, %v1345_v50  ;;  %v1354_v20 = vsel %vm129_vm2, %v1345_v50, 0 }
0x159c   :  { %7203 = vmatpush3.bf16.msra.mxu1 %v1354_v20 }
0x159d   :  { %7216 = vmatprep.subr.bf16.mxu1 %v8064_v0  ;;  %v7917_v21 = vpop.eup %7916 }
0x159e   :  { %v7919_v22 = vpop.eup %7918  ;;  %v8555_v23 = vmul.f32 %v7917_v21, %v7913_v10  ;;  %v1428_v30 = vpop.permute.xlu1 %1427 }
0x159f   :  { %v8559_v25 = vmul.f32 %v7919_v22, %v7911_v63  ;;  %7209 = vmatpush3.bf16.msra.mxu0 %v1428_v30 }
0x15a0   :  { %v1341_v27 = vpack.c.bf16 %v8555_v23, %v8555_v23  ;;  %7210 = vmatprep.subr.bf16.mxu0 %v8064_v0 }
0x15a1   :  { %v7921_v45 = vpop.eup %7920 }
0x15a2   :  { %v8557_v24 = vmul.f32 %v7921_v45, %v7915_v15 }
0x15a4   :  { %v1340_v1 = vpack.c.bf16 %v8559_v25, %v8557_v24 }
0x15a6   :  { %7204 = vmatprep.mubr.msk.bf16.mxu1 %vm202_vm6, %v1340_v1 }
0x15a7   :  { %7205 = vmatmul.mubr.msk.bf16.vlgmr.msra.gmra.mrb[28].mxu1 %vm202_vm6, %v1341_v27 }
0x15a8   :  { %7220 = vmatprep.mubr.msk.bf16.mxu1 %vm8065_vm0, %v8064_v0  ;;  %7217 = vmatpush3.bf16.msra.mxu1 %v8596_v26 }
0x15a9   :  { %7218 = vmatprep.subr.bf16.mxu1 %v8064_v0 }
0x15ac   :  { %7219 = vmatpush3.bf16.msra.mxu1 %v8603_v57 }
0x167a   :  { %v7206_v28 = vpop.f32.mrb[28].mxu1 }
0x167b   :  { %v1390_v29 = vpop.f32.mrb[29].mxu1  ;;  %v1418_v46 = vrot.slane %v7206_v28, 7 }
0x167c   :  { %v7207_v33 = vpop.f32.mrb[30].mxu1  ;;  %v1406_v32 = vrot.slane %v1390_v29, 5 }
0x167d   :  { %v1393_v48 = vpop.f32.mrb[31].mxu1 }
0x167e   :  { %v1407_v36 = vrot.slane %v1393_v48, 5  ;;  %v1412_v35 = vrot.slane %v1393_v48, 2  ;;  %v1417_v2 = vrot.slane %v1393_v48, 7 }
0x1680   :  { %1413 = vrot.lane.b32.xlu1 %v1412_v35, %s8072_s18  ;;  %v1408_v39 = vsel %vm303_vm8, %v1406_v32, %v1407_v36  ;;  %v1419_v40 = vsel %vm315_vm9, %v1417_v2, %v1418_v46  ;;  %v1497_v36 = vrot.slane %v8499_v61, %v8267_v49 }
0x1681   :  { %1409 = vrot.lane.b32.xlu0 %v1408_v39, %s8073_s19 }
0x1684   :  { %1429 = vrot.lane.b32.xlu1 %v8467_v9, %s8071_s17 }
0x1685   :  { %1420 = vrot.lane.b32.xlu0 %v1419_v40, %s8074_s20 }
0x1689   :  { %1434 = vrot.lane.b32.xlu0 %v8503_v5, %s8071_s17 }
0x16a8   :  { %1134 = vadd.xlane.f32.xlu1 %v1133_v47 }
0x16b9   :  { %1147 = vrot.lane.b32.xlu1 %v1130_v41, %s8069_s28 }
0x16bd   :  { %1151 = vrot.lane.b32.xlu1 %v1130_v41, %s8070_s16 }
0x16f2   :  { %v1414_v9 = vpop.permute.xlu1 %1413 }
0x16f3   :  { %v1410_v53 = vpop.permute.xlu0 %1409 }
0x16f4   :  { %v1423_v8 = vsel %vm141_vm5, %v1390_v29, %v1410_v53 }
0x16f5   :  { %v1424_v56 = vsel %vm323_vm10, %v1423_v8, %v1414_v9 }
0x16f6   :  { %v1430_v54 = vpop.permute.xlu1 %1429 }
0x16f7   :  { %v1421_v5 = vpop.permute.xlu0 %1420  ;;  %7211 = vmatpush3.bf16.msra.mxu0 %v1430_v54 }
0x16f8   :  { %v1425_v55 = vsel %vm325_vm11, %v1424_v56, %v1421_v5  ;;  %7224 = vmatprep.subr.bf16.mxu0 %v8064_v0 }
0x16f9   :  { %v1426_v44 = vpack.c.bf16 %v1425_v55, %v1425_v55 }
0x16fb   :  { %7213 = vmatmul.mubr.msk.bf16.vlgmr.msra.gmra.mrb[28].mxu0 %vm70_vm1, %v1426_v44  ;;  %v1435_v60 = vpop.permute.xlu0 %1434 }
0x16fc   :  { %7228 = vmatprep.mubr.msk.bf16.mxu0 %vm8065_vm0, %v8064_v0 }
0x1735   :  { %v1135_v58 = vpop.xlane.xlu1 %1134 }
0x1736   :  { %v1136_v59 = vmul.f32 0.03125, %v1135_v58 }
0x1738   :  { %v1137_v63 = vsub.f32 %v1132_v43, %v1136_v59 }
0x1739   :  { %v1148_v33 = vpop.permute.xlu1 %1147 }
0x173a   :  { %v1138_v18 = vmul.f32 %v1137_v63, %v1137_v63 }
0x173c   :  { %v1139_v19 = vsel %vm382_vm12, %v1138_v18, 0.0 }
0x173d   :  { %v1152_v32 = vpop.permute.xlu1 %1151 }
0x17ce   :  { %v1474_v62 = vpop.f32.mrb[28].mxu0 }
0x17cf   :  { %v1475_v4 = vadd.f32 %v1474_v62, %v1435_v60  ;;  %v7214_v10 = vpop.f32.mrb[29].mxu0 }
0x17d0   :  { %v1477_v14 = vpop.f32.mrb[30].mxu0 }
0x17d1   :  { %v7215_v15 = vpop.f32.mrb[31].mxu0  ;;  %v1480_v16 = vadd.f32 %v1475_v4, %v8474_v52  ;;  %v8620_v52 = vrot.slane %v8616_v37, %v8167_v7 }
0x17d3   :  { %v1481_v17 = vsel %vm382_vm12, %v1480_v16, 0.0 }
0x17d4   :  { %1482 = vadd.xlane.f32.xlu0 %v1481_v17 }
0x17d8   :  { %1140 = vadd.xlane.f32.xlu0 %v1139_v19 }
0x17ee   :  { %1572 = vrot.lane.b32.xlu0 %v8596_v26, %s8069_s28 }
0x17f2   :  { %1574 = vrot.lane.b32.xlu0 %v8603_v57, %s8069_s28 }
0x17f6   :  { %1579 = vrot.lane.b32.xlu0 %v8620_v52, %s8069_s28 }
0x1861   :  { %v1483_v50 = vpop.xlane.xlu0 %1482 }
0x1862   :  { %v1484_v20 = vmul.f32 0.03125, %v1483_v50 }
0x1864   :  { %v1485_v21 = vsub.f32 %v1480_v16, %v1484_v20 }
0x1865   :  { %v1141_v22 = vpop.xlane.xlu0 %1140 }
0x1866   :  { %v1142_v45 = vmul.f32 0.03125, %v1141_v22  ;;  %v1486_v1 = vmul.f32 %v1485_v21, %v1485_v21 }
0x1868   :  { %v1143_v27 = vadd.f32 1e-05, %v1142_v45  ;;  %v1487_v30 = vsel %vm382_vm12, %v1486_v1, 0.0 }
0x1869   :  { %1488 = vadd.xlane.f32.xlu1 %v1487_v30  ;;  %v1573_v28 = vpop.permute.xlu0 %1572 }
0x186a   :  { %7922 = vrsqrt.f32 %v1143_v27  ;;  %7225 = vmatpush3.bf16.msra.mxu0 %v1573_v28 }
0x186b   :  { %7226 = vmatprep.subr.bf16.mxu0 %v8064_v0 }
0x186d   :  { %v1575_v29 = vpop.permute.xlu0 %1574 }
0x186e   :  { %7227 = vmatpush3.bf16.msra.mxu0 %v1575_v29 }
0x1871   :  { %v1580_v54 = vpop.permute.xlu0 %1579 }
0x1874   :  { %v7923_v46 = vpop.eup %7922 }
0x1875   :  { %v1145_v48 = vmul.f32 %v7923_v46, %v1137_v63 }
0x1877   :  { %v1150_v35 = vmul.f32 %v1148_v33, %v1145_v48 }
0x1879   :  { %v1154_v2 = vadd.f32 %v1152_v32, %v1150_v35 }
0x187a   :  { %1500 = vrot.lane.b32.xlu1 %v1497_v36, %s8069_s28 }
0x187b   :  { %v8629_v39 = vpack.c.bf16 %v1154_v2, %v1154_v2 }
0x187d   :  { %7229 = vmatmul.mubr.msk.bf16.vlgmr.msra.gmra.mrb[32].mxu0 %vm70_vm1, %v8629_v39 }
0x18f6   :  { %v1489_v40 = vpop.xlane.xlu1 %1488 }
0x18f7   :  { %v1490_v41 = vmul.f32 0.03125, %v1489_v40  ;;  %v8671_v40 = vld [vmem:[%s10104_s4] sm:$0xff] }
0x18f9   :  { %v1491_v42 = vadd.f32 1e-05, %v1490_v41 }
0x18fa   :  { %v1501_v9 = vpop.permute.xlu1 %1500 }
0x18fb   :  { %7924 = vrsqrt.f32 %v1491_v42 }
0x1905   :  { %v7925_v43 = vpop.eup %7924 }
0x1906   :  { %v1493_v47 = vmul.f32 %v7925_v43, %v1485_v21  ;;  %v8676_v43 = vld [vmem:[%s10104_s4 + $0x8] sm:$0xff] }
0x1908   :  { %v1498_v53 = vmul.f32 %v1497_v36, %v1493_v47 }
0x190a   :  { %v8633_v8 = vadd.f32 %v1501_v9, %v1498_v53  ;;  %v8682_v53 = vld [vmem:[%s10104_s4 + $0x10] sm:$0xf] }
0x190c   :  { %v1511_v61 = vpack.c.bf16 %v8633_v8, %v8633_v8 }
0x190e   :  { %7221 = vmatmul.mubr.msk.bf16.vlgmr.msra.gmra.mrb[32].mxu1 %vm70_vm1, %v1511_v61 }
0x1950   :  { %v1619_v5 = vpop.f32.mrb[32].mxu0 }
0x1951   :  { %v1620_v56 = vadd.f32 %v1619_v5, %v1580_v54  ;;  %v7230_v55 = vpop.f32.mrb[33].mxu0 }
0x1952   :  { %v1622_v44 = vpop.f32.mrb[34].mxu0 }
0x1953   :  { %v7231_v58 = vpop.f32.mrb[35].mxu0  ;;  %v1648_v59 = vrot.slane %v1620_v56, 6  ;;  %v1644_v60 = vrot.slane %v1620_v56, 3  ;;  %v1652_v62 = vrot.slane %v1620_v56, 1 }
0x1955   :  { %1649 = vrot.lane.b32.xlu0 %v1648_v59, %s8068_s27  ;;  %1645 = vrot.lane.b32.xlu1 %v1644_v60, %s8067_s26 }
0x1959   :  { %1653 = vrot.lane.b32.xlu1 %v1652_v62, %s8066_s25 }
0x19c7   :  { %v1646_v63 = vpop.permute.xlu1 %1645  ;;  %v1650_v4 = vpop.permute.xlu0 %1649 }
0x19c8   :  { %v1657_v10 = vsel %vm129_vm2, %v1646_v63, %v1650_v4  ;;  %v1656_v15 = vsel %vm127_vm3, %v1620_v56, %v1646_v63 }
0x19cb   :  { %v1654_v14 = vpop.permute.xlu1 %1653 }
0x19cc   :  { %v1658_v16 = vsel %vm131_vm4, %v1657_v10, %v1654_v14  ;;  %v8646_v18 = vpack.c.bf16 %v1654_v14, %v1654_v14 }
0x19cd   :  { %v8644_v17 = vpack.c.bf16 %v1658_v16, %v1656_v15 }
0x19ce   :  { %v1671_v50 = vsel %vm141_vm5, %v8646_v18, 0 }
0x19cf   :  { %7729 = vmatprep.subr.msk.bf16.mxu1 %vm141_vm5, %v8644_v17  ;;  %v1668_v19 = vsel %vm141_vm5, %v8644_v17, 0 }
0x19d0   :  { %7233 = vmatpush3.bf16.xpose.msra.mxu1 %v1668_v19 }
0x19d1   :  { %7730 = vmatprep.subr.msk.bf16.mxu1 %vm141_vm5, %v8646_v18 }
0x19d8   :  { %7235 = vmatpush3.bf16.xpose.msra.mxu1 %v1671_v50 }
0x19d9   :  { %7256 = vmatprep.subr.bf16.mxu1 %v8064_v0 }
0x19e1   :  { %v1565_v20 = vpop.f32.mrb[32].mxu1 }
0x19e2   :  { %v1566_v21 = vadd.f32 %v1565_v20, %v8620_v52  ;;  %v7222_v22 = vpop.f32.mrb[33].mxu1 }
0x19e3   :  { %v1568_v45 = vpop.f32.mrb[34].mxu1 }
0x19e4   :  { %v7223_v1 = vpop.f32.mrb[35].mxu1  ;;  %v1626_v27 = vrot.slane %v1566_v21, 3  ;;  %v1630_v30 = vrot.slane %v1566_v21, 6  ;;  %v1634_v28 = vrot.slane %v1566_v21, 1 }
0x19e6   :  { %1627 = vrot.lane.b32.xlu0 %v1626_v27, %s8067_s26  ;;  %1631 = vrot.lane.b32.xlu1 %v1630_v30, %s8068_s27 }
0x19ea   :  { %1635 = vrot.lane.b32.xlu0 %v1634_v28, %s8066_s25 }
0x1a58   :  { %v1628_v29 = vpop.permute.xlu0 %1627  ;;  %v1632_v33 = vpop.permute.xlu1 %1631 }
0x1a59   :  { %v1639_v46 = vsel %vm129_vm2, %v1628_v29, %v1632_v33  ;;  %v1638_v32 = vsel %vm127_vm3, %v1566_v21, %v1628_v29 }
0x1a5c   :  { %v1636_v48 = vpop.permute.xlu0 %1635 }
0x1a5d   :  { %v1640_v36 = vsel %vm131_vm4, %v1639_v46, %v1636_v48  ;;  %v1642_v2 = vpack.c.bf16 %v1636_v48, %v1636_v48 }
0x1a5e   :  { %v1641_v35 = vpack.c.bf16 %v1640_v36, %v1638_v32 }
0x1a60   :  { %7236 = vmatprep.mubr.msk.bf16.mxu1 %vm141_vm5, %v1641_v35 }
0x1a61   :  { %7237 = vmatmul.mubr.msk.bf16.vlgmr.msra.gmra.mrb[36].mxu1 %vm141_vm5, %v1642_v2 }
0x1a62   :  { %7260 = vmatprep.mubr.msk.bf16.mxu1 %vm8065_vm0, %v8064_v0 }
0x1b34   :  { %v7238_v41 = vpop.f32.mrb[36].mxu1 }
0x1b35   :  { %v1707_v42 = vpop.f32.mrb[37].mxu1  ;;  %v1716_v56 = vadd.f32 %v7238_v41, %v8682_v53 }
0x1b36   :  { %v1708_v47 = vadd.f32 %v1707_v42, %v8671_v40  ;;  %v7239_v9 = vpop.f32.mrb[38].mxu1 }
0x1b37   :  { %v1710_v61 = vpop.f32.mrb[39].mxu1  ;;  %v1727_v44 = vsel %vm209_vm7, %v1716_v56, -inf }
0x1b38   :  { %v1711_v54 = vadd.f32 %v1710_v61, %v8676_v43  ;;  %v1721_v5 = vsel %vm202_vm6, %v1708_v47, -inf }
0x1b39   :  { %1722 = vmax.xlane.f32.xlu1 %v1721_v5 }
0x1b3a   :  { %v1724_v55 = vsel %vm202_vm6, %v1711_v54, -inf }
0x1b3b   :  { %1725 = vmax.xlane.f32.xlu0 %v1724_v55 }
0x1b3f   :  { %1728 = vmax.xlane.f32.xlu0 %v1727_v44 }
0x1bc6   :  { %v1723_v58 = vpop.xlane.xlu1 %1722 }
0x1bc7   :  { %v1730_v62 = vsub.f32 %v1708_v47, %v1723_v58 }
0x1bc8   :  { %v1726_v59 = vpop.xlane.xlu0 %1725 }
0x1bc9   :  { %v1731_v60 = vsub.f32 %v1711_v54, %v1726_v59  ;;  %v1733_v14 = vmul.f32 1.442695, %v1730_v62 }
0x1bcb   :  { %v1735_v63 = vmul.f32 1.442695, %v1731_v60 }
0x1bcc   :  { %v1729_v4 = vpop.xlane.xlu0 %1728 }
0x1bcd   :  { %7926 = vpow2.f32 %v1735_v63  ;;  %v1732_v10 = vsub.f32 %v1716_v56, %v1729_v4 }
0x1bcf   :  { %v1737_v15 = vmul.f32 1.442695, %v1732_v10 }
0x1bd1   :  { %7928 = vpow2.f32 %v1737_v15 }
0x1bd2   :  { %7930 = vpow2.f32 %v1733_v14 }
0x1bd7   :  { %v7927_v16 = vpop.eup %7926 }
0x1bd8   :  { %v1742_v19 = vsel %vm202_vm6, %v7927_v16, 0.0 }
0x1bd9   :  { %1743 = vadd.xlane.f32.xlu0 %v1742_v19 }
0x1bdb   :  { %v7929_v50 = vpop.eup %7928 }
0x1bdc   :  { %v1745_v20 = vsel %vm209_vm7, %v7929_v50, 0.0  ;;  %v7931_v21 = vpop.eup %7930 }
0x1bdd   :  { %1746 = vadd.xlane.f32.xlu1 %v1745_v20  ;;  %v1739_v22 = vsel %vm202_vm6, %v7931_v21, 0.0 }
0x1be1   :  { %1740 = vadd.xlane.f32.xlu1 %v1739_v22 }
0x1bef   :  { %1758 = vrot.lane.b32.xlu0 %v8644_v17, %s8069_s28 }
0x1bf2   :  { %1760 = vrot.lane.b32.xlu1 %v8646_v18, %s8069_s28 }
0x1bf6   :  { %1843 = vrot.lane.b32.xlu1 %v8596_v26, %s8071_s17 }
0x1c66   :  { %v1744_v45 = vpop.xlane.xlu0 %1743 }
0x1c6a   :  { %v1759_v1 = vpop.permute.xlu0 %1758  ;;  %v1747_v27 = vpop.xlane.xlu1 %1746 }
0x1c6b   :  { %7240 = vmatprep.subr.bf16.mxu0 %v1759_v1  ;;  %7932 = vrcp.f32 %v1747_v27 }
0x1c6c   :  { %7241 = vmatpush3.bf16.msra.mxu0 %v1759_v1  ;;  %7934 = vrcp.f32 %v1744_v45 }
0x1c6e   :  { %v1741_v30 = vpop.xlane.xlu1 %1740 }
0x1c6f   :  { %7936 = vrcp.f32 %v1741_v30 }
0x1c72   :  { %v1761_v28 = vpop.permute.xlu1 %1760 }
0x1c73   :  { %7731 = vmatprep.subr.msk.bf16.mxu0 %vm129_vm2, %v1761_v28  ;;  %v1770_v17 = vsel %vm129_vm2, %v1761_v28, 0  ;;  %v1912_v28 = vrot.slane %v8616_v37, %v8267_v49  ;;  %v7802_v37 = vld [vmem:[%s10100_s7 + $0xb0] sm:$0xff]  }
0x1c74   :  { %7243 = vmatpush3.bf16.msra.mxu0 %v1770_v17  ;;  %v7800_v17 = vld [vmem:[%s10100_s7 + $0xa0] sm:$0xff]  }
0x1c75   :  { %7248 = vmatprep.subr.bf16.mxu0 %v8064_v0  ;;  %v7933_v18 = vpop.eup %7932  ;;  %7257 = vmatpush3.bf16.msra.mxu1 %v7800_v17  ;;  %v8802_v17 = vld [vmem:[%s10096_s5 + $0x48] sm:$0xff]  }
0x1c76   :  { %v7935_v29 = vpop.eup %7934  ;;  %v8701_v33 = vmul.f32 %v7933_v18, %v7929_v50  ;;  %v1844_v35 = vpop.permute.xlu1 %1843  ;;  %7258 = vmatprep.subr.bf16.mxu1 %v8064_v0  ;;  %v7803_v18 = vld [vmem:[%s10100_s7 + $0xb8] sm:$0xff]  }
0x1c77   :  { %v8705_v48 = vmul.f32 %v7935_v29, %v7927_v16  ;;  %v7804_v29 = vld [vmem:[%s10100_s7 + $0xc0] sm:$0xff]  }
0x1c78   :  { %v1755_v36 = vpack.c.bf16 %v8701_v33, %v8701_v33 }
0x1c79   :  { %v7937_v26 = vpop.eup %7936 }
0x1c7a   :  { %v8703_v46 = vmul.f32 %v7937_v26, %v7931_v21  ;;  %v7805_v26 = vld [vmem:[%s10100_s7 + $0xc8] sm:$0xff]  }
0x1c7c   :  { %v1754_v32 = vpack.c.bf16 %v8705_v48, %v8703_v46 }
0x1c7e   :  { %7244 = vmatprep.mubr.msk.bf16.mxu0 %vm202_vm6, %v1754_v32  ;;  %v7806_v32 = vld [vmem:[%s10100_s7 + $0xd0] sm:$0xff]  }
0x1c7f   :  { %7245 = vmatmul.mubr.msk.bf16.vlgmr.msra.gmra.mrb[36].mxu0 %vm202_vm6, %v1755_v36  ;;  %v7807_v36 = vld [vmem:[%s10100_s7 + $0xd8] sm:$0xff]  }
0x1c80   :  { %7252 = vmatprep.mubr.msk.bf16.mxu0 %vm8065_vm0, %v8064_v0  ;;  %7249 = vmatpush3.bf16.msra.mxu0 %v1844_v35 }
0x1c81   :  { %7250 = vmatprep.subr.bf16.mxu0 %v8064_v0 }
0x1d52   :  { %v7246_v2 = vpop.f32.mrb[36].mxu0 }
0x1d53   :  { %v1806_v41 = vpop.f32.mrb[37].mxu0  ;;  %v1834_v47 = vrot.slane %v7246_v2, 7 }
0x1d54   :  { %v7247_v42 = vpop.f32.mrb[38].mxu0  ;;  %v1822_v61 = vrot.slane %v1806_v41, 5 }
0x1d55   :  { %v1809_v9 = vpop.f32.mrb[39].mxu0 }
0x1d56   :  { %v1823_v54 = vrot.slane %v1809_v9, 5  ;;  %v1828_v5 = vrot.slane %v1809_v9, 2  ;;  %v1833_v56 = vrot.slane %v1809_v9, 7 }
0x1d58   :  { %1829 = vrot.lane.b32.xlu1 %v1828_v5, %s8072_s18  ;;  %v1824_v55 = vsel %vm303_vm8, %v1822_v61, %v1823_v54  ;;  %v1835_v44 = vsel %vm315_vm9, %v1833_v56, %v1834_v47  ;;  %v7808_v56 = vld [vmem:[%s10100_s7 + $0xe0] sm:$0xff]  }
0x1d59   :  { %1825 = vrot.lane.b32.xlu0 %v1824_v55, %s8073_s19  ;;  %v7809_v55 = vld [vmem:[%s10100_s7 + $0xe8] sm:$0xff]  }
0x1d5c   :  { %1845 = vrot.lane.b32.xlu1 %v8603_v57, %s8071_s17 }
0x1d5d   :  { %1836 = vrot.lane.b32.xlu0 %v1835_v44, %s8074_s20  ;;  %v6508_v44 = vld [vmem:[%s10101_s8 + $0x4] sm:$0x3] }
0x1d61   :  { %1849 = vrot.lane.b32.xlu0 %v8620_v52, %s8071_s17 }
0x1dca   :  { %v1830_v58 = vpop.permute.xlu1 %1829 }
0x1dcb   :  { %v1826_v59 = vpop.permute.xlu0 %1825 }
0x1dcc   :  { %v1839_v60 = vsel %vm141_vm5, %v1806_v41, %v1826_v59  ;;  %v1946_v59 = vrot.slane %v6508_v44, %v8167_v7 }
0x1dcd   :  { %v1840_v63 = vsel %vm323_vm10, %v1839_v60, %v1830_v58  ;;  %v2095_v58 = vrot.slane %v6508_v44, %v8267_v49 }
0x1dce   :  { %v1846_v62 = vpop.permute.xlu1 %1845 }
0x1dcf   :  { %v1837_v4 = vpop.permute.xlu0 %1836  ;;  %7251 = vmatpush3.bf16.msra.mxu0 %v1846_v62 }
0x1dd0   :  { %v1841_v10 = vsel %vm325_vm11, %v1840_v63, %v1837_v4  ;;  %7264 = vmatprep.subr.bf16.mxu0 %v8064_v0 }
0x1dd1   :  { %v1842_v14 = vpack.c.bf16 %v1841_v10, %v1841_v10 }
0x1dd3   :  { %7253 = vmatmul.mubr.msk.bf16.vlgmr.msra.gmra.mrb[40].mxu0 %vm70_vm1, %v1842_v14  ;;  %v1850_v57 = vpop.permute.xlu0 %1849 }
0x1dd4   :  { %7280 = vmatprep.mubr.msk.bf16.mxu0 %vm8065_vm0, %v8064_v0  ;;  %7265 = vmatpush3.bf16.msra.mxu0 %v7802_v37 }
0x1dd5   :  { %7266 = vmatprep.subr.bf16.mxu0 %v8064_v0 }
0x1dd8   :  { %7267 = vmatpush3.bf16.msra.mxu0 %v7803_v18 }
0x1dd9   :  { %7268 = vmatprep.subr.bf16.mxu0 %v8064_v0 }
0x1ddc   :  { %7269 = vmatpush3.bf16.msra.mxu0 %v7804_v29 }
0x1ddd   :  { %7270 = vmatprep.subr.bf16.mxu0 %v8064_v0 }
0x1de0   :  { %7271 = vmatpush3.bf16.msra.mxu0 %v7805_v26 }
0x1de1   :  { %7272 = vmatprep.subr.bf16.mxu0 %v8064_v0 }
0x1de4   :  { %7273 = vmatpush3.bf16.msra.mxu0 %v7806_v32 }
0x1de5   :  { %7274 = vmatprep.subr.bf16.mxu0 %v8064_v0 }
0x1de8   :  { %7275 = vmatpush3.bf16.msra.mxu0 %v7807_v36 }
0x1de9   :  { %7276 = vmatprep.subr.bf16.mxu0 %v8064_v0 }
0x1dec   :  { %7277 = vmatpush3.bf16.msra.mxu0 %v7808_v56 }
0x1ded   :  { %7278 = vmatprep.subr.bf16.mxu0 %v8064_v0 }
0x1df0   :  { %7279 = vmatpush3.bf16.msra.mxu0 %v7809_v55 }
0x1df1   :  { %7308 = vmatprep.subr.bf16.mxu0 %v8064_v0 }
0x1ea6   :  { %v1889_v52 = vpop.f32.mrb[40].mxu0 }
0x1ea7   :  { %v1890_v15 = vadd.f32 %v1889_v52, %v1850_v57  ;;  %v7254_v16 = vpop.f32.mrb[41].mxu0 }
0x1ea8   :  { %v1892_v19 = vpop.f32.mrb[42].mxu0 }
0x1ea9   :  { %v7255_v50 = vpop.f32.mrb[43].mxu0  ;;  %v1895_v20 = vadd.f32 %v1890_v15, %v8633_v8  ;;  %v7801_v8 = vld [vmem:[%s10100_s7 + $0xa8] sm:$0xff]  }
0x1eaa   :  { %7259 = vmatpush3.bf16.msra.mxu1 %v7801_v8 }
0x1eab   :  { %v1896_v21 = vsel %vm382_vm12, %v1895_v20, 0.0  ;;  %7284 = vmatprep.subr.bf16.mxu1 %v8064_v0 }
0x1eac   :  { %1897 = vadd.xlane.f32.xlu1 %v1896_v21 }
0x1f39   :  { %v1898_v22 = vpop.xlane.xlu1 %1897 }
0x1f3a   :  { %v1899_v45 = vmul.f32 0.03125, %v1898_v22 }
0x1f3c   :  { %v1900_v1 = vsub.f32 %v1895_v20, %v1899_v45 }
0x1f3e   :  { %v1901_v27 = vmul.f32 %v1900_v1, %v1900_v1 }
0x1f40   :  { %v1902_v30 = vsel %vm382_vm12, %v1901_v27, 0.0 }
0x1f41   :  { %1903 = vadd.xlane.f32.xlu0 %v1902_v30 }
0x1f57   :  { %1915 = vrot.lane.b32.xlu0 %v1912_v28, %s8069_s28 }
0x1f5b   :  { %2116 = vrot.lane.b32.xlu0 %v2095_v58, %s8070_s16 }
0x1fce   :  { %v1904_v35 = vpop.xlane.xlu0 %1903 }
0x1fcf   :  { %v1905_v2 = vmul.f32 0.03125, %v1904_v35 }
0x1fd1   :  { %v1906_v41 = vadd.f32 1e-05, %v1905_v2 }
0x1fd2   :  { %v1916_v9 = vpop.permute.xlu0 %1915 }
0x1fd3   :  { %7938 = vrsqrt.f32 %v1906_v41 }
0x1fd6   :  { %v2117_v36 = vpop.permute.xlu0 %2116 }
0x1fdd   :  { %v7939_v42 = vpop.eup %7938 }
0x1fde   :  { %v1908_v47 = vmul.f32 %v7939_v42, %v1900_v1  ;;  %v8813_v42 = vld [vmem:[%s10098_s6 + $0x8] sm:$0x3] }
0x1fe0   :  { %v1913_v61 = vmul.f32 %v1912_v28, %v1908_v47  ;;  %v8795_v28 = vld [vmem:[%s10096_s5 + $0x40] sm:$0xff]   ;;  %v8817_v47 = vrot.slane %v8813_v42, %v8167_v7 }
0x1fe2   :  { %v1918_v54 = vadd.f32 %v1916_v9, %v1913_v61 }
0x1fe4   :  { %v1942_v5 = vpack.c.bf16 %v1918_v54, %v1918_v54 }
0x1fe6   :  { %7261 = vmatmul.mubr.msk.bf16.vlgmr.msra.gmra.mrb[40].mxu1 %vm70_vm1, %v1942_v5 }
0x1fe7   :  { %7288 = vmatprep.mubr.msk.bf16.mxu1 %vm8065_vm0, %v8064_v0  ;;  %7285 = vmatpush3.bf16.msra.mxu1 %v8795_v28 }
0x1fe8   :  { %7286 = vmatprep.subr.bf16.mxu1 %v8064_v0 }
0x1feb   :  { %7287 = vmatpush3.bf16.msra.mxu1 %v8802_v17 }
0x20b9   :  { %v1996_v60 = vpop.f32.mrb[40].mxu1 }
0x20ba   :  { %v1997_v62 = vadd.f32 %v1996_v60, %v1946_v59  ;;  %v7262_v63 = vpop.f32.mrb[41].mxu1 }
0x20bb   :  { %v1999_v4 = vpop.f32.mrb[42].mxu1 }
0x20bc   :  { %v2002_v10 = vmax.f32 %v1997_v62, 0.0  ;;  %v7263_v14 = vpop.f32.mrb[43].mxu1 }
0x20be   :  { %v2003_v57 = vpack.c.bf16 %v2002_v10, %v2002_v10 }
0x20c0   :  { %7281 = vmatmul.mubr.bf16.vlgmr.msra.gmra.mrb[44].mxu0 %v2003_v57 }
0x20c1   :  { %7312 = vmatprep.mubr.msk.bf16.mxu0 %vm8065_vm0, %v8064_v0 }
0x2193   :  { %v2086_v52 = vpop.f32.mrb[44].mxu0 }
0x2194   :  { %v2096_v15 = vadd.f32 %v2095_v58, %v2086_v52  ;;  %v7282_v16 = vpop.f32.mrb[45].mxu0 }
0x2195   :  { %v2089_v19 = vpop.f32.mrb[46].mxu0 }
0x2196   :  { %v2097_v50 = vadd.f32 %v2096_v15, %v1918_v54  ;;  %v7283_v20 = vpop.f32.mrb[47].mxu0 }
0x2198   :  { %v2098_v21 = vsel %vm382_vm12, %v2097_v50, 0.0 }
0x2199   :  { %2099 = vadd.xlane.f32.xlu1 %v2098_v21 }
0x2226   :  { %v2100_v22 = vpop.xlane.xlu1 %2099 }
0x2227   :  { %v2101_v45 = vmul.f32 0.03125, %v2100_v22 }
0x2229   :  { %v2102_v1 = vsub.f32 %v2097_v50, %v2101_v45 }
0x222b   :  { %v2103_v27 = vmul.f32 %v2102_v1, %v2102_v1 }
0x222d   :  { %v2104_v30 = vsel %vm382_vm12, %v2103_v27, 0.0 }
0x222e   :  { %2105 = vadd.xlane.f32.xlu1 %v2104_v30 }
0x223f   :  { %2112 = vrot.lane.b32.xlu1 %v2095_v58, %s8069_s28 }
0x22bb   :  { %v2106_v8 = vpop.xlane.xlu1 %2105 }
0x22bc   :  { %v2107_v37 = vmul.f32 0.03125, %v2106_v8 }
0x22be   :  { %v2108_v18 = vadd.f32 1e-05, %v2107_v37 }
0x22bf   :  { %v2113_v26 = vpop.permute.xlu1 %2112 }
0x22c0   :  { %7940 = vrsqrt.f32 %v2108_v18 }
0x22ca   :  { %v7941_v29 = vpop.eup %7940 }
0x22cb   :  { %v2110_v32 = vmul.f32 %v7941_v29, %v2102_v1 }
0x22cd   :  { %v2115_v35 = vmul.f32 %v2113_v26, %v2110_v32 }
0x22cf   :  { %v8805_v2 = vadd.f32 %v2117_v36, %v2115_v35 }
0x22d1   :  { %v2127_v41 = vpack.c.bf16 %v8805_v2, %v8805_v2 }
0x22d3   :  { %7289 = vmatmul.mubr.msk.bf16.vlgmr.msra.gmra.mrb[44].mxu1 %vm70_vm1, %v2127_v41 }
0x23a6   :  { %v2181_v9 = vpop.f32.mrb[44].mxu1 }
0x23a7   :  { %v2182_v61 = vadd.f32 %v2181_v9, %v8817_v47  ;;  %v7290_v54 = vpop.f32.mrb[45].mxu1 }
0x23a8   :  { %v2184_v5 = vpop.f32.mrb[46].mxu1 }
0x23a9   :  { %v7291_v56 = vpop.f32.mrb[47].mxu1  ;;  %v2192_v55 = vrot.slane %v2182_v61, 6  ;;  %v2188_v44 = vrot.slane %v2182_v61, 3  ;;  %v2196_v58 = vrot.slane %v2182_v61, 1 }
0x23ab   :  { %2193 = vrot.lane.b32.xlu1 %v2192_v55, %s8068_s27  ;;  %2189 = vrot.lane.b32.xlu0 %v2188_v44, %s8067_s26 }
0x23af   :  { %2197 = vrot.lane.b32.xlu0 %v2196_v58, %s8066_s25 }
0x241d   :  { %v2190_v59 = vpop.permute.xlu0 %2189  ;;  %v2194_v60 = vpop.permute.xlu1 %2193 }
0x241e   :  { %v2201_v62 = vsel %vm129_vm2, %v2190_v59, %v2194_v60  ;;  %v2200_v4 = vsel %vm127_vm3, %v2182_v61, %v2190_v59 }
0x2421   :  { %v2198_v63 = vpop.permute.xlu0 %2197 }
0x2422   :  { %v2202_v10 = vsel %vm131_vm4, %v2201_v62, %v2198_v63  ;;  %v2204_v14 = vpack.c.bf16 %v2198_v63, %v2198_v63 }
0x2423   :  { %v2203_v57 = vpack.c.bf16 %v2202_v10, %v2200_v4 }
0x2424   :  { %2209 = vrot.lane.b32.xlu0 %v2204_v14, %s8069_s28 }
0x2425   :  { %2207 = vrot.lane.b32.xlu1 %v2203_v57, %s8069_s28  ;;  %7296 = vmatprep.mubr.msk.bf16.mxu1 %vm141_vm5, %v2203_v57 }
0x2496   :  { %v2210_v16 = vpop.permute.xlu0 %2209 }
0x2497   :  { %v2208_v52 = vpop.permute.xlu1 %2207  ;;  %v2221_v19 = vsel %vm141_vm5, %v2210_v16, 0 }
0x2498   :  { %7732 = vmatprep.subr.msk.bf16.mxu1 %vm141_vm5, %v2208_v52  ;;  %v2218_v15 = vsel %vm141_vm5, %v2208_v52, 0 }
0x2499   :  { %7293 = vmatpush3.bf16.xpose.msra.mxu1 %v2218_v15 }
0x249a   :  { %7733 = vmatprep.subr.msk.bf16.mxu1 %vm141_vm5, %v2210_v16 }
0x24a1   :  { %7295 = vmatpush3.bf16.xpose.msra.mxu1 %v2221_v19 }
0x24a8   :  { %7297 = vmatmul.mubr.msk.bf16.vlgmr.msra.gmra.mrb[48].mxu1 %vm141_vm5, %v2204_v14 }
0x257b   :  { %v7298_v50 = vpop.f32.mrb[48].mxu1 }
0x257c   :  { %v2257_v20 = vpop.f32.mrb[49].mxu1  ;;  %v2266_v30 = vadd.f32 %v7298_v50, %v8538_v38 }
0x257d   :  { %v2258_v21 = vadd.f32 %v2257_v20, %v8527_v31  ;;  %v7299_v22 = vpop.f32.mrb[50].mxu1 }
0x257e   :  { %v2260_v45 = vpop.f32.mrb[51].mxu1  ;;  %v2277_v37 = vsel %vm209_vm7, %v2266_v30, -inf }
0x257f   :  { %v2261_v1 = vadd.f32 %v2260_v45, %v8532_v34  ;;  %v2271_v27 = vsel %vm202_vm6, %v2258_v21, -inf }
0x2580   :  { %2272 = vmax.xlane.f32.xlu1 %v2271_v27 }
0x2581   :  { %v2274_v8 = vsel %vm202_vm6, %v2261_v1, -inf }
0x2582   :  { %2275 = vmax.xlane.f32.xlu0 %v2274_v8 }
0x2586   :  { %2278 = vmax.xlane.f32.xlu0 %v2277_v37 }
0x260d   :  { %v2273_v18 = vpop.xlane.xlu1 %2272 }
0x260e   :  { %v2280_v32 = vsub.f32 %v2258_v21, %v2273_v18 }
0x260f   :  { %v2276_v29 = vpop.xlane.xlu0 %2275 }
0x2610   :  { %v2281_v26 = vsub.f32 %v2261_v1, %v2276_v29  ;;  %v2283_v34 = vmul.f32 1.442695, %v2280_v32 }
0x2612   :  { %v2285_v31 = vmul.f32 1.442695, %v2281_v26 }
0x2613   :  { %v2279_v36 = vpop.xlane.xlu0 %2278 }
0x2614   :  { %7942 = vpow2.f32 %v2285_v31  ;;  %v2282_v35 = vsub.f32 %v2266_v30, %v2279_v36 }
0x2616   :  { %v2287_v41 = vmul.f32 1.442695, %v2282_v35 }
0x2618   :  { %7944 = vpow2.f32 %v2287_v41 }
0x2619   :  { %7946 = vpow2.f32 %v2283_v34 }
0x261e   :  { %v7943_v9 = vpop.eup %7942 }
0x261f   :  { %v2292_v38 = vsel %vm202_vm6, %v7943_v9, 0.0 }
0x2620   :  { %2293 = vadd.xlane.f32.xlu0 %v2292_v38 }
0x2622   :  { %v7945_v61 = vpop.eup %7944 }
0x2623   :  { %v2295_v54 = vsel %vm209_vm7, %v7945_v61, 0.0  ;;  %v7947_v5 = vpop.eup %7946 }
0x2624   :  { %2296 = vadd.xlane.f32.xlu1 %v2295_v54  ;;  %v2289_v56 = vsel %vm202_vm6, %v7947_v5, 0.0 }
0x2628   :  { %2290 = vadd.xlane.f32.xlu1 %v2289_v56  ;;  %v8886_v56 = vld [vmem:[%s10096_s5 + $0x50] sm:$0xff]  }
0x2636   :  { %2306 = vrot.lane.b32.xlu0 %v2203_v57, %s8070_s16 }
0x2639   :  { %2308 = vrot.lane.b32.xlu1 %v2204_v14, %s8070_s16 }
0x263d   :  { %2391 = vrot.lane.b32.xlu1 %v8795_v28, %s8071_s17 }
0x26ad   :  { %v2294_v55 = vpop.xlane.xlu0 %2293 }
0x26b1   :  { %v2307_v44 = vpop.permute.xlu0 %2306  ;;  %v2297_v58 = vpop.xlane.xlu1 %2296 }
0x26b2   :  { %7300 = vmatprep.subr.bf16.mxu1 %v2307_v44  ;;  %7948 = vrcp.f32 %v2297_v58 }
0x26b3   :  { %7301 = vmatpush3.bf16.msra.mxu1 %v2307_v44  ;;  %7950 = vrcp.f32 %v2294_v55  ;;  %v8893_v55 = vld [vmem:[%s10096_s5 + $0x58] sm:$0xff]  }
0x26b5   :  { %v2291_v59 = vpop.xlane.xlu1 %2290 }
0x26b6   :  { %7952 = vrcp.f32 %v2291_v59 }
0x26b9   :  { %v2309_v60 = vpop.permute.xlu1 %2308 }
0x26ba   :  { %7734 = vmatprep.subr.msk.bf16.mxu1 %vm129_vm2, %v2309_v60  ;;  %v2318_v62 = vsel %vm129_vm2, %v2309_v60, 0 }
0x26bb   :  { %7303 = vmatpush3.bf16.msra.mxu1 %v2318_v62 }
0x26bc   :  { %7316 = vmatprep.subr.bf16.mxu1 %v8064_v0  ;;  %v7949_v63 = vpop.eup %7948 }
0x26bd   :  { %v7951_v4 = vpop.eup %7950  ;;  %v8850_v10 = vmul.f32 %v7949_v63, %v7945_v61  ;;  %v2392_v16 = vpop.permute.xlu1 %2391 }
0x26be   :  { %v8854_v57 = vmul.f32 %v7951_v4, %v7943_v9  ;;  %7309 = vmatpush3.bf16.msra.mxu0 %v2392_v16 }
0x26bf   :  { %v2305_v15 = vpack.c.bf16 %v8850_v10, %v8850_v10  ;;  %7310 = vmatprep.subr.bf16.mxu0 %v8064_v0 }
0x26c0   :  { %v7953_v28 = vpop.eup %7952 }
0x26c1   :  { %v8852_v14 = vmul.f32 %v7953_v28, %v7947_v5 }
0x26c3   :  { %v2304_v52 = vpack.c.bf16 %v8854_v57, %v8852_v14 }
0x26c5   :  { %7304 = vmatprep.mubr.msk.bf16.mxu1 %vm202_vm6, %v2304_v52 }
0x26c6   :  { %7305 = vmatmul.mubr.msk.bf16.vlgmr.msra.gmra.mrb[52].mxu1 %vm202_vm6, %v2305_v15 }
0x26c7   :  { %7320 = vmatprep.mubr.msk.bf16.mxu1 %vm8065_vm0, %v8064_v0  ;;  %7317 = vmatpush3.bf16.msra.mxu1 %v8886_v56 }
0x26c8   :  { %7318 = vmatprep.subr.bf16.mxu1 %v8064_v0 }
0x26cb   :  { %7319 = vmatpush3.bf16.msra.mxu1 %v8893_v55 }
0x2799   :  { %v7306_v19 = vpop.f32.mrb[52].mxu1 }
0x279a   :  { %v2354_v50 = vpop.f32.mrb[53].mxu1  ;;  %v2382_v21 = vrot.slane %v7306_v19, 7 }
0x279b   :  { %v7307_v20 = vpop.f32.mrb[54].mxu1  ;;  %v2370_v45 = vrot.slane %v2354_v50, 5 }
0x279c   :  { %v2357_v22 = vpop.f32.mrb[55].mxu1 }
0x279d   :  { %v2371_v1 = vrot.slane %v2357_v22, 5  ;;  %v2376_v27 = vrot.slane %v2357_v22, 2  ;;  %v2381_v30 = vrot.slane %v2357_v22, 7 }
0x279f   :  { %2377 = vrot.lane.b32.xlu1 %v2376_v27, %s8072_s18  ;;  %v2372_v8 = vsel %vm303_vm8, %v2370_v45, %v2371_v1  ;;  %v2383_v37 = vsel %vm315_vm9, %v2381_v30, %v2382_v21 }
0x27a0   :  { %2373 = vrot.lane.b32.xlu0 %v2372_v8, %s8073_s19 }
0x27a3   :  { %2393 = vrot.lane.b32.xlu1 %v8802_v17, %s8071_s17 }
0x27a4   :  { %2384 = vrot.lane.b32.xlu0 %v2383_v37, %s8074_s20 }
0x27a8   :  { %2398 = vrot.lane.b32.xlu0 %v8817_v47, %s8071_s17 }
0x2811   :  { %v2378_v18 = vpop.permute.xlu1 %2377 }
0x2812   :  { %v2374_v29 = vpop.permute.xlu0 %2373 }
0x2813   :  { %v2387_v26 = vsel %vm141_vm5, %v2354_v50, %v2374_v29 }
0x2814   :  { %v2388_v36 = vsel %vm323_vm10, %v2387_v26, %v2378_v18 }
0x2815   :  { %v2394_v32 = vpop.permute.xlu1 %2393 }
0x2816   :  { %v2385_v31 = vpop.permute.xlu0 %2384  ;;  %7311 = vmatpush3.bf16.msra.mxu0 %v2394_v32 }
0x2817   :  { %v2389_v35 = vsel %vm325_vm11, %v2388_v36, %v2385_v31  ;;  %7324 = vmatprep.subr.bf16.mxu0 %v8064_v0 }
0x2818   :  { %v2390_v34 = vpack.c.bf16 %v2389_v35, %v2389_v35 }
0x281a   :  { %7313 = vmatmul.mubr.msk.bf16.vlgmr.msra.gmra.mrb[48].mxu0 %vm70_vm1, %v2390_v34  ;;  %v2399_v17 = vpop.permute.xlu0 %2398 }
0x281b   :  { %7328 = vmatprep.mubr.msk.bf16.mxu0 %vm8065_vm0, %v8064_v0 }
0x28ed   :  { %v2438_v47 = vpop.f32.mrb[48].mxu0 }
0x28ee   :  { %v2439_v41 = vadd.f32 %v2438_v47, %v2399_v17  ;;  %v7314_v9 = vpop.f32.mrb[49].mxu0 }
0x28ef   :  { %v2441_v38 = vpop.f32.mrb[50].mxu0 }
0x28f0   :  { %v2444_v61 = vadd.f32 %v2439_v41, %v8805_v2  ;;  %v7315_v54 = vpop.f32.mrb[51].mxu0  ;;  %v2461_v2 = vrot.slane %v8813_v42, %v8267_v49  ;;  %v8907_v42 = vld [vmem:[%s10098_s6 + $0xa] sm:$0x3] }
0x28f1   :  { %v8911_v63 = vrot.slane %v8907_v42, %v8167_v7 }
0x28f2   :  { %v2445_v5 = vsel %vm382_vm12, %v2444_v61, 0.0 }
0x28f3   :  { %2446 = vadd.xlane.f32.xlu1 %v2445_v5 }
0x2904   :  { %2537 = vrot.lane.b32.xlu1 %v8893_v55, %s8069_s28 }
0x2908   :  { %2464 = vrot.lane.b32.xlu1 %v2461_v2, %s8069_s28 }
0x2980   :  { %v2447_v44 = vpop.xlane.xlu1 %2446 }
0x2981   :  { %v2448_v58 = vmul.f32 0.03125, %v2447_v44 }
0x2983   :  { %v2449_v59 = vsub.f32 %v2444_v61, %v2448_v58 }
0x2984   :  { %v2538_v16 = vpop.permute.xlu1 %2537 }
0x2985   :  { %v2450_v60 = vmul.f32 %v2449_v59, %v2449_v59 }
0x2987   :  { %v2451_v62 = vsel %vm382_vm12, %v2450_v60, 0.0 }
0x2988   :  { %2452 = vadd.xlane.f32.xlu0 %v2451_v62  ;;  %v2465_v20 = vpop.permute.xlu1 %2464 }
0x299e   :  { %2535 = vrot.lane.b32.xlu0 %v8886_v56, %s8069_s28 }
0x29a2   :  { %2542 = vrot.lane.b32.xlu0 %v8911_v63, %s8069_s28 }
0x2a15   :  { %v2453_v4 = vpop.xlane.xlu0 %2452 }
0x2a16   :  { %v2454_v28 = vmul.f32 0.03125, %v2453_v4 }
0x2a18   :  { %v2455_v52 = vadd.f32 1e-05, %v2454_v28 }
0x2a19   :  { %v2536_v15 = vpop.permute.xlu0 %2535 }
0x2a1a   :  { %7954 = vrsqrt.f32 %v2455_v52  ;;  %7325 = vmatpush3.bf16.msra.mxu0 %v2536_v15 }
0x2a1b   :  { %7326 = vmatprep.subr.bf16.mxu0 %v8064_v0 }
0x2a1d   :  { %v2543_v1 = vpop.permute.xlu0 %2542 }
0x2a1e   :  { %7327 = vmatpush3.bf16.msra.mxu0 %v2538_v16 }
0x2a21   :  { %7329 = vmatmul.mubr.msk.bf16.vlgmr.msra.gmra.mrb[52].mxu0 %vm70_vm1, %v8629_v39 }
0x2a24   :  { %v7955_v19 = vpop.eup %7954 }
0x2a25   :  { %v2457_v50 = vmul.f32 %v7955_v19, %v2449_v59 }
0x2a27   :  { %v2462_v21 = vmul.f32 %v2461_v2, %v2457_v50 }
0x2a29   :  { %v8918_v22 = vadd.f32 %v2465_v20, %v2462_v21 }
0x2a2b   :  { %v2475_v45 = vpack.c.bf16 %v8918_v22, %v8918_v22 }
0x2a2d   :  { %7321 = vmatmul.mubr.msk.bf16.vlgmr.msra.gmra.mrb[56].mxu1 %vm70_vm1, %v2475_v45 }
0x2af4   :  { %v2579_v27 = vpop.f32.mrb[52].mxu0 }
0x2af5   :  { %v2580_v30 = vadd.f32 %v2579_v27, %v2543_v1  ;;  %v7330_v8 = vpop.f32.mrb[53].mxu0 }
0x2af6   :  { %v2582_v37 = vpop.f32.mrb[54].mxu0 }
0x2af7   :  { %v7331_v18 = vpop.f32.mrb[55].mxu0  ;;  %v2608_v29 = vrot.slane %v2580_v30, 6  ;;  %v2604_v26 = vrot.slane %v2580_v30, 3  ;;  %v2612_v39 = vrot.slane %v2580_v30, 1 }
0x2af9   :  { %2609 = vrot.lane.b32.xlu0 %v2608_v29, %s8068_s27  ;;  %2605 = vrot.lane.b32.xlu1 %v2604_v26, %s8067_s26 }
0x2afd   :  { %2613 = vrot.lane.b32.xlu1 %v2612_v39, %s8066_s25 }
0x2b00   :  { %v2529_v32 = vpop.f32.mrb[56].mxu1 }
0x2b01   :  { %v2530_v31 = vadd.f32 %v2529_v32, %v8911_v63  ;;  %v7322_v36 = vpop.f32.mrb[57].mxu1 }
0x2b02   :  { %v2532_v35 = vpop.f32.mrb[58].mxu1 }
0x2b03   :  { %v7323_v34 = vpop.f32.mrb[59].mxu1  ;;  %v2586_v17 = vrot.slane %v2530_v31, 3  ;;  %v2590_v47 = vrot.slane %v2530_v31, 6  ;;  %v2594_v41 = vrot.slane %v2530_v31, 1 }
0x2b05   :  { %2587 = vrot.lane.b32.xlu0 %v2586_v17, %s8067_s26  ;;  %2591 = vrot.lane.b32.xlu1 %v2590_v47, %s8068_s27 }
0x2b09   :  { %2595 = vrot.lane.b32.xlu0 %v2594_v41, %s8066_s25 }
0x2b6b   :  { %v2606_v9 = vpop.permute.xlu1 %2605  ;;  %v2610_v38 = vpop.permute.xlu0 %2609 }
0x2b6c   :  { %v2617_v61 = vsel %vm129_vm2, %v2606_v9, %v2610_v38  ;;  %v2616_v5 = vsel %vm127_vm3, %v2580_v30, %v2606_v9 }
0x2b6f   :  { %v2614_v54 = vpop.permute.xlu1 %2613 }
0x2b70   :  { %v2618_v2 = vsel %vm131_vm4, %v2617_v61, %v2614_v54  ;;  %v2620_v58 = vpack.c.bf16 %v2614_v54, %v2614_v54 }
0x2b71   :  { %v2619_v44 = vpack.c.bf16 %v2618_v2, %v2616_v5 }
0x2b72   :  { %v2631_v52 = vsel %vm141_vm5, %v2620_v58, 0 }
0x2b73   :  { %7735 = vmatprep.subr.msk.bf16.mxu1 %vm141_vm5, %v2619_v44  ;;  %v2628_v59 = vsel %vm141_vm5, %v2619_v44, 0 }
0x2b74   :  { %7333 = vmatpush3.bf16.xpose.msra.mxu1 %v2628_v59 }
0x2b75   :  { %7736 = vmatprep.subr.msk.bf16.mxu1 %vm141_vm5, %v2620_v58 }
0x2b77   :  { %v2588_v60 = vpop.permute.xlu0 %2587  ;;  %v2592_v62 = vpop.permute.xlu1 %2591 }
0x2b78   :  { %v2599_v4 = vsel %vm129_vm2, %v2588_v60, %v2592_v62  ;;  %v2598_v15 = vsel %vm127_vm3, %v2530_v31, %v2588_v60 }
0x2b7b   :  { %v2596_v28 = vpop.permute.xlu0 %2595 }
0x2b7c   :  { %v2600_v16 = vsel %vm131_vm4, %v2599_v4, %v2596_v28  ;;  %7335 = vmatpush3.bf16.xpose.msra.mxu1 %v2631_v52  ;;  %v2602_v50 = vpack.c.bf16 %v2596_v28, %v2596_v28 }
0x2b7d   :  { %v2601_v19 = vpack.c.bf16 %v2600_v16, %v2598_v15  ;;  %7356 = vmatprep.subr.bf16.mxu1 %v8064_v0 }
0x2b7f   :  { %7336 = vmatprep.mubr.msk.bf16.mxu1 %vm141_vm5, %v2601_v19 }
0x2b83   :  { %7337 = vmatmul.mubr.msk.bf16.vlgmr.msra.gmra.mrb[60].mxu1 %vm141_vm5, %v2602_v50 }
0x2b84   :  { %7360 = vmatprep.mubr.msk.bf16.mxu1 %vm8065_vm0, %v8064_v0 }
0x2c56   :  { %v7338_v20 = vpop.f32.mrb[60].mxu1 }
0x2c57   :  { %v2667_v21 = vpop.f32.mrb[61].mxu1  ;;  %v2676_v37 = vadd.f32 %v7338_v20, %v8682_v53 }
0x2c58   :  { %v2668_v45 = vadd.f32 %v2667_v21, %v8671_v40  ;;  %v7339_v1 = vpop.f32.mrb[62].mxu1 }
0x2c59   :  { %v2670_v27 = vpop.f32.mrb[63].mxu1  ;;  %v2687_v29 = vsel %vm209_vm7, %v2676_v37, -inf }
0x2c5a   :  { %v2671_v30 = vadd.f32 %v2670_v27, %v8676_v43  ;;  %v2681_v8 = vsel %vm202_vm6, %v2668_v45, -inf }
0x2c5b   :  { %2682 = vmax.xlane.f32.xlu1 %v2681_v8 }
0x2c5c   :  { %v2684_v18 = vsel %vm202_vm6, %v2671_v30, -inf }
0x2c5d   :  { %2685 = vmax.xlane.f32.xlu0 %v2684_v18 }
0x2c61   :  { %2688 = vmax.xlane.f32.xlu0 %v2687_v29 }
0x2ce8   :  { %v2683_v26 = vpop.xlane.xlu1 %2682 }
0x2ce9   :  { %v2690_v31 = vsub.f32 %v2668_v45, %v2683_v26 }
0x2cea   :  { %v2686_v39 = vpop.xlane.xlu0 %2685 }
0x2ceb   :  { %v2691_v32 = vsub.f32 %v2671_v30, %v2686_v39  ;;  %v2693_v43 = vmul.f32 1.442695, %v2690_v31 }
0x2ced   :  { %v2695_v40 = vmul.f32 1.442695, %v2691_v32 }
0x2cee   :  { %v2689_v36 = vpop.xlane.xlu0 %2688 }
0x2cef   :  { %7956 = vpow2.f32 %v2695_v40  ;;  %v2692_v35 = vsub.f32 %v2676_v37, %v2689_v36 }
0x2cf1   :  { %v2697_v34 = vmul.f32 1.442695, %v2692_v35 }
0x2cf3   :  { %7958 = vpow2.f32 %v2697_v34 }
0x2cf4   :  { %7960 = vpow2.f32 %v2693_v43 }
0x2cf9   :  { %v7957_v17 = vpop.eup %7956 }
0x2cfa   :  { %v2702_v53 = vsel %vm202_vm6, %v7957_v17, 0.0 }
0x2cfb   :  { %2703 = vadd.xlane.f32.xlu0 %v2702_v53 }
0x2cfd   :  { %v7959_v47 = vpop.eup %7958 }
0x2cfe   :  { %v2705_v41 = vsel %vm209_vm7, %v7959_v47, 0.0  ;;  %v7961_v9 = vpop.eup %7960 }
0x2cff   :  { %2706 = vadd.xlane.f32.xlu1 %v2705_v41  ;;  %v2699_v38 = vsel %vm202_vm6, %v7961_v9, 0.0 }
0x2d03   :  { %2700 = vadd.xlane.f32.xlu1 %v2699_v38 }
0x2d11   :  { %2718 = vrot.lane.b32.xlu0 %v2619_v44, %s8069_s28 }
0x2d14   :  { %2720 = vrot.lane.b32.xlu1 %v2620_v58, %s8069_s28 }
0x2d18   :  { %2803 = vrot.lane.b32.xlu1 %v8886_v56, %s8071_s17 }
0x2d88   :  { %v2704_v61 = vpop.xlane.xlu0 %2703 }
0x2d8c   :  { %v2719_v54 = vpop.permute.xlu0 %2718  ;;  %v2707_v5 = vpop.xlane.xlu1 %2706 }
0x2d8d   :  { %7340 = vmatprep.subr.bf16.mxu0 %v2719_v54  ;;  %7962 = vrcp.f32 %v2707_v5 }
0x2d8e   :  { %7341 = vmatpush3.bf16.msra.mxu0 %v2719_v54  ;;  %7964 = vrcp.f32 %v2704_v61 }
0x2d90   :  { %v2701_v2 = vpop.xlane.xlu1 %2700 }
0x2d91   :  { %7966 = vrcp.f32 %v2701_v2  ;;  %v2872_v2 = vrot.slane %v8907_v42, %v8267_v49  ;;  %v7816_v42 = vld [vmem:[%s10100_s7 + $0x100] sm:$0xff]  }
0x2d94   :  { %v2721_v59 = vpop.permute.xlu1 %2720 }
0x2d95   :  { %7737 = vmatprep.subr.msk.bf16.mxu0 %vm129_vm2, %v2721_v59  ;;  %v2730_v60 = vsel %vm129_vm2, %v2721_v59, 0  ;;  %v7814_v59 = vld [vmem:[%s10100_s7 + $0xf0] sm:$0xff]  }
0x2d96   :  { %7343 = vmatpush3.bf16.msra.mxu0 %v2730_v60  ;;  %7357 = vmatpush3.bf16.msra.mxu1 %v7814_v59  ;;  %v7817_v60 = vld [vmem:[%s10100_s7 + $0x108] sm:$0xff]  }
0x2d97   :  { %7348 = vmatprep.subr.bf16.mxu0 %v8064_v0  ;;  %v7963_v44 = vpop.eup %7962  ;;  %7358 = vmatprep.subr.bf16.mxu1 %v8064_v0 }
0x2d98   :  { %v7965_v58 = vpop.eup %7964  ;;  %v8961_v62 = vmul.f32 %v7963_v44, %v7959_v47  ;;  %v2804_v16 = vpop.permute.xlu1 %2803  ;;  %v7818_v44 = vld [vmem:[%s10100_s7 + $0x110] sm:$0xff]  }
0x2d99   :  { %v8965_v28 = vmul.f32 %v7965_v58, %v7957_v17  ;;  %v7819_v58 = vld [vmem:[%s10100_s7 + $0x118] sm:$0xff]  }
0x2d9a   :  { %v2715_v15 = vpack.c.bf16 %v8961_v62, %v8961_v62 }
0x2d9b   :  { %v7967_v56 = vpop.eup %7966 }
0x2d9c   :  { %v8963_v4 = vmul.f32 %v7967_v56, %v7961_v9  ;;  %v7820_v56 = vld [vmem:[%s10100_s7 + $0x120] sm:$0xff]  }
0x2d9e   :  { %v2714_v52 = vpack.c.bf16 %v8965_v28, %v8963_v4 }
0x2da0   :  { %7344 = vmatprep.mubr.msk.bf16.mxu0 %vm202_vm6, %v2714_v52  ;;  %v7821_v52 = vld [vmem:[%s10100_s7 + $0x128] sm:$0xff]  }
0x2da1   :  { %7345 = vmatmul.mubr.msk.bf16.vlgmr.msra.gmra.mrb[56].mxu0 %vm202_vm6, %v2715_v15 }
0x2da2   :  { %7352 = vmatprep.mubr.msk.bf16.mxu0 %vm8065_vm0, %v8064_v0  ;;  %7349 = vmatpush3.bf16.msra.mxu0 %v2804_v16 }
0x2da3   :  { %7350 = vmatprep.subr.bf16.mxu0 %v8064_v0 }
0x2e74   :  { %v7346_v19 = vpop.f32.mrb[56].mxu0 }
0x2e75   :  { %v2766_v50 = vpop.f32.mrb[57].mxu0  ;;  %v2794_v21 = vrot.slane %v7346_v19, 7 }
0x2e76   :  { %v7347_v20 = vpop.f32.mrb[58].mxu0  ;;  %v2782_v1 = vrot.slane %v2766_v50, 5 }
0x2e77   :  { %v2769_v45 = vpop.f32.mrb[59].mxu0 }
0x2e78   :  { %v2783_v27 = vrot.slane %v2769_v45, 5  ;;  %v2788_v30 = vrot.slane %v2769_v45, 2  ;;  %v2793_v8 = vrot.slane %v2769_v45, 7 }
0x2e7a   :  { %2789 = vrot.lane.b32.xlu1 %v2788_v30, %s8072_s18  ;;  %v2784_v37 = vsel %vm303_vm8, %v2782_v1, %v2783_v27  ;;  %v2795_v18 = vsel %vm315_vm9, %v2793_v8, %v2794_v21  ;;  %v7822_v30 = vld [vmem:[%s10100_s7 + $0x130] sm:$0xff]   ;;  %v7823_v8 = vld [vmem:[%s10100_s7 + $0x138] sm:$0xff]  }
0x2e7b   :  { %2785 = vrot.lane.b32.xlu0 %v2784_v37, %s8073_s19  ;;  %v6567_v37 = vld [vmem:[%s10101_s8 + $0x6] sm:$0x3] }
0x2e7e   :  { %2805 = vrot.lane.b32.xlu1 %v8893_v55, %s8071_s17 }
0x2e7f   :  { %2796 = vrot.lane.b32.xlu0 %v2795_v18, %s8074_s20  ;;  %v3055_v18 = vrot.slane %v6567_v37, %v8267_v49 }
0x2e83   :  { %2809 = vrot.lane.b32.xlu0 %v8911_v63, %s8071_s17 }
0x2eec   :  { %v2790_v29 = vpop.permute.xlu1 %2789 }
0x2eed   :  { %v2786_v26 = vpop.permute.xlu0 %2785 }
0x2eee   :  { %v2799_v39 = vsel %vm141_vm5, %v2766_v50, %v2786_v26 }
0x2eef   :  { %v2800_v31 = vsel %vm323_vm10, %v2799_v39, %v2790_v29  ;;  %v2906_v29 = vrot.slane %v6567_v37, %v8167_v7 }
0x2ef0   :  { %v2806_v32 = vpop.permute.xlu1 %2805 }
0x2ef1   :  { %v2797_v40 = vpop.permute.xlu0 %2796  ;;  %7351 = vmatpush3.bf16.msra.mxu0 %v2806_v32 }
0x2ef2   :  { %v2801_v36 = vsel %vm325_vm11, %v2800_v31, %v2797_v40  ;;  %7364 = vmatprep.subr.bf16.mxu0 %v8064_v0 }
0x2ef3   :  { %v2802_v35 = vpack.c.bf16 %v2801_v36, %v2801_v36 }
0x2ef5   :  { %7353 = vmatmul.mubr.msk.bf16.vlgmr.msra.gmra.mrb[60].mxu0 %vm70_vm1, %v2802_v35  ;;  %v2810_v55 = vpop.permute.xlu0 %2809 }
0x2ef6   :  { %7380 = vmatprep.mubr.msk.bf16.mxu0 %vm8065_vm0, %v8064_v0  ;;  %7365 = vmatpush3.bf16.msra.mxu0 %v7816_v42 }
0x2ef7   :  { %7366 = vmatprep.subr.bf16.mxu0 %v8064_v0 }
0x2efa   :  { %7367 = vmatpush3.bf16.msra.mxu0 %v7817_v60 }
0x2efb   :  { %7368 = vmatprep.subr.bf16.mxu0 %v8064_v0 }
0x2efe   :  { %7369 = vmatpush3.bf16.msra.mxu0 %v7818_v44 }
0x2eff   :  { %7370 = vmatprep.subr.bf16.mxu0 %v8064_v0 }
0x2f02   :  { %7371 = vmatpush3.bf16.msra.mxu0 %v7819_v58 }
0x2f03   :  { %7372 = vmatprep.subr.bf16.mxu0 %v8064_v0 }
0x2f06   :  { %7373 = vmatpush3.bf16.msra.mxu0 %v7820_v56 }
0x2f07   :  { %7374 = vmatprep.subr.bf16.mxu0 %v8064_v0 }
0x2f0a   :  { %7375 = vmatpush3.bf16.msra.mxu0 %v7821_v52 }
0x2f0b   :  { %7376 = vmatprep.subr.bf16.mxu0 %v8064_v0 }
0x2f0e   :  { %7377 = vmatpush3.bf16.msra.mxu0 %v7822_v30  ;;  %v9087_v30 = vld [vmem:[%s10098_s6] sm:$0x3] }
0x2f0f   :  { %7378 = vmatprep.subr.bf16.mxu0 %v8064_v0  ;;  %v9091_v37 = vrot.slane %v9087_v30, %v8167_v7 }
0x2f12   :  { %7379 = vmatpush3.bf16.msra.mxu0 %v7823_v8 }
0x2fc8   :  { %v2849_v63 = vpop.f32.mrb[60].mxu0 }
0x2fc9   :  { %v2850_v43 = vadd.f32 %v2849_v63, %v2810_v55  ;;  %v7354_v34 = vpop.f32.mrb[61].mxu0 }
0x2fca   :  { %v2852_v17 = vpop.f32.mrb[62].mxu0 }
0x2fcb   :  { %v7355_v53 = vpop.f32.mrb[63].mxu0  ;;  %v2855_v47 = vadd.f32 %v2850_v43, %v8918_v22  ;;  %v7815_v22 = vld [vmem:[%s10100_s7 + $0xf8] sm:$0xff]  }
0x2fcc   :  { %7359 = vmatpush3.bf16.msra.mxu1 %v7815_v22 }
0x2fcd   :  { %v2856_v41 = vsel %vm382_vm12, %v2855_v47, 0.0  ;;  %7384 = vmatprep.subr.bf16.mxu1 %v8064_v0 }
0x2fce   :  { %2857 = vadd.xlane.f32.xlu1 %v2856_v41 }
0x305b   :  { %v2858_v9 = vpop.xlane.xlu1 %2857 }
0x305c   :  { %v2859_v38 = vmul.f32 0.03125, %v2858_v9 }
0x305e   :  { %v2860_v61 = vsub.f32 %v2855_v47, %v2859_v38 }
0x3060   :  { %v2861_v54 = vmul.f32 %v2860_v61, %v2860_v61 }
0x3062   :  { %v2862_v5 = vsel %vm382_vm12, %v2861_v54, 0.0 }
0x3063   :  { %2863 = vadd.xlane.f32.xlu0 %v2862_v5  ;;  %v7824_v5 = vld [vmem:[%s10105_s9] sm:$0xff]  }
0x3079   :  { %2875 = vrot.lane.b32.xlu0 %v2872_v2, %s8069_s28 }
0x307d   :  { %3076 = vrot.lane.b32.xlu0 %v3055_v18, %s8070_s16 }
0x30f0   :  { %v2864_v15 = vpop.xlane.xlu0 %2863 }
0x30f1   :  { %v2865_v16 = vmul.f32 0.03125, %v2864_v15 }
0x30f3   :  { %v2866_v19 = vadd.f32 1e-05, %v2865_v16  ;;  %v9060_v16 = vld [vmem:[%s10096_s5] sm:$0xff]  }
0x30f4   :  { %v2876_v21 = vpop.permute.xlu0 %2875 }
0x30f5   :  { %7968 = vrsqrt.f32 %v2866_v19 }
0x30f8   :  { %v3077_v56 = vpop.permute.xlu0 %3076 }
0x30ff   :  { %v7969_v50 = vpop.eup %7968 }
0x3100   :  { %v2868_v20 = vmul.f32 %v7969_v50, %v2860_v61  ;;  %v9066_v50 = vld [vmem:[%s10097_s0 + $0x8] sm:$0x1f] }
0x3102   :  { %v2873_v45 = vmul.f32 %v2872_v2, %v2868_v20  ;;  %v7825_v2 = vld [vmem:[%s10105_s9 + $0x8] sm:$0xff]  }
0x3103   :  { %v9072_v20 = vld [vmem:[%s10096_s5 + $0x8] sm:$0xff]  }
0x3104   :  { %v2878_v1 = vadd.f32 %v2876_v21, %v2873_v45  ;;  %v3246_v21 = vpack.c.bf16 %v9066_v50, %v9066_v50 }
0x3106   :  { %v2902_v27 = vpack.c.bf16 %v2878_v1, %v2878_v1 }
0x3108   :  { %7361 = vmatmul.mubr.msk.bf16.vlgmr.msra.gmra.mrb[64].mxu1 %vm70_vm1, %v2902_v27 }
0x3109   :  { %7388 = vmatprep.mubr.msk.bf16.mxu1 %vm8065_vm0, %v8064_v0  ;;  %7385 = vmatpush3.bf16.msra.mxu1 %v7824_v5 }
0x310a   :  { %7386 = vmatprep.subr.bf16.mxu1 %v8064_v0 }
0x310d   :  { %7387 = vmatpush3.bf16.msra.mxu1 %v7825_v2 }
0x310e   :  { %7392 = vmatprep.subr.bf16.mxu1 %v8064_v0 }
0x31db   :  { %v2956_v26 = vpop.f32.mrb[64].mxu1 }
0x31dc   :  { %v2957_v39 = vadd.f32 %v2956_v26, %v2906_v29  ;;  %v7362_v32 = vpop.f32.mrb[65].mxu1 }
0x31dd   :  { %v2959_v31 = vpop.f32.mrb[66].mxu1 }
0x31de   :  { %v2962_v40 = vmax.f32 %v2957_v39, 0.0  ;;  %v7363_v36 = vpop.f32.mrb[67].mxu1 }
0x31e0   :  { %v2963_v35 = vpack.c.bf16 %v2962_v40, %v2962_v40 }
0x31e2   :  { %7381 = vmatmul.mubr.bf16.vlgmr.msra.gmra.mrb[64].mxu0 %v2963_v35 }
0x32b5   :  { %v3046_v55 = vpop.f32.mrb[64].mxu0 }
0x32b6   :  { %v3056_v63 = vadd.f32 %v3055_v18, %v3046_v55  ;;  %v7382_v43 = vpop.f32.mrb[65].mxu0 }
0x32b7   :  { %v3049_v34 = vpop.f32.mrb[66].mxu0 }
0x32b8   :  { %v3057_v17 = vadd.f32 %v3056_v63, %v2878_v1  ;;  %v7383_v53 = vpop.f32.mrb[67].mxu0 }
0x32ba   :  { %v3058_v47 = vsel %vm382_vm12, %v3057_v17, 0.0 }
0x32bb   :  { %3059 = vadd.xlane.f32.xlu1 %v3058_v47 }
0x3348   :  { %v3060_v41 = vpop.xlane.xlu1 %3059 }
0x3349   :  { %v3061_v9 = vmul.f32 0.03125, %v3060_v41 }
0x334b   :  { %v3062_v38 = vsub.f32 %v3057_v17, %v3061_v9 }
0x334d   :  { %v3063_v61 = vmul.f32 %v3062_v38, %v3062_v38 }
0x334f   :  { %v3064_v54 = vsel %vm382_vm12, %v3063_v61, 0.0 }
0x3350   :  { %3065 = vadd.xlane.f32.xlu1 %v3064_v54  ;;  %v9114_v54 = vld [vmem:[%s10099_s2 + $0x18] sm:$0xff] }
0x3361   :  { %3072 = vrot.lane.b32.xlu1 %v3055_v18, %s8069_s28 }
0x33dd   :  { %v3066_v59 = vpop.xlane.xlu1 %3065 }
0x33de   :  { %v3067_v22 = vmul.f32 0.03125, %v3066_v59  ;;  %v9119_v59 = vld [vmem:[%s10099_s2 + $0x20] sm:$0xff] }
0x33e0   :  { %v3068_v42 = vadd.f32 1e-05, %v3067_v22 }
0x33e1   :  { %v3073_v44 = vpop.permute.xlu1 %3072 }
0x33e2   :  { %7970 = vrsqrt.f32 %v3068_v42 }
0x33ec   :  { %v7971_v60 = vpop.eup %7970 }
0x33ed   :  { %v3070_v58 = vmul.f32 %v7971_v60, %v3062_v38  ;;  %v9125_v60 = vld [vmem:[%s10099_s2 + $0x28] sm:$0xf] }
0x33ef   :  { %v3075_v52 = vmul.f32 %v3073_v44, %v3070_v58 }
0x33f1   :  { %v3079_v15 = vadd.f32 %v3077_v56, %v3075_v52 }
0x33f3   :  { %v3080_v19 = vpack.c.bf16 %v3079_v15, %v3079_v15 }
0x33f5   :  { %7389 = vmatmul.mubr.msk.bf16.vlgmr.msra.gmra.mrb[68].mxu1 %vm70_vm1, %v3080_v19 }
0x33f6   :  { %7393 = vmatpush3.bf16.msra.mxu1 %v9060_v16  ;;  %7396 = vmatprep.mubr.msk.bf16.mxu1 %vm8065_vm0, %v8064_v0 }
0x33f7   :  { %7394 = vmatprep.subr.bf16.mxu1 %v8064_v0 }
0x33fa   :  { %7395 = vmatpush3.bf16.msra.mxu1 %v9072_v20 }
0x33fd   :  { %7397 = vmatmul.mubr.msk.bf16.vlgmr.msra.gmra.mrb[72].mxu1 %vm70_vm1, %v3246_v21 }
0x34c8   :  { %v3134_v45 = vpop.f32.mrb[68].mxu1 }
0x34c9   :  { %3140 = vst [vmem:[%s10106_s10] sm:$0x1f] %v3134_v45  ;;  %v7390_v1 = vpop.f32.mrb[69].mxu1 }
0x34ca   :  { %v3137_v27 = vpop.f32.mrb[70].mxu1 }
0x34cb   :  { %v7391_v8 = vpop.f32.mrb[71].mxu1 }
0x34d0   :  { %v3300_v18 = vpop.f32.mrb[72].mxu1 }
0x34d1   :  { %v3301_v29 = vadd.f32 %v3300_v18, %v9091_v37  ;;  %v7398_v26 = vpop.f32.mrb[73].mxu1 }
0x34d2   :  { %v3303_v39 = vpop.f32.mrb[74].mxu1 }
0x34d3   :  { %v7399_v32 = vpop.f32.mrb[75].mxu1  ;;  %v3311_v31 = vrot.slane %v3301_v29, 6  ;;  %v3307_v40 = vrot.slane %v3301_v29, 3  ;;  %v3315_v36 = vrot.slane %v3301_v29, 1 }
0x34d5   :  { %3312 = vrot.lane.b32.xlu1 %v3311_v31, %s8068_s27  ;;  %3308 = vrot.lane.b32.xlu0 %v3307_v40, %s8067_s26 }
0x34d9   :  { %3316 = vrot.lane.b32.xlu0 %v3315_v36, %s8066_s25 }
0x3547   :  { %v3309_v35 = vpop.permute.xlu0 %3308  ;;  %v3313_v55 = vpop.permute.xlu1 %3312 }
0x3548   :  { %v3320_v63 = vsel %vm129_vm2, %v3309_v35, %v3313_v55  ;;  %v3319_v34 = vsel %vm127_vm3, %v3301_v29, %v3309_v35 }
0x354b   :  { %v3317_v43 = vpop.permute.xlu0 %3316 }
0x354c   :  { %v3321_v17 = vsel %vm131_vm4, %v3320_v63, %v3317_v43  ;;  %v3323_v53 = vpack.c.bf16 %v3317_v43, %v3317_v43 }
0x354d   :  { %v3322_v47 = vpack.c.bf16 %v3321_v17, %v3319_v34 }
0x354e   :  { %3328 = vrot.lane.b32.xlu0 %v3323_v53, %s8069_s28 }
0x354f   :  { %3326 = vrot.lane.b32.xlu1 %v3322_v47, %s8069_s28  ;;  %7404 = vmatprep.mubr.msk.bf16.mxu1 %vm141_vm5, %v3322_v47 }
0x35c0   :  { %v3329_v38 = vpop.permute.xlu0 %3328 }
0x35c1   :  { %v3327_v41 = vpop.permute.xlu1 %3326  ;;  %v3340_v61 = vsel %vm141_vm5, %v3329_v38, 0 }
0x35c2   :  { %7738 = vmatprep.subr.msk.bf16.mxu1 %vm141_vm5, %v3327_v41  ;;  %v3337_v9 = vsel %vm141_vm5, %v3327_v41, 0 }
0x35c3   :  { %7401 = vmatpush3.bf16.xpose.msra.mxu1 %v3337_v9 }
0x35c4   :  { %7739 = vmatprep.subr.msk.bf16.mxu1 %vm141_vm5, %v3329_v38 }
0x35cb   :  { %7403 = vmatpush3.bf16.xpose.msra.mxu1 %v3340_v61 }
0x35cc   :  { %7416 = vmatprep.subr.bf16.mxu1 %v8064_v0 }
0x35d2   :  { %7405 = vmatmul.mubr.msk.bf16.vlgmr.msra.gmra.mrb[76].mxu1 %vm141_vm5, %v3323_v53 }
0x35d3   :  { %7420 = vmatprep.mubr.msk.bf16.mxu1 %vm8065_vm0, %v8064_v0 }
0x36a5   :  { %v7406_v5 = vpop.f32.mrb[76].mxu1 }
0x36a6   :  { %v3376_v2 = vpop.f32.mrb[77].mxu1  ;;  %v3385_v52 = vadd.f32 %v7406_v5, %v9125_v60 }
0x36a7   :  { %v3377_v22 = vadd.f32 %v9114_v54, %v3376_v2  ;;  %v7407_v42 = vpop.f32.mrb[78].mxu1 }
0x36a8   :  { %v3379_v44 = vpop.f32.mrb[79].mxu1  ;;  %v3396_v19 = vsel %vm209_vm7, %v3385_v52, -inf }
0x36a9   :  { %v3380_v58 = vadd.f32 %v9119_v59, %v3379_v44  ;;  %v3390_v56 = vsel %vm202_vm6, %v3377_v22, -inf }
0x36aa   :  { %3391 = vmax.xlane.f32.xlu1 %v3390_v56 }
0x36ab   :  { %v3393_v15 = vsel %vm202_vm6, %v3380_v58, -inf }
0x36ac   :  { %3394 = vmax.xlane.f32.xlu0 %v3393_v15 }
0x36b0   :  { %3397 = vmax.xlane.f32.xlu0 %v3396_v19 }
0x3737   :  { %v3392_v21 = vpop.xlane.xlu1 %3391 }
0x3738   :  { %v3399_v27 = vsub.f32 %v3377_v22, %v3392_v21 }
0x3739   :  { %v3395_v45 = vpop.xlane.xlu0 %3394 }
0x373a   :  { %v3400_v1 = vsub.f32 %v3380_v58, %v3395_v45  ;;  %v3402_v26 = vmul.f32 1.442695, %v3399_v27 }
0x373c   :  { %v3404_v8 = vmul.f32 1.442695, %v3400_v1 }
0x373d   :  { %v3398_v18 = vpop.xlane.xlu0 %3397 }
0x373e   :  { %7972 = vpow2.f32 %v3404_v8  ;;  %v3401_v29 = vsub.f32 %v3385_v52, %v3398_v18 }
0x3740   :  { %v3406_v39 = vmul.f32 1.442695, %v3401_v29 }
0x3742   :  { %7974 = vpow2.f32 %v3406_v39 }
0x3743   :  { %7976 = vpow2.f32 %v3402_v26 }
0x3748   :  { %v7973_v32 = vpop.eup %7972 }
0x3749   :  { %v3411_v31 = vsel %vm202_vm6, %v7973_v32, 0.0 }
0x374a   :  { %3412 = vadd.xlane.f32.xlu0 %v3411_v31 }
0x374c   :  { %v7975_v40 = vpop.eup %7974 }
0x374d   :  { %v3414_v36 = vsel %vm209_vm7, %v7975_v40, 0.0  ;;  %v7977_v35 = vpop.eup %7976 }
0x374e   :  { %3415 = vadd.xlane.f32.xlu1 %v3414_v36  ;;  %v3408_v55 = vsel %vm202_vm6, %v7977_v35, 0.0 }
0x3752   :  { %3409 = vadd.xlane.f32.xlu1 %v3408_v55 }
0x3760   :  { %3425 = vrot.lane.b32.xlu0 %v3322_v47, %s8070_s16 }
0x3763   :  { %3427 = vrot.lane.b32.xlu1 %v3323_v53, %s8070_s16 }
0x3767   :  { %3510 = vrot.lane.b32.xlu1 %v9060_v16, %s8071_s17 }
0x37d7   :  { %v3413_v63 = vpop.xlane.xlu0 %3412 }
0x37db   :  { %v3426_v43 = vpop.permute.xlu0 %3425  ;;  %v3416_v34 = vpop.xlane.xlu1 %3415 }
0x37dc   :  { %7408 = vmatprep.subr.bf16.mxu0 %v3426_v43  ;;  %7978 = vrcp.f32 %v3416_v34 }
0x37dd   :  { %7409 = vmatpush3.bf16.msra.mxu0 %v3426_v43  ;;  %7980 = vrcp.f32 %v3413_v63 }
0x37df   :  { %v3410_v17 = vpop.xlane.xlu1 %3409 }
0x37e0   :  { %7982 = vrcp.f32 %v3410_v17 }
0x37e3   :  { %v3428_v41 = vpop.permute.xlu1 %3427 }
0x37e4   :  { %7740 = vmatprep.subr.msk.bf16.mxu0 %vm129_vm2, %v3428_v41  ;;  %v3437_v9 = vsel %vm129_vm2, %v3428_v41, 0 }
0x37e5   :  { %7411 = vmatpush3.bf16.msra.mxu0 %v3437_v9 }
0x37e6   :  { %7424 = vmatprep.subr.bf16.mxu0 %v8064_v0  ;;  %v7979_v53 = vpop.eup %7978 }
0x37e7   :  { %v7981_v47 = vpop.eup %7980  ;;  %v9142_v38 = vmul.f32 %v7979_v53, %v7975_v40  ;;  %v3511_v42 = vpop.permute.xlu1 %3510 }
0x37e8   :  { %v9146_v5 = vmul.f32 %v7981_v47, %v7973_v32  ;;  %7417 = vmatpush3.bf16.msra.mxu1 %v3511_v42  ;;  %v7831_v42 = vld [vmem:[%s10100_s7 + $0x18] sm:$0xff]  }
0x37e9   :  { %v3424_v22 = vpack.c.bf16 %v9142_v38, %v9142_v38  ;;  %7418 = vmatprep.subr.bf16.mxu1 %v8064_v0 }
0x37ea   :  { %v7983_v16 = vpop.eup %7982 }
0x37eb   :  { %v9144_v61 = vmul.f32 %v7983_v16, %v7977_v35 }
0x37ed   :  { %v3423_v2 = vpack.c.bf16 %v9146_v5, %v9144_v61 }
0x37ef   :  { %7412 = vmatprep.mubr.msk.bf16.mxu0 %vm202_vm6, %v3423_v2  ;;  %v3580_v2 = vrot.slane %v9087_v30, %v8267_v49  ;;  %v7830_v30 = vld [vmem:[%s10100_s7 + $0x10] sm:$0xff]  }
0x37f0   :  { %7413 = vmatmul.mubr.msk.bf16.vlgmr.msra.gmra.mrb[68].mxu0 %vm202_vm6, %v3424_v22  ;;  %v7828_v22 = vld [vmem:[%s10100_s7] sm:$0xff]  }
0x37f1   :  { %7428 = vmatprep.mubr.msk.bf16.mxu0 %vm8065_vm0, %v8064_v0  ;;  %7425 = vmatpush3.bf16.msra.mxu0 %v7828_v22 }
0x37f2   :  { %7426 = vmatprep.subr.bf16.mxu0 %v8064_v0 }
0x38c3   :  { %v7414_v44 = vpop.f32.mrb[68].mxu0 }
0x38c4   :  { %v3473_v58 = vpop.f32.mrb[69].mxu0  ;;  %v3501_v52 = vrot.slane %v7414_v44, 7  ;;  %v7832_v44 = vld [vmem:[%s10100_s7 + $0x20] sm:$0xff]  }
0x38c5   :  { %v7415_v56 = vpop.f32.mrb[70].mxu0  ;;  %v3489_v19 = vrot.slane %v3473_v58, 5 }
0x38c6   :  { %v3476_v15 = vpop.f32.mrb[71].mxu0  ;;  %v7834_v56 = vld [vmem:[%s10100_s7 + $0x30] sm:$0xff]  }
0x38c7   :  { %v3490_v21 = vrot.slane %v3476_v15, 5  ;;  %v3495_v45 = vrot.slane %v3476_v15, 2  ;;  %v3500_v1 = vrot.slane %v3476_v15, 7 }
0x38c9   :  { %3496 = vrot.lane.b32.xlu1 %v3495_v45, %s8072_s18  ;;  %v3491_v27 = vsel %vm303_vm8, %v3489_v19, %v3490_v21  ;;  %v3502_v8 = vsel %vm315_vm9, %v3500_v1, %v3501_v52  ;;  %v7835_v52 = vld [vmem:[%s10100_s7 + $0x38] sm:$0xff]  }
0x38ca   :  { %3492 = vrot.lane.b32.xlu0 %v3491_v27, %s8073_s19 }
0x38cd   :  { %3512 = vrot.lane.b32.xlu1 %v9072_v20, %s8071_s17 }
0x38ce   :  { %3503 = vrot.lane.b32.xlu0 %v3502_v8, %s8074_s20 }
0x38d2   :  { %3517 = vrot.lane.b32.xlu0 %v9091_v37, %s8071_s17 }
0x393b   :  { %v3497_v18 = vpop.permute.xlu1 %3496 }
0x393c   :  { %v3493_v29 = vpop.permute.xlu0 %3492 }
0x393d   :  { %v3506_v26 = vsel %vm141_vm5, %v3473_v58, %v3493_v29  ;;  %v7833_v58 = vld [vmem:[%s10100_s7 + $0x28] sm:$0xff]  }
0x393e   :  { %v3507_v31 = vsel %vm323_vm10, %v3506_v26, %v3497_v18  ;;  %v7836_v26 = vld [vmem:[%s10100_s7 + $0x40] sm:$0xff]  }
0x393f   :  { %v3513_v39 = vpop.permute.xlu1 %3512 }
0x3940   :  { %v3504_v32 = vpop.permute.xlu0 %3503  ;;  %7419 = vmatpush3.bf16.msra.mxu1 %v3513_v39  ;;  %v7837_v39 = vld [vmem:[%s10100_s7 + $0x48] sm:$0xff]  }
0x3941   :  { %v3508_v40 = vsel %vm325_vm11, %v3507_v31, %v3504_v32  ;;  %7432 = vmatprep.subr.bf16.mxu1 %v8064_v0  ;;  %v3607_v32 = vld [vmem:[%s10101_s8] sm:$0x3] }
0x3942   :  { %v3509_v36 = vpack.c.bf16 %v3508_v40, %v3508_v40  ;;  %v3761_v31 = vrot.slane %v3607_v32, %v8267_v49  ;;  %v3612_v40 = vrot.slane %v3607_v32, %v8167_v7 }
0x3944   :  { %7421 = vmatmul.mubr.msk.bf16.vlgmr.msra.gmra.mrb[80].mxu1 %vm70_vm1, %v3509_v36  ;;  %v3518_v20 = vpop.permute.xlu0 %3517 }
0x3945   :  { %7448 = vmatprep.mubr.msk.bf16.mxu1 %vm8065_vm0, %v8064_v0  ;;  %7433 = vmatpush3.bf16.msra.mxu1 %v7830_v30 }
0x3946   :  { %7434 = vmatprep.subr.bf16.mxu1 %v8064_v0 }
0x3949   :  { %7435 = vmatpush3.bf16.msra.mxu1 %v7831_v42 }
0x394a   :  { %7436 = vmatprep.subr.bf16.mxu1 %v8064_v0 }
0x394d   :  { %7437 = vmatpush3.bf16.msra.mxu1 %v7832_v44  ;;  %v9236_v44 = vld [vmem:[%s10096_s5 + $0x10] sm:$0xff]  }
0x394e   :  { %7438 = vmatprep.subr.bf16.mxu1 %v8064_v0 }
0x3951   :  { %7439 = vmatpush3.bf16.msra.mxu1 %v7833_v58  ;;  %v9243_v58 = vld [vmem:[%s10096_s5 + $0x18] sm:$0xff]  }
0x3952   :  { %7440 = vmatprep.subr.bf16.mxu1 %v8064_v0 }
0x3955   :  { %7441 = vmatpush3.bf16.msra.mxu1 %v7834_v56 }
0x3956   :  { %7442 = vmatprep.subr.bf16.mxu1 %v8064_v0 }
0x3959   :  { %7443 = vmatpush3.bf16.msra.mxu1 %v7835_v52 }
0x395a   :  { %7444 = vmatprep.subr.bf16.mxu1 %v8064_v0 }
0x395d   :  { %7445 = vmatpush3.bf16.msra.mxu1 %v7836_v26 }
0x395e   :  { %7446 = vmatprep.subr.bf16.mxu1 %v8064_v0 }
0x3961   :  { %7447 = vmatpush3.bf16.msra.mxu1 %v7837_v39 }
0x3962   :  { %7476 = vmatprep.subr.bf16.mxu1 %v8064_v0 }
0x3a17   :  { %v3557_v37 = vpop.f32.mrb[80].mxu1 }
0x3a18   :  { %v3558_v35 = vadd.f32 %v3557_v37, %v3518_v20  ;;  %v7422_v55 = vpop.f32.mrb[81].mxu1 }
0x3a19   :  { %v3560_v63 = vpop.f32.mrb[82].mxu1 }
0x3a1a   :  { %v3563_v43 = vadd.f32 %v9066_v50, %v3558_v35  ;;  %v7423_v34 = vpop.f32.mrb[83].mxu1  ;;  %v7829_v50 = vld [vmem:[%s10100_s7 + $0x8] sm:$0xff]  }
0x3a1b   :  { %7427 = vmatpush3.bf16.msra.mxu0 %v7829_v50 }
0x3a1c   :  { %v3564_v17 = vsel %vm382_vm12, %v3563_v43, 0.0  ;;  %7452 = vmatprep.subr.bf16.mxu0 %v8064_v0 }
0x3a1d   :  { %3565 = vadd.xlane.f32.xlu1 %v3564_v17 }
0x3aaa   :  { %v3566_v41 = vpop.xlane.xlu1 %3565 }
0x3aab   :  { %v3567_v9 = vmul.f32 0.03125, %v3566_v41 }
0x3aad   :  { %v3568_v53 = vsub.f32 %v3563_v43, %v3567_v9 }
0x3aaf   :  { %v3569_v47 = vmul.f32 %v3568_v53, %v3568_v53 }
0x3ab1   :  { %v3570_v16 = vsel %vm382_vm12, %v3569_v47, 0.0 }
0x3ab2   :  { %3571 = vadd.xlane.f32.xlu0 %v3570_v16 }
0x3ac8   :  { %3583 = vrot.lane.b32.xlu0 %v3580_v2, %s8069_s28 }
0x3acc   :  { %3782 = vrot.lane.b32.xlu0 %v3761_v31, %s8070_s16 }
0x3b3f   :  { %v3572_v15 = vpop.xlane.xlu0 %3571 }
0x3b40   :  { %v3573_v19 = vmul.f32 0.03125, %v3572_v15 }
0x3b42   :  { %v3574_v21 = vadd.f32 1e-05, %v3573_v19 }
0x3b43   :  { %v3584_v27 = vpop.permute.xlu0 %3583 }
0x3b44   :  { %7984 = vrsqrt.f32 %v3574_v21 }
0x3b4e   :  { %v7985_v45 = vpop.eup %7984 }
0x3b4f   :  { %v3576_v1 = vmul.f32 %v7985_v45, %v3568_v53 }
0x3b51   :  { %v3581_v8 = vmul.f32 %v3580_v2, %v3576_v1  ;;  %v3783_v1 = vpop.permute.xlu0 %3782 }
0x3b53   :  { %v3586_v18 = vadd.f32 %v3584_v27, %v3581_v8 }
0x3b55   :  { %v3608_v29 = vpack.c.bf16 %v3586_v18, %v3586_v18 }
0x3b57   :  { %7429 = vmatmul.mubr.msk.bf16.vlgmr.msra.gmra.mrb[72].mxu0 %vm70_vm1, %v3608_v29  ;;  %v9254_v29 = vld [vmem:[%s10098_s6 + $0x2] sm:$0x3] }
0x3b58   :  { %7456 = vmatprep.mubr.msk.bf16.mxu0 %vm8065_vm0, %v8064_v0  ;;  %7453 = vmatpush3.bf16.msra.mxu0 %v9236_v44  ;;  %v9258_v26 = vrot.slane %v9254_v29, %v8167_v7 }
0x3b59   :  { %7454 = vmatprep.subr.bf16.mxu0 %v8064_v0 }
0x3b5c   :  { %7455 = vmatpush3.bf16.msra.mxu0 %v9243_v58 }
0x3c2a   :  { %v3662_v36 = vpop.f32.mrb[72].mxu0 }
0x3c2b   :  { %v3663_v20 = vadd.f32 %v3662_v36, %v3612_v40  ;;  %v7430_v37 = vpop.f32.mrb[73].mxu0 }
0x3c2c   :  { %v3665_v35 = vpop.f32.mrb[74].mxu0 }
0x3c2d   :  { %v3668_v55 = vmax.f32 %v3663_v20, 0.0  ;;  %v7431_v63 = vpop.f32.mrb[75].mxu0 }
0x3c2f   :  { %v3669_v43 = vpack.c.bf16 %v3668_v55, %v3668_v55 }
0x3c31   :  { %7449 = vmatmul.mubr.bf16.vlgmr.msra.gmra.mrb[84].mxu1 %v3669_v43 }
0x3c32   :  { %7480 = vmatprep.mubr.msk.bf16.mxu1 %vm8065_vm0, %v8064_v0 }
0x3d04   :  { %v3752_v34 = vpop.f32.mrb[84].mxu1 }
0x3d05   :  { %v3762_v17 = vadd.f32 %v3761_v31, %v3752_v34  ;;  %v7450_v41 = vpop.f32.mrb[85].mxu1 }
0x3d06   :  { %v3755_v9 = vpop.f32.mrb[86].mxu1 }
0x3d07   :  { %v3763_v53 = vadd.f32 %v3762_v17, %v3586_v18  ;;  %v7451_v47 = vpop.f32.mrb[87].mxu1 }
0x3d09   :  { %v3764_v16 = vsel %vm382_vm12, %v3763_v53, 0.0 }
0x3d0a   :  { %3765 = vadd.xlane.f32.xlu1 %v3764_v16 }
0x3d97   :  { %v3766_v2 = vpop.xlane.xlu1 %3765 }
0x3d98   :  { %v3767_v22 = vmul.f32 0.03125, %v3766_v2 }
0x3d9a   :  { %v3768_v50 = vsub.f32 %v3763_v53, %v3767_v22 }
0x3d9c   :  { %v3769_v30 = vmul.f32 %v3768_v50, %v3768_v50 }
0x3d9e   :  { %v3770_v42 = vsel %vm382_vm12, %v3769_v30, 0.0 }
0x3d9f   :  { %3771 = vadd.xlane.f32.xlu1 %v3770_v42 }
0x3db0   :  { %3778 = vrot.lane.b32.xlu1 %v3761_v31, %s8069_s28 }
0x3e2c   :  { %v3772_v56 = vpop.xlane.xlu1 %3771 }
0x3e2d   :  { %v3773_v52 = vmul.f32 0.03125, %v3772_v56 }
0x3e2f   :  { %v3774_v15 = vadd.f32 1e-05, %v3773_v52 }
0x3e30   :  { %v3779_v21 = vpop.permute.xlu1 %3778 }
0x3e31   :  { %7986 = vrsqrt.f32 %v3774_v15 }
0x3e3b   :  { %v7987_v19 = vpop.eup %7986 }
0x3e3c   :  { %v3776_v45 = vmul.f32 %v7987_v19, %v3768_v50 }
0x3e3e   :  { %v3781_v27 = vmul.f32 %v3779_v21, %v3776_v45 }
0x3e40   :  { %v9246_v8 = vadd.f32 %v3783_v1, %v3781_v27 }
0x3e42   :  { %v3791_v18 = vpack.c.bf16 %v9246_v8, %v9246_v8 }
0x3e44   :  { %7457 = vmatmul.mubr.msk.bf16.vlgmr.msra.gmra.mrb[76].mxu0 %vm70_vm1, %v3791_v18 }
0x3f17   :  { %v3845_v39 = vpop.f32.mrb[76].mxu0 }
0x3f18   :  { %v3846_v32 = vadd.f32 %v3845_v39, %v9258_v26  ;;  %v7458_v31 = vpop.f32.mrb[77].mxu0 }
0x3f19   :  { %v3848_v40 = vpop.f32.mrb[78].mxu0 }
0x3f1a   :  { %v7459_v36 = vpop.f32.mrb[79].mxu0  ;;  %v3856_v20 = vrot.slane %v3846_v32, 6  ;;  %v3852_v37 = vrot.slane %v3846_v32, 3  ;;  %v3860_v35 = vrot.slane %v3846_v32, 1 }
0x3f1c   :  { %3857 = vrot.lane.b32.xlu1 %v3856_v20, %s8068_s27  ;;  %3853 = vrot.lane.b32.xlu0 %v3852_v37, %s8067_s26 }
0x3f20   :  { %3861 = vrot.lane.b32.xlu0 %v3860_v35, %s8066_s25 }
0x3f8e   :  { %v3854_v55 = vpop.permute.xlu0 %3853  ;;  %v3858_v63 = vpop.permute.xlu1 %3857 }
0x3f8f   :  { %v3865_v43 = vsel %vm129_vm2, %v3854_v55, %v3858_v63  ;;  %v3864_v17 = vsel %vm127_vm3, %v3846_v32, %v3854_v55 }
0x3f92   :  { %v3862_v34 = vpop.permute.xlu0 %3861 }
0x3f93   :  { %v3866_v41 = vsel %vm131_vm4, %v3865_v43, %v3862_v34  ;;  %v3868_v9 = vpack.c.bf16 %v3862_v34, %v3862_v34 }
0x3f94   :  { %v3867_v53 = vpack.c.bf16 %v3866_v41, %v3864_v17 }
0x3f95   :  { %3873 = vrot.lane.b32.xlu0 %v3868_v9, %s8069_s28 }
0x3f96   :  { %3871 = vrot.lane.b32.xlu1 %v3867_v53, %s8069_s28  ;;  %7464 = vmatprep.mubr.msk.bf16.mxu0 %vm141_vm5, %v3867_v53 }
0x4007   :  { %v3874_v2 = vpop.permute.xlu0 %3873 }
0x4008   :  { %v3872_v47 = vpop.permute.xlu1 %3871  ;;  %v3885_v22 = vsel %vm141_vm5, %v3874_v2, 0 }
0x4009   :  { %7741 = vmatprep.subr.msk.bf16.mxu0 %vm141_vm5, %v3872_v47  ;;  %v3882_v16 = vsel %vm141_vm5, %v3872_v47, 0 }
0x400a   :  { %7461 = vmatpush3.bf16.xpose.msra.mxu0 %v3882_v16 }
0x400b   :  { %7742 = vmatprep.subr.msk.bf16.mxu0 %vm141_vm5, %v3874_v2 }
0x4012   :  { %7463 = vmatpush3.bf16.xpose.msra.mxu0 %v3885_v22 }
0x4019   :  { %7465 = vmatmul.mubr.msk.bf16.vlgmr.msra.gmra.mrb[80].mxu0 %vm141_vm5, %v3868_v9 }
0x40ec   :  { %v7466_v50 = vpop.f32.mrb[80].mxu0 }
0x40ed   :  { %v3921_v30 = vpop.f32.mrb[81].mxu0  ;;  %v3930_v21 = vadd.f32 %v7466_v50, %v9125_v60 }
0x40ee   :  { %v3922_v42 = vadd.f32 %v9114_v54, %v3921_v30  ;;  %v7467_v56 = vpop.f32.mrb[82].mxu0 }
0x40ef   :  { %v3924_v52 = vpop.f32.mrb[83].mxu0  ;;  %v3941_v1 = vsel %vm209_vm7, %v3930_v21, -inf }
0x40f0   :  { %v3925_v15 = vadd.f32 %v9119_v59, %v3924_v52  ;;  %v3935_v19 = vsel %vm202_vm6, %v3922_v42, -inf }
0x40f1   :  { %3936 = vmax.xlane.f32.xlu1 %v3935_v19 }
0x40f2   :  { %v3938_v45 = vsel %vm202_vm6, %v3925_v15, -inf }
0x40f3   :  { %3939 = vmax.xlane.f32.xlu0 %v3938_v45 }
0x40f7   :  { %3942 = vmax.xlane.f32.xlu0 %v3941_v1 }
0x417e   :  { %v3937_v27 = vpop.xlane.xlu1 %3936 }
0x417f   :  { %v3944_v32 = vsub.f32 %v3922_v42, %v3937_v27 }
0x4180   :  { %v3940_v18 = vpop.xlane.xlu0 %3939 }
0x4181   :  { %v3945_v39 = vsub.f32 %v3925_v15, %v3940_v18  ;;  %v3947_v59 = vmul.f32 1.442695, %v3944_v32 }
0x4183   :  { %v3949_v54 = vmul.f32 1.442695, %v3945_v39 }
0x4184   :  { %v3943_v31 = vpop.xlane.xlu0 %3942 }
0x4185   :  { %7988 = vpow2.f32 %v3949_v54  ;;  %v3946_v40 = vsub.f32 %v3930_v21, %v3943_v31 }
0x4187   :  { %v3951_v36 = vmul.f32 1.442695, %v3946_v40 }
0x4189   :  { %7990 = vpow2.f32 %v3951_v36 }
0x418a   :  { %7992 = vpow2.f32 %v3947_v59 }
0x418f   :  { %v7989_v20 = vpop.eup %7988 }
0x4190   :  { %v3956_v60 = vsel %vm202_vm6, %v7989_v20, 0.0 }
0x4191   :  { %3957 = vadd.xlane.f32.xlu0 %v3956_v60 }
0x4193   :  { %v7991_v37 = vpop.eup %7990 }
0x4194   :  { %v3959_v35 = vsel %vm209_vm7, %v7991_v37, 0.0  ;;  %v7993_v55 = vpop.eup %7992 }
0x4195   :  { %3960 = vadd.xlane.f32.xlu1 %v3959_v35  ;;  %v3953_v63 = vsel %vm202_vm6, %v7993_v55, 0.0 }
0x4199   :  { %3954 = vadd.xlane.f32.xlu1 %v3953_v63 }
0x41a7   :  { %3970 = vrot.lane.b32.xlu0 %v3867_v53, %s8070_s16 }
0x41aa   :  { %3972 = vrot.lane.b32.xlu1 %v3868_v9, %s8070_s16 }
0x41ae   :  { %4055 = vrot.lane.b32.xlu1 %v9236_v44, %s8071_s17 }
0x421e   :  { %v3958_v43 = vpop.xlane.xlu0 %3957 }
0x4222   :  { %v3971_v34 = vpop.permute.xlu0 %3970  ;;  %v3961_v17 = vpop.xlane.xlu1 %3960 }
0x4223   :  { %7468 = vmatprep.subr.bf16.mxu0 %v3971_v34  ;;  %7994 = vrcp.f32 %v3961_v17 }
0x4224   :  { %7469 = vmatpush3.bf16.msra.mxu0 %v3971_v34  ;;  %7996 = vrcp.f32 %v3958_v43 }
0x4226   :  { %v3955_v41 = vpop.xlane.xlu1 %3954 }
0x4227   :  { %7998 = vrcp.f32 %v3955_v41 }
0x422a   :  { %v3973_v47 = vpop.permute.xlu1 %3972 }
0x422b   :  { %7743 = vmatprep.subr.msk.bf16.mxu0 %vm129_vm2, %v3973_v47  ;;  %v3982_v16 = vsel %vm129_vm2, %v3973_v47, 0 }
0x422c   :  { %7471 = vmatpush3.bf16.msra.mxu0 %v3982_v16 }
0x422d   :  { %7484 = vmatprep.subr.bf16.mxu0 %v8064_v0  ;;  %v7995_v9 = vpop.eup %7994 }
0x422e   :  { %v7997_v53 = vpop.eup %7996  ;;  %v9291_v2 = vmul.f32 %v7995_v9, %v7991_v37  ;;  %v4056_v56 = vpop.permute.xlu1 %4055 }
0x422f   :  { %v9295_v50 = vmul.f32 %v7997_v53, %v7989_v20  ;;  %7477 = vmatpush3.bf16.msra.mxu1 %v4056_v56  ;;  %v7845_v56 = vld [vmem:[%s10100_s7 + $0x68] sm:$0xff]  }
0x4230   :  { %v3969_v42 = vpack.c.bf16 %v9291_v2, %v9291_v2  ;;  %7478 = vmatprep.subr.bf16.mxu1 %v8064_v0 }
0x4231   :  { %v7999_v44 = vpop.eup %7998 }
0x4232   :  { %v9293_v22 = vmul.f32 %v7999_v44, %v7993_v55 }
0x4234   :  { %v3968_v30 = vpack.c.bf16 %v9295_v50, %v9293_v22 }
0x4236   :  { %7472 = vmatprep.mubr.msk.bf16.mxu0 %vm202_vm6, %v3968_v30  ;;  %v4125_v30 = vrot.slane %v9254_v29, %v8267_v49  ;;  %v7844_v29 = vld [vmem:[%s10100_s7 + $0x60] sm:$0xff]  }
0x4237   :  { %7473 = vmatmul.mubr.msk.bf16.vlgmr.msra.gmra.mrb[84].mxu0 %vm202_vm6, %v3969_v42  ;;  %v7840_v42 = vld [vmem:[%s10100_s7 + $0x50] sm:$0xff]  }
0x4238   :  { %7488 = vmatprep.mubr.msk.bf16.mxu0 %vm8065_vm0, %v8064_v0  ;;  %7485 = vmatpush3.bf16.msra.mxu0 %v7840_v42 }
0x4239   :  { %7486 = vmatprep.subr.bf16.mxu0 %v8064_v0 }
0x430a   :  { %v7474_v52 = vpop.f32.mrb[84].mxu0 }
0x430b   :  { %v4018_v15 = vpop.f32.mrb[85].mxu0  ;;  %v4046_v21 = vrot.slane %v7474_v52, 7  ;;  %v7846_v52 = vld [vmem:[%s10100_s7 + $0x70] sm:$0xff]  }
0x430c   :  { %v7475_v19 = vpop.f32.mrb[86].mxu0  ;;  %v4034_v1 = vrot.slane %v4018_v15, 5 }
0x430d   :  { %v4021_v45 = vpop.f32.mrb[87].mxu0  ;;  %v7848_v19 = vld [vmem:[%s10100_s7 + $0x80] sm:$0xff]  }
0x430e   :  { %v4035_v27 = vrot.slane %v4021_v45, 5  ;;  %v4040_v18 = vrot.slane %v4021_v45, 2  ;;  %v4045_v39 = vrot.slane %v4021_v45, 7 }
0x4310   :  { %4041 = vrot.lane.b32.xlu1 %v4040_v18, %s8072_s18  ;;  %v4036_v32 = vsel %vm303_vm8, %v4034_v1, %v4035_v27  ;;  %v4047_v54 = vsel %vm315_vm9, %v4045_v39, %v4046_v21  ;;  %v7849_v21 = vld [vmem:[%s10100_s7 + $0x88] sm:$0xff]  }
0x4311   :  { %4037 = vrot.lane.b32.xlu0 %v4036_v32, %s8073_s19 }
0x4314   :  { %4057 = vrot.lane.b32.xlu1 %v9243_v58, %s8071_s17 }
0x4315   :  { %4048 = vrot.lane.b32.xlu0 %v4047_v54, %s8074_s20 }
0x4319   :  { %4062 = vrot.lane.b32.xlu0 %v9258_v26, %s8071_s17 }
0x4382   :  { %v4042_v31 = vpop.permute.xlu1 %4041 }
0x4383   :  { %v4038_v40 = vpop.permute.xlu0 %4037 }
0x4384   :  { %v4051_v59 = vsel %vm141_vm5, %v4018_v15, %v4038_v40  ;;  %v7847_v15 = vld [vmem:[%s10100_s7 + $0x78] sm:$0xff]   ;;  %v9365_v40 = vld [vmem:[%s10096_s5 + $0x20] sm:$0xff]  }
0x4385   :  { %v4052_v60 = vsel %vm323_vm10, %v4051_v59, %v4042_v31 }
0x4386   :  { %v4058_v36 = vpop.permute.xlu1 %4057 }
0x4387   :  { %v4049_v20 = vpop.permute.xlu0 %4048  ;;  %7479 = vmatpush3.bf16.msra.mxu1 %v4058_v36  ;;  %v9374_v36 = vld [vmem:[%s10096_s5 + $0x28] sm:$0xff]  }
0x4388   :  { %v4053_v37 = vsel %vm325_vm11, %v4052_v60, %v4049_v20  ;;  %7492 = vmatprep.subr.bf16.mxu1 %v8064_v0  ;;  %v9381_v20 = vld [vmem:[%s10102_s1 + $0x8] sm:$0x1f] }
0x4389   :  { %v4054_v35 = vpack.c.bf16 %v4053_v37, %v4053_v37  ;;  %v4338_v60 = vpack.c.bf16 %v9381_v20, %v9381_v20  ;;  %v7850_v37 = vld [vmem:[%s10100_s7 + $0x90] sm:$0xff]  }
0x438b   :  { %7481 = vmatmul.mubr.msk.bf16.vlgmr.msra.gmra.mrb[88].mxu1 %vm70_vm1, %v4054_v35  ;;  %v4063_v58 = vpop.permute.xlu0 %4062  ;;  %v7851_v35 = vld [vmem:[%s10100_s7 + $0x98] sm:$0xff]  }
0x438c   :  { %7508 = vmatprep.mubr.msk.bf16.mxu1 %vm8065_vm0, %v8064_v0  ;;  %7493 = vmatpush3.bf16.msra.mxu1 %v7844_v29 }
0x438d   :  { %7494 = vmatprep.subr.bf16.mxu1 %v8064_v0 }
0x4390   :  { %7495 = vmatpush3.bf16.msra.mxu1 %v7845_v56 }
0x4391   :  { %7496 = vmatprep.subr.bf16.mxu1 %v8064_v0 }
0x4394   :  { %7497 = vmatpush3.bf16.msra.mxu1 %v7846_v52 }
0x4395   :  { %7498 = vmatprep.subr.bf16.mxu1 %v8064_v0 }
0x4398   :  { %7499 = vmatpush3.bf16.msra.mxu1 %v7847_v15 }
0x4399   :  { %7500 = vmatprep.subr.bf16.mxu1 %v8064_v0 }
0x439c   :  { %7501 = vmatpush3.bf16.msra.mxu1 %v7848_v19 }
0x439d   :  { %7502 = vmatprep.subr.bf16.mxu1 %v8064_v0 }
0x43a0   :  { %7503 = vmatpush3.bf16.msra.mxu1 %v7849_v21 }
0x43a1   :  { %7504 = vmatprep.subr.bf16.mxu1 %v8064_v0 }
0x43a4   :  { %7505 = vmatpush3.bf16.msra.mxu1 %v7850_v37 }
0x43a5   :  { %7506 = vmatprep.subr.bf16.mxu1 %v8064_v0 }
0x43a8   :  { %7507 = vmatpush3.bf16.msra.mxu1 %v7851_v35 }
0x43a9   :  { %7536 = vmatprep.subr.bf16.mxu1 %v8064_v0 }
0x445e   :  { %v4102_v26 = vpop.f32.mrb[88].mxu1 }
0x445f   :  { %v4103_v55 = vadd.f32 %v4102_v26, %v4063_v58  ;;  %v7482_v63 = vpop.f32.mrb[89].mxu1  ;;  %v9399_v58 = vld [vmem:[%s10101_s8 + $0x2] sm:$0x3] }
0x4460   :  { %v4105_v43 = vpop.f32.mrb[90].mxu1  ;;  %v4157_v26 = vrot.slane %v9399_v58, %v8167_v7 }
0x4461   :  { %v4108_v34 = vadd.f32 %v4103_v55, %v9246_v8  ;;  %v7483_v17 = vpop.f32.mrb[91].mxu1  ;;  %v7841_v8 = vld [vmem:[%s10100_s7 + $0x58] sm:$0xff]  }
0x4462   :  { %7487 = vmatpush3.bf16.msra.mxu0 %v7841_v8  ;;  %v9406_v17 = vld [vmem:[%s10098_s6 + $0x4] sm:$0x3] }
0x4463   :  { %v4109_v41 = vsel %vm382_vm12, %v4108_v34, 0.0  ;;  %7512 = vmatprep.subr.bf16.mxu0 %v8064_v0 }
0x4464   :  { %4110 = vadd.xlane.f32.xlu1 %v4109_v41 }
0x44f1   :  { %v4111_v47 = vpop.xlane.xlu1 %4110 }
0x44f2   :  { %v4112_v16 = vmul.f32 0.03125, %v4111_v47 }
0x44f4   :  { %v4113_v9 = vsub.f32 %v4108_v34, %v4112_v16 }
0x44f6   :  { %v4114_v53 = vmul.f32 %v4113_v9, %v4113_v9 }
0x44f8   :  { %v4115_v44 = vsel %vm382_vm12, %v4114_v53, 0.0 }
0x44f9   :  { %4116 = vadd.xlane.f32.xlu0 %v4115_v44 }
0x450f   :  { %4128 = vrot.lane.b32.xlu0 %v4125_v30, %s8069_s28 }
0x4586   :  { %v4117_v45 = vpop.xlane.xlu0 %4116 }
0x4587   :  { %v4118_v1 = vmul.f32 0.03125, %v4117_v45 }
0x4589   :  { %v4119_v27 = vadd.f32 1e-05, %v4118_v1 }
0x458a   :  { %v4129_v32 = vpop.permute.xlu0 %4128 }
0x458b   :  { %8000 = vrsqrt.f32 %v4119_v27 }
0x4595   :  { %v8001_v18 = vpop.eup %8000 }
0x4596   :  { %v4121_v39 = vmul.f32 %v8001_v18, %v4113_v9  ;;  %v9410_v9 = vrot.slane %v9406_v17, %v8167_v7 }
0x4598   :  { %v4126_v54 = vmul.f32 %v4125_v30, %v4121_v39 }
0x459a   :  { %v9360_v31 = vadd.f32 %v4129_v32, %v4126_v54 }
0x459c   :  { %v4153_v59 = vpack.c.bf16 %v9360_v31, %v9360_v31 }
0x459e   :  { %7489 = vmatmul.mubr.msk.bf16.vlgmr.msra.gmra.mrb[88].mxu0 %vm70_vm1, %v4153_v59 }
0x459f   :  { %7513 = vmatpush3.bf16.msra.mxu0 %v9365_v40  ;;  %7516 = vmatprep.mubr.msk.bf16.mxu0 %vm8065_vm0, %v8064_v0 }
0x45a0   :  { %7514 = vmatprep.subr.bf16.mxu0 %v8064_v0 }
0x45a3   :  { %7515 = vmatpush3.bf16.msra.mxu0 %v9374_v36 }
0x45a6   :  { %7517 = vmatmul.mubr.msk.bf16.vlgmr.msra.gmra.mrb[92].mxu0 %vm70_vm1, %v4338_v60 }
0x4671   :  { %v4207_v55 = vpop.f32.mrb[88].mxu0 }
0x4672   :  { %v4208_v63 = vadd.f32 %v4207_v55, %v4157_v26  ;;  %v7490_v43 = vpop.f32.mrb[89].mxu0 }
0x4673   :  { %v4210_v34 = vpop.f32.mrb[90].mxu0 }
0x4674   :  { %v4213_v41 = vmax.f32 %v4208_v63, 0.0  ;;  %v7491_v47 = vpop.f32.mrb[91].mxu0  ;;  %v9434_v63 = vld [vmem:[%s10103_s3 + $0x18] sm:$0xff] }
0x4676   :  { %v4214_v16 = vpack.c.bf16 %v4213_v41, %v4213_v41  ;;  %v9439_v41 = vld [vmem:[%s10103_s3 + $0x20] sm:$0xff] }
0x4678   :  { %7509 = vmatmul.mubr.bf16.vlgmr.msra.gmra.mrb[92].mxu1 %v4214_v16 }
0x4679   :  { %v4392_v53 = vpop.f32.mrb[92].mxu0  ;;  %7540 = vmatprep.mubr.msk.bf16.mxu1 %vm8065_vm0, %v8064_v0 }
0x467a   :  { %v4393_v44 = vadd.f32 %v4392_v53, %v9410_v9  ;;  %v7518_v30 = vpop.f32.mrb[93].mxu0  ;;  %v9445_v53 = vld [vmem:[%s10103_s3 + $0x28] sm:$0xf]  ;;  %s8079_s3 = smov 100  }
0x467b   :  { %v4395_v42 = vpop.f32.mrb[94].mxu0 }
0x467c   :  { %v7519_v8 = vpop.f32.mrb[95].mxu0  ;;  %v4407_v29 = vrot.slane %v4393_v44, 1  ;;  %v4399_v56 = vrot.slane %v4393_v44, 3  ;;  %v4403_v52 = vrot.slane %v4393_v44, 6 }
0x467e   :  { %4408 = vrot.lane.b32.xlu0 %v4407_v29, %s8066_s25  ;;  %4400 = vrot.lane.b32.xlu1 %v4399_v56, %s8067_s26 }
0x4682   :  { %4404 = vrot.lane.b32.xlu1 %v4403_v52, %s8068_s27 }
0x46f0   :  { %v4409_v15 = vpop.permute.xlu0 %4408  ;;  %v4401_v19 = vpop.permute.xlu1 %4400 }
0x46f1   :  { %v4415_v21 = vpack.c.bf16 %v4409_v15, %v4409_v15  ;;  %v4411_v27 = vsel %vm127_vm3, %v4393_v44, %v4401_v19 }
0x46f3   :  { %4420 = vrot.lane.b32.xlu0 %v4415_v21, %s8069_s28 }
0x46f4   :  { %v4405_v45 = vpop.permute.xlu1 %4404 }
0x46f5   :  { %v4412_v1 = vsel %vm129_vm2, %v4401_v19, %v4405_v45 }
0x46f6   :  { %v4413_v18 = vsel %vm131_vm4, %v4412_v1, %v4409_v15 }
0x46f7   :  { %v4414_v39 = vpack.c.bf16 %v4413_v18, %v4411_v27 }
0x46f9   :  { %4418 = vrot.lane.b32.xlu1 %v4414_v39, %s8069_s28  ;;  %7524 = vmatprep.mubr.msk.bf16.mxu0 %vm141_vm5, %v4414_v39 }
0x474b   :  { %v9424_v32 = vpop.f32.mrb[92].mxu1 }
0x474c   :  { %v7510_v54 = vpop.f32.mrb[93].mxu1 }
0x474d   :  { %v4300_v59 = vpop.f32.mrb[94].mxu1 }
0x474e   :  { %v7511_v60 = vpop.f32.mrb[95].mxu1 }
0x4765   :  { %v4421_v26 = vpop.permute.xlu0 %4420 }
0x4766   :  { %v4432_v55 = vsel %vm141_vm5, %v4421_v26, 0 }
0x476b   :  { %v4419_v37 = vpop.permute.xlu1 %4418 }
0x476c   :  { %7744 = vmatprep.subr.msk.bf16.mxu0 %vm141_vm5, %v4419_v37  ;;  %v4429_v35 = vsel %vm141_vm5, %v4419_v37, 0 }
0x476d   :  { %7521 = vmatpush3.bf16.xpose.msra.mxu0 %v4429_v35 }
0x476e   :  { %7745 = vmatprep.subr.msk.bf16.mxu0 %vm141_vm5, %v4421_v26 }
0x4775   :  { %7523 = vmatpush3.bf16.xpose.msra.mxu0 %v4432_v55 }
0x477c   :  { %7525 = vmatmul.mubr.msk.bf16.vlgmr.msra.gmra.mrb[96].mxu0 %vm141_vm5, %v4415_v21 }
0x484f   :  { %v7526_v43 = vpop.f32.mrb[96].mxu0 }
0x4850   :  { %v4468_v34 = vpop.f32.mrb[97].mxu0  ;;  %v4477_v8 = vadd.f32 %v7526_v43, %v9445_v53 }
0x4851   :  { %v4469_v47 = vadd.f32 %v9434_v63, %v4468_v34  ;;  %v7527_v16 = vpop.f32.mrb[98].mxu0 }
0x4852   :  { %v4471_v44 = vpop.f32.mrb[99].mxu0  ;;  %v4488_v56 = vsel %vm209_vm7, %v4477_v8, -inf }
0x4853   :  { %v4472_v30 = vadd.f32 %v9439_v41, %v4471_v44  ;;  %v4482_v42 = vsel %vm202_vm6, %v4469_v47, -inf }
0x4854   :  { %4483 = vmax.xlane.f32.xlu1 %v4482_v42 }
0x4855   :  { %v4485_v29 = vsel %vm202_vm6, %v4472_v30, -inf }
0x4856   :  { %4486 = vmax.xlane.f32.xlu0 %v4485_v29 }
0x485a   :  { %4489 = vmax.xlane.f32.xlu0 %v4488_v56 }
0x48e1   :  { %v4484_v52 = vpop.xlane.xlu1 %4483 }
0x48e2   :  { %v4491_v45 = vsub.f32 %v4469_v47, %v4484_v52 }
0x48e3   :  { %v4487_v15 = vpop.xlane.xlu0 %4486 }
0x48e4   :  { %v4492_v19 = vsub.f32 %v4472_v30, %v4487_v15  ;;  %v4494_v54 = vmul.f32 1.442695, %v4491_v45 }
0x48e6   :  { %v4496_v1 = vmul.f32 1.442695, %v4492_v19 }
0x48e7   :  { %v4490_v27 = vpop.xlane.xlu0 %4489 }
0x48e8   :  { %8002 = vpow2.f32 %v4496_v1  ;;  %v4493_v18 = vsub.f32 %v4477_v8, %v4490_v27 }
0x48ea   :  { %v4498_v59 = vmul.f32 1.442695, %v4493_v18 }
0x48ec   :  { %8004 = vpow2.f32 %v4498_v59 }
0x48ed   :  { %8006 = vpow2.f32 %v4494_v54 }
0x48f2   :  { %v8003_v60 = vpop.eup %8002 }
0x48f3   :  { %v4503_v37 = vsel %vm202_vm6, %v8003_v60, 0.0 }
0x48f4   :  { %4504 = vadd.xlane.f32.xlu0 %v4503_v37 }
0x48f6   :  { %v8005_v35 = vpop.eup %8004 }
0x48f7   :  { %v4506_v26 = vsel %vm209_vm7, %v8005_v35, 0.0  ;;  %v8007_v55 = vpop.eup %8006 }
0x48f8   :  { %4507 = vadd.xlane.f32.xlu1 %v4506_v26  ;;  %v4500_v43 = vsel %vm202_vm6, %v8007_v55, 0.0 }
0x48fc   :  { %4501 = vadd.xlane.f32.xlu1 %v4500_v43  ;;  %v4306_v43 = vrot.slane %v9399_v58, %v8267_v49 }
0x490a   :  { %4517 = vrot.lane.b32.xlu0 %v4414_v39, %s8070_s16 }
0x490d   :  { %4519 = vrot.lane.b32.xlu1 %v4415_v21, %s8070_s16 }
0x4911   :  { %4602 = vrot.lane.b32.xlu1 %v9365_v40, %s8071_s17 }
0x4981   :  { %v4505_v34 = vpop.xlane.xlu0 %4504 }
0x4985   :  { %v4518_v47 = vpop.permute.xlu0 %4517  ;;  %v4508_v16 = vpop.xlane.xlu1 %4507 }
0x4986   :  { %7528 = vmatprep.subr.bf16.mxu0 %v4518_v47  ;;  %8008 = vrcp.f32 %v4508_v16 }
0x4987   :  { %7529 = vmatpush3.bf16.msra.mxu0 %v4518_v47  ;;  %8010 = vrcp.f32 %v4505_v34  ;;  %v4307_v34 = vadd.f32 %v4306_v43, %v9424_v32  ;;  %v9503_v32 = vld [vmem:[%s10096_s5 + $0x30] sm:$0xff]  }
0x4989   :  { %v4502_v44 = vpop.xlane.xlu1 %4501  ;;  %v4308_v47 = vadd.f32 %v4307_v34, %v9360_v31 }
0x498a   :  { %8012 = vrcp.f32 %v4502_v44 }
0x498b   :  { %v4309_v16 = vsel %vm382_vm12, %v4308_v47, 0.0 }
0x498d   :  { %v4520_v30 = vpop.permute.xlu1 %4519 }
0x498e   :  { %7746 = vmatprep.subr.msk.bf16.mxu0 %vm129_vm2, %v4520_v30  ;;  %v4529_v42 = vsel %vm129_vm2, %v4520_v30, 0 }
0x498f   :  { %7531 = vmatpush3.bf16.msra.mxu0 %v4529_v42 }
0x4990   :  { %7544 = vmatprep.subr.bf16.mxu0 %v8064_v0  ;;  %v8009_v21 = vpop.eup %8008 }
0x4991   :  { %v8011_v39 = vpop.eup %8010  ;;  %v9462_v8 = vmul.f32 %v8009_v21, %v8005_v35  ;;  %v4603_v19 = vpop.permute.xlu1 %4602 }
0x4992   :  { %v9466_v56 = vmul.f32 %v8011_v39, %v8003_v60  ;;  %7537 = vmatpush3.bf16.msra.mxu1 %v4603_v19  ;;  %v9510_v39 = vld [vmem:[%s10096_s5 + $0x38] sm:$0xff]  }
0x4993   :  { %v4516_v15 = vpack.c.bf16 %v9462_v8, %v9462_v8  ;;  %7538 = vmatprep.subr.bf16.mxu1 %v8064_v0 }
0x4994   :  { %v8013_v40 = vpop.eup %8012 }
0x4995   :  { %v9464_v29 = vmul.f32 %v8013_v40, %v8007_v55 }
0x4997   :  { %v4515_v52 = vpack.c.bf16 %v9466_v56, %v9464_v29 }
0x4999   :  { %7532 = vmatprep.mubr.msk.bf16.mxu0 %vm202_vm6, %v4515_v52 }
0x499a   :  { %7533 = vmatmul.mubr.msk.bf16.vlgmr.msra.gmra.mrb[100].mxu0 %vm202_vm6, %v4516_v15 }
0x499b   :  { %7548 = vmatprep.mubr.msk.bf16.mxu0 %vm8065_vm0, %v8064_v0  ;;  %7545 = vmatpush3.bf16.msra.mxu0 %v9503_v32 }
0x499c   :  { %7546 = vmatprep.subr.bf16.mxu0 %v8064_v0 }
0x499f   :  { %7547 = vmatpush3.bf16.msra.mxu0 %v9510_v39 }
0x4a6d   :  { %v7534_v45 = vpop.f32.mrb[100].mxu0 }
0x4a6e   :  { %v4565_v1 = vpop.f32.mrb[101].mxu0  ;;  %v4593_v18 = vrot.slane %v7534_v45, 7 }
0x4a6f   :  { %v7535_v27 = vpop.f32.mrb[102].mxu0  ;;  %v4581_v59 = vrot.slane %v4565_v1, 5 }
0x4a70   :  { %v4568_v54 = vpop.f32.mrb[103].mxu0 }
0x4a71   :  { %v4582_v60 = vrot.slane %v4568_v54, 5  ;;  %v4587_v37 = vrot.slane %v4568_v54, 2  ;;  %v4592_v35 = vrot.slane %v4568_v54, 7 }
0x4a73   :  { %4588 = vrot.lane.b32.xlu1 %v4587_v37, %s8072_s18  ;;  %v4583_v26 = vsel %vm303_vm8, %v4581_v59, %v4582_v60  ;;  %v4594_v55 = vsel %vm315_vm9, %v4592_v35, %v4593_v18 }
0x4a74   :  { %4584 = vrot.lane.b32.xlu0 %v4583_v26, %s8073_s19  ;;  %v9523_v26 = vld [vmem:[%s10098_s6 + $0x6] sm:$0x3] }
0x4a77   :  { %4604 = vrot.lane.b32.xlu1 %v9374_v36, %s8071_s17 }
0x4a78   :  { %4595 = vrot.lane.b32.xlu0 %v4594_v55, %s8074_s20 }
0x4a7c   :  { %4609 = vrot.lane.b32.xlu0 %v9410_v9, %s8071_s17 }
0x4a9b   :  { %4310 = vadd.xlane.f32.xlu1 %v4309_v16 }
0x4aac   :  { %4323 = vrot.lane.b32.xlu1 %v4306_v43, %s8069_s28 }
0x4ab0   :  { %4327 = vrot.lane.b32.xlu1 %v4306_v43, %s8070_s16 }
0x4ae5   :  { %v4589_v36 = vpop.permute.xlu1 %4588 }
0x4ae6   :  { %v4585_v44 = vpop.permute.xlu0 %4584 }
0x4ae7   :  { %v4598_v30 = vsel %vm141_vm5, %v4565_v1, %v4585_v44 }
0x4ae8   :  { %v4599_v21 = vsel %vm323_vm10, %v4598_v30, %v4589_v36 }
0x4ae9   :  { %v4605_v42 = vpop.permute.xlu1 %4604 }
0x4aea   :  { %v4596_v9 = vpop.permute.xlu0 %4595  ;;  %7539 = vmatpush3.bf16.msra.mxu1 %v4605_v42 }
0x4aeb   :  { %v4600_v58 = vsel %vm325_vm11, %v4599_v21, %v4596_v9  ;;  %7552 = vmatprep.subr.bf16.mxu1 %v8064_v0 }
0x4aec   :  { %v4601_v31 = vpack.c.bf16 %v4600_v58, %v4600_v58 }
0x4aee   :  { %7541 = vmatmul.mubr.msk.bf16.vlgmr.msra.gmra.mrb[96].mxu1 %vm70_vm1, %v4601_v31  ;;  %v4610_v15 = vpop.permute.xlu0 %4609 }
0x4aef   :  { %7556 = vmatprep.mubr.msk.bf16.mxu1 %vm8065_vm0, %v8064_v0 }
0x4b28   :  { %v4311_v40 = vpop.xlane.xlu1 %4310 }
0x4b29   :  { %v4312_v52 = vmul.f32 0.03125, %v4311_v40  ;;  %v4672_v40 = vrot.slane %v9406_v17, %v8267_v49 }
0x4b2b   :  { %v4313_v45 = vsub.f32 %v4308_v47, %v4312_v52 }
0x4b2c   :  { %v4324_v21 = vpop.permute.xlu1 %4323 }
0x4b2d   :  { %v4314_v37 = vmul.f32 %v4313_v45, %v4313_v45 }
0x4b2f   :  { %v4315_v35 = vsel %vm382_vm12, %v4314_v37, 0.0 }
0x4b30   :  { %v4328_v52 = vpop.permute.xlu1 %4327 }
0x4bc1   :  { %v4649_v19 = vpop.f32.mrb[96].mxu1 }
0x4bc2   :  { %v4650_v1 = vadd.f32 %v4649_v19, %v4610_v15  ;;  %v7542_v27 = vpop.f32.mrb[97].mxu1 }
0x4bc3   :  { %v4652_v18 = vpop.f32.mrb[98].mxu1 }
0x4bc4   :  { %v4655_v54 = vadd.f32 %v9381_v20, %v4650_v1  ;;  %v7543_v59 = vpop.f32.mrb[99].mxu1  ;;  %v9527_v20 = vrot.slane %v9523_v26, %v8167_v7 }
0x4bc6   :  { %v4656_v60 = vsel %vm382_vm12, %v4655_v54, 0.0 }
0x4bc7   :  { %4657 = vadd.xlane.f32.xlu0 %v4656_v60 }
0x4bcb   :  { %4316 = vadd.xlane.f32.xlu0 %v4315_v35 }
0x4be1   :  { %4745 = vrot.lane.b32.xlu0 %v9503_v32, %s8069_s28 }
0x4be5   :  { %4747 = vrot.lane.b32.xlu0 %v9510_v39, %s8069_s28 }
0x4be9   :  { %4752 = vrot.lane.b32.xlu0 %v9527_v20, %s8069_s28 }
0x4c54   :  { %v4658_v55 = vpop.xlane.xlu0 %4657 }
0x4c55   :  { %v4659_v43 = vmul.f32 0.03125, %v4658_v55 }
0x4c57   :  { %v4660_v34 = vsub.f32 %v4655_v54, %v4659_v43 }
0x4c58   :  { %v4317_v47 = vpop.xlane.xlu0 %4316 }
0x4c59   :  { %v4318_v16 = vmul.f32 0.03125, %v4317_v47  ;;  %v4661_v36 = vmul.f32 %v4660_v34, %v4660_v34 }
0x4c5b   :  { %v4319_v44 = vadd.f32 1e-05, %v4318_v16  ;;  %v4662_v30 = vsel %vm382_vm12, %v4661_v36, 0.0 }
0x4c5c   :  { %4663 = vadd.xlane.f32.xlu1 %v4662_v30  ;;  %v4746_v42 = vpop.permute.xlu0 %4745 }
0x4c5d   :  { %8014 = vrsqrt.f32 %v4319_v44  ;;  %7553 = vmatpush3.bf16.msra.mxu1 %v4746_v42 }
0x4c5e   :  { %7554 = vmatprep.subr.bf16.mxu1 %v8064_v0 }
0x4c60   :  { %v4748_v9 = vpop.permute.xlu0 %4747 }
0x4c61   :  { %7555 = vmatpush3.bf16.msra.mxu1 %v4748_v9 }
0x4c64   :  { %v4753_v55 = vpop.permute.xlu0 %4752 }
0x4c67   :  { %v8015_v58 = vpop.eup %8014 }
0x4c68   :  { %v4321_v31 = vmul.f32 %v8015_v58, %v4313_v45 }
0x4c6a   :  { %v4326_v15 = vmul.f32 %v4324_v21, %v4321_v31 }
0x4c6c   :  { %v4330_v19 = vadd.f32 %v4328_v52, %v4326_v15 }
0x4c6d   :  { %4675 = vrot.lane.b32.xlu1 %v4672_v40, %s8069_s28 }
0x4c6e   :  { %v9536_v1 = vpack.c.bf16 %v4330_v19, %v4330_v19 }
0x4c70   :  { %7557 = vmatmul.mubr.msk.bf16.vlgmr.msra.gmra.mrb[100].mxu1 %vm70_vm1, %v9536_v1 }
0x4ce9   :  { %v4664_v27 = vpop.xlane.xlu1 %4663 }
0x4cea   :  { %v4665_v18 = vmul.f32 0.03125, %v4664_v27 }
0x4cec   :  { %v4666_v54 = vadd.f32 1e-05, %v4665_v18 }
0x4ced   :  { %v4676_v45 = vpop.permute.xlu1 %4675 }
0x4cee   :  { %8016 = vrsqrt.f32 %v4666_v54 }
0x4cf8   :  { %v8017_v59 = vpop.eup %8016 }
0x4cf9   :  { %v4668_v60 = vmul.f32 %v8017_v59, %v4660_v34 }
0x4cfb   :  { %v4673_v37 = vmul.f32 %v4672_v40, %v4668_v60 }
0x4cfd   :  { %v9540_v35 = vadd.f32 %v4676_v45, %v4673_v37 }
0x4cff   :  { %v4684_v17 = vpack.c.bf16 %v9540_v35, %v9540_v35 }
0x4d01   :  { %7549 = vmatmul.mubr.msk.bf16.vlgmr.msra.gmra.mrb[104].mxu0 %vm70_vm1, %v4684_v17 }
0x4d43   :  { %v4792_v43 = vpop.f32.mrb[100].mxu1 }
0x4d44   :  { %v4793_v47 = vadd.f32 %v4792_v43, %v4753_v55  ;;  %v7558_v16 = vpop.f32.mrb[101].mxu1 }
0x4d45   :  { %v4795_v36 = vpop.f32.mrb[102].mxu1 }
0x4d46   :  { %v7559_v44 = vpop.f32.mrb[103].mxu1  ;;  %v4821_v30 = vrot.slane %v4793_v47, 6  ;;  %v4817_v42 = vrot.slane %v4793_v47, 3  ;;  %v4825_v34 = vrot.slane %v4793_v47, 1 }
0x4d48   :  { %4822 = vrot.lane.b32.xlu0 %v4821_v30, %s8068_s27  ;;  %4818 = vrot.lane.b32.xlu1 %v4817_v42, %s8067_s26 }
0x4d4c   :  { %4826 = vrot.lane.b32.xlu1 %v4825_v34, %s8066_s25 }
0x4dba   :  { %v4819_v9 = vpop.permute.xlu1 %4818  ;;  %v4823_v21 = vpop.permute.xlu0 %4822 }
0x4dbb   :  { %v4830_v58 = vsel %vm129_vm2, %v4819_v9, %v4823_v21  ;;  %v4829_v40 = vsel %vm127_vm3, %v4793_v47, %v4819_v9  ;;  %v9578_v21 = vld [vmem:[%s10104_s4 + $0x18] sm:$0xff] }
0x4dbe   :  { %v4827_v31 = vpop.permute.xlu1 %4826 }
0x4dbf   :  { %v4831_v52 = vsel %vm131_vm4, %v4830_v58, %v4827_v31  ;;  %v9553_v19 = vpack.c.bf16 %v4827_v31, %v4827_v31 }
0x4dc0   :  { %v9551_v15 = vpack.c.bf16 %v4831_v52, %v4829_v40  ;;  %v9583_v40 = vld [vmem:[%s10104_s4 + $0x20] sm:$0xff] }
0x4dc1   :  { %v4844_v18 = vsel %vm141_vm5, %v9553_v19, 0 }
0x4dc2   :  { %7747 = vmatprep.subr.msk.bf16.mxu0 %vm141_vm5, %v9551_v15  ;;  %v4841_v27 = vsel %vm141_vm5, %v9551_v15, 0 }
0x4dc3   :  { %7561 = vmatpush3.bf16.xpose.msra.mxu0 %v4841_v27 }
0x4dc4   :  { %7748 = vmatprep.subr.msk.bf16.mxu0 %vm141_vm5, %v9553_v19 }
0x4dcb   :  { %7563 = vmatpush3.bf16.xpose.msra.mxu0 %v4844_v18  ;;  %v9589_v18 = vld [vmem:[%s10104_s4 + $0x28] sm:$0xf] }
0x4dcc   :  { %7584 = vmatprep.subr.bf16.mxu0 %v8064_v0 }
0x4dd4   :  { %v4738_v54 = vpop.f32.mrb[104].mxu0 }
0x4dd5   :  { %v4739_v59 = vadd.f32 %v4738_v54, %v9527_v20  ;;  %v7550_v60 = vpop.f32.mrb[105].mxu0 }
0x4dd6   :  { %v4741_v45 = vpop.f32.mrb[106].mxu0 }
0x4dd7   :  { %v7551_v37 = vpop.f32.mrb[107].mxu0  ;;  %v4799_v17 = vrot.slane %v4739_v59, 3  ;;  %v4803_v55 = vrot.slane %v4739_v59, 6  ;;  %v4807_v43 = vrot.slane %v4739_v59, 1 }
0x4dd9   :  { %4800 = vrot.lane.b32.xlu0 %v4799_v17, %s8067_s26  ;;  %4804 = vrot.lane.b32.xlu1 %v4803_v55, %s8068_s27 }
0x4ddd   :  { %4808 = vrot.lane.b32.xlu0 %v4807_v43, %s8066_s25 }
0x4e4b   :  { %v4801_v47 = vpop.permute.xlu0 %4800  ;;  %v4805_v16 = vpop.permute.xlu1 %4804 }
0x4e4c   :  { %v4812_v36 = vsel %vm129_vm2, %v4801_v47, %v4805_v16  ;;  %v4811_v30 = vsel %vm127_vm3, %v4739_v59, %v4801_v47 }
0x4e4f   :  { %v4809_v44 = vpop.permute.xlu0 %4808 }
0x4e50   :  { %v4813_v42 = vsel %vm131_vm4, %v4812_v36, %v4809_v44  ;;  %v4815_v9 = vpack.c.bf16 %v4809_v44, %v4809_v44 }
0x4e51   :  { %v4814_v34 = vpack.c.bf16 %v4813_v42, %v4811_v30 }
0x4e53   :  { %7564 = vmatprep.mubr.msk.bf16.mxu0 %vm141_vm5, %v4814_v34 }
0x4e54   :  { %7565 = vmatmul.mubr.msk.bf16.vlgmr.msra.gmra.mrb[108].mxu0 %vm141_vm5, %v4815_v9 }
0x4e55   :  { %7588 = vmatprep.mubr.msk.bf16.mxu0 %vm8065_vm0, %v8064_v0 }
0x4f27   :  { %v7566_v58 = vpop.f32.mrb[108].mxu0 }
0x4f28   :  { %v4880_v31 = vpop.f32.mrb[109].mxu0  ;;  %v4889_v45 = vadd.f32 %v7566_v58, %v9589_v18 }
0x4f29   :  { %v4881_v52 = vadd.f32 %v9578_v21, %v4880_v31  ;;  %v7567_v27 = vpop.f32.mrb[110].mxu0 }
0x4f2a   :  { %v4883_v54 = vpop.f32.mrb[111].mxu0  ;;  %v4900_v17 = vsel %vm209_vm7, %v4889_v45, -inf }
0x4f2b   :  { %v4884_v59 = vadd.f32 %v9583_v40, %v4883_v54  ;;  %v4894_v60 = vsel %vm202_vm6, %v4881_v52, -inf }
0x4f2c   :  { %4895 = vmax.xlane.f32.xlu1 %v4894_v60 }
0x4f2d   :  { %v4897_v37 = vsel %vm202_vm6, %v4884_v59, -inf }
0x4f2e   :  { %4898 = vmax.xlane.f32.xlu0 %v4897_v37 }
0x4f32   :  { %4901 = vmax.xlane.f32.xlu0 %v4900_v17 }
0x4fb9   :  { %v4896_v55 = vpop.xlane.xlu1 %4895 }
0x4fba   :  { %v4903_v16 = vsub.f32 %v4881_v52, %v4896_v55 }
0x4fbb   :  { %v4899_v43 = vpop.xlane.xlu0 %4898 }
0x4fbc   :  { %v4904_v47 = vsub.f32 %v4884_v59, %v4899_v43  ;;  %v4906_v42 = vmul.f32 1.442695, %v4903_v16 }
0x4fbe   :  { %v4908_v36 = vmul.f32 1.442695, %v4904_v47 }
0x4fbf   :  { %v4902_v44 = vpop.xlane.xlu0 %4901 }
0x4fc0   :  { %8018 = vpow2.f32 %v4908_v36  ;;  %v4905_v30 = vsub.f32 %v4889_v45, %v4902_v44 }
0x4fc2   :  { %v4910_v34 = vmul.f32 1.442695, %v4905_v30 }
0x4fc4   :  { %8020 = vpow2.f32 %v4910_v34 }
0x4fc5   :  { %8022 = vpow2.f32 %v4906_v42 }
0x4fca   :  { %v8019_v9 = vpop.eup %8018 }
0x4fcb   :  { %v4915_v58 = vsel %vm202_vm6, %v8019_v9, 0.0 }
0x4fcc   :  { %4916 = vadd.xlane.f32.xlu0 %v4915_v58 }
0x4fce   :  { %v8021_v31 = vpop.eup %8020 }
0x4fcf   :  { %v4918_v27 = vsel %vm209_vm7, %v8021_v31, 0.0  ;;  %v8023_v54 = vpop.eup %8022 }
0x4fd0   :  { %4919 = vadd.xlane.f32.xlu1 %v4918_v27  ;;  %v4912_v59 = vsel %vm202_vm6, %v8023_v54, 0.0 }
0x4fd4   :  { %4913 = vadd.xlane.f32.xlu1 %v4912_v59 }
0x4fe2   :  { %4931 = vrot.lane.b32.xlu0 %v9551_v15, %s8069_s28 }
0x4fe5   :  { %4933 = vrot.lane.b32.xlu1 %v9553_v19, %s8069_s28 }
0x4fe9   :  { %5016 = vrot.lane.b32.xlu1 %v9503_v32, %s8071_s17 }
0x5059   :  { %v4917_v52 = vpop.xlane.xlu0 %4916 }
0x505d   :  { %v4932_v60 = vpop.permute.xlu0 %4931  ;;  %v4920_v45 = vpop.xlane.xlu1 %4919 }
0x505e   :  { %7568 = vmatprep.subr.bf16.mxu1 %v4932_v60  ;;  %8024 = vrcp.f32 %v4920_v45 }
0x505f   :  { %7569 = vmatpush3.bf16.msra.mxu1 %v4932_v60  ;;  %8026 = vrcp.f32 %v4917_v52 }
0x5061   :  { %v4914_v37 = vpop.xlane.xlu1 %4913 }
0x5062   :  { %8028 = vrcp.f32 %v4914_v37 }
0x5065   :  { %v4934_v17 = vpop.permute.xlu1 %4933 }
0x5066   :  { %v4943_v55 = vsel %vm129_vm2, %v4934_v17, 0  ;;  %7749 = vmatprep.subr.msk.bf16.mxu1 %vm129_vm2, %v4934_v17 }
0x5067   :  { %7571 = vmatpush3.bf16.msra.mxu1 %v4943_v55 }
0x5068   :  { %7576 = vmatprep.subr.bf16.mxu1 %v8064_v0  ;;  %v8025_v15 = vpop.eup %8024 }
0x5069   :  { %v8027_v19 = vpop.eup %8026  ;;  %v9608_v43 = vmul.f32 %v8025_v15, %v8021_v31  ;;  %v5017_v30 = vpop.permute.xlu1 %5016 }
0x506a   :  { %v9612_v16 = vmul.f32 %v8027_v19, %v8019_v9 }
0x506b   :  { %v4928_v44 = vpack.c.bf16 %v9608_v43, %v9608_v43 }
0x506c   :  { %v8029_v32 = vpop.eup %8028 }
0x506d   :  { %v9610_v47 = vmul.f32 %v8029_v32, %v8023_v54 }
0x506f   :  { %v4927_v36 = vpack.c.bf16 %v9612_v16, %v9610_v47 }
0x5071   :  { %7572 = vmatprep.mubr.msk.bf16.mxu1 %vm202_vm6, %v4927_v36 }
0x5072   :  { %7573 = vmatmul.mubr.msk.bf16.vlgmr.msra.gmra.mrb[104].mxu1 %vm202_vm6, %v4928_v44 }
0x5073   :  { %7580 = vmatprep.mubr.msk.bf16.mxu1 %vm8065_vm0, %v8064_v0  ;;  %7577 = vmatpush3.bf16.msra.mxu1 %v5017_v30 }
0x5074   :  { %7578 = vmatprep.subr.bf16.mxu1 %v8064_v0 }
0x5145   :  { %v7574_v42 = vpop.f32.mrb[104].mxu1 }
0x5146   :  { %v4979_v34 = vpop.f32.mrb[105].mxu1  ;;  %v5007_v58 = vrot.slane %v7574_v42, 7 }
0x5147   :  { %v7575_v9 = vpop.f32.mrb[106].mxu1  ;;  %v4995_v27 = vrot.slane %v4979_v34, 5 }
0x5148   :  { %v4982_v31 = vpop.f32.mrb[107].mxu1 }
0x5149   :  { %v4996_v54 = vrot.slane %v4982_v31, 5  ;;  %v5001_v59 = vrot.slane %v4982_v31, 2  ;;  %v5006_v52 = vrot.slane %v4982_v31, 7 }
0x514b   :  { %5002 = vrot.lane.b32.xlu1 %v5001_v59, %s8072_s18  ;;  %v4997_v60 = vsel %vm303_vm8, %v4995_v27, %v4996_v54  ;;  %v5008_v45 = vsel %vm315_vm9, %v5006_v52, %v5007_v58 }
0x514c   :  { %4998 = vrot.lane.b32.xlu0 %v4997_v60, %s8073_s19 }
0x514f   :  { %5018 = vrot.lane.b32.xlu1 %v9510_v39, %s8071_s17 }
0x5150   :  { %5009 = vrot.lane.b32.xlu0 %v5008_v45, %s8074_s20  ;;  %v5085_v45 = vrot.slane %v9523_v26, %v8267_v49  ;;  %v7856_v26 = vld [vmem:[%s10100_s7 + $0xb0] sm:$0xff]  }
0x5154   :  { %5022 = vrot.lane.b32.xlu0 %v9527_v20, %s8071_s17 }
0x51bd   :  { %v5003_v37 = vpop.permute.xlu1 %5002 }
0x51be   :  { %v4999_v17 = vpop.permute.xlu0 %4998 }
0x51bf   :  { %v5012_v55 = vsel %vm141_vm5, %v4979_v34, %v4999_v17  ;;  %v7857_v17 = vld [vmem:[%s10100_s7 + $0xb8] sm:$0xff]  }
0x51c0   :  { %v5013_v19 = vsel %vm323_vm10, %v5012_v55, %v5003_v37  ;;  %v7854_v37 = vld [vmem:[%s10100_s7 + $0xa0] sm:$0xff]  }
0x51c1   :  { %v5019_v15 = vpop.permute.xlu1 %5018  ;;  %7585 = vmatpush3.bf16.msra.mxu0 %v7854_v37  ;;  %v7858_v55 = vld [vmem:[%s10100_s7 + $0xc0] sm:$0xff]  }
0x51c2   :  { %v5010_v32 = vpop.permute.xlu0 %5009  ;;  %7579 = vmatpush3.bf16.msra.mxu1 %v5019_v15  ;;  %7586 = vmatprep.subr.bf16.mxu0 %v8064_v0  ;;  %v7859_v15 = vld [vmem:[%s10100_s7 + $0xc8] sm:$0xff]  }
0x51c3   :  { %v5014_v36 = vsel %vm325_vm11, %v5013_v19, %v5010_v32  ;;  %7592 = vmatprep.subr.bf16.mxu1 %v8064_v0  ;;  %v7860_v19 = vld [vmem:[%s10100_s7 + $0xd0] sm:$0xff]   ;;  %v7861_v32 = vld [vmem:[%s10100_s7 + $0xd8] sm:$0xff]  }
0x51c4   :  { %v5015_v44 = vpack.c.bf16 %v5014_v36, %v5014_v36 }
0x51c6   :  { %7581 = vmatmul.mubr.msk.bf16.vlgmr.msra.gmra.mrb[108].mxu1 %vm70_vm1, %v5015_v44  ;;  %v5023_v39 = vpop.permute.xlu0 %5022 }
0x51c7   :  { %7608 = vmatprep.mubr.msk.bf16.mxu1 %vm8065_vm0, %v8064_v0  ;;  %7593 = vmatpush3.bf16.msra.mxu1 %v7856_v26 }
0x51c8   :  { %7594 = vmatprep.subr.bf16.mxu1 %v8064_v0 }
0x51cb   :  { %7595 = vmatpush3.bf16.msra.mxu1 %v7857_v17 }
0x51cc   :  { %7596 = vmatprep.subr.bf16.mxu1 %v8064_v0 }
0x51cf   :  { %7597 = vmatpush3.bf16.msra.mxu1 %v7858_v55 }
0x51d0   :  { %7598 = vmatprep.subr.bf16.mxu1 %v8064_v0 }
0x51d3   :  { %7599 = vmatpush3.bf16.msra.mxu1 %v7859_v15 }
0x51d4   :  { %7600 = vmatprep.subr.bf16.mxu1 %v8064_v0 }
0x51d7   :  { %7601 = vmatpush3.bf16.msra.mxu1 %v7860_v19 }
0x51d8   :  { %7602 = vmatprep.subr.bf16.mxu1 %v8064_v0 }
0x51db   :  { %7603 = vmatpush3.bf16.msra.mxu1 %v7861_v32 }
0x51dc   :  { %7604 = vmatprep.subr.bf16.mxu1 %v8064_v0 }
0x5299   :  { %v5062_v20 = vpop.f32.mrb[108].mxu1 }
0x529a   :  { %v5063_v30 = vadd.f32 %v5062_v20, %v5023_v39  ;;  %v7582_v42 = vpop.f32.mrb[109].mxu1 }
0x529b   :  { %v5065_v34 = vpop.f32.mrb[110].mxu1 }
0x529c   :  { %v5068_v9 = vadd.f32 %v5063_v30, %v9540_v35  ;;  %v7583_v58 = vpop.f32.mrb[111].mxu1  ;;  %v7855_v35 = vld [vmem:[%s10100_s7 + $0xa8] sm:$0xff]  }
0x529d   :  { %7587 = vmatpush3.bf16.msra.mxu0 %v7855_v35 }
0x529e   :  { %v5069_v31 = vsel %vm382_vm12, %v5068_v9, 0.0  ;;  %7612 = vmatprep.subr.bf16.mxu0 %v8064_v0 }
0x529f   :  { %5070 = vadd.xlane.f32.xlu1 %v5069_v31  ;;  %v7862_v31 = vld [vmem:[%s10100_s7 + $0xe0] sm:$0xff]  }
0x52a0   :  { %7605 = vmatpush3.bf16.msra.mxu1 %v7862_v31 }
0x52a1   :  { %7606 = vmatprep.subr.bf16.mxu1 %v8064_v0 }
0x532c   :  { %v5071_v27 = vpop.xlane.xlu1 %5070 }
0x532d   :  { %v5072_v54 = vmul.f32 0.03125, %v5071_v27  ;;  %v7863_v27 = vld [vmem:[%s10100_s7 + $0xe8] sm:$0xff]  }
0x532e   :  { %7607 = vmatpush3.bf16.msra.mxu1 %v7863_v27  ;;  %v9702_v27 = vld [vmem:[%s10096_s5 + $0x40] sm:$0xff]  }
0x532f   :  { %v5073_v59 = vsub.f32 %v5068_v9, %v5072_v54  ;;  %v6704_v54 = vld [vmem:[%s10101_s8 + $0x4] sm:$0x3]  ;;  %7636 = vmatprep.subr.bf16.mxu1 %v8064_v0 }
0x5331   :  { %v5074_v52 = vmul.f32 %v5073_v59, %v5073_v59 }
0x5333   :  { %v5075_v60 = vsel %vm382_vm12, %v5074_v52, 0.0  ;;  %v5117_v52 = vrot.slane %v6704_v54, %v8167_v7 }
0x5334   :  { %5076 = vadd.xlane.f32.xlu0 %v5075_v60 }
0x534a   :  { %5088 = vrot.lane.b32.xlu0 %v5085_v45, %s8069_s28 }
0x53c1   :  { %v5077_v36 = vpop.xlane.xlu0 %5076 }
0x53c2   :  { %v5078_v44 = vmul.f32 0.03125, %v5077_v36 }
0x53c4   :  { %v5079_v39 = vadd.f32 1e-05, %v5078_v44 }
0x53c5   :  { %v5089_v42 = vpop.permute.xlu0 %5088 }
0x53c6   :  { %8030 = vrsqrt.f32 %v5079_v39 }
0x53d0   :  { %v8031_v20 = vpop.eup %8030 }
0x53d1   :  { %v5081_v30 = vmul.f32 %v8031_v20, %v5073_v59  ;;  %v5266_v59 = vrot.slane %v6704_v54, %v8267_v49 }
0x53d3   :  { %v5086_v34 = vmul.f32 %v5085_v45, %v5081_v30  ;;  %5287 = vrot.lane.b32.xlu0 %v5266_v59, %s8070_s16 }
0x53d5   :  { %v5091_v9 = vadd.f32 %v5089_v42, %v5086_v34 }
0x53d7   :  { %v5113_v58 = vpack.c.bf16 %v5091_v9, %v5091_v9 }
0x53d9   :  { %7589 = vmatmul.mubr.msk.bf16.vlgmr.msra.gmra.mrb[112].mxu0 %vm70_vm1, %v5113_v58 }
0x53da   :  { %7616 = vmatprep.mubr.msk.bf16.mxu0 %vm8065_vm0, %v8064_v0  ;;  %7613 = vmatpush3.bf16.msra.mxu0 %v9702_v27 }
0x53db   :  { %7614 = vmatprep.subr.bf16.mxu0 %v8064_v0 }
0x54ac   :  { %v5167_v60 = vpop.f32.mrb[112].mxu0 }
0x54ad   :  { %v5168_v45 = vadd.f32 %v5167_v60, %v5117_v52  ;;  %v7590_v37 = vpop.f32.mrb[113].mxu0 }
0x54ae   :  { %v5170_v35 = vpop.f32.mrb[114].mxu0 }
0x54af   :  { %v5173_v26 = vmax.f32 %v5168_v45, 0.0  ;;  %v7591_v17 = vpop.f32.mrb[115].mxu0  ;;  %v5288_v35 = vpop.permute.xlu0 %5287 }
0x54b1   :  { %v5174_v55 = vpack.c.bf16 %v5173_v26, %v5173_v26 }
0x54b3   :  { %7609 = vmatmul.mubr.bf16.vlgmr.msra.gmra.mrb[112].mxu1 %v5174_v55 }
0x54b4   :  { %7640 = vmatprep.mubr.msk.bf16.mxu1 %vm8065_vm0, %v8064_v0 }
0x5586   :  { %v5257_v15 = vpop.f32.mrb[112].mxu1 }
0x5587   :  { %v5267_v19 = vadd.f32 %v5266_v59, %v5257_v15  ;;  %v7610_v32 = vpop.f32.mrb[113].mxu1  ;;  %v9720_v15 = vld [vmem:[%s10098_s6 + $0x8] sm:$0x3] }
0x5588   :  { %v5260_v36 = vpop.f32.mrb[114].mxu1 }
0x5589   :  { %v5268_v44 = vadd.f32 %v5267_v19, %v5091_v9  ;;  %v7611_v39 = vpop.f32.mrb[115].mxu1  ;;  %v9709_v9 = vld [vmem:[%s10096_s5 + $0x48] sm:$0xff]   ;;  %v9724_v19 = vrot.slane %v9720_v15, %v8167_v7 }
0x558a   :  { %7615 = vmatpush3.bf16.msra.mxu0 %v9709_v9 }
0x558b   :  { %v5269_v20 = vsel %vm382_vm12, %v5268_v44, 0.0 }
0x558c   :  { %5270 = vadd.xlane.f32.xlu1 %v5269_v20 }
0x5619   :  { %v5271_v30 = vpop.xlane.xlu1 %5270 }
0x561a   :  { %v5272_v42 = vmul.f32 0.03125, %v5271_v30 }
0x561c   :  { %v5273_v34 = vsub.f32 %v5268_v44, %v5272_v42 }
0x561e   :  { %v5274_v58 = vmul.f32 %v5273_v34, %v5273_v34 }
0x5620   :  { %v5275_v31 = vsel %vm382_vm12, %v5274_v58, 0.0 }
0x5621   :  { %5276 = vadd.xlane.f32.xlu1 %v5275_v31 }
0x5632   :  { %5283 = vrot.lane.b32.xlu1 %v5266_v59, %s8069_s28 }
0x56ae   :  { %v5277_v54 = vpop.xlane.xlu1 %5276 }
0x56af   :  { %v5278_v52 = vmul.f32 0.03125, %v5277_v54 }
0x56b1   :  { %v5279_v60 = vadd.f32 1e-05, %v5278_v52 }
0x56b2   :  { %v5284_v45 = vpop.permute.xlu1 %5283 }
0x56b3   :  { %8032 = vrsqrt.f32 %v5279_v60 }
0x56bd   :  { %v8033_v59 = vpop.eup %8032 }
0x56be   :  { %v5281_v37 = vmul.f32 %v8033_v59, %v5273_v34 }
0x56c0   :  { %v5286_v26 = vmul.f32 %v5284_v45, %v5281_v37 }
0x56c2   :  { %v9712_v17 = vadd.f32 %v5288_v35, %v5286_v26 }
0x56c4   :  { %v5296_v55 = vpack.c.bf16 %v9712_v17, %v9712_v17 }
0x56c6   :  { %7617 = vmatmul.mubr.msk.bf16.vlgmr.msra.gmra.mrb[116].mxu0 %vm70_vm1, %v5296_v55 }
0x5799   :  { %v5350_v32 = vpop.f32.mrb[116].mxu0 }
0x579a   :  { %v5351_v36 = vadd.f32 %v5350_v32, %v9724_v19  ;;  %v7618_v44 = vpop.f32.mrb[117].mxu0 }
0x579b   :  { %v5353_v39 = vpop.f32.mrb[118].mxu0 }
0x579c   :  { %v7619_v20 = vpop.f32.mrb[119].mxu0  ;;  %v5361_v30 = vrot.slane %v5351_v36, 6  ;;  %v5357_v42 = vrot.slane %v5351_v36, 3  ;;  %v5365_v34 = vrot.slane %v5351_v36, 1 }
0x579e   :  { %5362 = vrot.lane.b32.xlu1 %v5361_v30, %s8068_s27  ;;  %5358 = vrot.lane.b32.xlu0 %v5357_v42, %s8067_s26 }
0x57a2   :  { %5366 = vrot.lane.b32.xlu0 %v5365_v34, %s8066_s25 }
0x5810   :  { %v5359_v58 = vpop.permute.xlu0 %5358  ;;  %v5363_v31 = vpop.permute.xlu1 %5362 }
0x5811   :  { %v5370_v54 = vsel %vm129_vm2, %v5359_v58, %v5363_v31  ;;  %v5369_v60 = vsel %vm127_vm3, %v5351_v36, %v5359_v58 }
0x5814   :  { %v5367_v52 = vpop.permute.xlu0 %5366 }
0x5815   :  { %v5371_v59 = vsel %vm131_vm4, %v5370_v54, %v5367_v52  ;;  %v5373_v45 = vpack.c.bf16 %v5367_v52, %v5367_v52 }
0x5816   :  { %v5372_v37 = vpack.c.bf16 %v5371_v59, %v5369_v60 }
0x5817   :  { %5378 = vrot.lane.b32.xlu0 %v5373_v45, %s8069_s28 }
0x5818   :  { %5376 = vrot.lane.b32.xlu1 %v5372_v37, %s8069_s28  ;;  %7624 = vmatprep.mubr.msk.bf16.mxu0 %vm141_vm5, %v5372_v37 }
0x5889   :  { %v5379_v55 = vpop.permute.xlu0 %5378 }
0x588a   :  { %v5377_v35 = vpop.permute.xlu1 %5376  ;;  %v5390_v32 = vsel %vm141_vm5, %v5379_v55, 0 }
0x588b   :  { %v5387_v26 = vsel %vm141_vm5, %v5377_v35, 0  ;;  %7750 = vmatprep.subr.msk.bf16.mxu0 %vm141_vm5, %v5377_v35 }
0x588c   :  { %7621 = vmatpush3.bf16.xpose.msra.mxu0 %v5387_v26 }
0x588d   :  { %7751 = vmatprep.subr.msk.bf16.mxu0 %vm141_vm5, %v5379_v55 }
0x5894   :  { %7623 = vmatpush3.bf16.xpose.msra.mxu0 %v5390_v32 }
0x589b   :  { %7625 = vmatmul.mubr.msk.bf16.vlgmr.msra.gmra.mrb[120].mxu0 %vm141_vm5, %v5373_v45 }
0x596e   :  { %v7626_v36 = vpop.f32.mrb[120].mxu0 }
0x596f   :  { %v5426_v44 = vpop.f32.mrb[121].mxu0  ;;  %v5435_v58 = vadd.f32 %v7626_v36, %v9445_v53 }
0x5970   :  { %v5427_v39 = vadd.f32 %v9434_v63, %v5426_v44  ;;  %v7627_v20 = vpop.f32.mrb[122].mxu0 }
0x5971   :  { %v5429_v30 = vpop.f32.mrb[123].mxu0  ;;  %v5446_v54 = vsel %vm209_vm7, %v5435_v58, -inf }
0x5972   :  { %v5430_v42 = vadd.f32 %v9439_v41, %v5429_v30  ;;  %v5440_v34 = vsel %vm202_vm6, %v5427_v39, -inf }
0x5973   :  { %5441 = vmax.xlane.f32.xlu1 %v5440_v34 }
0x5974   :  { %v5443_v31 = vsel %vm202_vm6, %v5430_v42, -inf }
0x5975   :  { %5444 = vmax.xlane.f32.xlu0 %v5443_v31 }
0x5979   :  { %5447 = vmax.xlane.f32.xlu0 %v5446_v54 }
0x5a00   :  { %v5442_v52 = vpop.xlane.xlu1 %5441 }
0x5a01   :  { %v5449_v35 = vsub.f32 %v5427_v39, %v5442_v52 }
0x5a02   :  { %v5445_v60 = vpop.xlane.xlu0 %5444 }
0x5a03   :  { %v5450_v59 = vsub.f32 %v5430_v42, %v5445_v60  ;;  %v5452_v41 = vmul.f32 1.442695, %v5449_v35 }
0x5a05   :  { %v5454_v63 = vmul.f32 1.442695, %v5450_v59 }
0x5a06   :  { %v5448_v26 = vpop.xlane.xlu0 %5447 }
0x5a07   :  { %8034 = vpow2.f32 %v5454_v63  ;;  %v5451_v55 = vsub.f32 %v5435_v58, %v5448_v26 }
0x5a09   :  { %v5456_v32 = vmul.f32 1.442695, %v5451_v55 }
0x5a0b   :  { %8036 = vpow2.f32 %v5456_v32 }
0x5a0c   :  { %8038 = vpow2.f32 %v5452_v41 }
0x5a11   :  { %v8035_v44 = vpop.eup %8034 }
0x5a12   :  { %v5461_v53 = vsel %vm202_vm6, %v8035_v44, 0.0 }
0x5a13   :  { %5462 = vadd.xlane.f32.xlu0 %v5461_v53 }
0x5a15   :  { %v8037_v36 = vpop.eup %8036 }
0x5a16   :  { %v5464_v20 = vsel %vm209_vm7, %v8037_v36, 0.0  ;;  %v8039_v30 = vpop.eup %8038 }
0x5a17   :  { %5465 = vadd.xlane.f32.xlu1 %v5464_v20  ;;  %v5458_v42 = vsel %vm202_vm6, %v8039_v30, 0.0 }
0x5a1b   :  { %5459 = vadd.xlane.f32.xlu1 %v5458_v42 }
0x5a29   :  { %5475 = vrot.lane.b32.xlu0 %v5372_v37, %s8070_s16 }
0x5a2c   :  { %5477 = vrot.lane.b32.xlu1 %v5373_v45, %s8070_s16 }
0x5a30   :  { %5560 = vrot.lane.b32.xlu1 %v9702_v27, %s8071_s17 }
0x5aa0   :  { %v5463_v39 = vpop.xlane.xlu0 %5462 }
0x5aa4   :  { %v5476_v34 = vpop.permute.xlu0 %5475  ;;  %v5466_v58 = vpop.xlane.xlu1 %5465 }
0x5aa5   :  { %7628 = vmatprep.subr.bf16.mxu0 %v5476_v34  ;;  %8040 = vrcp.f32 %v5466_v58 }
0x5aa6   :  { %7629 = vmatpush3.bf16.msra.mxu0 %v5476_v34  ;;  %8042 = vrcp.f32 %v5463_v39 }
0x5aa8   :  { %v5460_v31 = vpop.xlane.xlu1 %5459 }
0x5aa9   :  { %8044 = vrcp.f32 %v5460_v31 }
0x5aac   :  { %v5478_v54 = vpop.permute.xlu1 %5477 }
0x5aad   :  { %v5487_v52 = vsel %vm129_vm2, %v5478_v54, 0  ;;  %7752 = vmatprep.subr.msk.bf16.mxu0 %vm129_vm2, %v5478_v54 }
0x5aae   :  { %7631 = vmatpush3.bf16.msra.mxu0 %v5487_v52 }
0x5aaf   :  { %7644 = vmatprep.subr.bf16.mxu0 %v8064_v0  ;;  %v8041_v45 = vpop.eup %8040 }
0x5ab0   :  { %v8043_v37 = vpop.eup %8042  ;;  %v9757_v60 = vmul.f32 %v8041_v45, %v8037_v36  ;;  %v5561_v55 = vpop.permute.xlu1 %5560 }
0x5ab1   :  { %v9761_v35 = vmul.f32 %v8043_v37, %v8035_v44  ;;  %7637 = vmatpush3.bf16.msra.mxu1 %v5561_v55 }
0x5ab2   :  { %v5474_v26 = vpack.c.bf16 %v9757_v60, %v9757_v60  ;;  %7638 = vmatprep.subr.bf16.mxu1 %v8064_v0 }
0x5ab3   :  { %v8045_v27 = vpop.eup %8044 }
0x5ab4   :  { %v9759_v59 = vmul.f32 %v8045_v27, %v8039_v30 }
0x5ab6   :  { %v5473_v63 = vpack.c.bf16 %v9761_v35, %v9759_v59 }
0x5ab8   :  { %7632 = vmatprep.mubr.msk.bf16.mxu0 %vm202_vm6, %v5473_v63 }
0x5ab9   :  { %7633 = vmatmul.mubr.msk.bf16.vlgmr.msra.gmra.mrb[124].mxu0 %vm202_vm6, %v5474_v26 }
0x5aba   :  { %7648 = vmatprep.mubr.msk.bf16.mxu0 %vm8065_vm0, %v8064_v0 }
0x5b8c   :  { %v7634_v41 = vpop.f32.mrb[124].mxu0 }
0x5b8d   :  { %v5523_v32 = vpop.f32.mrb[125].mxu0  ;;  %v5551_v53 = vrot.slane %v7634_v41, 7 }
0x5b8e   :  { %v7635_v44 = vpop.f32.mrb[126].mxu0  ;;  %v5539_v20 = vrot.slane %v5523_v32, 5 }
0x5b8f   :  { %v5526_v36 = vpop.f32.mrb[127].mxu0 }
0x5b90   :  { %v5540_v30 = vrot.slane %v5526_v36, 5  ;;  %v5545_v42 = vrot.slane %v5526_v36, 2  ;;  %v5550_v39 = vrot.slane %v5526_v36, 7 }
0x5b92   :  { %5546 = vrot.lane.b32.xlu1 %v5545_v42, %s8072_s18  ;;  %v5541_v34 = vsel %vm303_vm8, %v5539_v20, %v5540_v30  ;;  %v5552_v58 = vsel %vm315_vm9, %v5550_v39, %v5551_v53  ;;  %v9793_v20 = vld [vmem:[%s10096_s5 + $0x50] sm:$0xff]   ;;  %v9800_v30 = vld [vmem:[%s10096_s5 + $0x58] sm:$0xff]  }
0x5b93   :  { %5542 = vrot.lane.b32.xlu0 %v5541_v34, %s8073_s19  ;;  %7645 = vmatpush3.bf16.msra.mxu0 %v9793_v20 }
0x5b94   :  { %7646 = vmatprep.subr.bf16.mxu0 %v8064_v0 }
0x5b96   :  { %5562 = vrot.lane.b32.xlu1 %v9709_v9, %s8071_s17 }
0x5b97   :  { %5553 = vrot.lane.b32.xlu0 %v5552_v58, %s8074_s20  ;;  %7647 = vmatpush3.bf16.msra.mxu0 %v9800_v30 }
0x5b9b   :  { %5567 = vrot.lane.b32.xlu0 %v9724_v19, %s8071_s17 }
0x5c04   :  { %v5547_v31 = vpop.permute.xlu1 %5546 }
0x5c05   :  { %v5543_v54 = vpop.permute.xlu0 %5542 }
0x5c06   :  { %v5556_v52 = vsel %vm141_vm5, %v5523_v32, %v5543_v54 }
0x5c07   :  { %v5557_v27 = vsel %vm323_vm10, %v5556_v52, %v5547_v31 }
0x5c08   :  { %v5563_v45 = vpop.permute.xlu1 %5562 }
0x5c09   :  { %v5554_v37 = vpop.permute.xlu0 %5553  ;;  %7639 = vmatpush3.bf16.msra.mxu1 %v5563_v45 }
0x5c0a   :  { %v5558_v63 = vsel %vm325_vm11, %v5557_v27, %v5554_v37  ;;  %7652 = vmatprep.subr.bf16.mxu1 %v8064_v0 }
0x5c0b   :  { %v5559_v26 = vpack.c.bf16 %v5558_v63, %v5558_v63 }
0x5c0d   :  { %7641 = vmatmul.mubr.msk.bf16.vlgmr.msra.gmra.mrb[116].mxu1 %vm70_vm1, %v5559_v26  ;;  %v5568_v9 = vpop.permute.xlu0 %5567 }
0x5c0e   :  { %7656 = vmatprep.mubr.msk.bf16.mxu1 %vm8065_vm0, %v8064_v0 }
0x5ce0   :  { %v5607_v19 = vpop.f32.mrb[116].mxu1 }
0x5ce1   :  { %v5608_v55 = vadd.f32 %v5607_v19, %v5568_v9  ;;  %v7642_v41 = vpop.f32.mrb[117].mxu1 }
0x5ce2   :  { %v5610_v32 = vpop.f32.mrb[118].mxu1 }
0x5ce3   :  { %v5613_v44 = vadd.f32 %v5608_v55, %v9712_v17  ;;  %v7643_v53 = vpop.f32.mrb[119].mxu1  ;;  %v5630_v17 = vrot.slane %v9720_v15, %v8267_v49  ;;  %v9814_v15 = vld [vmem:[%s10098_s6 + $0xa] sm:$0x3] }
0x5ce4   :  { %v9818_v54 = vrot.slane %v9814_v15, %v8167_v7 }
0x5ce5   :  { %v5614_v36 = vsel %vm382_vm12, %v5613_v44, 0.0 }
0x5ce6   :  { %5615 = vadd.xlane.f32.xlu1 %v5614_v36 }
0x5cf7   :  { %5704 = vrot.lane.b32.xlu1 %v9800_v30, %s8069_s28 }
0x5cfb   :  { %5633 = vrot.lane.b32.xlu1 %v5630_v17, %s8069_s28 }
0x5d73   :  { %v5616_v42 = vpop.xlane.xlu1 %5615 }
0x5d74   :  { %v5617_v39 = vmul.f32 0.03125, %v5616_v42 }
0x5d76   :  { %v5618_v34 = vsub.f32 %v5613_v44, %v5617_v39 }
0x5d77   :  { %v5705_v63 = vpop.permute.xlu1 %5704 }
0x5d78   :  { %v5619_v58 = vmul.f32 %v5618_v34, %v5618_v34 }
0x5d7a   :  { %v5620_v31 = vsel %vm382_vm12, %v5619_v58, 0.0 }
0x5d7b   :  { %5621 = vadd.xlane.f32.xlu0 %v5620_v31  ;;  %v5634_v19 = vpop.permute.xlu1 %5633 }
0x5d91   :  { %5702 = vrot.lane.b32.xlu0 %v9793_v20, %s8069_s28 }
0x5d95   :  { %5709 = vrot.lane.b32.xlu0 %v9818_v54, %s8069_s28 }
0x5e08   :  { %v5622_v52 = vpop.xlane.xlu0 %5621 }
0x5e09   :  { %v5623_v45 = vmul.f32 0.03125, %v5622_v52 }
0x5e0b   :  { %v5624_v37 = vadd.f32 1e-05, %v5623_v45 }
0x5e0c   :  { %v5703_v27 = vpop.permute.xlu0 %5702 }
0x5e0d   :  { %8046 = vrsqrt.f32 %v5624_v37  ;;  %7653 = vmatpush3.bf16.msra.mxu1 %v5703_v27 }
0x5e0e   :  { %7654 = vmatprep.subr.bf16.mxu1 %v8064_v0 }
0x5e10   :  { %v5710_v44 = vpop.permute.xlu0 %5709 }
0x5e11   :  { %7655 = vmatpush3.bf16.msra.mxu1 %v5705_v63 }
0x5e14   :  { %7657 = vmatmul.mubr.msk.bf16.vlgmr.msra.gmra.mrb[120].mxu1 %vm70_vm1, %v9536_v1 }
0x5e17   :  { %v8047_v26 = vpop.eup %8046 }
0x5e18   :  { %v5626_v9 = vmul.f32 %v8047_v26, %v5618_v34 }
0x5e1a   :  { %v5631_v55 = vmul.f32 %v5630_v17, %v5626_v9 }
0x5e1c   :  { %v9825_v41 = vadd.f32 %v5634_v19, %v5631_v55 }
0x5e1e   :  { %v5642_v32 = vpack.c.bf16 %v9825_v41, %v9825_v41 }
0x5e20   :  { %7649 = vmatmul.mubr.msk.bf16.vlgmr.msra.gmra.mrb[128].mxu0 %vm70_vm1, %v5642_v32 }
0x5ee7   :  { %v5746_v53 = vpop.f32.mrb[120].mxu1 }
0x5ee8   :  { %v5747_v36 = vadd.f32 %v5746_v53, %v5710_v44  ;;  %v7658_v42 = vpop.f32.mrb[121].mxu1 }
0x5ee9   :  { %v5749_v39 = vpop.f32.mrb[122].mxu1 }
0x5eea   :  { %v7659_v58 = vpop.f32.mrb[123].mxu1  ;;  %v5775_v31 = vrot.slane %v5747_v36, 6  ;;  %v5771_v52 = vrot.slane %v5747_v36, 3  ;;  %v5779_v1 = vrot.slane %v5747_v36, 1 }
0x5eec   :  { %5776 = vrot.lane.b32.xlu0 %v5775_v31, %s8068_s27  ;;  %5772 = vrot.lane.b32.xlu1 %v5771_v52, %s8067_s26 }
0x5ef0   :  { %5780 = vrot.lane.b32.xlu1 %v5779_v1, %s8066_s25 }
0x5ef3   :  { %v5696_v17 = vpop.f32.mrb[128].mxu0 }
0x5ef4   :  { %v5697_v34 = vadd.f32 %v5696_v17, %v9818_v54  ;;  %v7650_v45 = vpop.f32.mrb[129].mxu0 }
0x5ef5   :  { %v5699_v37 = vpop.f32.mrb[130].mxu0 }
0x5ef6   :  { %v7651_v27 = vpop.f32.mrb[131].mxu0  ;;  %v5753_v63 = vrot.slane %v5697_v34, 3  ;;  %v5757_v26 = vrot.slane %v5697_v34, 6  ;;  %v5761_v9 = vrot.slane %v5697_v34, 1 }
0x5ef8   :  { %5754 = vrot.lane.b32.xlu0 %v5753_v63, %s8067_s26  ;;  %5758 = vrot.lane.b32.xlu1 %v5757_v26, %s8068_s27 }
0x5efc   :  { %5762 = vrot.lane.b32.xlu0 %v5761_v9, %s8066_s25 }
0x5f5e   :  { %v5773_v19 = vpop.permute.xlu1 %5772  ;;  %v5777_v55 = vpop.permute.xlu0 %5776 }
0x5f5f   :  { %v5784_v32 = vsel %vm129_vm2, %v5773_v19, %v5777_v55  ;;  %v5783_v53 = vsel %vm127_vm3, %v5747_v36, %v5773_v19 }
0x5f62   :  { %v5781_v44 = vpop.permute.xlu1 %5780 }
0x5f63   :  { %v5785_v42 = vsel %vm131_vm4, %v5784_v32, %v5781_v44  ;;  %v5787_v58 = vpack.c.bf16 %v5781_v44, %v5781_v44 }
0x5f64   :  { %v5786_v39 = vpack.c.bf16 %v5785_v42, %v5783_v53 }
0x5f65   :  { %v5798_v37 = vsel %vm141_vm5, %v5787_v58, 0 }
0x5f66   :  { %7753 = vmatprep.subr.msk.bf16.mxu0 %vm141_vm5, %v5786_v39  ;;  %v5795_v31 = vsel %vm141_vm5, %v5786_v39, 0 }
0x5f67   :  { %7661 = vmatpush3.bf16.xpose.msra.mxu0 %v5795_v31 }
0x5f68   :  { %7754 = vmatprep.subr.msk.bf16.mxu0 %vm141_vm5, %v5787_v58 }
0x5f6a   :  { %v5755_v52 = vpop.permute.xlu0 %5754  ;;  %v5759_v1 = vpop.permute.xlu1 %5758 }
0x5f6b   :  { %v5766_v17 = vsel %vm129_vm2, %v5755_v52, %v5759_v1  ;;  %v5765_v36 = vsel %vm127_vm3, %v5697_v34, %v5755_v52 }
0x5f6e   :  { %v5763_v45 = vpop.permute.xlu0 %5762 }
0x5f6f   :  { %v5767_v27 = vsel %vm131_vm4, %v5766_v17, %v5763_v45  ;;  %7663 = vmatpush3.bf16.xpose.msra.mxu0 %v5798_v37  ;;  %v5769_v26 = vpack.c.bf16 %v5763_v45, %v5763_v45 }
0x5f70   :  { %v5768_v63 = vpack.c.bf16 %v5767_v27, %v5765_v36  ;;  %7684 = vmatprep.subr.bf16.mxu0 %v8064_v0 }
0x5f72   :  { %7664 = vmatprep.mubr.msk.bf16.mxu0 %vm141_vm5, %v5768_v63 }
0x5f76   :  { %7665 = vmatmul.mubr.msk.bf16.vlgmr.msra.gmra.mrb[132].mxu0 %vm141_vm5, %v5769_v26 }
0x5f77   :  { %7688 = vmatprep.mubr.msk.bf16.mxu0 %vm8065_vm0, %v8064_v0 }
0x6049   :  { %v7666_v9 = vpop.f32.mrb[132].mxu0 }
0x604a   :  { %v5834_v19 = vpop.f32.mrb[133].mxu0  ;;  %v5843_v42 = vadd.f32 %v7666_v9, %v9589_v18 }
0x604b   :  { %v5835_v55 = vadd.f32 %v9578_v21, %v5834_v19  ;;  %v7667_v32 = vpop.f32.mrb[134].mxu0 }
0x604c   :  { %v5837_v34 = vpop.f32.mrb[135].mxu0  ;;  %v5854_v52 = vsel %vm209_vm7, %v5843_v42, -inf }
0x604d   :  { %v5838_v44 = vadd.f32 %v9583_v40, %v5837_v34  ;;  %v5848_v53 = vsel %vm202_vm6, %v5835_v55, -inf }
0x604e   :  { %5849 = vmax.xlane.f32.xlu1 %v5848_v53 }
0x604f   :  { %v5851_v31 = vsel %vm202_vm6, %v5838_v44, -inf }
0x6050   :  { %5852 = vmax.xlane.f32.xlu0 %v5851_v31 }
0x6054   :  { %5855 = vmax.xlane.f32.xlu0 %v5854_v52 }
0x60db   :  { %v5850_v1 = vpop.xlane.xlu1 %5849 }
0x60dc   :  { %v5857_v37 = vsub.f32 %v5835_v55, %v5850_v1 }
0x60dd   :  { %v5853_v17 = vpop.xlane.xlu0 %5852 }
0x60de   :  { %v5858_v45 = vsub.f32 %v5838_v44, %v5853_v17  ;;  %v5860_v40 = vmul.f32 1.442695, %v5857_v37 }
0x60e0   :  { %v5862_v21 = vmul.f32 1.442695, %v5858_v45 }
0x60e1   :  { %v5856_v36 = vpop.xlane.xlu0 %5855 }
0x60e2   :  { %8048 = vpow2.f32 %v5862_v21  ;;  %v5859_v27 = vsub.f32 %v5843_v42, %v5856_v36 }
0x60e4   :  { %v5864_v63 = vmul.f32 1.442695, %v5859_v27 }
0x60e6   :  { %8050 = vpow2.f32 %v5864_v63 }
0x60e7   :  { %8052 = vpow2.f32 %v5860_v40 }
0x60ec   :  { %v8049_v26 = vpop.eup %8048 }
0x60ed   :  { %v5869_v18 = vsel %vm202_vm6, %v8049_v26, 0.0 }
0x60ee   :  { %5870 = vadd.xlane.f32.xlu0 %v5869_v18 }
0x60f0   :  { %v8051_v9 = vpop.eup %8050 }
0x60f1   :  { %v5872_v19 = vsel %vm209_vm7, %v8051_v9, 0.0  ;;  %v8053_v32 = vpop.eup %8052 }
0x60f2   :  { %5873 = vadd.xlane.f32.xlu1 %v5872_v19  ;;  %v5866_v34 = vsel %vm202_vm6, %v8053_v32, 0.0 }
0x60f6   :  { %5867 = vadd.xlane.f32.xlu1 %v5866_v34 }
0x6104   :  { %5885 = vrot.lane.b32.xlu0 %v5786_v39, %s8069_s28 }
0x6107   :  { %5887 = vrot.lane.b32.xlu1 %v5787_v58, %s8069_s28 }
0x610b   :  { %5970 = vrot.lane.b32.xlu1 %v9793_v20, %s8071_s17 }
0x617b   :  { %v5871_v55 = vpop.xlane.xlu0 %5870 }
0x617f   :  { %v5886_v44 = vpop.permute.xlu0 %5885  ;;  %v5874_v53 = vpop.xlane.xlu1 %5873 }
0x6180   :  { %7668 = vmatprep.subr.bf16.mxu1 %v5886_v44  ;;  %8054 = vrcp.f32 %v5874_v53 }
0x6181   :  { %7669 = vmatpush3.bf16.msra.mxu1 %v5886_v44  ;;  %8056 = vrcp.f32 %v5871_v55 }
0x6183   :  { %v5868_v42 = vpop.xlane.xlu1 %5867 }
0x6184   :  { %8058 = vrcp.f32 %v5868_v42 }
0x6187   :  { %v5888_v31 = vpop.permute.xlu1 %5887 }
0x6188   :  { %v5897_v52 = vsel %vm129_vm2, %v5888_v31, 0  ;;  %7755 = vmatprep.subr.msk.bf16.mxu1 %vm129_vm2, %v5888_v31  ;;  %vm3220_vm2 = vcmask 982016  }
0x6189   :  { %7671 = vmatpush3.bf16.msra.mxu1 %v5897_v52 }
0x618a   :  { %7676 = vmatprep.subr.bf16.mxu1 %v8064_v0  ;;  %v8055_v39 = vpop.eup %8054 }
0x618b   :  { %v8057_v58 = vpop.eup %8056  ;;  %v9868_v1 = vmul.f32 %v8055_v39, %v8051_v9  ;;  %v5971_v36 = vpop.permute.xlu1 %5970 }
0x618c   :  { %v9872_v45 = vmul.f32 %v8057_v58, %v8049_v26 }
0x618d   :  { %v5882_v21 = vpack.c.bf16 %v9868_v1, %v9868_v1 }
0x618e   :  { %v8059_v20 = vpop.eup %8058 }
0x618f   :  { %v9870_v17 = vmul.f32 %v8059_v20, %v8053_v32 }
0x6191   :  { %v5881_v37 = vpack.c.bf16 %v9872_v45, %v9870_v17 }
0x6193   :  { %7672 = vmatprep.mubr.msk.bf16.mxu1 %vm202_vm6, %v5881_v37 }
0x6194   :  { %7673 = vmatmul.mubr.msk.bf16.vlgmr.msra.gmra.mrb[124].mxu1 %vm202_vm6, %v5882_v21 }
0x6195   :  { %7680 = vmatprep.mubr.msk.bf16.mxu1 %vm8065_vm0, %v8064_v0  ;;  %7677 = vmatpush3.bf16.msra.mxu1 %v5971_v36 }
0x6196   :  { %7678 = vmatprep.subr.bf16.mxu1 %v8064_v0 }
0x6267   :  { %v7674_v27 = vpop.f32.mrb[124].mxu1 }
0x6268   :  { %v5933_v40 = vpop.f32.mrb[125].mxu1  ;;  %v5961_v26 = vrot.slane %v7674_v27, 7 }
0x6269   :  { %v7675_v63 = vpop.f32.mrb[126].mxu1  ;;  %v5949_v9 = vrot.slane %v5933_v40, 5 }
0x626a   :  { %v5936_v18 = vpop.f32.mrb[127].mxu1 }
0x626b   :  { %v5950_v19 = vrot.slane %v5936_v18, 5  ;;  %v5955_v32 = vrot.slane %v5936_v18, 2  ;;  %v5960_v34 = vrot.slane %v5936_v18, 7 }
0x626d   :  { %5956 = vrot.lane.b32.xlu1 %v5955_v32, %s8072_s18  ;;  %v5951_v55 = vsel %vm303_vm8, %v5949_v9, %v5950_v19  ;;  %v5962_v44 = vsel %vm315_vm9, %v5960_v34, %v5961_v26 }
0x626e   :  { %5952 = vrot.lane.b32.xlu0 %v5951_v55, %s8073_s19  ;;  %v6039_v55 = vrot.slane %v9814_v15, %v8267_v49  ;;  %v7869_v15 = vld [vmem:[%s10100_s7 + $0xf8] sm:$0xff]   ;;  %s8077_s19 = smov 60  }
0x6271   :  { %5972 = vrot.lane.b32.xlu1 %v9800_v30, %s8071_s17 }
0x6272   :  { %5963 = vrot.lane.b32.xlu0 %v5962_v44, %s8074_s20  ;;  %v9907_v44 = vld [vmem:[%s10101_s8 + $0x6] sm:$0x3]  ;;  %s8078_s20 = smov 80  }
0x6276   :  { %5976 = vrot.lane.b32.xlu0 %v9818_v54, %s8071_s17  ;;  %s8075_s17 = smov 20  }
0x62df   :  { %v5957_v53 = vpop.permute.xlu1 %5956 }
0x62e0   :  { %v5953_v42 = vpop.permute.xlu0 %5952 }
0x62e1   :  { %v5966_v31 = vsel %vm141_vm5, %v5933_v40, %v5953_v42  ;;  %v7877_v42 = vld [vmem:[%s10100_s7 + $0x138] sm:$0xff]  }
0x62e2   :  { %v5967_v39 = vsel %vm323_vm10, %v5966_v31, %v5957_v53  ;;  %v7868_v53 = vld [vmem:[%s10100_s7 + $0xf0] sm:$0xff]   ;;  %v6071_v31 = vrot.slane %v9907_v44, %v8167_v7 }
0x62e3   :  { %v5973_v52 = vpop.permute.xlu1 %5972  ;;  %7685 = vmatpush3.bf16.msra.mxu0 %v7868_v53 }
0x62e4   :  { %v5964_v58 = vpop.permute.xlu0 %5963  ;;  %7679 = vmatpush3.bf16.msra.mxu1 %v5973_v52  ;;  %7686 = vmatprep.subr.bf16.mxu0 %v8064_v0 }
0x62e5   :  { %v5968_v20 = vsel %vm325_vm11, %v5967_v39, %v5964_v58  ;;  %7692 = vmatprep.subr.bf16.mxu1 %v8064_v0 }
0x62e6   :  { %v5969_v37 = vpack.c.bf16 %v5968_v20, %v5968_v20 }
0x62e7   :  { %7687 = vmatpush3.bf16.msra.mxu0 %v7869_v15 }
0x62e8   :  { %7681 = vmatmul.mubr.msk.bf16.vlgmr.msra.gmra.mrb[128].mxu1 %vm70_vm1, %v5969_v37  ;;  %v5977_v30 = vpop.permute.xlu0 %5976  ;;  %7712 = vmatprep.subr.bf16.mxu0 %v8064_v0 }
0x62e9   :  { %7708 = vmatprep.mubr.msk.bf16.mxu1 %vm8065_vm0, %v8064_v0 }
0x63bb   :  { %v6016_v54 = vpop.f32.mrb[128].mxu1 }
0x63bc   :  { %v6017_v21 = vadd.f32 %v6016_v54, %v5977_v30  ;;  %v7682_v36 = vpop.f32.mrb[129].mxu1 }
0x63bd   :  { %v6019_v27 = vpop.f32.mrb[130].mxu1 }
0x63be   :  { %v6022_v40 = vadd.f32 %v6017_v21, %v9825_v41  ;;  %v7683_v63 = vpop.f32.mrb[131].mxu1  ;;  %v9912_v41 = vrot.slane %v9907_v44, %v8267_v49  ;;  %v7870_v49 = vld [vmem:[%s10100_s7 + $0x100] sm:$0xff]   ;;  %v7879_v44 = vld [vmem:[%s10105_s9 + $0x8] sm:$0xff]  }
0x63bf   :  { %7693 = vmatpush3.bf16.msra.mxu1 %v7870_v49 }
0x63c0   :  { %v6023_v26 = vsel %vm382_vm12, %v6022_v40, 0.0  ;;  %7694 = vmatprep.subr.bf16.mxu1 %v8064_v0 }
0x63c1   :  { %6024 = vadd.xlane.f32.xlu1 %v6023_v26 }
0x644e   :  { %v6025_v18 = vpop.xlane.xlu1 %6024 }
0x644f   :  { %v6026_v9 = vmul.f32 0.03125, %v6025_v18 }
0x6451   :  { %v6027_v19 = vsub.f32 %v6022_v40, %v6026_v9 }
0x6453   :  { %v6028_v32 = vmul.f32 %v6027_v19, %v6027_v19 }
0x6455   :  { %v6029_v34 = vsel %vm382_vm12, %v6028_v32, 0.0 }
0x6456   :  { %6030 = vadd.xlane.f32.xlu0 %v6029_v34 }
0x646c   :  { %6042 = vrot.lane.b32.xlu0 %v6039_v55, %s8069_s28 }
0x6470   :  { %6241 = vrot.lane.b32.xlu0 %v9912_v41, %s8070_s16  ;;  %s8076_s16 = smov 40  }
0x6474   :  { %3144 = vrot.lane.b32.xlu0 %v8386_v51, %s8075_s17  ;;  %v7872_v51 = vld [vmem:[%s10100_s7 + $0x110] sm:$0xff]  }
0x6478   :  { %3148 = vrot.lane.b32.xlu0 %v8384_v3, %s8075_s17  ;;  %v7871_v3 = vld [vmem:[%s10100_s7 + $0x108] sm:$0xff]  }
0x6479   :  { %7695 = vmatpush3.bf16.msra.mxu1 %v7871_v3 }
0x647a   :  { %7696 = vmatprep.subr.bf16.mxu1 %v8064_v0 }
0x647c   :  { %3158 = vrot.lane.b32.xlu0 %v8559_v25, %s8076_s16  ;;  %v7873_v25 = vld [vmem:[%s10100_s7 + $0x118] sm:$0xff]  }
0x647d   :  { %7697 = vmatpush3.bf16.msra.mxu1 %v7872_v51 }
0x647e   :  { %7698 = vmatprep.subr.bf16.mxu1 %v8064_v0 }
0x6480   :  { %3168 = vrot.lane.b32.xlu0 %v8852_v14, %s8077_s19 }
0x6481   :  { %7699 = vmatpush3.bf16.msra.mxu1 %v7873_v25 }
0x6482   :  { %7700 = vmatprep.subr.bf16.mxu1 %v8064_v0 }
0x6484   :  { %3172 = vrot.lane.b32.xlu0 %v8850_v10, %s8077_s19  ;;  %v7875_v10 = vld [vmem:[%s10100_s7 + $0x128] sm:$0xff]  }
0x6488   :  { %3182 = vrot.lane.b32.xlu0 %v8705_v48, %s8078_s20  ;;  %v7874_v48 = vld [vmem:[%s10100_s7 + $0x120] sm:$0xff]  }
0x6489   :  { %7701 = vmatpush3.bf16.msra.mxu1 %v7874_v48 }
0x648a   :  { %7702 = vmatprep.subr.bf16.mxu1 %v8064_v0 }
0x648c   :  { %3192 = vrot.lane.b32.xlu0 %v8963_v4, %s8079_s3 }
0x648d   :  { %7703 = vmatpush3.bf16.msra.mxu1 %v7875_v10 }
0x648e   :  { %7704 = vmatprep.subr.bf16.mxu1 %v8064_v0 }
0x6490   :  { %3196 = vrot.lane.b32.xlu0 %v8961_v62, %s8079_s3 }
0x6494   :  { %6312 = vrot.lane.b32.xlu0 %v9295_v50, %s8075_s17 }
0x6498   :  { %6322 = vrot.lane.b32.xlu0 %v9464_v29, %s8076_s16 }
0x649c   :  { %6326 = vrot.lane.b32.xlu0 %v9462_v8, %s8076_s16 }
0x64a0   :  { %6336 = vrot.lane.b32.xlu0 %v9761_v35, %s8077_s19 }
0x64a4   :  { %6346 = vrot.lane.b32.xlu0 %v9610_v47, %s8078_s20 }
0x64a8   :  { %6350 = vrot.lane.b32.xlu0 %v9608_v43, %s8078_s20 }
0x64ac   :  { %6360 = vrot.lane.b32.xlu0 %v9872_v45, %s8079_s3  ;;  %v7876_v45 = vld [vmem:[%s10100_s7 + $0x130] sm:$0xff]  }
0x64ad   :  { %7705 = vmatpush3.bf16.msra.mxu1 %v7876_v45 }
0x64ae   :  { %7706 = vmatprep.subr.bf16.mxu1 %v8064_v0 }
0x64b1   :  { %7707 = vmatpush3.bf16.msra.mxu1 %v7877_v42 }
0x64e3   :  { %v6031_v14 = vpop.xlane.xlu0 %6030 }
0x64e4   :  { %v6032_v62 = vmul.f32 0.03125, %v6031_v14 }
0x64e6   :  { %v6033_v4 = vadd.f32 1e-05, %v6032_v62 }
0x64e7   :  { %v6043_v43 = vpop.permute.xlu0 %6042 }
0x64e8   :  { %8060 = vrsqrt.f32 %v6033_v4 }
0x64f2   :  { %v8061_v50 = vpop.eup %8060 }
0x64f3   :  { %v6035_v8 = vmul.f32 %v8061_v50, %v6027_v19 }
0x64f5   :  { %v6040_v29 = vmul.f32 %v6039_v55, %v6035_v8  ;;  %v7878_v55 = vld [vmem:[%s10105_s9] sm:$0xff]  }
0x64f7   :  { %v6045_v47 = vadd.f32 %v6043_v43, %v6040_v29 }
0x64f9   :  { %v6067_v35 = vpack.c.bf16 %v6045_v47, %v6045_v47 }
0x64fb   :  { %7689 = vmatmul.mubr.msk.bf16.vlgmr.msra.gmra.mrb[136].mxu0 %vm70_vm1, %v6067_v35 }
0x64fc   :  { %7716 = vmatprep.mubr.msk.bf16.mxu0 %vm8065_vm0, %v8064_v0  ;;  %7713 = vmatpush3.bf16.msra.mxu0 %v7878_v55  ;;  %vm3212_vm0 = vcmask 654336  }
0x64fd   :  { %7714 = vmatprep.subr.bf16.mxu0 %v8064_v0  ;;  %v6242_v0 = vpop.permute.xlu0 %6241 }
0x6500   :  { %7715 = vmatpush3.bf16.msra.mxu0 %v7879_v44 }
0x65ce   :  { %v6121_v52 = vpop.f32.mrb[136].mxu0 }
0x65cf   :  { %v6122_v39 = vadd.f32 %v6121_v52, %v6071_v31  ;;  %v7690_v58 = vpop.f32.mrb[137].mxu0 }
0x65d0   :  { %v6124_v20 = vpop.f32.mrb[138].mxu0 }
0x65d1   :  { %v6127_v37 = vmax.f32 %v6122_v39, 0.0  ;;  %v7691_v30 = vpop.f32.mrb[139].mxu0 }
0x65d3   :  { %v6128_v54 = vpack.c.bf16 %v6127_v37, %v6127_v37 }
0x65d5   :  { %7709 = vmatmul.mubr.bf16.vlgmr.msra.gmra.mrb[132].mxu1 %v6128_v54 }
0x66a8   :  { %v6211_v21 = vpop.f32.mrb[132].mxu1 }
0x66a9   :  { %v6221_v36 = vadd.f32 %v9912_v41, %v6211_v21  ;;  %v7710_v27 = vpop.f32.mrb[133].mxu1 }
0x66aa   :  { %v6214_v40 = vpop.f32.mrb[134].mxu1 }
0x66ab   :  { %v6222_v63 = vadd.f32 %v6221_v36, %v6045_v47  ;;  %v7711_v26 = vpop.f32.mrb[135].mxu1 }
0x66ad   :  { %v6223_v18 = vsel %vm382_vm12, %v6222_v63, 0.0 }
0x66ae   :  { %6224 = vadd.xlane.f32.xlu1 %v6223_v18 }
0x673b   :  { %v6225_v9 = vpop.xlane.xlu1 %6224 }
0x673c   :  { %v6226_v7 = vmul.f32 0.03125, %v6225_v9 }
0x673e   :  { %v6227_v19 = vsub.f32 %v6222_v63, %v6226_v7 }
0x6740   :  { %v6228_v32 = vmul.f32 %v6227_v19, %v6227_v19 }
0x6742   :  { %v6229_v34 = vsel %vm382_vm12, %v6228_v32, 0.0 }
0x6743   :  { %6230 = vadd.xlane.f32.xlu1 %v6229_v34 }
0x6754   :  { %6237 = vrot.lane.b32.xlu1 %v9912_v41, %s8069_s28 }
0x6758   :  { %3146 = vrot.lane.b32.xlu1 %v8388_v6, %s8075_s17  ;;  %v3145_v6 = vpop.permute.xlu0 %3144 }
0x6759   :  { %v3201_v49 = vsel %vm202_vm6, %v8232_v12, %v3145_v6 }
0x675c   :  { %3156 = vrot.lane.b32.xlu1 %v8557_v24, %s8076_s16 }
0x6760   :  { %3160 = vrot.lane.b32.xlu1 %v8555_v23, %s8076_s16  ;;  %v3149_v23 = vpop.permute.xlu0 %3148 }
0x6761   :  { %v3203_v14 = vsel %vm202_vm6, %v8230_v11, %v3149_v23 }
0x6764   :  { %3170 = vrot.lane.b32.xlu1 %v8854_v57, %s8077_s19  ;;  %v3159_v24 = vpop.permute.xlu0 %3158 }
0x6768   :  { %3180 = vrot.lane.b32.xlu1 %v8703_v46, %s8078_s20 }
0x676c   :  { %3184 = vrot.lane.b32.xlu1 %v8701_v33, %s8078_s20  ;;  %v3169_v33 = vpop.permute.xlu0 %3168 }
0x6770   :  { %3194 = vrot.lane.b32.xlu1 %v8965_v28, %s8079_s3  ;;  %v3173_v46 = vpop.permute.xlu0 %3172 }
0x6774   :  { %6310 = vrot.lane.b32.xlu1 %v9293_v22, %s8075_s17 }
0x6778   :  { %6314 = vrot.lane.b32.xlu1 %v9291_v2, %s8075_s17  ;;  %v3183_v2 = vpop.permute.xlu0 %3182 }
0x677c   :  { %6324 = vrot.lane.b32.xlu1 %v9466_v56, %s8076_s16 }
0x6780   :  { %6334 = vrot.lane.b32.xlu1 %v9759_v59, %s8077_s19 }
0x6784   :  { %6338 = vrot.lane.b32.xlu1 %v9757_v60, %s8077_s19 }
0x6788   :  { %6348 = vrot.lane.b32.xlu1 %v9612_v16, %s8078_s20  ;;  %v3193_v16 = vpop.permute.xlu0 %3192 }
0x678c   :  { %6358 = vrot.lane.b32.xlu1 %v9870_v17, %s8079_s3  ;;  %v3197_v17 = vpop.permute.xlu0 %3196 }
0x6790   :  { %6362 = vrot.lane.b32.xlu1 %v9868_v1, %s8079_s3  ;;  %v6313_v25 = vpop.permute.xlu0 %6312 }
0x6791   :  { %v6368_v18 = vsel %vm202_vm6, %v9146_v5, %v6313_v25 }
0x6794   :  { %v6323_v43 = vpop.permute.xlu0 %6322 }
0x6798   :  { %v6327_v20 = vpop.permute.xlu0 %6326 }
0x679c   :  { %v6337_v21 = vpop.permute.xlu0 %6336 }
0x67a0   :  { %v6347_v40 = vpop.permute.xlu0 %6346 }
0x67a4   :  { %v6351_v26 = vpop.permute.xlu0 %6350 }
0x67a8   :  { %v6361_v44 = vpop.permute.xlu0 %6360 }
0x67d0   :  { %v6231_v57 = vpop.xlane.xlu1 %6230 }
0x67d1   :  { %v6232_v28 = vmul.f32 0.03125, %v6231_v57 }
0x67d3   :  { %v6233_v22 = vadd.f32 1e-05, %v6232_v28 }
0x67d4   :  { %v6238_v56 = vpop.permute.xlu1 %6237 }
0x67d5   :  { %8062 = vrsqrt.f32 %v6233_v22 }
0x67d8   :  { %v3147_v60 = vpop.permute.xlu1 %3146 }
0x67d9   :  { %v3202_v12 = vsel %vm202_vm6, %v8234_v13, %v3147_v60 }
0x67da   :  { %v3206_v11 = vsel %vm3204_vm13, %v3202_v12, %v3159_v24 }
0x67dc   :  { %v3157_v59 = vpop.permute.xlu1 %3156 }
0x67dd   :  { %v3205_v48 = vsel %vm3204_vm13, %v3201_v49, %v3157_v59 }
0x67de   :  { %v3209_v4 = vsel %vm3208_vm14, %v3205_v48, %v3169_v33 }
0x67df   :  { %v8063_v41 = vpop.eup %8062 }
0x67e0   :  { %v6235_v53 = vmul.f32 %v8063_v41, %v6227_v19  ;;  %v3161_v15 = vpop.permute.xlu1 %3160 }
0x67e1   :  { %v3207_v50 = vsel %vm3204_vm13, %v3203_v14, %v3161_v15 }
0x67e2   :  { %v6240_v1 = vmul.f32 %v6238_v56, %v6235_v53  ;;  %v3211_v45 = vsel %vm3208_vm14, %v3207_v50, %v3173_v46 }
0x67e4   :  { %v6244_v3 = vadd.f32 %v6242_v0, %v6240_v1  ;;  %v3171_v51 = vpop.permute.xlu1 %3170 }
0x67e5   :  { %v3210_v13 = vsel %vm3208_vm14, %v3206_v11, %v3171_v51 }
0x67e6   :  { %v6245_v10 = vpack.c.bf16 %v6244_v3, %v6244_v3  ;;  %v3214_v58 = vsel %vm3212_vm0, %v3210_v13, %v3183_v2 }
0x67e8   :  { %v3181_v62 = vpop.permute.xlu1 %3180  ;;  %7717 = vmatmul.mubr.msk.bf16.vlgmr.msra.gmra.mrb[140].mxu0 %vm70_vm1, %v6245_v10 }
0x67e9   :  { %v3213_v8 = vsel %vm3212_vm0, %v3209_v4, %v3181_v62 }
0x67ea   :  { %v3217_v29 = vsel %vm3216_vm15, %v3213_v8, %v3193_v16 }
0x67eb   :  { %v3221_v47 = vsel %vm3220_vm2, %v3217_v29, 0.0 }
0x67ec   :  { %3224 = vst [vmem:[%s10107_s11] sm:$0xff] %v3221_v47  ;;  %v3185_v35 = vpop.permute.xlu1 %3184 }
0x67ed   :  { %v3215_v42 = vsel %vm3212_vm0, %v3211_v45, %v3185_v35 }
0x67ee   :  { %v3219_v31 = vsel %vm3216_vm15, %v3215_v42, %v3197_v17 }
0x67ef   :  { %v3223_v52 = vsel %vm3220_vm2, %v3219_v31, 0.0 }
0x67f0   :  { %3226 = vst [vmem:[%s10107_s11 + $0x10] sm:$0xf] %v3223_v52  ;;  %v3195_v39 = vpop.permute.xlu1 %3194 }
0x67f1   :  { %v3218_v37 = vsel %vm3216_vm15, %v3214_v58, %v3195_v39 }
0x67f2   :  { %v3222_v30 = vsel %vm3220_vm2, %v3218_v37, 0.0 }
0x67f3   :  { %3225 = vst [vmem:[%s10107_s11 + $0x8] sm:$0xff] %v3222_v30 }
0x67f4   :  { %v6311_v54 = vpop.permute.xlu1 %6310 }
0x67f5   :  { %v6367_v7 = vsel %vm202_vm6, %v9144_v61, %v6311_v54 }
0x67f6   :  { %v6370_v32 = vsel %vm3204_vm13, %v6367_v7, %v6323_v43 }
0x67f8   :  { %v6315_v36 = vpop.permute.xlu1 %6314 }
0x67f9   :  { %v6369_v0 = vsel %vm202_vm6, %v9142_v38, %v6315_v36 }
0x67fa   :  { %v6372_v61 = vsel %vm3204_vm13, %v6369_v0, %v6327_v20 }
0x67fc   :  { %v6325_v27 = vpop.permute.xlu1 %6324 }
0x67fd   :  { %v6371_v19 = vsel %vm3204_vm13, %v6368_v18, %v6325_v27 }
0x67fe   :  { %v6374_v55 = vsel %vm3208_vm14, %v6371_v19, %v6337_v21 }
0x6800   :  { %v6335_v63 = vpop.permute.xlu1 %6334 }
0x6801   :  { %v6373_v6 = vsel %vm3208_vm14, %v6370_v32, %v6335_v63 }
0x6802   :  { %v6376_v46 = vsel %vm3212_vm0, %v6373_v6, %v6347_v40 }
0x6804   :  { %v6339_v9 = vpop.permute.xlu1 %6338 }
0x6805   :  { %v6375_v57 = vsel %vm3208_vm14, %v6372_v61, %v6339_v9 }
0x6806   :  { %v6378_v22 = vsel %vm3212_vm0, %v6375_v57, %v6351_v26 }
0x6808   :  { %v6349_v34 = vpop.permute.xlu1 %6348 }
0x6809   :  { %v6377_v23 = vsel %vm3212_vm0, %v6374_v55, %v6349_v34 }
0x680a   :  { %v6380_v5 = vsel %vm3216_vm15, %v6377_v23, %v6361_v44 }
0x680b   :  { %v6383_v24 = vsel %vm3220_vm2, %v6380_v5, 0.0 }
0x680c   :  { %6780 = vst [vmem:[%s10107_s11 + $0x20] sm:$0xff] %v6383_v24  ;;  %v6359_v33 = vpop.permute.xlu1 %6358 }
0x680d   :  { %v6379_v38 = vsel %vm3216_vm15, %v6376_v46, %v6359_v33 }
0x680e   :  { %v6382_v28 = vsel %vm3220_vm2, %v6379_v38, 0.0 }
0x680f   :  { %6779 = vst [vmem:[%s10107_s11 + $0x18] sm:$0xff] %v6382_v28 }
0x6810   :  { %v6363_v2 = vpop.permute.xlu1 %6362 }
0x6811   :  { %v6381_v56 = vsel %vm3216_vm15, %v6378_v22, %v6363_v2 }
0x6812   :  { %v6384_v60 = vsel %vm3220_vm2, %v6381_v56, 0.0 }
0x6813   :  { %6781 = vst [vmem:[%s10107_s11 + $0x28] sm:$0xf] %v6384_v60 }
0x68bb   :  { %v6299_v16 = vpop.f32.mrb[140].mxu0 }
0x68bc   :  { %6778 = vst [vmem:[%s10106_s10 + $0x8] sm:$0x1f] %v6299_v16  ;;  %v7718_v59 = vpop.f32.mrb[141].mxu0 }
0x68bd   :  { %v6302_v41 = vpop.f32.mrb[142].mxu0 }
0x68be   :  { %v7719_v17 = vpop.f32.mrb[143].mxu0 }

</bundles_post_ra>
